<compile_context>
chip_gen: v7x
topology: tpu7x:2x2x1
jax: 0.10.0
libtpu: 0.0.40
codegen_flags: <defaults>
</compile_context>

<pallas_src>
import numpy as np
import jax
import jax.numpy as jnp
from jax.experimental import pallas as pl
from jax.experimental.pallas import tpu as pltpu

IN_FEATURES = 17 * 3        # 51   (x is (B, 17, 3), output is (B, 17, 3))
CTX_FEATURES = 17 * 2 * 2   # 68   (c is (B, 17, 2, 2))
N_FEAT = 32                 # small n_feat (multiple of 8 for GroupNorm(8, .))
N_GROUPS = 8

# Packed input-slab row layout (features on sublanes, batch on lanes).
X_PAD = 64                  # x features padded 51 -> 64   (rows 0..63)
C_PAD = 72                  # c features padded 68 -> 72   (rows 64..135)
T_ROW = X_PAD + C_PAD       # 136  t
M_ROW = T_ROW + 1           # 137  context_mask
IN_ROWS = 144               # padded to a multiple of 8
OUT_PAD = 64                # output features padded 51 -> 64
BIAS_ROWS = 64              # bias slab rows (longest column is 64)

SUB_TILE = 128              # lane width of the vreg-resident working set
MAX_TILE = 1024             # max lanes per grid step

# Ordered layer tables shared by the host-side packer and the kernel.
SQ_NAMES = [
    "init_l2",
    "down1_rlb_l1", "down1_rlb_l2", "down1_lin",
    "down2_rlb_l1", "down2_rlb_l2", "down2_lin",
    "to_vec",
    "up0_lin",
    "up1_rlb1_l1", "up1_rlb1_l2", "up1_rlb2_l1", "up1_rlb2_l2",
    "up2_rlb1_l1", "up2_rlb1_l2", "up2_rlb2_l1", "up2_rlb2_l2",
    "out_l1",
    "gn_mix",
]
SQ = {n: i for i, n in enumerate(SQ_NAMES)}

BIAS_NAMES = [
    "init_l1", "init_l2",
    "down1_rlb_l1", "down1_rlb_l2", "down1_lin",
    "down2_rlb_l1", "down2_rlb_l2", "down2_lin",
    "to_vec",
    "t_l1_w", "t_l1", "ctx_l1", "emb_l2",
    "up0_lin", "up0_gn_g", "up0_gn_b",
    "up1_lin0", "up1_rlb1_l1", "up1_rlb1_l2", "up1_rlb2_l1", "up1_rlb2_l2",
    "up2_lin0", "up2_rlb1_l1", "up2_rlb1_l2", "up2_rlb2_l1", "up2_rlb2_l2",
    "out_l1", "out_gn_g", "out_gn_b", "out_l2",
]
BI = {n: i for i, n in enumerate(BIAS_NAMES)}


# ----------------------------------------------------------------------------
# Parameter construction (deterministic, synthetic).  BatchNorm1d (eval mode)
# is folded into the preceding Linear — an exact transformation.
# ----------------------------------------------------------------------------
def build_params(key, n_feat=N_FEAT):
    keys = iter(jax.random.split(key, 64))

    def linear(fan_in, fan_out):
        k1, k2 = jax.random.split(next(keys))
        bound = 1.0 / float(np.sqrt(fan_in))
        w = jax.random.uniform(k1, (fan_in, fan_out), jnp.float32, -bound, bound)
        b = jax.random.uniform(k2, (1, fan_out), jnp.float32, -bound, bound)
        return w, b

    def bn_folded_linear(fan_in, fan_out):
        w, b = linear(fan_in, fan_out)
        kg, kbe, kmu, kv = jax.random.split(next(keys), 4)
        g = 1.0 + 0.1 * jax.random.normal(kg, (fan_out,), jnp.float32)
        be = 0.1 * jax.random.normal(kbe, (fan_out,), jnp.float32)
        mu = 0.1 * jax.random.normal(kmu, (fan_out,), jnp.float32)
        var = 1.0 + 0.5 * jax.random.uniform(kv, (fan_out,), jnp.float32)
        s = g / jnp.sqrt(var + 1e-5)
        return w * s[None, :], b * s[None, :] + (be - mu * s)[None, :]

    p = {}

    def add_lin(name, fi, fo, bn=False):
        w, b = (bn_folded_linear if bn else linear)(fi, fo)
        p[name + "_w"] = w
        p[name + "_b"] = b

    def add_rlb(name, fi, fo):   # ResidualLinearBlock: two Linear+BN(folded)+GELU
        add_lin(name + "_l1", fi, fo, bn=True)
        add_lin(name + "_l2", fo, fo, bn=True)

    def add_gn(name):
        kg, kb = jax.random.split(next(keys))
        p[name + "_g"] = 1.0 + 0.1 * jax.random.normal(kg, (1, n_feat), jnp.float32)
        p[name + "_b"] = 0.1 * jax.random.normal(kb, (1, n_feat), jnp.float32)

    add_rlb("init", IN_FEATURES, n_feat)                       # init_conv (is_res)
    add_rlb("down1_rlb", n_feat, n_feat); add_lin("down1_lin", n_feat, n_feat)
    add_rlb("down2_rlb", n_feat, n_feat); add_lin("down2_lin", n_feat, n_feat)
    add_lin("to_vec", n_feat, n_feat)
    add_lin("t1_l1", 1, n_feat);              add_lin("t1_l2", n_feat, n_feat)
    add_lin("t2_l1", 1, n_feat);              add_lin("t2_l2", n_feat, n_feat)
    add_lin("ctx1_l1", CTX_FEATURES, n_feat); add_lin("ctx1_l2", n_feat, n_feat)
    add_lin("ctx2_l1", CTX_FEATURES, n_feat); add_lin("ctx2_l2", n_feat, n_feat)
    add_lin("up0_lin", n_feat, n_feat); add_gn("up0_gn")
    add_lin("up1_lin0", 2 * n_feat, n_feat)
    add_rlb("up1_rlb1", n_feat, n_feat); add_rlb("up1_rlb2", n_feat, n_feat)
    add_lin("up2_lin0", 2 * n_feat, n_feat)
    add_rlb("up2_rlb1", n_feat, n_feat); add_rlb("up2_rlb2", n_feat, n_feat)
    add_lin("out_l1", n_feat, n_feat); add_gn("out_gn")
    add_lin("out_l2", n_feat, IN_FEATURES)

    # Group-averaging matrix: lets the kernel compute GroupNorm statistics with
    # a matmul instead of an in-kernel reshape.  Symmetric, so transpose-free.
    gs = n_feat // N_GROUPS
    ids = np.arange(n_feat) // gs
    p["gn_mix"] = jnp.asarray((ids[:, None] == ids[None, :]).astype(np.float32) / gs)
    return p


# ----------------------------------------------------------------------------
# Host-side packing: ~60 tiny arrays -> 7 slabs, in the (out_features, in_*)
# transposed layout the kernel uses.  Constant-index BlockSpecs keep them
# resident across grid steps (fetched once).
# ----------------------------------------------------------------------------
def pack_params(params, n_feat=N_FEAT):
    def wt(name):                                   # transposed weight (out, in)
        return params[name + "_w"].T

    def bvec(name):
        return params[name + "_b"].reshape(-1)

    # Square 32x32 weights (+ GroupNorm mixing matrix): one (19, 32, 32) slab.
    sq = [params["gn_mix"] if n == "gn_mix" else wt(n) for n in SQ_NAMES]
    w_sq = jnp.stack(sq, axis=0)

    # init_conv first layer: (32, 64), input features zero-padded 51 -> 64.
    w_init1 = jnp.zeros((n_feat, X_PAD), jnp.float32)
    w_init1 = w_init1.at[:, :IN_FEATURES].set(wt("init_l1"))

    # Merged context first layer: (64, 72); rows 0-31 ctx1_l1, rows 32-63 ctx2_l1.
    w_ctx1 = jnp.zeros((2 * n_feat, C_PAD), jnp.float32)
    w_ctx1 = w_ctx1.at[:, :CTX_FEATURES].set(
        jnp.concatenate([wt("ctx1_l1"), wt("ctx2_l1")], axis=0))

    # Fused block-structured second embedding layer: (64, 128) acting on [ch; th]
    #   out rows  0..31 <- ch[0:32]  via ctx1_l2  and  th[0:32]  via t1_l2
    #   out rows 32..63 <- ch[32:64] via ctx2_l2  and  th[32:64] via t2_l2
    # so emb[0:32] = cemb1 + temb1 and emb[32:64] = cemb2 + temb2 in one matmul.
    w_emb2 = jnp.zeros((2 * n_feat, 4 * n_feat), jnp.float32)
    w_emb2 = w_emb2.at[0:n_feat, 0:n_feat].set(wt("ctx1_l2"))
    w_emb2 = w_emb2.at[n_feat:2 * n_feat, n_feat:2 * n_feat].set(wt("ctx2_l2"))
    w_emb2 = w_emb2.at[0:n_feat, 2 * n_feat:3 * n_feat].set(wt("t1_l2"))
    w_emb2 = w_emb2.at[n_feat:2 * n_feat, 3 * n_feat:4 * n_feat].set(wt("t2_l2"))

    # PoseUp lin0 weights in fused K=64 form (cols 0-31: act, cols 32-63: skip).
    w_up = jnp.stack([wt("up1_lin0"), wt("up2_lin0")], axis=0)    # (2, 32, 64)

    # Output layer: (64, 32), output rows zero-padded 51 -> 64.
    w_out2 = jnp.zeros((OUT_PAD, n_feat), jnp.float32)
    w_out2 = w_out2.at[:IN_FEATURES, :].set(wt("out_l2"))

    cols = []
    for n in BIAS_NAMES:
        if n == "t_l1_w":        # Linear(1, n_feat) weights for t1/t2 (a column)
            v = jnp.concatenate([params["t1_l1_w"].reshape(-1),
                                 params["t2_l1_w"].reshape(-1)])
        elif n == "t_l1":
            v = jnp.concatenate([bvec("t1_l1"), bvec("t2_l1")])
        elif n == "ctx_l1":
            v = jnp.concatenate([bvec("ctx1_l1"), bvec("ctx2_l1")])
        elif n == "emb_l2":      # merged second-layer embedding biases
            v = jnp.concatenate([bvec("ctx1_l2") + bvec("t1_l2"),
                                 bvec("ctx2_l2") + bvec("t2_l2")])
        elif n in ("up0_gn_g", "up0_gn_b", "out_gn_g", "out_gn_b"):
            v = params[n].reshape(-1)
        else:
            v = bvec(n)
        cols.append(jnp.zeros((BIAS_ROWS,), jnp.float32).at[: v.shape[0]].set(v))
    b_slab = jnp.stack(cols, axis=1)                # (64, 30)

    return (w_sq, w_init1, w_ctx1, w_emb2, w_up, w_out2, b_slab)


# ----------------------------------------------------------------------------
# Pallas kernel.  Layout: (features, batch) — features on sublanes, batch on
# the 128-lane axis.  The per-grid-step block spans `bt` lanes; compute runs
# over 128-lane sub-tiles via an unrolled fori_loop to keep vreg pressure low.
# ----------------------------------------------------------------------------
def unet_kernel(in_ref, wsq_ref, winit_ref, wctx_ref, wemb_ref, wup_ref,
                wout_ref, b_ref, o_ref):
    f32 = jnp.float32
    n_sub = in_ref.shape[1] // SUB_TILE             # static

    def w(name):
        return wsq_ref[SQ[name]]                    # (32, 32)

    def b(name, n=N_FEAT):
        j = BI[name]
        return b_ref[0:n, j:j + 1]                  # (n, 1) static slice

    def gelu(h):
        return jax.nn.gelu(h, approximate=True)

    def relu(h):
        return jnp.maximum(h, 0.0)

    def lin(h, name):
        return jnp.dot(w(name), h, preferred_element_type=f32) + b(name)

    def rlb(h, name):                               # ResidualLinearBlock, same ch
        h1 = gelu(lin(h, name + "_l1"))
        return gelu(lin(h1, name + "_l2"))

    def group_norm(h, name):
        gn = w("gn_mix")
        mean = jnp.dot(gn, h, preferred_element_type=f32)
        d = h - mean
        var = jnp.dot(gn, d * d, preferred_element_type=f32)
        hn = d * jax.lax.rsqrt(var + 1e-5)
        return hn * b(name + "_g") + b(name + "_b")

    def pose_up(a, skip, idx, name):                # concat on sublanes, one K=64 dot
        cat = jnp.concatenate([a, skip], axis=0)    # (64, SUB)
        h = (jnp.dot(wup_ref[idx], cat, preferred_element_type=f32)
             + b(name + "_lin0"))
        return rlb(rlb(h, name + "_rlb1"), name + "_rlb2")

    def body(j, carry):
        col = pl.multiple_of(j * SUB_TILE, SUB_TILE)
        cols = pl.ds(col, SUB_TILE)

        x = in_ref[0:X_PAD, cols]                   # (64, SUB)  zero-padded
        tm = in_ref[T_ROW:T_ROW + 8, cols]          # (8, SUB)   aligned tail load
        tval = tm[0:1, :]                           # (1, SUB)   t
        c = in_ref[X_PAD:X_PAD + C_PAD, cols] * (tm[1:2, :] - 1.0)   # c * (m - 1)

        # init_conv: residual block with in != out -> (x1 + x2) / 1.414
        x1 = gelu(jnp.dot(winit_ref[...], x, preferred_element_type=f32)
                  + b("init_l1"))
        x2 = gelu(lin(x1, "init_l2"))
        h0 = (x1 + x2) / 1.414

        d1 = lin(rlb(h0, "down1_rlb"), "down1_lin")
        d2 = lin(rlb(d1, "down2_rlb"), "down2_lin")
        hv = gelu(lin(d2, "to_vec"))

        # Context / time embeddings: merged first layers, then one fused
        # block-structured (64, 128) matmul produces cemb1+temb1 / cemb2+temb2.
        ch = gelu(jnp.dot(wctx_ref[...], c, preferred_element_type=f32)
                  + b("ctx_l1", 2 * N_FEAT))                        # (64, SUB)
        th = gelu(b("t_l1_w", 2 * N_FEAT) * tval + b("t_l1", 2 * N_FEAT))
        emb = (jnp.dot(wemb_ref[...], jnp.concatenate([ch, th], axis=0),
                       preferred_element_type=f32)
               + b("emb_l2", 2 * N_FEAT))                           # (64, SUB)

        u1 = relu(group_norm(lin(hv, "up0_lin"), "up0_gn")) + emb[0:N_FEAT, :]
        u2 = pose_up(u1, d2, 0, "up1") + emb[N_FEAT:2 * N_FEAT, :]
        u3 = pose_up(u2, d1, 1, "up2")

        oo = relu(group_norm(lin(u3, "out_l1"), "out_gn"))
        o = (jnp.dot(wout_ref[...], oo, preferred_element_type=f32)
             + b("out_l2", OUT_PAD))
        o_ref[:, cols] = o.astype(o_ref.dtype)      # (64, SUB) lane-dense store
        return carry

    jax.lax.fori_loop(0, n_sub, body, 0, unroll=True)


# ----------------------------------------------------------------------------
# Wrapper: single packed-input slab, tile selection, pallas_call.
# ----------------------------------------------------------------------------
def _pick_tile(batch):
    # At least 2 grid steps when the batch allows it (v7x has 2 TensorCores),
    # blocks up to MAX_TILE lanes, always a multiple of SUB_TILE.
    half = -(-batch // 2)
    bt = -(-half // SUB_TILE) * SUB_TILE
    return max(SUB_TILE, min(MAX_TILE, bt))


def pack_inputs(x, c, t, context_mask, Bp):
    B = x.shape[0]
    xf = x.reshape(B, -1).astype(jnp.float32)
    cf = c.reshape(B, -1).astype(jnp.float32)
    tf = t.reshape(B, 1).astype(jnp.float32)
    mf = context_mask.reshape(B, 1).astype(jnp.float32)

    def z(n):
        return jnp.zeros((B, n), jnp.float32)

    slab = jnp.concatenate(
        [xf, z(X_PAD - xf.shape[1]), cf, z(C_PAD - cf.shape[1]), tf, mf,
         z(IN_ROWS - X_PAD - C_PAD - 2)], axis=1)            # (B, 144)
    return jnp.pad(slab, ((0, Bp - B), (0, 0))).T            # (144, Bp)


def context_pose_unet(x, c, t, context_mask, packed):
    B = x.shape[0]
    bt = _pick_tile(B)
    Bp = -(-B // bt) * bt
    in_slab = pack_inputs(x, c, t, context_mask, Bp)
    w_sq, w_init1, w_ctx1, w_emb2, w_up, w_out2, b_slab = packed

    def const2(a):
        return pl.BlockSpec(a.shape, lambda i: (0, 0))

    in_specs = [
        pl.BlockSpec((IN_ROWS, bt), lambda i: (0, i)),        # only per-step DMA
        pl.BlockSpec(w_sq.shape, lambda i: (0, 0, 0)),
        const2(w_init1), const2(w_ctx1), const2(w_emb2),
        pl.BlockSpec(w_up.shape, lambda i: (0, 0, 0)),
        const2(w_out2), const2(b_slab),
    ]

    macs = (N_FEAT * X_PAD + N_FEAT * N_FEAT                  # init
            + 2 * 3 * N_FEAT * N_FEAT                         # down1, down2
            + N_FEAT * N_FEAT                                 # to_vec
            + 2 * N_FEAT * C_PAD + 2 * N_FEAT * 4 * N_FEAT    # embeddings
            + N_FEAT * N_FEAT + 4 * N_FEAT * N_FEAT           # up0 + 2 GroupNorms
            + 2 * (N_FEAT * 2 * N_FEAT + 4 * N_FEAT * N_FEAT)  # up1, up2
            + N_FEAT * N_FEAT + OUT_PAD * N_FEAT)             # out
    weight_bytes = 4 * sum(int(np.prod(a.shape)) for a in packed)
    cost = pl.CostEstimate(
        flops=2 * macs * Bp,
        transcendentals=700 * Bp,
        bytes_accessed=4 * (IN_ROWS + OUT_PAD) * Bp + weight_bytes)

    outT = pl.pallas_call(
        unet_kernel,
        out_shape=jax.ShapeDtypeStruct((OUT_PAD, Bp), jnp.float32),
        grid=(Bp // bt,),
        in_specs=in_specs,
        out_specs=pl.BlockSpec((OUT_PAD, bt), lambda i: (0, i)),
        compiler_params=pltpu.CompilerParams(dimension_semantics=("parallel",)),
        cost_estimate=cost,
    )(in_slab, w_sq, w_init1, w_ctx1, w_emb2, w_up, w_out2, b_slab)

    return outT[:IN_FEATURES, :B].T.reshape(B, 17, 3)


# ----------------------------------------------------------------------------
# Pure-JAX reference (same folded params, original (batch, feature) layout).
# ----------------------------------------------------------------------------
def reference_forward(x, c, t, context_mask, params):
    B = x.shape[0]
    xf = x.reshape(B, -1).astype(jnp.float32)
    cf = c.reshape(B, -1).astype(jnp.float32)
    tf = t.reshape(B, 1).astype(jnp.float32)
    mf = context_mask.reshape(B, 1).astype(jnp.float32)

    def lin(h, n): return h @ params[n + "_w"] + params[n + "_b"]
    def gelu(h): return jax.nn.gelu(h, approximate=True)
    def relu(h): return jnp.maximum(h, 0.0)

    def rlb(h, n, is_res, same):
        x1 = gelu(lin(h, n + "_l1")); x2 = gelu(lin(x1, n + "_l2"))
        if is_res:
            return ((h + x2) if same else (x1 + x2)) / 1.414
        return x2

    def gn(h, n):
        Bn, C = h.shape
        hr = h.reshape(Bn, N_GROUPS, C // N_GROUPS)
        m = hr.mean(-1, keepdims=True); v = hr.var(-1, keepdims=True)
        hn = ((hr - m) / jnp.sqrt(v + 1e-5)).reshape(Bn, C)
        return hn * params[n + "_g"] + params[n + "_b"]

    def embed(inp, n): return lin(gelu(lin(inp, n + "_l1")), n + "_l2")
    def tembed(tv, n):
        return lin(gelu(tv * params[n + "_l1_w"] + params[n + "_l1_b"]), n + "_l2")
    def pose_up(a, skip, n):
        h = lin(jnp.concatenate([a, skip], axis=1), n + "_lin0")
        return rlb(rlb(h, n + "_rlb1", False, True), n + "_rlb2", False, True)

    cc = cf * (-1.0 * (1.0 - mf))
    h0 = rlb(xf, "init", True, False)
    d1 = lin(rlb(h0, "down1_rlb", False, True), "down1_lin")
    d2 = lin(rlb(d1, "down2_rlb", False, True), "down2_lin")
    hv = gelu(lin(d2, "to_vec"))
    cemb1, cemb2 = embed(cc, "ctx1"), embed(cc, "ctx2")
    temb1, temb2 = tembed(tf, "t1"), tembed(tf, "t2")
    u1 = relu(gn(lin(hv, "up0_lin"), "up0_gn")) + cemb1 + temb1
    u2 = pose_up(u1, d2, "up1") + cemb2 + temb2
    u3 = pose_up(u2, d1, "up2")
    o = lin(relu(gn(lin(u3, "out_l1"), "out_gn")), "out_l2")
    return o.reshape(B, 17, 3)


if __name__ == "__main__":
    key = jax.random.PRNGKey(0)
    kp, kx, kc, kt, km = jax.random.split(key, 5)
    params = build_params(kp)
    packed = pack_params(params)

    # B=384 -> batch tile 256, 2-step grid (v7x megacore), 2 lane sub-tiles per
    # step, and a ragged tail that exercises the batch padding path.
    B = 384
    x = jax.random.normal(kx, (B, 17, 3), jnp.float32)
    c = jax.random.normal(kc, (B, 17, 2, 2), jnp.float32)
    t = jax.random.uniform(kt, (B,), jnp.float32)
    context_mask = (jax.random.uniform(km, (B,)) > 0.5).astype(jnp.float32)

    out = jax.block_until_ready(context_pose_unet(x, c, t, context_mask, packed))
    assert out.shape == (B, 17, 3)

    ref = reference_forward(x, c, t, context_mask, params)
    np.testing.assert_allclose(np.asarray(out), np.asarray(ref), rtol=2e-3, atol=2e-3)
    print("KERNEL_OK")
</pallas_src>

<mosaic_0001>
module attributes {stable_mosaic.version = 11 : i64} {
  func.func @unet_kernel(%arg0: i32, %arg1: memref<144x256xf32, #tpu.memory_space<vmem>>, %arg2: memref<19x32x32xf32, #tpu.memory_space<vmem>>, %arg3: memref<32x64xf32, #tpu.memory_space<vmem>>, %arg4: memref<64x72xf32, #tpu.memory_space<vmem>>, %arg5: memref<64x128xf32, #tpu.memory_space<vmem>>, %arg6: memref<2x32x64xf32, #tpu.memory_space<vmem>>, %arg7: memref<64x32xf32, #tpu.memory_space<vmem>>, %arg8: memref<64x30xf32, #tpu.memory_space<vmem>>, %arg9: memref<64x256xf32, #tpu.memory_space<vmem>>) attributes {dimension_semantics = [#tpu.dimension_semantics<parallel>], iteration_bounds = array<i64: 2>, scalar_prefetch = 0 : i64, scratch_operands = 0 : i64, tpu.core_type = #tpu.core_type<tc>, window_params = [{transform_indices = @transform_0, window_bounds = array<i64: 144, 256>}, {pipeline_mode = #tpu.pipeline_mode<synchronous>, transform_indices = @transform_1, window_bounds = array<i64: 19, 32, 32>}, {pipeline_mode = #tpu.pipeline_mode<synchronous>, transform_indices = @transform_2, window_bounds = array<i64: 32, 64>}, {pipeline_mode = #tpu.pipeline_mode<synchronous>, transform_indices = @transform_3, window_bounds = array<i64: 64, 72>}, {pipeline_mode = #tpu.pipeline_mode<synchronous>, transform_indices = @transform_4, window_bounds = array<i64: 64, 128>}, {pipeline_mode = #tpu.pipeline_mode<synchronous>, transform_indices = @transform_5, window_bounds = array<i64: 2, 32, 64>}, {pipeline_mode = #tpu.pipeline_mode<synchronous>, transform_indices = @transform_6, window_bounds = array<i64: 64, 32>}, {pipeline_mode = #tpu.pipeline_mode<synchronous>, transform_indices = @transform_7, window_bounds = array<i64: 64, 30>}, {transform_indices = @transform_8, window_bounds = array<i64: 64, 256>}]} {
    %c0_i32 = arith.constant 0 : i32
    %c128_i32 = arith.constant 128 : i32
    %0 = arith.muli %c0_i32, %c128_i32 : i32
    %1 = tpu.assume_multiple %0, 128 : i32
    %c0 = arith.constant 0 : index
    %2 = arith.index_cast %1 : i32 to index
    %3 = vector.load %arg1[%c0, %2] : memref<144x256xf32, #tpu.memory_space<vmem>>, vector<64x128xf32>
    %c136 = arith.constant 136 : index
    %4 = arith.index_cast %1 : i32 to index
    %5 = vector.load %arg1[%c136, %4] : memref<144x256xf32, #tpu.memory_space<vmem>>, vector<8x128xf32>
    %6 = vector.extract_strided_slice %5 {offsets = [0, 0], sizes = [1, 128], strides = [1, 1]} : vector<8x128xf32> to vector<1x128xf32>
    %c64 = arith.constant 64 : index
    %7 = arith.index_cast %1 : i32 to index
    %8 = vector.load %arg1[%c64, %7] : memref<144x256xf32, #tpu.memory_space<vmem>>, vector<72x128xf32>
    %9 = vector.extract_strided_slice %5 {offsets = [1, 0], sizes = [1, 128], strides = [1, 1]} : vector<8x128xf32> to vector<1x128xf32>
    %cst = arith.constant 1.000000e+00 : f32
    %10 = vector.broadcast %cst : f32 to vector<1x128xf32>
    %11 = arith.subf %9, %10 : vector<1x128xf32>
    %12 = vector.broadcast %11 : vector<1x128xf32> to vector<72x128xf32>
    %13 = arith.mulf %8, %12 : vector<72x128xf32>
    %c0_0 = arith.constant 0 : index
    %c0_1 = arith.constant 0 : index
    %14 = vector.load %arg3[%c0_0, %c0_1] : memref<32x64xf32, #tpu.memory_space<vmem>>, vector<32x64xf32>
    %cst_2 = arith.constant dense<0.000000e+00> : vector<32x128xf32>
    %15 = tpu.matmul %14, %3, %cst_2 {dimension_numbers = #tpu.dot_dimension_numbers<[1], [0], [0], [1], [0, 0, 1, 1], [], []>} : vector<32x64xf32>, vector<64x128xf32>, vector<32x128xf32> -> vector<32x128xf32>
    %c0_3 = arith.constant 0 : index
    %c0_4 = arith.constant 0 : index
    %16 = vector.load %arg8[%c0_3, %c0_4] : memref<64x30xf32, #tpu.memory_space<vmem>>, vector<32x1xf32>
    %17 = vector.broadcast %16 : vector<32x1xf32> to vector<32x128xf32>
    %18 = arith.addf %15, %17 : vector<32x128xf32>
    %19 = arith.mulf %18, %18 : vector<32x128xf32>
    %20 = arith.mulf %18, %19 : vector<32x128xf32>
    %cst_5 = arith.constant 4.471500e-02 : f32
    %21 = vector.broadcast %cst_5 : f32 to vector<32x128xf32>
    %22 = arith.mulf %21, %20 : vector<32x128xf32>
    %23 = arith.addf %18, %22 : vector<32x128xf32>
    %cst_6 = arith.constant 0.797884583 : f32
    %24 = vector.broadcast %cst_6 : f32 to vector<32x128xf32>
    %25 = arith.mulf %24, %23 : vector<32x128xf32>
    %26 = math.tanh %25 : vector<32x128xf32>
    %cst_7 = arith.constant 1.000000e+00 : f32
    %27 = vector.broadcast %cst_7 : f32 to vector<32x128xf32>
    %28 = arith.addf %27, %26 : vector<32x128xf32>
    %cst_8 = arith.constant 5.000000e-01 : f32
    %29 = vector.broadcast %cst_8 : f32 to vector<32x128xf32>
    %30 = arith.mulf %29, %28 : vector<32x128xf32>
    %31 = arith.mulf %18, %30 : vector<32x128xf32>
    %c0_9 = arith.constant 0 : index
    %c0_10 = arith.constant 0 : index
    %c0_11 = arith.constant 0 : index
    %32 = vector.load %arg2[%c0_9, %c0_10, %c0_11] : memref<19x32x32xf32, #tpu.memory_space<vmem>>, vector<1x32x32xf32>
    %33 = vector.shape_cast %32 : vector<1x32x32xf32> to vector<32x32xf32>
    %cst_12 = arith.constant dense<0.000000e+00> : vector<32x128xf32>
    %34 = tpu.matmul %33, %31, %cst_12 {dimension_numbers = #tpu.dot_dimension_numbers<[1], [0], [0], [1], [0, 0, 1, 1], [], []>} : vector<32x32xf32>, vector<32x128xf32>, vector<32x128xf32> -> vector<32x128xf32>
    %c0_13 = arith.constant 0 : index
    %c1 = arith.constant 1 : index
    %35 = vector.load %arg8[%c0_13, %c1] : memref<64x30xf32, #tpu.memory_space<vmem>>, vector<32x1xf32>
    %36 = vector.broadcast %35 : vector<32x1xf32> to vector<32x128xf32>
    %37 = arith.addf %34, %36 : vector<32x128xf32>
    %38 = arith.mulf %37, %37 : vector<32x128xf32>
    %39 = arith.mulf %37, %38 : vector<32x128xf32>
    %cst_14 = arith.constant 4.471500e-02 : f32
    %40 = vector.broadcast %cst_14 : f32 to vector<32x128xf32>
    %41 = arith.mulf %40, %39 : vector<32x128xf32>
    %42 = arith.addf %37, %41 : vector<32x128xf32>
    %cst_15 = arith.constant 0.797884583 : f32
    %43 = vector.broadcast %cst_15 : f32 to vector<32x128xf32>
    %44 = arith.mulf %43, %42 : vector<32x128xf32>
    %45 = math.tanh %44 : vector<32x128xf32>
    %cst_16 = arith.constant 1.000000e+00 : f32
    %46 = vector.broadcast %cst_16 : f32 to vector<32x128xf32>
    %47 = arith.addf %46, %45 : vector<32x128xf32>
    %cst_17 = arith.constant 5.000000e-01 : f32
    %48 = vector.broadcast %cst_17 : f32 to vector<32x128xf32>
    %49 = arith.mulf %48, %47 : vector<32x128xf32>
    %50 = arith.mulf %37, %49 : vector<32x128xf32>
    %51 = arith.addf %31, %50 : vector<32x128xf32>
    %cst_18 = arith.constant 1.414000e+00 : f32
    %52 = vector.broadcast %cst_18 : f32 to vector<32x128xf32>
    %53 = arith.divf %51, %52 : vector<32x128xf32>
    %c1_19 = arith.constant 1 : index
    %c0_20 = arith.constant 0 : index
    %c0_21 = arith.constant 0 : index
    %54 = vector.load %arg2[%c1_19, %c0_20, %c0_21] : memref<19x32x32xf32, #tpu.memory_space<vmem>>, vector<1x32x32xf32>
    %55 = vector.shape_cast %54 : vector<1x32x32xf32> to vector<32x32xf32>
    %cst_22 = arith.constant dense<0.000000e+00> : vector<32x128xf32>
    %56 = tpu.matmul %55, %53, %cst_22 {dimension_numbers = #tpu.dot_dimension_numbers<[1], [0], [0], [1], [0, 0, 1, 1], [], []>} : vector<32x32xf32>, vector<32x128xf32>, vector<32x128xf32> -> vector<32x128xf32>
    %c0_23 = arith.constant 0 : index
    %c2 = arith.constant 2 : index
    %57 = vector.load %arg8[%c0_23, %c2] : memref<64x30xf32, #tpu.memory_space<vmem>>, vector<32x1xf32>
    %58 = vector.broadcast %57 : vector<32x1xf32> to vector<32x128xf32>
    %59 = arith.addf %56, %58 : vector<32x128xf32>
    %60 = arith.mulf %59, %59 : vector<32x128xf32>
    %61 = arith.mulf %59, %60 : vector<32x128xf32>
    %cst_24 = arith.constant 4.471500e-02 : f32
    %62 = vector.broadcast %cst_24 : f32 to vector<32x128xf32>
    %63 = arith.mulf %62, %61 : vector<32x128xf32>
    %64 = arith.addf %59, %63 : vector<32x128xf32>
    %cst_25 = arith.constant 0.797884583 : f32
    %65 = vector.broadcast %cst_25 : f32 to vector<32x128xf32>
    %66 = arith.mulf %65, %64 : vector<32x128xf32>
    %67 = math.tanh %66 : vector<32x128xf32>
    %cst_26 = arith.constant 1.000000e+00 : f32
    %68 = vector.broadcast %cst_26 : f32 to vector<32x128xf32>
    %69 = arith.addf %68, %67 : vector<32x128xf32>
    %cst_27 = arith.constant 5.000000e-01 : f32
    %70 = vector.broadcast %cst_27 : f32 to vector<32x128xf32>
    %71 = arith.mulf %70, %69 : vector<32x128xf32>
    %72 = arith.mulf %59, %71 : vector<32x128xf32>
    %c2_28 = arith.constant 2 : index
    %c0_29 = arith.constant 0 : index
    %c0_30 = arith.constant 0 : index
    %73 = vector.load %arg2[%c2_28, %c0_29, %c0_30] : memref<19x32x32xf32, #tpu.memory_space<vmem>>, vector<1x32x32xf32>
    %74 = vector.shape_cast %73 : vector<1x32x32xf32> to vector<32x32xf32>
    %cst_31 = arith.constant dense<0.000000e+00> : vector<32x128xf32>
    %75 = tpu.matmul %74, %72, %cst_31 {dimension_numbers = #tpu.dot_dimension_numbers<[1], [0], [0], [1], [0, 0, 1, 1], [], []>} : vector<32x32xf32>, vector<32x128xf32>, vector<32x128xf32> -> vector<32x128xf32>
    %c0_32 = arith.constant 0 : index
    %c3 = arith.constant 3 : index
    %76 = vector.load %arg8[%c0_32, %c3] : memref<64x30xf32, #tpu.memory_space<vmem>>, vector<32x1xf32>
    %77 = vector.broadcast %76 : vector<32x1xf32> to vector<32x128xf32>
    %78 = arith.addf %75, %77 : vector<32x128xf32>
    %79 = arith.mulf %78, %78 : vector<32x128xf32>
    %80 = arith.mulf %78, %79 : vector<32x128xf32>
    %cst_33 = arith.constant 4.471500e-02 : f32
    %81 = vector.broadcast %cst_33 : f32 to vector<32x128xf32>
    %82 = arith.mulf %81, %80 : vector<32x128xf32>
    %83 = arith.addf %78, %82 : vector<32x128xf32>
    %cst_34 = arith.constant 0.797884583 : f32
    %84 = vector.broadcast %cst_34 : f32 to vector<32x128xf32>
    %85 = arith.mulf %84, %83 : vector<32x128xf32>
    %86 = math.tanh %85 : vector<32x128xf32>
    %cst_35 = arith.constant 1.000000e+00 : f32
    %87 = vector.broadcast %cst_35 : f32 to vector<32x128xf32>
    %88 = arith.addf %87, %86 : vector<32x128xf32>
    %cst_36 = arith.constant 5.000000e-01 : f32
    %89 = vector.broadcast %cst_36 : f32 to vector<32x128xf32>
    %90 = arith.mulf %89, %88 : vector<32x128xf32>
    %91 = arith.mulf %78, %90 : vector<32x128xf32>
    %c3_37 = arith.constant 3 : index
    %c0_38 = arith.constant 0 : index
    %c0_39 = arith.constant 0 : index
    %92 = vector.load %arg2[%c3_37, %c0_38, %c0_39] : memref<19x32x32xf32, #tpu.memory_space<vmem>>, vector<1x32x32xf32>
    %93 = vector.shape_cast %92 : vector<1x32x32xf32> to vector<32x32xf32>
    %cst_40 = arith.constant dense<0.000000e+00> : vector<32x128xf32>
    %94 = tpu.matmul %93, %91, %cst_40 {dimension_numbers = #tpu.dot_dimension_numbers<[1], [0], [0], [1], [0, 0, 1, 1], [], []>} : vector<32x32xf32>, vector<32x128xf32>, vector<32x128xf32> -> vector<32x128xf32>
    %c0_41 = arith.constant 0 : index
    %c4 = arith.constant 4 : index
    %95 = vector.load %arg8[%c0_41, %c4] : memref<64x30xf32, #tpu.memory_space<vmem>>, vector<32x1xf32>
    %96 = vector.broadcast %95 : vector<32x1xf32> to vector<32x128xf32>
    %97 = arith.addf %94, %96 : vector<32x128xf32>
    %c4_42 = arith.constant 4 : index
    %c0_43 = arith.constant 0 : index
    %c0_44 = arith.constant 0 : index
    %98 = vector.load %arg2[%c4_42, %c0_43, %c0_44] : memref<19x32x32xf32, #tpu.memory_space<vmem>>, vector<1x32x32xf32>
    %99 = vector.shape_cast %98 : vector<1x32x32xf32> to vector<32x32xf32>
    %cst_45 = arith.constant dense<0.000000e+00> : vector<32x128xf32>
    %100 = tpu.matmul %99, %97, %cst_45 {dimension_numbers = #tpu.dot_dimension_numbers<[1], [0], [0], [1], [0, 0, 1, 1], [], []>} : vector<32x32xf32>, vector<32x128xf32>, vector<32x128xf32> -> vector<32x128xf32>
    %c0_46 = arith.constant 0 : index
    %c5 = arith.constant 5 : index
    %101 = vector.load %arg8[%c0_46, %c5] : memref<64x30xf32, #tpu.memory_space<vmem>>, vector<32x1xf32>
    %102 = vector.broadcast %101 : vector<32x1xf32> to vector<32x128xf32>
    %103 = arith.addf %100, %102 : vector<32x128xf32>
    %104 = arith.mulf %103, %103 : vector<32x128xf32>
    %105 = arith.mulf %103, %104 : vector<32x128xf32>
    %cst_47 = arith.constant 4.471500e-02 : f32
    %106 = vector.broadcast %cst_47 : f32 to vector<32x128xf32>
    %107 = arith.mulf %106, %105 : vector<32x128xf32>
    %108 = arith.addf %103, %107 : vector<32x128xf32>
    %cst_48 = arith.constant 0.797884583 : f32
    %109 = vector.broadcast %cst_48 : f32 to vector<32x128xf32>
    %110 = arith.mulf %109, %108 : vector<32x128xf32>
    %111 = math.tanh %110 : vector<32x128xf32>
    %cst_49 = arith.constant 1.000000e+00 : f32
    %112 = vector.broadcast %cst_49 : f32 to vector<32x128xf32>
    %113 = arith.addf %112, %111 : vector<32x128xf32>
    %cst_50 = arith.constant 5.000000e-01 : f32
    %114 = vector.broadcast %cst_50 : f32 to vector<32x128xf32>
    %115 = arith.mulf %114, %113 : vector<32x128xf32>
    %116 = arith.mulf %103, %115 : vector<32x128xf32>
    %c5_51 = arith.constant 5 : index
    %c0_52 = arith.constant 0 : index
    %c0_53 = arith.constant 0 : index
    %117 = vector.load %arg2[%c5_51, %c0_52, %c0_53] : memref<19x32x32xf32, #tpu.memory_space<vmem>>, vector<1x32x32xf32>
    %118 = vector.shape_cast %117 : vector<1x32x32xf32> to vector<32x32xf32>
    %cst_54 = arith.constant dense<0.000000e+00> : vector<32x128xf32>
    %119 = tpu.matmul %118, %116, %cst_54 {dimension_numbers = #tpu.dot_dimension_numbers<[1], [0], [0], [1], [0, 0, 1, 1], [], []>} : vector<32x32xf32>, vector<32x128xf32>, vector<32x128xf32> -> vector<32x128xf32>
    %c0_55 = arith.constant 0 : index
    %c6 = arith.constant 6 : index
    %120 = vector.load %arg8[%c0_55, %c6] : memref<64x30xf32, #tpu.memory_space<vmem>>, vector<32x1xf32>
    %121 = vector.broadcast %120 : vector<32x1xf32> to vector<32x128xf32>
    %122 = arith.addf %119, %121 : vector<32x128xf32>
    %123 = arith.mulf %122, %122 : vector<32x128xf32>
    %124 = arith.mulf %122, %123 : vector<32x128xf32>
    %cst_56 = arith.constant 4.471500e-02 : f32
    %125 = vector.broadcast %cst_56 : f32 to vector<32x128xf32>
    %126 = arith.mulf %125, %124 : vector<32x128xf32>
    %127 = arith.addf %122, %126 : vector<32x128xf32>
    %cst_57 = arith.constant 0.797884583 : f32
    %128 = vector.broadcast %cst_57 : f32 to vector<32x128xf32>
    %129 = arith.mulf %128, %127 : vector<32x128xf32>
    %130 = math.tanh %129 : vector<32x128xf32>
    %cst_58 = arith.constant 1.000000e+00 : f32
    %131 = vector.broadcast %cst_58 : f32 to vector<32x128xf32>
    %132 = arith.addf %131, %130 : vector<32x128xf32>
    %cst_59 = arith.constant 5.000000e-01 : f32
    %133 = vector.broadcast %cst_59 : f32 to vector<32x128xf32>
    %134 = arith.mulf %133, %132 : vector<32x128xf32>
    %135 = arith.mulf %122, %134 : vector<32x128xf32>
    %c6_60 = arith.constant 6 : index
    %c0_61 = arith.constant 0 : index
    %c0_62 = arith.constant 0 : index
    %136 = vector.load %arg2[%c6_60, %c0_61, %c0_62] : memref<19x32x32xf32, #tpu.memory_space<vmem>>, vector<1x32x32xf32>
    %137 = vector.shape_cast %136 : vector<1x32x32xf32> to vector<32x32xf32>
    %cst_63 = arith.constant dense<0.000000e+00> : vector<32x128xf32>
    %138 = tpu.matmul %137, %135, %cst_63 {dimension_numbers = #tpu.dot_dimension_numbers<[1], [0], [0], [1], [0, 0, 1, 1], [], []>} : vector<32x32xf32>, vector<32x128xf32>, vector<32x128xf32> -> vector<32x128xf32>
    %c0_64 = arith.constant 0 : index
    %c7 = arith.constant 7 : index
    %139 = vector.load %arg8[%c0_64, %c7] : memref<64x30xf32, #tpu.memory_space<vmem>>, vector<32x1xf32>
    %140 = vector.broadcast %139 : vector<32x1xf32> to vector<32x128xf32>
    %141 = arith.addf %138, %140 : vector<32x128xf32>
    %c7_65 = arith.constant 7 : index
    %c0_66 = arith.constant 0 : index
    %c0_67 = arith.constant 0 : index
    %142 = vector.load %arg2[%c7_65, %c0_66, %c0_67] : memref<19x32x32xf32, #tpu.memory_space<vmem>>, vector<1x32x32xf32>
    %143 = vector.shape_cast %142 : vector<1x32x32xf32> to vector<32x32xf32>
    %cst_68 = arith.constant dense<0.000000e+00> : vector<32x128xf32>
    %144 = tpu.matmul %143, %141, %cst_68 {dimension_numbers = #tpu.dot_dimension_numbers<[1], [0], [0], [1], [0, 0, 1, 1], [], []>} : vector<32x32xf32>, vector<32x128xf32>, vector<32x128xf32> -> vector<32x128xf32>
    %c0_69 = arith.constant 0 : index
    %c8 = arith.constant 8 : index
    %145 = vector.load %arg8[%c0_69, %c8] : memref<64x30xf32, #tpu.memory_space<vmem>>, vector<32x1xf32>
    %146 = vector.broadcast %145 : vector<32x1xf32> to vector<32x128xf32>
    %147 = arith.addf %144, %146 : vector<32x128xf32>
    %148 = arith.mulf %147, %147 : vector<32x128xf32>
    %149 = arith.mulf %147, %148 : vector<32x128xf32>
    %cst_70 = arith.constant 4.471500e-02 : f32
    %150 = vector.broadcast %cst_70 : f32 to vector<32x128xf32>
    %151 = arith.mulf %150, %149 : vector<32x128xf32>
    %152 = arith.addf %147, %151 : vector<32x128xf32>
    %cst_71 = arith.constant 0.797884583 : f32
    %153 = vector.broadcast %cst_71 : f32 to vector<32x128xf32>
    %154 = arith.mulf %153, %152 : vector<32x128xf32>
    %155 = math.tanh %154 : vector<32x128xf32>
    %cst_72 = arith.constant 1.000000e+00 : f32
    %156 = vector.broadcast %cst_72 : f32 to vector<32x128xf32>
    %157 = arith.addf %156, %155 : vector<32x128xf32>
    %cst_73 = arith.constant 5.000000e-01 : f32
    %158 = vector.broadcast %cst_73 : f32 to vector<32x128xf32>
    %159 = arith.mulf %158, %157 : vector<32x128xf32>
    %160 = arith.mulf %147, %159 : vector<32x128xf32>
    %c0_74 = arith.constant 0 : index
    %c0_75 = arith.constant 0 : index
    %161 = vector.load %arg4[%c0_74, %c0_75] : memref<64x72xf32, #tpu.memory_space<vmem>>, vector<64x72xf32>
    %cst_76 = arith.constant dense<0.000000e+00> : vector<64x128xf32>
    %162 = tpu.matmul %161, %13, %cst_76 {dimension_numbers = #tpu.dot_dimension_numbers<[1], [0], [0], [1], [0, 0, 1, 1], [], []>} : vector<64x72xf32>, vector<72x128xf32>, vector<64x128xf32> -> vector<64x128xf32>
    %c0_77 = arith.constant 0 : index
    %c11 = arith.constant 11 : index
    %163 = vector.load %arg8[%c0_77, %c11] : memref<64x30xf32, #tpu.memory_space<vmem>>, vector<64x1xf32>
    %164 = vector.broadcast %163 : vector<64x1xf32> to vector<64x128xf32>
    %165 = arith.addf %162, %164 : vector<64x128xf32>
    %166 = arith.mulf %165, %165 : vector<64x128xf32>
    %167 = arith.mulf %165, %166 : vector<64x128xf32>
    %cst_78 = arith.constant 4.471500e-02 : f32
    %168 = vector.broadcast %cst_78 : f32 to vector<64x128xf32>
    %169 = arith.mulf %168, %167 : vector<64x128xf32>
    %170 = arith.addf %165, %169 : vector<64x128xf32>
    %cst_79 = arith.constant 0.797884583 : f32
    %171 = vector.broadcast %cst_79 : f32 to vector<64x128xf32>
    %172 = arith.mulf %171, %170 : vector<64x128xf32>
    %173 = math.tanh %172 : vector<64x128xf32>
    %cst_80 = arith.constant 1.000000e+00 : f32
    %174 = vector.broadcast %cst_80 : f32 to vector<64x128xf32>
    %175 = arith.addf %174, %173 : vector<64x128xf32>
    %cst_81 = arith.constant 5.000000e-01 : f32
    %176 = vector.broadcast %cst_81 : f32 to vector<64x128xf32>
    %177 = arith.mulf %176, %175 : vector<64x128xf32>
    %178 = arith.mulf %165, %177 : vector<64x128xf32>
    %c0_82 = arith.constant 0 : index
    %c9 = arith.constant 9 : index
    %179 = vector.load %arg8[%c0_82, %c9] : memref<64x30xf32, #tpu.memory_space<vmem>>, vector<64x1xf32>
    %180 = vector.broadcast %179 : vector<64x1xf32> to vector<64x128xf32>
    %181 = vector.broadcast %6 : vector<1x128xf32> to vector<64x128xf32>
    %182 = arith.mulf %180, %181 : vector<64x128xf32>
    %c0_83 = arith.constant 0 : index
    %c10 = arith.constant 10 : index
    %183 = vector.load %arg8[%c0_83, %c10] : memref<64x30xf32, #tpu.memory_space<vmem>>, vector<64x1xf32>
    %184 = vector.broadcast %183 : vector<64x1xf32> to vector<64x128xf32>
    %185 = arith.addf %182, %184 : vector<64x128xf32>
    %186 = arith.mulf %185, %185 : vector<64x128xf32>
    %187 = arith.mulf %185, %186 : vector<64x128xf32>
    %cst_84 = arith.constant 4.471500e-02 : f32
    %188 = vector.broadcast %cst_84 : f32 to vector<64x128xf32>
    %189 = arith.mulf %188, %187 : vector<64x128xf32>
    %190 = arith.addf %185, %189 : vector<64x128xf32>
    %cst_85 = arith.constant 0.797884583 : f32
    %191 = vector.broadcast %cst_85 : f32 to vector<64x128xf32>
    %192 = arith.mulf %191, %190 : vector<64x128xf32>
    %193 = math.tanh %192 : vector<64x128xf32>
    %cst_86 = arith.constant 1.000000e+00 : f32
    %194 = vector.broadcast %cst_86 : f32 to vector<64x128xf32>
    %195 = arith.addf %194, %193 : vector<64x128xf32>
    %cst_87 = arith.constant 5.000000e-01 : f32
    %196 = vector.broadcast %cst_87 : f32 to vector<64x128xf32>
    %197 = arith.mulf %196, %195 : vector<64x128xf32>
    %198 = arith.mulf %185, %197 : vector<64x128xf32>
    %c0_88 = arith.constant 0 : index
    %c0_89 = arith.constant 0 : index
    %199 = vector.load %arg5[%c0_88, %c0_89] : memref<64x128xf32, #tpu.memory_space<vmem>>, vector<64x128xf32>
    %200 = tpu.concatenate %178, %198 in 0 : vector<64x128xf32>, vector<64x128xf32> -> vector<128x128xf32>
    %cst_90 = arith.constant dense<0.000000e+00> : vector<64x128xf32>
    %201 = tpu.matmul %199, %200, %cst_90 {dimension_numbers = #tpu.dot_dimension_numbers<[1], [0], [0], [1], [0, 0, 1, 1], [], []>} : vector<64x128xf32>, vector<128x128xf32>, vector<64x128xf32> -> vector<64x128xf32>
    %c0_91 = arith.constant 0 : index
    %c12 = arith.constant 12 : index
    %202 = vector.load %arg8[%c0_91, %c12] : memref<64x30xf32, #tpu.memory_space<vmem>>, vector<64x1xf32>
    %203 = vector.broadcast %202 : vector<64x1xf32> to vector<64x128xf32>
    %204 = arith.addf %201, %203 : vector<64x128xf32>
    %c8_92 = arith.constant 8 : index
    %c0_93 = arith.constant 0 : index
    %c0_94 = arith.constant 0 : index
    %205 = vector.load %arg2[%c8_92, %c0_93, %c0_94] : memref<19x32x32xf32, #tpu.memory_space<vmem>>, vector<1x32x32xf32>
    %206 = vector.shape_cast %205 : vector<1x32x32xf32> to vector<32x32xf32>
    %cst_95 = arith.constant dense<0.000000e+00> : vector<32x128xf32>
    %207 = tpu.matmul %206, %160, %cst_95 {dimension_numbers = #tpu.dot_dimension_numbers<[1], [0], [0], [1], [0, 0, 1, 1], [], []>} : vector<32x32xf32>, vector<32x128xf32>, vector<32x128xf32> -> vector<32x128xf32>
    %c0_96 = arith.constant 0 : index
    %c13 = arith.constant 13 : index
    %208 = vector.load %arg8[%c0_96, %c13] : memref<64x30xf32, #tpu.memory_space<vmem>>, vector<32x1xf32>
    %209 = vector.broadcast %208 : vector<32x1xf32> to vector<32x128xf32>
    %210 = arith.addf %207, %209 : vector<32x128xf32>
    %c18 = arith.constant 18 : index
    %c0_97 = arith.constant 0 : index
    %c0_98 = arith.constant 0 : index
    %211 = vector.load %arg2[%c18, %c0_97, %c0_98] : memref<19x32x32xf32, #tpu.memory_space<vmem>>, vector<1x32x32xf32>
    %212 = vector.shape_cast %211 : vector<1x32x32xf32> to vector<32x32xf32>
    %cst_99 = arith.constant dense<0.000000e+00> : vector<32x128xf32>
    %213 = tpu.matmul %212, %210, %cst_99 {dimension_numbers = #tpu.dot_dimension_numbers<[1], [0], [0], [1], [0, 0, 1, 1], [], []>} : vector<32x32xf32>, vector<32x128xf32>, vector<32x128xf32> -> vector<32x128xf32>
    %214 = arith.subf %210, %213 : vector<32x128xf32>
    %215 = arith.mulf %214, %214 : vector<32x128xf32>
    %cst_100 = arith.constant dense<0.000000e+00> : vector<32x128xf32>
    %216 = tpu.matmul %212, %215, %cst_100 {dimension_numbers = #tpu.dot_dimension_numbers<[1], [0], [0], [1], [0, 0, 1, 1], [], []>} : vector<32x32xf32>, vector<32x128xf32>, vector<32x128xf32> -> vector<32x128xf32>
    %cst_101 = arith.constant 9.99999974E-6 : f32
    %217 = vector.broadcast %cst_101 : f32 to vector<32x128xf32>
    %218 = arith.addf %216, %217 : vector<32x128xf32>
    %219 = math.rsqrt %218 : vector<32x128xf32>
    %220 = arith.mulf %214, %219 : vector<32x128xf32>
    %c0_102 = arith.constant 0 : index
    %c14 = arith.constant 14 : index
    %221 = vector.load %arg8[%c0_102, %c14] : memref<64x30xf32, #tpu.memory_space<vmem>>, vector<32x1xf32>
    %222 = vector.broadcast %221 : vector<32x1xf32> to vector<32x128xf32>
    %223 = arith.mulf %220, %222 : vector<32x128xf32>
    %c0_103 = arith.constant 0 : index
    %c15 = arith.constant 15 : index
    %224 = vector.load %arg8[%c0_103, %c15] : memref<64x30xf32, #tpu.memory_space<vmem>>, vector<32x1xf32>
    %225 = vector.broadcast %224 : vector<32x1xf32> to vector<32x128xf32>
    %226 = arith.addf %223, %225 : vector<32x128xf32>
    %cst_104 = arith.constant 0.000000e+00 : f32
    %227 = vector.broadcast %cst_104 : f32 to vector<32x128xf32>
    %228 = arith.maximumf %226, %227 : vector<32x128xf32>
    %229 = vector.extract_strided_slice %204 {offsets = [0, 0], sizes = [32, 128], strides = [1, 1]} : vector<64x128xf32> to vector<32x128xf32>
    %230 = arith.addf %228, %229 : vector<32x128xf32>
    %231 = tpu.concatenate %230, %141 in 0 : vector<32x128xf32>, vector<32x128xf32> -> vector<64x128xf32>
    %c0_105 = arith.constant 0 : index
    %c0_106 = arith.constant 0 : index
    %c0_107 = arith.constant 0 : index
    %232 = vector.load %arg6[%c0_105, %c0_106, %c0_107] : memref<2x32x64xf32, #tpu.memory_space<vmem>>, vector<1x32x64xf32>
    %233 = vector.shape_cast %232 : vector<1x32x64xf32> to vector<32x64xf32>
    %cst_108 = arith.constant dense<0.000000e+00> : vector<32x128xf32>
    %234 = tpu.matmul %233, %231, %cst_108 {dimension_numbers = #tpu.dot_dimension_numbers<[1], [0], [0], [1], [0, 0, 1, 1], [], []>} : vector<32x64xf32>, vector<64x128xf32>, vector<32x128xf32> -> vector<32x128xf32>
    %c0_109 = arith.constant 0 : index
    %c16 = arith.constant 16 : index
    %235 = vector.load %arg8[%c0_109, %c16] : memref<64x30xf32, #tpu.memory_space<vmem>>, vector<32x1xf32>
    %236 = vector.broadcast %235 : vector<32x1xf32> to vector<32x128xf32>
    %237 = arith.addf %234, %236 : vector<32x128xf32>
    %c9_110 = arith.constant 9 : index
    %c0_111 = arith.constant 0 : index
    %c0_112 = arith.constant 0 : index
    %238 = vector.load %arg2[%c9_110, %c0_111, %c0_112] : memref<19x32x32xf32, #tpu.memory_space<vmem>>, vector<1x32x32xf32>
    %239 = vector.shape_cast %238 : vector<1x32x32xf32> to vector<32x32xf32>
    %cst_113 = arith.constant dense<0.000000e+00> : vector<32x128xf32>
    %240 = tpu.matmul %239, %237, %cst_113 {dimension_numbers = #tpu.dot_dimension_numbers<[1], [0], [0], [1], [0, 0, 1, 1], [], []>} : vector<32x32xf32>, vector<32x128xf32>, vector<32x128xf32> -> vector<32x128xf32>
    %c0_114 = arith.constant 0 : index
    %c17 = arith.constant 17 : index
    %241 = vector.load %arg8[%c0_114, %c17] : memref<64x30xf32, #tpu.memory_space<vmem>>, vector<32x1xf32>
    %242 = vector.broadcast %241 : vector<32x1xf32> to vector<32x128xf32>
    %243 = arith.addf %240, %242 : vector<32x128xf32>
    %244 = arith.mulf %243, %243 : vector<32x128xf32>
    %245 = arith.mulf %243, %244 : vector<32x128xf32>
    %cst_115 = arith.constant 4.471500e-02 : f32
    %246 = vector.broadcast %cst_115 : f32 to vector<32x128xf32>
    %247 = arith.mulf %246, %245 : vector<32x128xf32>
    %248 = arith.addf %243, %247 : vector<32x128xf32>
    %cst_116 = arith.constant 0.797884583 : f32
    %249 = vector.broadcast %cst_116 : f32 to vector<32x128xf32>
    %250 = arith.mulf %249, %248 : vector<32x128xf32>
    %251 = math.tanh %250 : vector<32x128xf32>
    %cst_117 = arith.constant 1.000000e+00 : f32
    %252 = vector.broadcast %cst_117 : f32 to vector<32x128xf32>
    %253 = arith.addf %252, %251 : vector<32x128xf32>
    %cst_118 = arith.constant 5.000000e-01 : f32
    %254 = vector.broadcast %cst_118 : f32 to vector<32x128xf32>
    %255 = arith.mulf %254, %253 : vector<32x128xf32>
    %256 = arith.mulf %243, %255 : vector<32x128xf32>
    %c10_119 = arith.constant 10 : index
    %c0_120 = arith.constant 0 : index
    %c0_121 = arith.constant 0 : index
    %257 = vector.load %arg2[%c10_119, %c0_120, %c0_121] : memref<19x32x32xf32, #tpu.memory_space<vmem>>, vector<1x32x32xf32>
    %258 = vector.shape_cast %257 : vector<1x32x32xf32> to vector<32x32xf32>
    %cst_122 = arith.constant dense<0.000000e+00> : vector<32x128xf32>
    %259 = tpu.matmul %258, %256, %cst_122 {dimension_numbers = #tpu.dot_dimension_numbers<[1], [0], [0], [1], [0, 0, 1, 1], [], []>} : vector<32x32xf32>, vector<32x128xf32>, vector<32x128xf32> -> vector<32x128xf32>
    %c0_123 = arith.constant 0 : index
    %c18_124 = arith.constant 18 : index
    %260 = vector.load %arg8[%c0_123, %c18_124] : memref<64x30xf32, #tpu.memory_space<vmem>>, vector<32x1xf32>
    %261 = vector.broadcast %260 : vector<32x1xf32> to vector<32x128xf32>
    %262 = arith.addf %259, %261 : vector<32x128xf32>
    %263 = arith.mulf %262, %262 : vector<32x128xf32>
    %264 = arith.mulf %262, %263 : vector<32x128xf32>
    %cst_125 = arith.constant 4.471500e-02 : f32
    %265 = vector.broadcast %cst_125 : f32 to vector<32x128xf32>
    %266 = arith.mulf %265, %264 : vector<32x128xf32>
    %267 = arith.addf %262, %266 : vector<32x128xf32>
    %cst_126 = arith.constant 0.797884583 : f32
    %268 = vector.broadcast %cst_126 : f32 to vector<32x128xf32>
    %269 = arith.mulf %268, %267 : vector<32x128xf32>
    %270 = math.tanh %269 : vector<32x128xf32>
    %cst_127 = arith.constant 1.000000e+00 : f32
    %271 = vector.broadcast %cst_127 : f32 to vector<32x128xf32>
    %272 = arith.addf %271, %270 : vector<32x128xf32>
    %cst_128 = arith.constant 5.000000e-01 : f32
    %273 = vector.broadcast %cst_128 : f32 to vector<32x128xf32>
    %274 = arith.mulf %273, %272 : vector<32x128xf32>
    %275 = arith.mulf %262, %274 : vector<32x128xf32>
    %c11_129 = arith.constant 11 : index
    %c0_130 = arith.constant 0 : index
    %c0_131 = arith.constant 0 : index
    %276 = vector.load %arg2[%c11_129, %c0_130, %c0_131] : memref<19x32x32xf32, #tpu.memory_space<vmem>>, vector<1x32x32xf32>
    %277 = vector.shape_cast %276 : vector<1x32x32xf32> to vector<32x32xf32>
    %cst_132 = arith.constant dense<0.000000e+00> : vector<32x128xf32>
    %278 = tpu.matmul %277, %275, %cst_132 {dimension_numbers = #tpu.dot_dimension_numbers<[1], [0], [0], [1], [0, 0, 1, 1], [], []>} : vector<32x32xf32>, vector<32x128xf32>, vector<32x128xf32> -> vector<32x128xf32>
    %c0_133 = arith.constant 0 : index
    %c19 = arith.constant 19 : index
    %279 = vector.load %arg8[%c0_133, %c19] : memref<64x30xf32, #tpu.memory_space<vmem>>, vector<32x1xf32>
    %280 = vector.broadcast %279 : vector<32x1xf32> to vector<32x128xf32>
    %281 = arith.addf %278, %280 : vector<32x128xf32>
    %282 = arith.mulf %281, %281 : vector<32x128xf32>
    %283 = arith.mulf %281, %282 : vector<32x128xf32>
    %cst_134 = arith.constant 4.471500e-02 : f32
    %284 = vector.broadcast %cst_134 : f32 to vector<32x128xf32>
    %285 = arith.mulf %284, %283 : vector<32x128xf32>
    %286 = arith.addf %281, %285 : vector<32x128xf32>
    %cst_135 = arith.constant 0.797884583 : f32
    %287 = vector.broadcast %cst_135 : f32 to vector<32x128xf32>
    %288 = arith.mulf %287, %286 : vector<32x128xf32>
    %289 = math.tanh %288 : vector<32x128xf32>
    %cst_136 = arith.constant 1.000000e+00 : f32
    %290 = vector.broadcast %cst_136 : f32 to vector<32x128xf32>
    %291 = arith.addf %290, %289 : vector<32x128xf32>
    %cst_137 = arith.constant 5.000000e-01 : f32
    %292 = vector.broadcast %cst_137 : f32 to vector<32x128xf32>
    %293 = arith.mulf %292, %291 : vector<32x128xf32>
    %294 = arith.mulf %281, %293 : vector<32x128xf32>
    %c12_138 = arith.constant 12 : index
    %c0_139 = arith.constant 0 : index
    %c0_140 = arith.constant 0 : index
    %295 = vector.load %arg2[%c12_138, %c0_139, %c0_140] : memref<19x32x32xf32, #tpu.memory_space<vmem>>, vector<1x32x32xf32>
    %296 = vector.shape_cast %295 : vector<1x32x32xf32> to vector<32x32xf32>
    %cst_141 = arith.constant dense<0.000000e+00> : vector<32x128xf32>
    %297 = tpu.matmul %296, %294, %cst_141 {dimension_numbers = #tpu.dot_dimension_numbers<[1], [0], [0], [1], [0, 0, 1, 1], [], []>} : vector<32x32xf32>, vector<32x128xf32>, vector<32x128xf32> -> vector<32x128xf32>
    %c0_142 = arith.constant 0 : index
    %c20 = arith.constant 20 : index
    %298 = vector.load %arg8[%c0_142, %c20] : memref<64x30xf32, #tpu.memory_space<vmem>>, vector<32x1xf32>
    %299 = vector.broadcast %298 : vector<32x1xf32> to vector<32x128xf32>
    %300 = arith.addf %297, %299 : vector<32x128xf32>
    %301 = arith.mulf %300, %300 : vector<32x128xf32>
    %302 = arith.mulf %300, %301 : vector<32x128xf32>
    %cst_143 = arith.constant 4.471500e-02 : f32
    %303 = vector.broadcast %cst_143 : f32 to vector<32x128xf32>
    %304 = arith.mulf %303, %302 : vector<32x128xf32>
    %305 = arith.addf %300, %304 : vector<32x128xf32>
    %cst_144 = arith.constant 0.797884583 : f32
    %306 = vector.broadcast %cst_144 : f32 to vector<32x128xf32>
    %307 = arith.mulf %306, %305 : vector<32x128xf32>
    %308 = math.tanh %307 : vector<32x128xf32>
    %cst_145 = arith.constant 1.000000e+00 : f32
    %309 = vector.broadcast %cst_145 : f32 to vector<32x128xf32>
    %310 = arith.addf %309, %308 : vector<32x128xf32>
    %cst_146 = arith.constant 5.000000e-01 : f32
    %311 = vector.broadcast %cst_146 : f32 to vector<32x128xf32>
    %312 = arith.mulf %311, %310 : vector<32x128xf32>
    %313 = arith.mulf %300, %312 : vector<32x128xf32>
    %314 = vector.extract_strided_slice %204 {offsets = [32, 0], sizes = [32, 128], strides = [1, 1]} : vector<64x128xf32> to vector<32x128xf32>
    %315 = arith.addf %313, %314 : vector<32x128xf32>
    %316 = tpu.concatenate %315, %97 in 0 : vector<32x128xf32>, vector<32x128xf32> -> vector<64x128xf32>
    %c1_147 = arith.constant 1 : index
    %c0_148 = arith.constant 0 : index
    %c0_149 = arith.constant 0 : index
    %317 = vector.load %arg6[%c1_147, %c0_148, %c0_149] : memref<2x32x64xf32, #tpu.memory_space<vmem>>, vector<1x32x64xf32>
    %318 = vector.shape_cast %317 : vector<1x32x64xf32> to vector<32x64xf32>
    %cst_150 = arith.constant dense<0.000000e+00> : vector<32x128xf32>
    %319 = tpu.matmul %318, %316, %cst_150 {dimension_numbers = #tpu.dot_dimension_numbers<[1], [0], [0], [1], [0, 0, 1, 1], [], []>} : vector<32x64xf32>, vector<64x128xf32>, vector<32x128xf32> -> vector<32x128xf32>
    %c0_151 = arith.constant 0 : index
    %c21 = arith.constant 21 : index
    %320 = vector.load %arg8[%c0_151, %c21] : memref<64x30xf32, #tpu.memory_space<vmem>>, vector<32x1xf32>
    %321 = vector.broadcast %320 : vector<32x1xf32> to vector<32x128xf32>
    %322 = arith.addf %319, %321 : vector<32x128xf32>
    %c13_152 = arith.constant 13 : index
    %c0_153 = arith.constant 0 : index
    %c0_154 = arith.constant 0 : index
    %323 = vector.load %arg2[%c13_152, %c0_153, %c0_154] : memref<19x32x32xf32, #tpu.memory_space<vmem>>, vector<1x32x32xf32>
    %324 = vector.shape_cast %323 : vector<1x32x32xf32> to vector<32x32xf32>
    %cst_155 = arith.constant dense<0.000000e+00> : vector<32x128xf32>
    %325 = tpu.matmul %324, %322, %cst_155 {dimension_numbers = #tpu.dot_dimension_numbers<[1], [0], [0], [1], [0, 0, 1, 1], [], []>} : vector<32x32xf32>, vector<32x128xf32>, vector<32x128xf32> -> vector<32x128xf32>
    %c0_156 = arith.constant 0 : index
    %c22 = arith.constant 22 : index
    %326 = vector.load %arg8[%c0_156, %c22] : memref<64x30xf32, #tpu.memory_space<vmem>>, vector<32x1xf32>
    %327 = vector.broadcast %326 : vector<32x1xf32> to vector<32x128xf32>
    %328 = arith.addf %325, %327 : vector<32x128xf32>
    %329 = arith.mulf %328, %328 : vector<32x128xf32>
    %330 = arith.mulf %328, %329 : vector<32x128xf32>
    %cst_157 = arith.constant 4.471500e-02 : f32
    %331 = vector.broadcast %cst_157 : f32 to vector<32x128xf32>
    %332 = arith.mulf %331, %330 : vector<32x128xf32>
    %333 = arith.addf %328, %332 : vector<32x128xf32>
    %cst_158 = arith.constant 0.797884583 : f32
    %334 = vector.broadcast %cst_158 : f32 to vector<32x128xf32>
    %335 = arith.mulf %334, %333 : vector<32x128xf32>
    %336 = math.tanh %335 : vector<32x128xf32>
    %cst_159 = arith.constant 1.000000e+00 : f32
    %337 = vector.broadcast %cst_159 : f32 to vector<32x128xf32>
    %338 = arith.addf %337, %336 : vector<32x128xf32>
    %cst_160 = arith.constant 5.000000e-01 : f32
    %339 = vector.broadcast %cst_160 : f32 to vector<32x128xf32>
    %340 = arith.mulf %339, %338 : vector<32x128xf32>
    %341 = arith.mulf %328, %340 : vector<32x128xf32>
    %c14_161 = arith.constant 14 : index
    %c0_162 = arith.constant 0 : index
    %c0_163 = arith.constant 0 : index
    %342 = vector.load %arg2[%c14_161, %c0_162, %c0_163] : memref<19x32x32xf32, #tpu.memory_space<vmem>>, vector<1x32x32xf32>
    %343 = vector.shape_cast %342 : vector<1x32x32xf32> to vector<32x32xf32>
    %cst_164 = arith.constant dense<0.000000e+00> : vector<32x128xf32>
    %344 = tpu.matmul %343, %341, %cst_164 {dimension_numbers = #tpu.dot_dimension_numbers<[1], [0], [0], [1], [0, 0, 1, 1], [], []>} : vector<32x32xf32>, vector<32x128xf32>, vector<32x128xf32> -> vector<32x128xf32>
    %c0_165 = arith.constant 0 : index
    %c23 = arith.constant 23 : index
    %345 = vector.load %arg8[%c0_165, %c23] : memref<64x30xf32, #tpu.memory_space<vmem>>, vector<32x1xf32>
    %346 = vector.broadcast %345 : vector<32x1xf32> to vector<32x128xf32>
    %347 = arith.addf %344, %346 : vector<32x128xf32>
    %348 = arith.mulf %347, %347 : vector<32x128xf32>
    %349 = arith.mulf %347, %348 : vector<32x128xf32>
    %cst_166 = arith.constant 4.471500e-02 : f32
    %350 = vector.broadcast %cst_166 : f32 to vector<32x128xf32>
    %351 = arith.mulf %350, %349 : vector<32x128xf32>
    %352 = arith.addf %347, %351 : vector<32x128xf32>
    %cst_167 = arith.constant 0.797884583 : f32
    %353 = vector.broadcast %cst_167 : f32 to vector<32x128xf32>
    %354 = arith.mulf %353, %352 : vector<32x128xf32>
    %355 = math.tanh %354 : vector<32x128xf32>
    %cst_168 = arith.constant 1.000000e+00 : f32
    %356 = vector.broadcast %cst_168 : f32 to vector<32x128xf32>
    %357 = arith.addf %356, %355 : vector<32x128xf32>
    %cst_169 = arith.constant 5.000000e-01 : f32
    %358 = vector.broadcast %cst_169 : f32 to vector<32x128xf32>
    %359 = arith.mulf %358, %357 : vector<32x128xf32>
    %360 = arith.mulf %347, %359 : vector<32x128xf32>
    %c15_170 = arith.constant 15 : index
    %c0_171 = arith.constant 0 : index
    %c0_172 = arith.constant 0 : index
    %361 = vector.load %arg2[%c15_170, %c0_171, %c0_172] : memref<19x32x32xf32, #tpu.memory_space<vmem>>, vector<1x32x32xf32>
    %362 = vector.shape_cast %361 : vector<1x32x32xf32> to vector<32x32xf32>
    %cst_173 = arith.constant dense<0.000000e+00> : vector<32x128xf32>
    %363 = tpu.matmul %362, %360, %cst_173 {dimension_numbers = #tpu.dot_dimension_numbers<[1], [0], [0], [1], [0, 0, 1, 1], [], []>} : vector<32x32xf32>, vector<32x128xf32>, vector<32x128xf32> -> vector<32x128xf32>
    %c0_174 = arith.constant 0 : index
    %c24 = arith.constant 24 : index
    %364 = vector.load %arg8[%c0_174, %c24] : memref<64x30xf32, #tpu.memory_space<vmem>>, vector<32x1xf32>
    %365 = vector.broadcast %364 : vector<32x1xf32> to vector<32x128xf32>
    %366 = arith.addf %363, %365 : vector<32x128xf32>
    %367 = arith.mulf %366, %366 : vector<32x128xf32>
    %368 = arith.mulf %366, %367 : vector<32x128xf32>
    %cst_175 = arith.constant 4.471500e-02 : f32
    %369 = vector.broadcast %cst_175 : f32 to vector<32x128xf32>
    %370 = arith.mulf %369, %368 : vector<32x128xf32>
    %371 = arith.addf %366, %370 : vector<32x128xf32>
    %cst_176 = arith.constant 0.797884583 : f32
    %372 = vector.broadcast %cst_176 : f32 to vector<32x128xf32>
    %373 = arith.mulf %372, %371 : vector<32x128xf32>
    %374 = math.tanh %373 : vector<32x128xf32>
    %cst_177 = arith.constant 1.000000e+00 : f32
    %375 = vector.broadcast %cst_177 : f32 to vector<32x128xf32>
    %376 = arith.addf %375, %374 : vector<32x128xf32>
    %cst_178 = arith.constant 5.000000e-01 : f32
    %377 = vector.broadcast %cst_178 : f32 to vector<32x128xf32>
    %378 = arith.mulf %377, %376 : vector<32x128xf32>
    %379 = arith.mulf %366, %378 : vector<32x128xf32>
    %c16_179 = arith.constant 16 : index
    %c0_180 = arith.constant 0 : index
    %c0_181 = arith.constant 0 : index
    %380 = vector.load %arg2[%c16_179, %c0_180, %c0_181] : memref<19x32x32xf32, #tpu.memory_space<vmem>>, vector<1x32x32xf32>
    %381 = vector.shape_cast %380 : vector<1x32x32xf32> to vector<32x32xf32>
    %cst_182 = arith.constant dense<0.000000e+00> : vector<32x128xf32>
    %382 = tpu.matmul %381, %379, %cst_182 {dimension_numbers = #tpu.dot_dimension_numbers<[1], [0], [0], [1], [0, 0, 1, 1], [], []>} : vector<32x32xf32>, vector<32x128xf32>, vector<32x128xf32> -> vector<32x128xf32>
    %c0_183 = arith.constant 0 : index
    %c25 = arith.constant 25 : index
    %383 = vector.load %arg8[%c0_183, %c25] : memref<64x30xf32, #tpu.memory_space<vmem>>, vector<32x1xf32>
    %384 = vector.broadcast %383 : vector<32x1xf32> to vector<32x128xf32>
    %385 = arith.addf %382, %384 : vector<32x128xf32>
    %386 = arith.mulf %385, %385 : vector<32x128xf32>
    %387 = arith.mulf %385, %386 : vector<32x128xf32>
    %cst_184 = arith.constant 4.471500e-02 : f32
    %388 = vector.broadcast %cst_184 : f32 to vector<32x128xf32>
    %389 = arith.mulf %388, %387 : vector<32x128xf32>
    %390 = arith.addf %385, %389 : vector<32x128xf32>
    %cst_185 = arith.constant 0.797884583 : f32
    %391 = vector.broadcast %cst_185 : f32 to vector<32x128xf32>
    %392 = arith.mulf %391, %390 : vector<32x128xf32>
    %393 = math.tanh %392 : vector<32x128xf32>
    %cst_186 = arith.constant 1.000000e+00 : f32
    %394 = vector.broadcast %cst_186 : f32 to vector<32x128xf32>
    %395 = arith.addf %394, %393 : vector<32x128xf32>
    %cst_187 = arith.constant 5.000000e-01 : f32
    %396 = vector.broadcast %cst_187 : f32 to vector<32x128xf32>
    %397 = arith.mulf %396, %395 : vector<32x128xf32>
    %398 = arith.mulf %385, %397 : vector<32x128xf32>
    %c17_188 = arith.constant 17 : index
    %c0_189 = arith.constant 0 : index
    %c0_190 = arith.constant 0 : index
    %399 = vector.load %arg2[%c17_188, %c0_189, %c0_190] : memref<19x32x32xf32, #tpu.memory_space<vmem>>, vector<1x32x32xf32>
    %400 = vector.shape_cast %399 : vector<1x32x32xf32> to vector<32x32xf32>
    %cst_191 = arith.constant dense<0.000000e+00> : vector<32x128xf32>
    %401 = tpu.matmul %400, %398, %cst_191 {dimension_numbers = #tpu.dot_dimension_numbers<[1], [0], [0], [1], [0, 0, 1, 1], [], []>} : vector<32x32xf32>, vector<32x128xf32>, vector<32x128xf32> -> vector<32x128xf32>
    %c0_192 = arith.constant 0 : index
    %c26 = arith.constant 26 : index
    %402 = vector.load %arg8[%c0_192, %c26] : memref<64x30xf32, #tpu.memory_space<vmem>>, vector<32x1xf32>
    %403 = vector.broadcast %402 : vector<32x1xf32> to vector<32x128xf32>
    %404 = arith.addf %401, %403 : vector<32x128xf32>
    %c18_193 = arith.constant 18 : index
    %c0_194 = arith.constant 0 : index
    %c0_195 = arith.constant 0 : index
    %405 = vector.load %arg2[%c18_193, %c0_194, %c0_195] : memref<19x32x32xf32, #tpu.memory_space<vmem>>, vector<1x32x32xf32>
    %406 = vector.shape_cast %405 : vector<1x32x32xf32> to vector<32x32xf32>
    %cst_196 = arith.constant dense<0.000000e+00> : vector<32x128xf32>
    %407 = tpu.matmul %406, %404, %cst_196 {dimension_numbers = #tpu.dot_dimension_numbers<[1], [0], [0], [1], [0, 0, 1, 1], [], []>} : vector<32x32xf32>, vector<32x128xf32>, vector<32x128xf32> -> vector<32x128xf32>
    %408 = arith.subf %404, %407 : vector<32x128xf32>
    %409 = arith.mulf %408, %408 : vector<32x128xf32>
    %cst_197 = arith.constant dense<0.000000e+00> : vector<32x128xf32>
    %410 = tpu.matmul %406, %409, %cst_197 {dimension_numbers = #tpu.dot_dimension_numbers<[1], [0], [0], [1], [0, 0, 1, 1], [], []>} : vector<32x32xf32>, vector<32x128xf32>, vector<32x128xf32> -> vector<32x128xf32>
    %cst_198 = arith.constant 9.99999974E-6 : f32
    %411 = vector.broadcast %cst_198 : f32 to vector<32x128xf32>
    %412 = arith.addf %410, %411 : vector<32x128xf32>
    %413 = math.rsqrt %412 : vector<32x128xf32>
    %414 = arith.mulf %408, %413 : vector<32x128xf32>
    %c0_199 = arith.constant 0 : index
    %c27 = arith.constant 27 : index
    %415 = vector.load %arg8[%c0_199, %c27] : memref<64x30xf32, #tpu.memory_space<vmem>>, vector<32x1xf32>
    %416 = vector.broadcast %415 : vector<32x1xf32> to vector<32x128xf32>
    %417 = arith.mulf %414, %416 : vector<32x128xf32>
    %c0_200 = arith.constant 0 : index
    %c28 = arith.constant 28 : index
    %418 = vector.load %arg8[%c0_200, %c28] : memref<64x30xf32, #tpu.memory_space<vmem>>, vector<32x1xf32>
    %419 = vector.broadcast %418 : vector<32x1xf32> to vector<32x128xf32>
    %420 = arith.addf %417, %419 : vector<32x128xf32>
    %cst_201 = arith.constant 0.000000e+00 : f32
    %421 = vector.broadcast %cst_201 : f32 to vector<32x128xf32>
    %422 = arith.maximumf %420, %421 : vector<32x128xf32>
    %c0_202 = arith.constant 0 : index
    %c0_203 = arith.constant 0 : index
    %423 = vector.load %arg7[%c0_202, %c0_203] : memref<64x32xf32, #tpu.memory_space<vmem>>, vector<64x32xf32>
    %cst_204 = arith.constant dense<0.000000e+00> : vector<64x128xf32>
    %424 = tpu.matmul %423, %422, %cst_204 {dimension_numbers = #tpu.dot_dimension_numbers<[1], [0], [0], [1], [0, 0, 1, 1], [], []>} : vector<64x32xf32>, vector<32x128xf32>, vector<64x128xf32> -> vector<64x128xf32>
    %c0_205 = arith.constant 0 : index
    %c29 = arith.constant 29 : index
    %425 = vector.load %arg8[%c0_205, %c29] : memref<64x30xf32, #tpu.memory_space<vmem>>, vector<64x1xf32>
    %426 = vector.broadcast %425 : vector<64x1xf32> to vector<64x128xf32>
    %427 = arith.addf %424, %426 : vector<64x128xf32>
    %c0_206 = arith.constant 0 : index
    %428 = arith.index_cast %1 : i32 to index
    %429 = vector.load %arg9[%c0_206, %428] : memref<64x256xf32, #tpu.memory_space<vmem>>, vector<64x128xf32>
    tpu.vector_store %arg9[%c0_206, %428], %427 {strides = array<i32>} : memref<64x256xf32, #tpu.memory_space<vmem>>, vector<64x128xf32>,
    %c1_i32 = arith.constant 1 : i32
    %c128_i32_207 = arith.constant 128 : i32
    %430 = arith.muli %c1_i32, %c128_i32_207 : i32
    %431 = tpu.assume_multiple %430, 128 : i32
    %c0_208 = arith.constant 0 : index
    %432 = arith.index_cast %431 : i32 to index
    %433 = vector.load %arg1[%c0_208, %432] : memref<144x256xf32, #tpu.memory_space<vmem>>, vector<64x128xf32>
    %c136_209 = arith.constant 136 : index
    %434 = arith.index_cast %431 : i32 to index
    %435 = vector.load %arg1[%c136_209, %434] : memref<144x256xf32, #tpu.memory_space<vmem>>, vector<8x128xf32>
    %436 = vector.extract_strided_slice %435 {offsets = [0, 0], sizes = [1, 128], strides = [1, 1]} : vector<8x128xf32> to vector<1x128xf32>
    %c64_210 = arith.constant 64 : index
    %437 = arith.index_cast %431 : i32 to index
    %438 = vector.load %arg1[%c64_210, %437] : memref<144x256xf32, #tpu.memory_space<vmem>>, vector<72x128xf32>
    %439 = vector.extract_strided_slice %435 {offsets = [1, 0], sizes = [1, 128], strides = [1, 1]} : vector<8x128xf32> to vector<1x128xf32>
    %cst_211 = arith.constant 1.000000e+00 : f32
    %440 = vector.broadcast %cst_211 : f32 to vector<1x128xf32>
    %441 = arith.subf %439, %440 : vector<1x128xf32>
    %442 = vector.broadcast %441 : vector<1x128xf32> to vector<72x128xf32>
    %443 = arith.mulf %438, %442 : vector<72x128xf32>
    %c0_212 = arith.constant 0 : index
    %c0_213 = arith.constant 0 : index
    %444 = vector.load %arg3[%c0_212, %c0_213] : memref<32x64xf32, #tpu.memory_space<vmem>>, vector<32x64xf32>
    %cst_214 = arith.constant dense<0.000000e+00> : vector<32x128xf32>
    %445 = tpu.matmul %444, %433, %cst_214 {dimension_numbers = #tpu.dot_dimension_numbers<[1], [0], [0], [1], [0, 0, 1, 1], [], []>} : vector<32x64xf32>, vector<64x128xf32>, vector<32x128xf32> -> vector<32x128xf32>
    %c0_215 = arith.constant 0 : index
    %c0_216 = arith.constant 0 : index
    %446 = vector.load %arg8[%c0_215, %c0_216] : memref<64x30xf32, #tpu.memory_space<vmem>>, vector<32x1xf32>
    %447 = vector.broadcast %446 : vector<32x1xf32> to vector<32x128xf32>
    %448 = arith.addf %445, %447 : vector<32x128xf32>
    %449 = arith.mulf %448, %448 : vector<32x128xf32>
    %450 = arith.mulf %448, %449 : vector<32x128xf32>
    %cst_217 = arith.constant 4.471500e-02 : f32
    %451 = vector.broadcast %cst_217 : f32 to vector<32x128xf32>
    %452 = arith.mulf %451, %450 : vector<32x128xf32>
    %453 = arith.addf %448, %452 : vector<32x128xf32>
    %cst_218 = arith.constant 0.797884583 : f32
    %454 = vector.broadcast %cst_218 : f32 to vector<32x128xf32>
    %455 = arith.mulf %454, %453 : vector<32x128xf32>
    %456 = math.tanh %455 : vector<32x128xf32>
    %cst_219 = arith.constant 1.000000e+00 : f32
    %457 = vector.broadcast %cst_219 : f32 to vector<32x128xf32>
    %458 = arith.addf %457, %456 : vector<32x128xf32>
    %cst_220 = arith.constant 5.000000e-01 : f32
    %459 = vector.broadcast %cst_220 : f32 to vector<32x128xf32>
    %460 = arith.mulf %459, %458 : vector<32x128xf32>
    %461 = arith.mulf %448, %460 : vector<32x128xf32>
    %c0_221 = arith.constant 0 : index
    %c0_222 = arith.constant 0 : index
    %c0_223 = arith.constant 0 : index
    %462 = vector.load %arg2[%c0_221, %c0_222, %c0_223] : memref<19x32x32xf32, #tpu.memory_space<vmem>>, vector<1x32x32xf32>
    %463 = vector.shape_cast %462 : vector<1x32x32xf32> to vector<32x32xf32>
    %cst_224 = arith.constant dense<0.000000e+00> : vector<32x128xf32>
    %464 = tpu.matmul %463, %461, %cst_224 {dimension_numbers = #tpu.dot_dimension_numbers<[1], [0], [0], [1], [0, 0, 1, 1], [], []>} : vector<32x32xf32>, vector<32x128xf32>, vector<32x128xf32> -> vector<32x128xf32>
    %c0_225 = arith.constant 0 : index
    %c1_226 = arith.constant 1 : index
    %465 = vector.load %arg8[%c0_225, %c1_226] : memref<64x30xf32, #tpu.memory_space<vmem>>, vector<32x1xf32>
    %466 = vector.broadcast %465 : vector<32x1xf32> to vector<32x128xf32>
    %467 = arith.addf %464, %466 : vector<32x128xf32>
    %468 = arith.mulf %467, %467 : vector<32x128xf32>
    %469 = arith.mulf %467, %468 : vector<32x128xf32>
    %cst_227 = arith.constant 4.471500e-02 : f32
    %470 = vector.broadcast %cst_227 : f32 to vector<32x128xf32>
    %471 = arith.mulf %470, %469 : vector<32x128xf32>
    %472 = arith.addf %467, %471 : vector<32x128xf32>
    %cst_228 = arith.constant 0.797884583 : f32
    %473 = vector.broadcast %cst_228 : f32 to vector<32x128xf32>
    %474 = arith.mulf %473, %472 : vector<32x128xf32>
    %475 = math.tanh %474 : vector<32x128xf32>
    %cst_229 = arith.constant 1.000000e+00 : f32
    %476 = vector.broadcast %cst_229 : f32 to vector<32x128xf32>
    %477 = arith.addf %476, %475 : vector<32x128xf32>
    %cst_230 = arith.constant 5.000000e-01 : f32
    %478 = vector.broadcast %cst_230 : f32 to vector<32x128xf32>
    %479 = arith.mulf %478, %477 : vector<32x128xf32>
    %480 = arith.mulf %467, %479 : vector<32x128xf32>
    %481 = arith.addf %461, %480 : vector<32x128xf32>
    %cst_231 = arith.constant 1.414000e+00 : f32
    %482 = vector.broadcast %cst_231 : f32 to vector<32x128xf32>
    %483 = arith.divf %481, %482 : vector<32x128xf32>
    %c1_232 = arith.constant 1 : index
    %c0_233 = arith.constant 0 : index
    %c0_234 = arith.constant 0 : index
    %484 = vector.load %arg2[%c1_232, %c0_233, %c0_234] : memref<19x32x32xf32, #tpu.memory_space<vmem>>, vector<1x32x32xf32>
    %485 = vector.shape_cast %484 : vector<1x32x32xf32> to vector<32x32xf32>
    %cst_235 = arith.constant dense<0.000000e+00> : vector<32x128xf32>
    %486 = tpu.matmul %485, %483, %cst_235 {dimension_numbers = #tpu.dot_dimension_numbers<[1], [0], [0], [1], [0, 0, 1, 1], [], []>} : vector<32x32xf32>, vector<32x128xf32>, vector<32x128xf32> -> vector<32x128xf32>
    %c0_236 = arith.constant 0 : index
    %c2_237 = arith.constant 2 : index
    %487 = vector.load %arg8[%c0_236, %c2_237] : memref<64x30xf32, #tpu.memory_space<vmem>>, vector<32x1xf32>
    %488 = vector.broadcast %487 : vector<32x1xf32> to vector<32x128xf32>
    %489 = arith.addf %486, %488 : vector<32x128xf32>
    %490 = arith.mulf %489, %489 : vector<32x128xf32>
    %491 = arith.mulf %489, %490 : vector<32x128xf32>
    %cst_238 = arith.constant 4.471500e-02 : f32
    %492 = vector.broadcast %cst_238 : f32 to vector<32x128xf32>
    %493 = arith.mulf %492, %491 : vector<32x128xf32>
    %494 = arith.addf %489, %493 : vector<32x128xf32>
    %cst_239 = arith.constant 0.797884583 : f32
    %495 = vector.broadcast %cst_239 : f32 to vector<32x128xf32>
    %496 = arith.mulf %495, %494 : vector<32x128xf32>
    %497 = math.tanh %496 : vector<32x128xf32>
    %cst_240 = arith.constant 1.000000e+00 : f32
    %498 = vector.broadcast %cst_240 : f32 to vector<32x128xf32>
    %499 = arith.addf %498, %497 : vector<32x128xf32>
    %cst_241 = arith.constant 5.000000e-01 : f32
    %500 = vector.broadcast %cst_241 : f32 to vector<32x128xf32>
    %501 = arith.mulf %500, %499 : vector<32x128xf32>
    %502 = arith.mulf %489, %501 : vector<32x128xf32>
    %c2_242 = arith.constant 2 : index
    %c0_243 = arith.constant 0 : index
    %c0_244 = arith.constant 0 : index
    %503 = vector.load %arg2[%c2_242, %c0_243, %c0_244] : memref<19x32x32xf32, #tpu.memory_space<vmem>>, vector<1x32x32xf32>
    %504 = vector.shape_cast %503 : vector<1x32x32xf32> to vector<32x32xf32>
    %cst_245 = arith.constant dense<0.000000e+00> : vector<32x128xf32>
    %505 = tpu.matmul %504, %502, %cst_245 {dimension_numbers = #tpu.dot_dimension_numbers<[1], [0], [0], [1], [0, 0, 1, 1], [], []>} : vector<32x32xf32>, vector<32x128xf32>, vector<32x128xf32> -> vector<32x128xf32>
    %c0_246 = arith.constant 0 : index
    %c3_247 = arith.constant 3 : index
    %506 = vector.load %arg8[%c0_246, %c3_247] : memref<64x30xf32, #tpu.memory_space<vmem>>, vector<32x1xf32>
    %507 = vector.broadcast %506 : vector<32x1xf32> to vector<32x128xf32>
    %508 = arith.addf %505, %507 : vector<32x128xf32>
    %509 = arith.mulf %508, %508 : vector<32x128xf32>
    %510 = arith.mulf %508, %509 : vector<32x128xf32>
    %cst_248 = arith.constant 4.471500e-02 : f32
    %511 = vector.broadcast %cst_248 : f32 to vector<32x128xf32>
    %512 = arith.mulf %511, %510 : vector<32x128xf32>
    %513 = arith.addf %508, %512 : vector<32x128xf32>
    %cst_249 = arith.constant 0.797884583 : f32
    %514 = vector.broadcast %cst_249 : f32 to vector<32x128xf32>
    %515 = arith.mulf %514, %513 : vector<32x128xf32>
    %516 = math.tanh %515 : vector<32x128xf32>
    %cst_250 = arith.constant 1.000000e+00 : f32
    %517 = vector.broadcast %cst_250 : f32 to vector<32x128xf32>
    %518 = arith.addf %517, %516 : vector<32x128xf32>
    %cst_251 = arith.constant 5.000000e-01 : f32
    %519 = vector.broadcast %cst_251 : f32 to vector<32x128xf32>
    %520 = arith.mulf %519, %518 : vector<32x128xf32>
    %521 = arith.mulf %508, %520 : vector<32x128xf32>
    %c3_252 = arith.constant 3 : index
    %c0_253 = arith.constant 0 : index
    %c0_254 = arith.constant 0 : index
    %522 = vector.load %arg2[%c3_252, %c0_253, %c0_254] : memref<19x32x32xf32, #tpu.memory_space<vmem>>, vector<1x32x32xf32>
    %523 = vector.shape_cast %522 : vector<1x32x32xf32> to vector<32x32xf32>
    %cst_255 = arith.constant dense<0.000000e+00> : vector<32x128xf32>
    %524 = tpu.matmul %523, %521, %cst_255 {dimension_numbers = #tpu.dot_dimension_numbers<[1], [0], [0], [1], [0, 0, 1, 1], [], []>} : vector<32x32xf32>, vector<32x128xf32>, vector<32x128xf32> -> vector<32x128xf32>
    %c0_256 = arith.constant 0 : index
    %c4_257 = arith.constant 4 : index
    %525 = vector.load %arg8[%c0_256, %c4_257] : memref<64x30xf32, #tpu.memory_space<vmem>>, vector<32x1xf32>
    %526 = vector.broadcast %525 : vector<32x1xf32> to vector<32x128xf32>
    %527 = arith.addf %524, %526 : vector<32x128xf32>
    %c4_258 = arith.constant 4 : index
    %c0_259 = arith.constant 0 : index
    %c0_260 = arith.constant 0 : index
    %528 = vector.load %arg2[%c4_258, %c0_259, %c0_260] : memref<19x32x32xf32, #tpu.memory_space<vmem>>, vector<1x32x32xf32>
    %529 = vector.shape_cast %528 : vector<1x32x32xf32> to vector<32x32xf32>
    %cst_261 = arith.constant dense<0.000000e+00> : vector<32x128xf32>
    %530 = tpu.matmul %529, %527, %cst_261 {dimension_numbers = #tpu.dot_dimension_numbers<[1], [0], [0], [1], [0, 0, 1, 1], [], []>} : vector<32x32xf32>, vector<32x128xf32>, vector<32x128xf32> -> vector<32x128xf32>
    %c0_262 = arith.constant 0 : index
    %c5_263 = arith.constant 5 : index
    %531 = vector.load %arg8[%c0_262, %c5_263] : memref<64x30xf32, #tpu.memory_space<vmem>>, vector<32x1xf32>
    %532 = vector.broadcast %531 : vector<32x1xf32> to vector<32x128xf32>
    %533 = arith.addf %530, %532 : vector<32x128xf32>
    %534 = arith.mulf %533, %533 : vector<32x128xf32>
    %535 = arith.mulf %533, %534 : vector<32x128xf32>
    %cst_264 = arith.constant 4.471500e-02 : f32
    %536 = vector.broadcast %cst_264 : f32 to vector<32x128xf32>
    %537 = arith.mulf %536, %535 : vector<32x128xf32>
    %538 = arith.addf %533, %537 : vector<32x128xf32>
    %cst_265 = arith.constant 0.797884583 : f32
    %539 = vector.broadcast %cst_265 : f32 to vector<32x128xf32>
    %540 = arith.mulf %539, %538 : vector<32x128xf32>
    %541 = math.tanh %540 : vector<32x128xf32>
    %cst_266 = arith.constant 1.000000e+00 : f32
    %542 = vector.broadcast %cst_266 : f32 to vector<32x128xf32>
    %543 = arith.addf %542, %541 : vector<32x128xf32>
    %cst_267 = arith.constant 5.000000e-01 : f32
    %544 = vector.broadcast %cst_267 : f32 to vector<32x128xf32>
    %545 = arith.mulf %544, %543 : vector<32x128xf32>
    %546 = arith.mulf %533, %545 : vector<32x128xf32>
    %c5_268 = arith.constant 5 : index
    %c0_269 = arith.constant 0 : index
    %c0_270 = arith.constant 0 : index
    %547 = vector.load %arg2[%c5_268, %c0_269, %c0_270] : memref<19x32x32xf32, #tpu.memory_space<vmem>>, vector<1x32x32xf32>
    %548 = vector.shape_cast %547 : vector<1x32x32xf32> to vector<32x32xf32>
    %cst_271 = arith.constant dense<0.000000e+00> : vector<32x128xf32>
    %549 = tpu.matmul %548, %546, %cst_271 {dimension_numbers = #tpu.dot_dimension_numbers<[1], [0], [0], [1], [0, 0, 1, 1], [], []>} : vector<32x32xf32>, vector<32x128xf32>, vector<32x128xf32> -> vector<32x128xf32>
    %c0_272 = arith.constant 0 : index
    %c6_273 = arith.constant 6 : index
    %550 = vector.load %arg8[%c0_272, %c6_273] : memref<64x30xf32, #tpu.memory_space<vmem>>, vector<32x1xf32>
    %551 = vector.broadcast %550 : vector<32x1xf32> to vector<32x128xf32>
    %552 = arith.addf %549, %551 : vector<32x128xf32>
    %553 = arith.mulf %552, %552 : vector<32x128xf32>
    %554 = arith.mulf %552, %553 : vector<32x128xf32>
    %cst_274 = arith.constant 4.471500e-02 : f32
    %555 = vector.broadcast %cst_274 : f32 to vector<32x128xf32>
    %556 = arith.mulf %555, %554 : vector<32x128xf32>
    %557 = arith.addf %552, %556 : vector<32x128xf32>
    %cst_275 = arith.constant 0.797884583 : f32
    %558 = vector.broadcast %cst_275 : f32 to vector<32x128xf32>
    %559 = arith.mulf %558, %557 : vector<32x128xf32>
    %560 = math.tanh %559 : vector<32x128xf32>
    %cst_276 = arith.constant 1.000000e+00 : f32
    %561 = vector.broadcast %cst_276 : f32 to vector<32x128xf32>
    %562 = arith.addf %561, %560 : vector<32x128xf32>
    %cst_277 = arith.constant 5.000000e-01 : f32
    %563 = vector.broadcast %cst_277 : f32 to vector<32x128xf32>
    %564 = arith.mulf %563, %562 : vector<32x128xf32>
    %565 = arith.mulf %552, %564 : vector<32x128xf32>
    %c6_278 = arith.constant 6 : index
    %c0_279 = arith.constant 0 : index
    %c0_280 = arith.constant 0 : index
    %566 = vector.load %arg2[%c6_278, %c0_279, %c0_280] : memref<19x32x32xf32, #tpu.memory_space<vmem>>, vector<1x32x32xf32>
    %567 = vector.shape_cast %566 : vector<1x32x32xf32> to vector<32x32xf32>
    %cst_281 = arith.constant dense<0.000000e+00> : vector<32x128xf32>
    %568 = tpu.matmul %567, %565, %cst_281 {dimension_numbers = #tpu.dot_dimension_numbers<[1], [0], [0], [1], [0, 0, 1, 1], [], []>} : vector<32x32xf32>, vector<32x128xf32>, vector<32x128xf32> -> vector<32x128xf32>
    %c0_282 = arith.constant 0 : index
    %c7_283 = arith.constant 7 : index
    %569 = vector.load %arg8[%c0_282, %c7_283] : memref<64x30xf32, #tpu.memory_space<vmem>>, vector<32x1xf32>
    %570 = vector.broadcast %569 : vector<32x1xf32> to vector<32x128xf32>
    %571 = arith.addf %568, %570 : vector<32x128xf32>
    %c7_284 = arith.constant 7 : index
    %c0_285 = arith.constant 0 : index
    %c0_286 = arith.constant 0 : index
    %572 = vector.load %arg2[%c7_284, %c0_285, %c0_286] : memref<19x32x32xf32, #tpu.memory_space<vmem>>, vector<1x32x32xf32>
    %573 = vector.shape_cast %572 : vector<1x32x32xf32> to vector<32x32xf32>
    %cst_287 = arith.constant dense<0.000000e+00> : vector<32x128xf32>
    %574 = tpu.matmul %573, %571, %cst_287 {dimension_numbers = #tpu.dot_dimension_numbers<[1], [0], [0], [1], [0, 0, 1, 1], [], []>} : vector<32x32xf32>, vector<32x128xf32>, vector<32x128xf32> -> vector<32x128xf32>
    %c0_288 = arith.constant 0 : index
    %c8_289 = arith.constant 8 : index
    %575 = vector.load %arg8[%c0_288, %c8_289] : memref<64x30xf32, #tpu.memory_space<vmem>>, vector<32x1xf32>
    %576 = vector.broadcast %575 : vector<32x1xf32> to vector<32x128xf32>
    %577 = arith.addf %574, %576 : vector<32x128xf32>
    %578 = arith.mulf %577, %577 : vector<32x128xf32>
    %579 = arith.mulf %577, %578 : vector<32x128xf32>
    %cst_290 = arith.constant 4.471500e-02 : f32
    %580 = vector.broadcast %cst_290 : f32 to vector<32x128xf32>
    %581 = arith.mulf %580, %579 : vector<32x128xf32>
    %582 = arith.addf %577, %581 : vector<32x128xf32>
    %cst_291 = arith.constant 0.797884583 : f32
    %583 = vector.broadcast %cst_291 : f32 to vector<32x128xf32>
    %584 = arith.mulf %583, %582 : vector<32x128xf32>
    %585 = math.tanh %584 : vector<32x128xf32>
    %cst_292 = arith.constant 1.000000e+00 : f32
    %586 = vector.broadcast %cst_292 : f32 to vector<32x128xf32>
    %587 = arith.addf %586, %585 : vector<32x128xf32>
    %cst_293 = arith.constant 5.000000e-01 : f32
    %588 = vector.broadcast %cst_293 : f32 to vector<32x128xf32>
    %589 = arith.mulf %588, %587 : vector<32x128xf32>
    %590 = arith.mulf %577, %589 : vector<32x128xf32>
    %c0_294 = arith.constant 0 : index
    %c0_295 = arith.constant 0 : index
    %591 = vector.load %arg4[%c0_294, %c0_295] : memref<64x72xf32, #tpu.memory_space<vmem>>, vector<64x72xf32>
    %cst_296 = arith.constant dense<0.000000e+00> : vector<64x128xf32>
    %592 = tpu.matmul %591, %443, %cst_296 {dimension_numbers = #tpu.dot_dimension_numbers<[1], [0], [0], [1], [0, 0, 1, 1], [], []>} : vector<64x72xf32>, vector<72x128xf32>, vector<64x128xf32> -> vector<64x128xf32>
    %c0_297 = arith.constant 0 : index
    %c11_298 = arith.constant 11 : index
    %593 = vector.load %arg8[%c0_297, %c11_298] : memref<64x30xf32, #tpu.memory_space<vmem>>, vector<64x1xf32>
    %594 = vector.broadcast %593 : vector<64x1xf32> to vector<64x128xf32>
    %595 = arith.addf %592, %594 : vector<64x128xf32>
    %596 = arith.mulf %595, %595 : vector<64x128xf32>
    %597 = arith.mulf %595, %596 : vector<64x128xf32>
    %cst_299 = arith.constant 4.471500e-02 : f32
    %598 = vector.broadcast %cst_299 : f32 to vector<64x128xf32>
    %599 = arith.mulf %598, %597 : vector<64x128xf32>
    %600 = arith.addf %595, %599 : vector<64x128xf32>
    %cst_300 = arith.constant 0.797884583 : f32
    %601 = vector.broadcast %cst_300 : f32 to vector<64x128xf32>
    %602 = arith.mulf %601, %600 : vector<64x128xf32>
    %603 = math.tanh %602 : vector<64x128xf32>
    %cst_301 = arith.constant 1.000000e+00 : f32
    %604 = vector.broadcast %cst_301 : f32 to vector<64x128xf32>
    %605 = arith.addf %604, %603 : vector<64x128xf32>
    %cst_302 = arith.constant 5.000000e-01 : f32
    %606 = vector.broadcast %cst_302 : f32 to vector<64x128xf32>
    %607 = arith.mulf %606, %605 : vector<64x128xf32>
    %608 = arith.mulf %595, %607 : vector<64x128xf32>
    %c0_303 = arith.constant 0 : index
    %c9_304 = arith.constant 9 : index
    %609 = vector.load %arg8[%c0_303, %c9_304] : memref<64x30xf32, #tpu.memory_space<vmem>>, vector<64x1xf32>
    %610 = vector.broadcast %609 : vector<64x1xf32> to vector<64x128xf32>
    %611 = vector.broadcast %436 : vector<1x128xf32> to vector<64x128xf32>
    %612 = arith.mulf %610, %611 : vector<64x128xf32>
    %c0_305 = arith.constant 0 : index
    %c10_306 = arith.constant 10 : index
    %613 = vector.load %arg8[%c0_305, %c10_306] : memref<64x30xf32, #tpu.memory_space<vmem>>, vector<64x1xf32>
    %614 = vector.broadcast %613 : vector<64x1xf32> to vector<64x128xf32>
    %615 = arith.addf %612, %614 : vector<64x128xf32>
    %616 = arith.mulf %615, %615 : vector<64x128xf32>
    %617 = arith.mulf %615, %616 : vector<64x128xf32>
    %cst_307 = arith.constant 4.471500e-02 : f32
    %618 = vector.broadcast %cst_307 : f32 to vector<64x128xf32>
    %619 = arith.mulf %618, %617 : vector<64x128xf32>
    %620 = arith.addf %615, %619 : vector<64x128xf32>
    %cst_308 = arith.constant 0.797884583 : f32
    %621 = vector.broadcast %cst_308 : f32 to vector<64x128xf32>
    %622 = arith.mulf %621, %620 : vector<64x128xf32>
    %623 = math.tanh %622 : vector<64x128xf32>
    %cst_309 = arith.constant 1.000000e+00 : f32
    %624 = vector.broadcast %cst_309 : f32 to vector<64x128xf32>
    %625 = arith.addf %624, %623 : vector<64x128xf32>
    %cst_310 = arith.constant 5.000000e-01 : f32
    %626 = vector.broadcast %cst_310 : f32 to vector<64x128xf32>
    %627 = arith.mulf %626, %625 : vector<64x128xf32>
    %628 = arith.mulf %615, %627 : vector<64x128xf32>
    %c0_311 = arith.constant 0 : index
    %c0_312 = arith.constant 0 : index
    %629 = vector.load %arg5[%c0_311, %c0_312] : memref<64x128xf32, #tpu.memory_space<vmem>>, vector<64x128xf32>
    %630 = tpu.concatenate %608, %628 in 0 : vector<64x128xf32>, vector<64x128xf32> -> vector<128x128xf32>
    %cst_313 = arith.constant dense<0.000000e+00> : vector<64x128xf32>
    %631 = tpu.matmul %629, %630, %cst_313 {dimension_numbers = #tpu.dot_dimension_numbers<[1], [0], [0], [1], [0, 0, 1, 1], [], []>} : vector<64x128xf32>, vector<128x128xf32>, vector<64x128xf32> -> vector<64x128xf32>
    %c0_314 = arith.constant 0 : index
    %c12_315 = arith.constant 12 : index
    %632 = vector.load %arg8[%c0_314, %c12_315] : memref<64x30xf32, #tpu.memory_space<vmem>>, vector<64x1xf32>
    %633 = vector.broadcast %632 : vector<64x1xf32> to vector<64x128xf32>
    %634 = arith.addf %631, %633 : vector<64x128xf32>
    %c8_316 = arith.constant 8 : index
    %c0_317 = arith.constant 0 : index
    %c0_318 = arith.constant 0 : index
    %635 = vector.load %arg2[%c8_316, %c0_317, %c0_318] : memref<19x32x32xf32, #tpu.memory_space<vmem>>, vector<1x32x32xf32>
    %636 = vector.shape_cast %635 : vector<1x32x32xf32> to vector<32x32xf32>
    %cst_319 = arith.constant dense<0.000000e+00> : vector<32x128xf32>
    %637 = tpu.matmul %636, %590, %cst_319 {dimension_numbers = #tpu.dot_dimension_numbers<[1], [0], [0], [1], [0, 0, 1, 1], [], []>} : vector<32x32xf32>, vector<32x128xf32>, vector<32x128xf32> -> vector<32x128xf32>
    %c0_320 = arith.constant 0 : index
    %c13_321 = arith.constant 13 : index
    %638 = vector.load %arg8[%c0_320, %c13_321] : memref<64x30xf32, #tpu.memory_space<vmem>>, vector<32x1xf32>
    %639 = vector.broadcast %638 : vector<32x1xf32> to vector<32x128xf32>
    %640 = arith.addf %637, %639 : vector<32x128xf32>
    %c18_322 = arith.constant 18 : index
    %c0_323 = arith.constant 0 : index
    %c0_324 = arith.constant 0 : index
    %641 = vector.load %arg2[%c18_322, %c0_323, %c0_324] : memref<19x32x32xf32, #tpu.memory_space<vmem>>, vector<1x32x32xf32>
    %642 = vector.shape_cast %641 : vector<1x32x32xf32> to vector<32x32xf32>
    %cst_325 = arith.constant dense<0.000000e+00> : vector<32x128xf32>
    %643 = tpu.matmul %642, %640, %cst_325 {dimension_numbers = #tpu.dot_dimension_numbers<[1], [0], [0], [1], [0, 0, 1, 1], [], []>} : vector<32x32xf32>, vector<32x128xf32>, vector<32x128xf32> -> vector<32x128xf32>
    %644 = arith.subf %640, %643 : vector<32x128xf32>
    %645 = arith.mulf %644, %644 : vector<32x128xf32>
    %cst_326 = arith.constant dense<0.000000e+00> : vector<32x128xf32>
    %646 = tpu.matmul %642, %645, %cst_326 {dimension_numbers = #tpu.dot_dimension_numbers<[1], [0], [0], [1], [0, 0, 1, 1], [], []>} : vector<32x32xf32>, vector<32x128xf32>, vector<32x128xf32> -> vector<32x128xf32>
    %cst_327 = arith.constant 9.99999974E-6 : f32
    %647 = vector.broadcast %cst_327 : f32 to vector<32x128xf32>
    %648 = arith.addf %646, %647 : vector<32x128xf32>
    %649 = math.rsqrt %648 : vector<32x128xf32>
    %650 = arith.mulf %644, %649 : vector<32x128xf32>
    %c0_328 = arith.constant 0 : index
    %c14_329 = arith.constant 14 : index
    %651 = vector.load %arg8[%c0_328, %c14_329] : memref<64x30xf32, #tpu.memory_space<vmem>>, vector<32x1xf32>
    %652 = vector.broadcast %651 : vector<32x1xf32> to vector<32x128xf32>
    %653 = arith.mulf %650, %652 : vector<32x128xf32>
    %c0_330 = arith.constant 0 : index
    %c15_331 = arith.constant 15 : index
    %654 = vector.load %arg8[%c0_330, %c15_331] : memref<64x30xf32, #tpu.memory_space<vmem>>, vector<32x1xf32>
    %655 = vector.broadcast %654 : vector<32x1xf32> to vector<32x128xf32>
    %656 = arith.addf %653, %655 : vector<32x128xf32>
    %cst_332 = arith.constant 0.000000e+00 : f32
    %657 = vector.broadcast %cst_332 : f32 to vector<32x128xf32>
    %658 = arith.maximumf %656, %657 : vector<32x128xf32>
    %659 = vector.extract_strided_slice %634 {offsets = [0, 0], sizes = [32, 128], strides = [1, 1]} : vector<64x128xf32> to vector<32x128xf32>
    %660 = arith.addf %658, %659 : vector<32x128xf32>
    %661 = tpu.concatenate %660, %571 in 0 : vector<32x128xf32>, vector<32x128xf32> -> vector<64x128xf32>
    %c0_333 = arith.constant 0 : index
    %c0_334 = arith.constant 0 : index
    %c0_335 = arith.constant 0 : index
    %662 = vector.load %arg6[%c0_333, %c0_334, %c0_335] : memref<2x32x64xf32, #tpu.memory_space<vmem>>, vector<1x32x64xf32>
    %663 = vector.shape_cast %662 : vector<1x32x64xf32> to vector<32x64xf32>
    %cst_336 = arith.constant dense<0.000000e+00> : vector<32x128xf32>
    %664 = tpu.matmul %663, %661, %cst_336 {dimension_numbers = #tpu.dot_dimension_numbers<[1], [0], [0], [1], [0, 0, 1, 1], [], []>} : vector<32x64xf32>, vector<64x128xf32>, vector<32x128xf32> -> vector<32x128xf32>
    %c0_337 = arith.constant 0 : index
    %c16_338 = arith.constant 16 : index
    %665 = vector.load %arg8[%c0_337, %c16_338] : memref<64x30xf32, #tpu.memory_space<vmem>>, vector<32x1xf32>
    %666 = vector.broadcast %665 : vector<32x1xf32> to vector<32x128xf32>
    %667 = arith.addf %664, %666 : vector<32x128xf32>
    %c9_339 = arith.constant 9 : index
    %c0_340 = arith.constant 0 : index
    %c0_341 = arith.constant 0 : index
    %668 = vector.load %arg2[%c9_339, %c0_340, %c0_341] : memref<19x32x32xf32, #tpu.memory_space<vmem>>, vector<1x32x32xf32>
    %669 = vector.shape_cast %668 : vector<1x32x32xf32> to vector<32x32xf32>
    %cst_342 = arith.constant dense<0.000000e+00> : vector<32x128xf32>
    %670 = tpu.matmul %669, %667, %cst_342 {dimension_numbers = #tpu.dot_dimension_numbers<[1], [0], [0], [1], [0, 0, 1, 1], [], []>} : vector<32x32xf32>, vector<32x128xf32>, vector<32x128xf32> -> vector<32x128xf32>
    %c0_343 = arith.constant 0 : index
    %c17_344 = arith.constant 17 : index
    %671 = vector.load %arg8[%c0_343, %c17_344] : memref<64x30xf32, #tpu.memory_space<vmem>>, vector<32x1xf32>
    %672 = vector.broadcast %671 : vector<32x1xf32> to vector<32x128xf32>
    %673 = arith.addf %670, %672 : vector<32x128xf32>
    %674 = arith.mulf %673, %673 : vector<32x128xf32>
    %675 = arith.mulf %673, %674 : vector<32x128xf32>
    %cst_345 = arith.constant 4.471500e-02 : f32
    %676 = vector.broadcast %cst_345 : f32 to vector<32x128xf32>
    %677 = arith.mulf %676, %675 : vector<32x128xf32>
    %678 = arith.addf %673, %677 : vector<32x128xf32>
    %cst_346 = arith.constant 0.797884583 : f32
    %679 = vector.broadcast %cst_346 : f32 to vector<32x128xf32>
    %680 = arith.mulf %679, %678 : vector<32x128xf32>
    %681 = math.tanh %680 : vector<32x128xf32>
    %cst_347 = arith.constant 1.000000e+00 : f32
    %682 = vector.broadcast %cst_347 : f32 to vector<32x128xf32>
    %683 = arith.addf %682, %681 : vector<32x128xf32>
    %cst_348 = arith.constant 5.000000e-01 : f32
    %684 = vector.broadcast %cst_348 : f32 to vector<32x128xf32>
    %685 = arith.mulf %684, %683 : vector<32x128xf32>
    %686 = arith.mulf %673, %685 : vector<32x128xf32>
    %c10_349 = arith.constant 10 : index
    %c0_350 = arith.constant 0 : index
    %c0_351 = arith.constant 0 : index
    %687 = vector.load %arg2[%c10_349, %c0_350, %c0_351] : memref<19x32x32xf32, #tpu.memory_space<vmem>>, vector<1x32x32xf32>
    %688 = vector.shape_cast %687 : vector<1x32x32xf32> to vector<32x32xf32>
    %cst_352 = arith.constant dense<0.000000e+00> : vector<32x128xf32>
    %689 = tpu.matmul %688, %686, %cst_352 {dimension_numbers = #tpu.dot_dimension_numbers<[1], [0], [0], [1], [0, 0, 1, 1], [], []>} : vector<32x32xf32>, vector<32x128xf32>, vector<32x128xf32> -> vector<32x128xf32>
    %c0_353 = arith.constant 0 : index
    %c18_354 = arith.constant 18 : index
    %690 = vector.load %arg8[%c0_353, %c18_354] : memref<64x30xf32, #tpu.memory_space<vmem>>, vector<32x1xf32>
    %691 = vector.broadcast %690 : vector<32x1xf32> to vector<32x128xf32>
    %692 = arith.addf %689, %691 : vector<32x128xf32>
    %693 = arith.mulf %692, %692 : vector<32x128xf32>
    %694 = arith.mulf %692, %693 : vector<32x128xf32>
    %cst_355 = arith.constant 4.471500e-02 : f32
    %695 = vector.broadcast %cst_355 : f32 to vector<32x128xf32>
    %696 = arith.mulf %695, %694 : vector<32x128xf32>
    %697 = arith.addf %692, %696 : vector<32x128xf32>
    %cst_356 = arith.constant 0.797884583 : f32
    %698 = vector.broadcast %cst_356 : f32 to vector<32x128xf32>
    %699 = arith.mulf %698, %697 : vector<32x128xf32>
    %700 = math.tanh %699 : vector<32x128xf32>
    %cst_357 = arith.constant 1.000000e+00 : f32
    %701 = vector.broadcast %cst_357 : f32 to vector<32x128xf32>
    %702 = arith.addf %701, %700 : vector<32x128xf32>
    %cst_358 = arith.constant 5.000000e-01 : f32
    %703 = vector.broadcast %cst_358 : f32 to vector<32x128xf32>
    %704 = arith.mulf %703, %702 : vector<32x128xf32>
    %705 = arith.mulf %692, %704 : vector<32x128xf32>
    %c11_359 = arith.constant 11 : index
    %c0_360 = arith.constant 0 : index
    %c0_361 = arith.constant 0 : index
    %706 = vector.load %arg2[%c11_359, %c0_360, %c0_361] : memref<19x32x32xf32, #tpu.memory_space<vmem>>, vector<1x32x32xf32>
    %707 = vector.shape_cast %706 : vector<1x32x32xf32> to vector<32x32xf32>
    %cst_362 = arith.constant dense<0.000000e+00> : vector<32x128xf32>
    %708 = tpu.matmul %707, %705, %cst_362 {dimension_numbers = #tpu.dot_dimension_numbers<[1], [0], [0], [1], [0, 0, 1, 1], [], []>} : vector<32x32xf32>, vector<32x128xf32>, vector<32x128xf32> -> vector<32x128xf32>
    %c0_363 = arith.constant 0 : index
    %c19_364 = arith.constant 19 : index
    %709 = vector.load %arg8[%c0_363, %c19_364] : memref<64x30xf32, #tpu.memory_space<vmem>>, vector<32x1xf32>
    %710 = vector.broadcast %709 : vector<32x1xf32> to vector<32x128xf32>
    %711 = arith.addf %708, %710 : vector<32x128xf32>
    %712 = arith.mulf %711, %711 : vector<32x128xf32>
    %713 = arith.mulf %711, %712 : vector<32x128xf32>
    %cst_365 = arith.constant 4.471500e-02 : f32
    %714 = vector.broadcast %cst_365 : f32 to vector<32x128xf32>
    %715 = arith.mulf %714, %713 : vector<32x128xf32>
    %716 = arith.addf %711, %715 : vector<32x128xf32>
    %cst_366 = arith.constant 0.797884583 : f32
    %717 = vector.broadcast %cst_366 : f32 to vector<32x128xf32>
    %718 = arith.mulf %717, %716 : vector<32x128xf32>
    %719 = math.tanh %718 : vector<32x128xf32>
    %cst_367 = arith.constant 1.000000e+00 : f32
    %720 = vector.broadcast %cst_367 : f32 to vector<32x128xf32>
    %721 = arith.addf %720, %719 : vector<32x128xf32>
    %cst_368 = arith.constant 5.000000e-01 : f32
    %722 = vector.broadcast %cst_368 : f32 to vector<32x128xf32>
    %723 = arith.mulf %722, %721 : vector<32x128xf32>
    %724 = arith.mulf %711, %723 : vector<32x128xf32>
    %c12_369 = arith.constant 12 : index
    %c0_370 = arith.constant 0 : index
    %c0_371 = arith.constant 0 : index
    %725 = vector.load %arg2[%c12_369, %c0_370, %c0_371] : memref<19x32x32xf32, #tpu.memory_space<vmem>>, vector<1x32x32xf32>
    %726 = vector.shape_cast %725 : vector<1x32x32xf32> to vector<32x32xf32>
    %cst_372 = arith.constant dense<0.000000e+00> : vector<32x128xf32>
    %727 = tpu.matmul %726, %724, %cst_372 {dimension_numbers = #tpu.dot_dimension_numbers<[1], [0], [0], [1], [0, 0, 1, 1], [], []>} : vector<32x32xf32>, vector<32x128xf32>, vector<32x128xf32> -> vector<32x128xf32>
    %c0_373 = arith.constant 0 : index
    %c20_374 = arith.constant 20 : index
    %728 = vector.load %arg8[%c0_373, %c20_374] : memref<64x30xf32, #tpu.memory_space<vmem>>, vector<32x1xf32>
    %729 = vector.broadcast %728 : vector<32x1xf32> to vector<32x128xf32>
    %730 = arith.addf %727, %729 : vector<32x128xf32>
    %731 = arith.mulf %730, %730 : vector<32x128xf32>
    %732 = arith.mulf %730, %731 : vector<32x128xf32>
    %cst_375 = arith.constant 4.471500e-02 : f32
    %733 = vector.broadcast %cst_375 : f32 to vector<32x128xf32>
    %734 = arith.mulf %733, %732 : vector<32x128xf32>
    %735 = arith.addf %730, %734 : vector<32x128xf32>
    %cst_376 = arith.constant 0.797884583 : f32
    %736 = vector.broadcast %cst_376 : f32 to vector<32x128xf32>
    %737 = arith.mulf %736, %735 : vector<32x128xf32>
    %738 = math.tanh %737 : vector<32x128xf32>
    %cst_377 = arith.constant 1.000000e+00 : f32
    %739 = vector.broadcast %cst_377 : f32 to vector<32x128xf32>
    %740 = arith.addf %739, %738 : vector<32x128xf32>
    %cst_378 = arith.constant 5.000000e-01 : f32
    %741 = vector.broadcast %cst_378 : f32 to vector<32x128xf32>
    %742 = arith.mulf %741, %740 : vector<32x128xf32>
    %743 = arith.mulf %730, %742 : vector<32x128xf32>
    %744 = vector.extract_strided_slice %634 {offsets = [32, 0], sizes = [32, 128], strides = [1, 1]} : vector<64x128xf32> to vector<32x128xf32>
    %745 = arith.addf %743, %744 : vector<32x128xf32>
    %746 = tpu.concatenate %745, %527 in 0 : vector<32x128xf32>, vector<32x128xf32> -> vector<64x128xf32>
    %c1_379 = arith.constant 1 : index
    %c0_380 = arith.constant 0 : index
    %c0_381 = arith.constant 0 : index
    %747 = vector.load %arg6[%c1_379, %c0_380, %c0_381] : memref<2x32x64xf32, #tpu.memory_space<vmem>>, vector<1x32x64xf32>
    %748 = vector.shape_cast %747 : vector<1x32x64xf32> to vector<32x64xf32>
    %cst_382 = arith.constant dense<0.000000e+00> : vector<32x128xf32>
    %749 = tpu.matmul %748, %746, %cst_382 {dimension_numbers = #tpu.dot_dimension_numbers<[1], [0], [0], [1], [0, 0, 1, 1], [], []>} : vector<32x64xf32>, vector<64x128xf32>, vector<32x128xf32> -> vector<32x128xf32>
    %c0_383 = arith.constant 0 : index
    %c21_384 = arith.constant 21 : index
    %750 = vector.load %arg8[%c0_383, %c21_384] : memref<64x30xf32, #tpu.memory_space<vmem>>, vector<32x1xf32>
    %751 = vector.broadcast %750 : vector<32x1xf32> to vector<32x128xf32>
    %752 = arith.addf %749, %751 : vector<32x128xf32>
    %c13_385 = arith.constant 13 : index
    %c0_386 = arith.constant 0 : index
    %c0_387 = arith.constant 0 : index
    %753 = vector.load %arg2[%c13_385, %c0_386, %c0_387] : memref<19x32x32xf32, #tpu.memory_space<vmem>>, vector<1x32x32xf32>
    %754 = vector.shape_cast %753 : vector<1x32x32xf32> to vector<32x32xf32>
    %cst_388 = arith.constant dense<0.000000e+00> : vector<32x128xf32>
    %755 = tpu.matmul %754, %752, %cst_388 {dimension_numbers = #tpu.dot_dimension_numbers<[1], [0], [0], [1], [0, 0, 1, 1], [], []>} : vector<32x32xf32>, vector<32x128xf32>, vector<32x128xf32> -> vector<32x128xf32>
    %c0_389 = arith.constant 0 : index
    %c22_390 = arith.constant 22 : index
    %756 = vector.load %arg8[%c0_389, %c22_390] : memref<64x30xf32, #tpu.memory_space<vmem>>, vector<32x1xf32>
    %757 = vector.broadcast %756 : vector<32x1xf32> to vector<32x128xf32>
    %758 = arith.addf %755, %757 : vector<32x128xf32>
    %759 = arith.mulf %758, %758 : vector<32x128xf32>
    %760 = arith.mulf %758, %759 : vector<32x128xf32>
    %cst_391 = arith.constant 4.471500e-02 : f32
    %761 = vector.broadcast %cst_391 : f32 to vector<32x128xf32>
    %762 = arith.mulf %761, %760 : vector<32x128xf32>
    %763 = arith.addf %758, %762 : vector<32x128xf32>
    %cst_392 = arith.constant 0.797884583 : f32
    %764 = vector.broadcast %cst_392 : f32 to vector<32x128xf32>
    %765 = arith.mulf %764, %763 : vector<32x128xf32>
    %766 = math.tanh %765 : vector<32x128xf32>
    %cst_393 = arith.constant 1.000000e+00 : f32
    %767 = vector.broadcast %cst_393 : f32 to vector<32x128xf32>
    %768 = arith.addf %767, %766 : vector<32x128xf32>
    %cst_394 = arith.constant 5.000000e-01 : f32
    %769 = vector.broadcast %cst_394 : f32 to vector<32x128xf32>
    %770 = arith.mulf %769, %768 : vector<32x128xf32>
    %771 = arith.mulf %758, %770 : vector<32x128xf32>
    %c14_395 = arith.constant 14 : index
    %c0_396 = arith.constant 0 : index
    %c0_397 = arith.constant 0 : index
    %772 = vector.load %arg2[%c14_395, %c0_396, %c0_397] : memref<19x32x32xf32, #tpu.memory_space<vmem>>, vector<1x32x32xf32>
    %773 = vector.shape_cast %772 : vector<1x32x32xf32> to vector<32x32xf32>
    %cst_398 = arith.constant dense<0.000000e+00> : vector<32x128xf32>
    %774 = tpu.matmul %773, %771, %cst_398 {dimension_numbers = #tpu.dot_dimension_numbers<[1], [0], [0], [1], [0, 0, 1, 1], [], []>} : vector<32x32xf32>, vector<32x128xf32>, vector<32x128xf32> -> vector<32x128xf32>
    %c0_399 = arith.constant 0 : index
    %c23_400 = arith.constant 23 : index
    %775 = vector.load %arg8[%c0_399, %c23_400] : memref<64x30xf32, #tpu.memory_space<vmem>>, vector<32x1xf32>
    %776 = vector.broadcast %775 : vector<32x1xf32> to vector<32x128xf32>
    %777 = arith.addf %774, %776 : vector<32x128xf32>
    %778 = arith.mulf %777, %777 : vector<32x128xf32>
    %779 = arith.mulf %777, %778 : vector<32x128xf32>
    %cst_401 = arith.constant 4.471500e-02 : f32
    %780 = vector.broadcast %cst_401 : f32 to vector<32x128xf32>
    %781 = arith.mulf %780, %779 : vector<32x128xf32>
    %782 = arith.addf %777, %781 : vector<32x128xf32>
    %cst_402 = arith.constant 0.797884583 : f32
    %783 = vector.broadcast %cst_402 : f32 to vector<32x128xf32>
    %784 = arith.mulf %783, %782 : vector<32x128xf32>
    %785 = math.tanh %784 : vector<32x128xf32>
    %cst_403 = arith.constant 1.000000e+00 : f32
    %786 = vector.broadcast %cst_403 : f32 to vector<32x128xf32>
    %787 = arith.addf %786, %785 : vector<32x128xf32>
    %cst_404 = arith.constant 5.000000e-01 : f32
    %788 = vector.broadcast %cst_404 : f32 to vector<32x128xf32>
    %789 = arith.mulf %788, %787 : vector<32x128xf32>
    %790 = arith.mulf %777, %789 : vector<32x128xf32>
    %c15_405 = arith.constant 15 : index
    %c0_406 = arith.constant 0 : index
    %c0_407 = arith.constant 0 : index
    %791 = vector.load %arg2[%c15_405, %c0_406, %c0_407] : memref<19x32x32xf32, #tpu.memory_space<vmem>>, vector<1x32x32xf32>
    %792 = vector.shape_cast %791 : vector<1x32x32xf32> to vector<32x32xf32>
    %cst_408 = arith.constant dense<0.000000e+00> : vector<32x128xf32>
    %793 = tpu.matmul %792, %790, %cst_408 {dimension_numbers = #tpu.dot_dimension_numbers<[1], [0], [0], [1], [0, 0, 1, 1], [], []>} : vector<32x32xf32>, vector<32x128xf32>, vector<32x128xf32> -> vector<32x128xf32>
    %c0_409 = arith.constant 0 : index
    %c24_410 = arith.constant 24 : index
    %794 = vector.load %arg8[%c0_409, %c24_410] : memref<64x30xf32, #tpu.memory_space<vmem>>, vector<32x1xf32>
    %795 = vector.broadcast %794 : vector<32x1xf32> to vector<32x128xf32>
    %796 = arith.addf %793, %795 : vector<32x128xf32>
    %797 = arith.mulf %796, %796 : vector<32x128xf32>
    %798 = arith.mulf %796, %797 : vector<32x128xf32>
    %cst_411 = arith.constant 4.471500e-02 : f32
    %799 = vector.broadcast %cst_411 : f32 to vector<32x128xf32>
    %800 = arith.mulf %799, %798 : vector<32x128xf32>
    %801 = arith.addf %796, %800 : vector<32x128xf32>
    %cst_412 = arith.constant 0.797884583 : f32
    %802 = vector.broadcast %cst_412 : f32 to vector<32x128xf32>
    %803 = arith.mulf %802, %801 : vector<32x128xf32>
    %804 = math.tanh %803 : vector<32x128xf32>
    %cst_413 = arith.constant 1.000000e+00 : f32
    %805 = vector.broadcast %cst_413 : f32 to vector<32x128xf32>
    %806 = arith.addf %805, %804 : vector<32x128xf32>
    %cst_414 = arith.constant 5.000000e-01 : f32
    %807 = vector.broadcast %cst_414 : f32 to vector<32x128xf32>
    %808 = arith.mulf %807, %806 : vector<32x128xf32>
    %809 = arith.mulf %796, %808 : vector<32x128xf32>
    %c16_415 = arith.constant 16 : index
    %c0_416 = arith.constant 0 : index
    %c0_417 = arith.constant 0 : index
    %810 = vector.load %arg2[%c16_415, %c0_416, %c0_417] : memref<19x32x32xf32, #tpu.memory_space<vmem>>, vector<1x32x32xf32>
    %811 = vector.shape_cast %810 : vector<1x32x32xf32> to vector<32x32xf32>
    %cst_418 = arith.constant dense<0.000000e+00> : vector<32x128xf32>
    %812 = tpu.matmul %811, %809, %cst_418 {dimension_numbers = #tpu.dot_dimension_numbers<[1], [0], [0], [1], [0, 0, 1, 1], [], []>} : vector<32x32xf32>, vector<32x128xf32>, vector<32x128xf32> -> vector<32x128xf32>
    %c0_419 = arith.constant 0 : index
    %c25_420 = arith.constant 25 : index
    %813 = vector.load %arg8[%c0_419, %c25_420] : memref<64x30xf32, #tpu.memory_space<vmem>>, vector<32x1xf32>
    %814 = vector.broadcast %813 : vector<32x1xf32> to vector<32x128xf32>
    %815 = arith.addf %812, %814 : vector<32x128xf32>
    %816 = arith.mulf %815, %815 : vector<32x128xf32>
    %817 = arith.mulf %815, %816 : vector<32x128xf32>
    %cst_421 = arith.constant 4.471500e-02 : f32
    %818 = vector.broadcast %cst_421 : f32 to vector<32x128xf32>
    %819 = arith.mulf %818, %817 : vector<32x128xf32>
    %820 = arith.addf %815, %819 : vector<32x128xf32>
    %cst_422 = arith.constant 0.797884583 : f32
    %821 = vector.broadcast %cst_422 : f32 to vector<32x128xf32>
    %822 = arith.mulf %821, %820 : vector<32x128xf32>
    %823 = math.tanh %822 : vector<32x128xf32>
    %cst_423 = arith.constant 1.000000e+00 : f32
    %824 = vector.broadcast %cst_423 : f32 to vector<32x128xf32>
    %825 = arith.addf %824, %823 : vector<32x128xf32>
    %cst_424 = arith.constant 5.000000e-01 : f32
    %826 = vector.broadcast %cst_424 : f32 to vector<32x128xf32>
    %827 = arith.mulf %826, %825 : vector<32x128xf32>
    %828 = arith.mulf %815, %827 : vector<32x128xf32>
    %c17_425 = arith.constant 17 : index
    %c0_426 = arith.constant 0 : index
    %c0_427 = arith.constant 0 : index
    %829 = vector.load %arg2[%c17_425, %c0_426, %c0_427] : memref<19x32x32xf32, #tpu.memory_space<vmem>>, vector<1x32x32xf32>
    %830 = vector.shape_cast %829 : vector<1x32x32xf32> to vector<32x32xf32>
    %cst_428 = arith.constant dense<0.000000e+00> : vector<32x128xf32>
    %831 = tpu.matmul %830, %828, %cst_428 {dimension_numbers = #tpu.dot_dimension_numbers<[1], [0], [0], [1], [0, 0, 1, 1], [], []>} : vector<32x32xf32>, vector<32x128xf32>, vector<32x128xf32> -> vector<32x128xf32>
    %c0_429 = arith.constant 0 : index
    %c26_430 = arith.constant 26 : index
    %832 = vector.load %arg8[%c0_429, %c26_430] : memref<64x30xf32, #tpu.memory_space<vmem>>, vector<32x1xf32>
    %833 = vector.broadcast %832 : vector<32x1xf32> to vector<32x128xf32>
    %834 = arith.addf %831, %833 : vector<32x128xf32>
    %c18_431 = arith.constant 18 : index
    %c0_432 = arith.constant 0 : index
    %c0_433 = arith.constant 0 : index
    %835 = vector.load %arg2[%c18_431, %c0_432, %c0_433] : memref<19x32x32xf32, #tpu.memory_space<vmem>>, vector<1x32x32xf32>
    %836 = vector.shape_cast %835 : vector<1x32x32xf32> to vector<32x32xf32>
    %cst_434 = arith.constant dense<0.000000e+00> : vector<32x128xf32>
    %837 = tpu.matmul %836, %834, %cst_434 {dimension_numbers = #tpu.dot_dimension_numbers<[1], [0], [0], [1], [0, 0, 1, 1], [], []>} : vector<32x32xf32>, vector<32x128xf32>, vector<32x128xf32> -> vector<32x128xf32>
    %838 = arith.subf %834, %837 : vector<32x128xf32>
    %839 = arith.mulf %838, %838 : vector<32x128xf32>
    %cst_435 = arith.constant dense<0.000000e+00> : vector<32x128xf32>
    %840 = tpu.matmul %836, %839, %cst_435 {dimension_numbers = #tpu.dot_dimension_numbers<[1], [0], [0], [1], [0, 0, 1, 1], [], []>} : vector<32x32xf32>, vector<32x128xf32>, vector<32x128xf32> -> vector<32x128xf32>
    %cst_436 = arith.constant 9.99999974E-6 : f32
    %841 = vector.broadcast %cst_436 : f32 to vector<32x128xf32>
    %842 = arith.addf %840, %841 : vector<32x128xf32>
    %843 = math.rsqrt %842 : vector<32x128xf32>
    %844 = arith.mulf %838, %843 : vector<32x128xf32>
    %c0_437 = arith.constant 0 : index
    %c27_438 = arith.constant 27 : index
    %845 = vector.load %arg8[%c0_437, %c27_438] : memref<64x30xf32, #tpu.memory_space<vmem>>, vector<32x1xf32>
    %846 = vector.broadcast %845 : vector<32x1xf32> to vector<32x128xf32>
    %847 = arith.mulf %844, %846 : vector<32x128xf32>
    %c0_439 = arith.constant 0 : index
    %c28_440 = arith.constant 28 : index
    %848 = vector.load %arg8[%c0_439, %c28_440] : memref<64x30xf32, #tpu.memory_space<vmem>>, vector<32x1xf32>
    %849 = vector.broadcast %848 : vector<32x1xf32> to vector<32x128xf32>
    %850 = arith.addf %847, %849 : vector<32x128xf32>
    %cst_441 = arith.constant 0.000000e+00 : f32
    %851 = vector.broadcast %cst_441 : f32 to vector<32x128xf32>
    %852 = arith.maximumf %850, %851 : vector<32x128xf32>
    %c0_442 = arith.constant 0 : index
    %c0_443 = arith.constant 0 : index
    %853 = vector.load %arg7[%c0_442, %c0_443] : memref<64x32xf32, #tpu.memory_space<vmem>>, vector<64x32xf32>
    %cst_444 = arith.constant dense<0.000000e+00> : vector<64x128xf32>
    %854 = tpu.matmul %853, %852, %cst_444 {dimension_numbers = #tpu.dot_dimension_numbers<[1], [0], [0], [1], [0, 0, 1, 1], [], []>} : vector<64x32xf32>, vector<32x128xf32>, vector<64x128xf32> -> vector<64x128xf32>
    %c0_445 = arith.constant 0 : index
    %c29_446 = arith.constant 29 : index
    %855 = vector.load %arg8[%c0_445, %c29_446] : memref<64x30xf32, #tpu.memory_space<vmem>>, vector<64x1xf32>
    %856 = vector.broadcast %855 : vector<64x1xf32> to vector<64x128xf32>
    %857 = arith.addf %854, %856 : vector<64x128xf32>
    %c0_447 = arith.constant 0 : index
    %858 = arith.index_cast %431 : i32 to index
    %859 = vector.load %arg9[%c0_447, %858] : memref<64x256xf32, #tpu.memory_space<vmem>>, vector<64x128xf32>
    tpu.vector_store %arg9[%c0_447, %858], %857 {strides = array<i32>} : memref<64x256xf32, #tpu.memory_space<vmem>>, vector<64x128xf32>,
    %c2_i32 = arith.constant 2 : i32
    return
  }
  func.func @transform_0(%arg0: i32) -> (i32, i32) {
    %c0_i32 = arith.constant 0 : i32
    %c0_i32_0 = arith.constant 0 : i32
    return %c0_i32, %arg0 : i32, i32
  }
  func.func @transform_1(%arg0: i32) -> (i32, i32, i32) {
    %c0_i32 = arith.constant 0 : i32
    %c0_i32_0 = arith.constant 0 : i32
    %c0_i32_1 = arith.constant 0 : i32
    %c0_i32_2 = arith.constant 0 : i32
    return %c0_i32, %c0_i32_0, %c0_i32_1 : i32, i32, i32
  }
  func.func @transform_2(%arg0: i32) -> (i32, i32) {
    %c0_i32 = arith.constant 0 : i32
    %c0_i32_0 = arith.constant 0 : i32
    %c0_i32_1 = arith.constant 0 : i32
    return %c0_i32, %c0_i32_0 : i32, i32
  }
  func.func @transform_3(%arg0: i32) -> (i32, i32) {
    %c0_i32 = arith.constant 0 : i32
    %c0_i32_0 = arith.constant 0 : i32
    %c0_i32_1 = arith.constant 0 : i32
    return %c0_i32, %c0_i32_0 : i32, i32
  }
  func.func @transform_4(%arg0: i32) -> (i32, i32) {
    %c0_i32 = arith.constant 0 : i32
    %c0_i32_0 = arith.constant 0 : i32
    %c0_i32_1 = arith.constant 0 : i32
    return %c0_i32, %c0_i32_0 : i32, i32
  }
  func.func @transform_5(%arg0: i32) -> (i32, i32, i32) {
    %c0_i32 = arith.constant 0 : i32
    %c0_i32_0 = arith.constant 0 : i32
    %c0_i32_1 = arith.constant 0 : i32
    %c0_i32_2 = arith.constant 0 : i32
    return %c0_i32, %c0_i32_0, %c0_i32_1 : i32, i32, i32
  }
  func.func @transform_6(%arg0: i32) -> (i32, i32) {
    %c0_i32 = arith.constant 0 : i32
    %c0_i32_0 = arith.constant 0 : i32
    %c0_i32_1 = arith.constant 0 : i32
    return %c0_i32, %c0_i32_0 : i32, i32
  }
  func.func @transform_7(%arg0: i32) -> (i32, i32) {
    %c0_i32 = arith.constant 0 : i32
    %c0_i32_0 = arith.constant 0 : i32
    %c0_i32_1 = arith.constant 0 : i32
    return %c0_i32, %c0_i32_0 : i32, i32
  }
  func.func @transform_8(%arg0: i32) -> (i32, i32) {
    %c0_i32 = arith.constant 0 : i32
    %c0_i32_0 = arith.constant 0 : i32
    return %c0_i32, %arg0 : i32, i32
  }
}

</mosaic_0001>

<bundles_post_ra>
// kernel: tpu_custom_call.1
= control target key start
LH: loop header
LB: loop body
LE: loop exit
PB: predicated region body
PF: predicated region fallthrough
CT: control target
= control target key end

     0   :  { %13 = vsyncpa [#allocation3], 0  ;;  %s14274_s0 = inlined_call_operand.hbm [shape: f32[144,512], index: 0, kind: input, shape index: {}]   ;;  %s14275_s1 = inlined_call_operand.hbm [shape: f32[19,32,32], index: 1, kind: input, shape index: {}]   ;;  %s14276_s2 = inlined_call_operand.hbm [shape: f32[32,64], index: 2, kind: input, shape index: {}]   ;;  %s14277_s3 = inlined_call_operand.vmem [shape: f32[64,72], index: 3, kind: input, shape index: {}]   ;;  %s14278_s4 = inlined_call_operand.vmem [shape: f32[64,128], index: 4, kind: input, shape index: {}]   ;;  %s14279_s5 = inlined_call_operand.vmem [shape: f32[2,32,64], index: 5, kind: input, shape index: {}]   ;;  %s14280_s6 = inlined_call_operand.vmem [shape: f32[64,32], index: 6, kind: input, shape index: {}]   ;;  %s14281_s7 = inlined_call_operand.vmem [shape: f32[64,30], index: 7, kind: input, shape index: {}]   ;;  %s14282_s8 = inlined_call_operand.hbm [shape: f32[64,512], index: 8, kind: output, shape index: {}]  }
   0x1   :  { %15 = vsyncpa [#allocation3 + $0x1], 0 }
   0x2   :  { %16 = vsyncpa [#allocation6], 0 }
   0x3   :  { %17 = vsyncpa [#allocation4], 0 }
   0x4   :  { %19 = vsyncpa [#allocation4 + $0x1], 0  ;;  %s12184_s27 = smov 0   ;;  %s12186_s28 = smov 0  }
   0x5   :  { %s12188_s29 = smov 0   ;;  %s12190_s30 = smov 0  }
   0x6 LB: > { %s12205_s9 = sadd.s32 4294967295, %s12095_s30   ;;  %s9014_s10 = sadd.s32 4294967294, %s12095_s30   ;;  %s12095_s30 = sphi %s12190_s30, %s14499_s30   ;;  %s12091_s29 = sphi %s12188_s29, %s14503_s29   ;;  %s12087_s28 = sphi %s12186_s28, %s14502_s28   ;;  %s12083_s27 = sphi %s12184_s27, %s14501_s27  }
   0x7   : > { %s12209_s11 = sadd.s32 1, %s12095_s30   ;;  %s32_s12 = sadd.s32 1, %s12091_s29 }
   0x8   : > { %14306 = sst [smem:[#allocation12_spill]] %s12209_s11  ;;  %s29_s13 = ssub.s32 %s12095_s30, %s12209_s11 }
   0x9   : > { %p39_p0 = scmp.ne.s32.totalorder %s12091_s29, %s12087_s28  ;;  %p30_p1 = scmp.eq.s32.totalorder %s29_s13, 0 }
   0xa   : > { %p40_p2 = scmp.eq.s32.totalorder %s12095_s30, 0  ;;  %p45_p3 = scmp.ne.s32.totalorder %s12087_s28, %s12083_s27 }
   0xb   : > { %p14283_p4 = scmp.eq.s32.totalorder %s12205_s9, 0  ;;  %p216_p7 = scmp.eq.s32.totalorder %s12205_s9, 1 }
   0xc   : > { %s12221_s14 = scalar_select %p30_p1, %s12091_s29, %s32_s12  }
   0xd   : > { %p12223_p5 = por %p40_p2, %p39_p0  ;;  %p12229_p6 = por %p14283_p4, %p45_p3 }
   0xe   : > { %14307 = sst [smem:[#allocation13_spill]] %s12221_s14  ;;  %p222_p8 = scmp.eq.s32.totalorder %s9014_s10, 1 }
   0xf   : > { %s14308_s15 = scalar_select %p12223_p5, 1, 0 }
  0x10   : > { %s14309_s16 = scalar_select %p12229_p6, 1, 0 }
  0x11   : > { %p9015_p9 = scmp.ge.s32.totalorder %s12095_s30, 1  ;;  %p229_p10 = scmp.lt.s32.totalorder %s12095_s30, 3 }
  0x12   : > { %p12236_p11 = por %p216_p7, %p39_p0  ;;  %p12240_p12 = por %p222_p8, %p45_p3 }
  0x13   : > { %p12244_p13 = pnand %p9015_p9, %p229_p10  ;;  %s12097_s20 = smov [#allocation5]  }
  0x14   : > { %s14310_s17 = scalar_select %p12236_p11, 1, 0 }
  0x15   : > { %s14311_s18 = scalar_select %p12240_p12, 1, 0 }
  0x16   : > { %s14313_s19 = scalar_select %p12244_p13, 1, 0 }
  0x17   : > { %14312 = sst [smem:[#allocation14_spill]] %s14311_s18  ;;  %p11340_p1 = pneg %p12244_p13 }
  0x18   : > { %s241_s21 = sshll.u32 %s12097_s20, 4  ;;  %s12098_s23 = smov [#allocation7]   ;;  %s242_s21 = int_to_ptr.vmem [resolvable:$true] %s241_s21 }
  0x19   : > { %p12252_p2 = pnand %p11340_p1, %p14283_p4  ;;  %s254_s24 = sshll.u32 %s12098_s23, 4  ;;  %s255_s24 = int_to_ptr.vmem [resolvable:$true] %s254_s24 }
  0x1a   : > { %s11939_s10 = scalar_lea.hbm %s14275_s1, 9728 }
  0x1b   : > { %p11940_p7 = scmp.ne.s32.totalorder %s14275_s1, %s11939_s10  ;;  %p11941_p8 = pneg %p12252_p2 }
  0x1c   : > { %p11946_p1 = scmp.lt.u32.totalorder %s11939_s10, %s14275_s1 }
  0x1d   : > { %p11942_p9 = pnand %p11941_p8, %p11940_p7 }
  0x1f   : > { %p11943_p10 = pneg %p11942_p9 }
  0x21   : > { %p11948_p0 = pnand %p11946_p1, %p11943_p10 }
  0x23   : > { %11951 = shalt.err (!%p11948_p0)
}
  0x24   : > { %s11952_s23 = scalar_lea.vmem %s242_s21, 9728  ;;  %p11960_p11 = scmp.lt.s32.totalorder %s242_s21, %s242_s21 }
  0x25   : > { %p11953_p4 = scmp.ne.s32.totalorder %s242_s21, %s11952_s23  ;;  %p11961_p6 = scmp.lt.s32.totalorder %s11952_s23, %s11952_s23 }
  0x27   : > { %p11955_p3 = pnand %p11953_p4, %p11941_p8  ;;  %p11962_p13 = por %p11961_p6, %p11960_p11 }
  0x29   : > { %p11956_p12 = pneg %p11955_p3 }
  0x2b   : > { %p11963_p5 = pnand %p11962_p13, %p11956_p12 }
  0x2d   : > { %11966 = shalt.err (!%p11963_p5)
}
  0x2e   : > { %s12099_s25 = smov 128   ;;  %s12100_s14 = smov 8  }
  0x2f   : > { %11343 = dma.hbm_to_vmem [thread:$0]  (!%p12252_p2), %s14275_s1, 9728, %s242_s21, [#allocation6], %s12099_s25, %s12099_s25, %s12100_s14  }
  0x30   : > { %p14315_p0 = scmp.ne.s32.totalorder %s14308_s15, 0  ;;  %p14316_p7 = scmp.lt.s32.totalorder %s12095_s30, 2 }
  0x31   : > { %s11967_s23 = scalar_lea.hbm %s14276_s2, 512 }
  0x32   : > { %p12284_p4 = pnand %p14316_p7, %p14315_p0  ;;  %p11968_p5 = scmp.ne.s32.totalorder %s14276_s2, %s11967_s23 }
  0x33   : > { %p11974_p12 = scmp.lt.u32.totalorder %s11967_s23, %s14276_s2 }
  0x34   : > { %s14317_s12 = scalar_select %p12284_p4, 1, 0 }
  0x35   : > { %p11970_p6 = pnand %p11968_p5, %p11941_p8 }
  0x37   : > { %p11971_p11 = pneg %p11970_p6 }
  0x39   : > { %p11976_p13 = pnand %p11974_p12, %p11971_p11 }
  0x3b   : > { %11979 = shalt.err (!%p11976_p13)
}
  0x3c   : > { %s11980_s26 = scalar_lea.vmem %s255_s24, 512  ;;  %p11988_p1 = scmp.lt.s32.totalorder %s255_s24, %s255_s24 }
  0x3d   : > { %p11981_p3 = scmp.ne.s32.totalorder %s255_s24, %s11980_s26  ;;  %p11989_p0 = scmp.lt.s32.totalorder %s11980_s26, %s11980_s26 }
  0x3f   : > { %p11983_p9 = pnand %p11981_p3, %p11941_p8  ;;  %p11990_p7 = por %p11989_p0, %p11988_p1 }
  0x41   : > { %p11984_p10 = pneg %p11983_p9 }
  0x43   : > { %p11991_p4 = pnand %p11990_p7, %p11984_p10 }
  0x45   : > { %11994 = shalt.err (!%p11991_p4)
}
  0x46   : > { %11346 = dma.hbm_to_vmem [thread:$0]  (!%p12252_p2), %s14276_s2, 512, %s255_s24, [#allocation6], %s12099_s25, %s12099_s25, %s12100_s14  }
  0x47   : > { %s283_s10 = sand.u32 1, %s12091_s29   ;;  %s9298_s20 = sshll.u32 %s12095_s30, 8 }
  0x48   : > { %s11326_s13 = smul.u32 288, %s283_s10  ;;  %s12313_s15 = scalar_lea.hbm %s14274_s0, %s9298_s20 }
  0x49   : > { %s12317_s11 = scalar_lea.sflag [#allocation3], %s283_s10  ;;  %s11995_s18 = scalar_lea.hbm %s12313_s15, 4608 }
  0x4a   : > { %s287_s22 = scalar_lea.vmem [#allocation2], %s11326_s13  ;;  %p11996_p2 = scmp.ne.s32.totalorder %s12313_s15, %s11995_s18 }
  0x4b   : > { %s294_s26 = sshll.u32 %s287_s22, 4  ;;  %p14318_p8 = scmp.ne.s32.totalorder %s14317_s12, 0  ;;  %s12315_s26 = int_to_ptr.vmem [resolvable:$true] %s294_s26 }
  0x4c   : > { %s12000_s14 = scalar_lea.hbm %s14274_s0, 9216  ;;  %p12001_p11 = scmp.lt.u32.totalorder %s12313_s15, %s14274_s0 }
  0x4d   : > { %p11997_p4 = pneg %p14318_p8  ;;  %p12002_p12 = scmp.lt.u32.totalorder %s12000_s14, %s11995_s18 }
  0x4e   : > { %p12004_p3 = scmp.lt.u32.totalorder %s11995_s18, %s12313_s15 }
  0x4f   : > { %p11998_p5 = pnand %p11997_p4, %p11996_p2  ;;  %p12003_p13 = por %p12002_p12, %p12001_p11 }
  0x51   : > { %p11999_p6 = pneg %p11998_p5  ;;  %p12005_p9 = por %p12004_p3, %p12003_p13 }
  0x53   : > { %p12006_p10 = pnand %p12005_p9, %p11999_p6 }
  0x55   : > { %12009 = shalt.err (!%p12006_p10)
}
  0x56   : > { %s12010_s10 = scalar_lea.vmem %s12315_s26, 4608  ;;  %s12101_s13 = smov [#allocation2]  }
  0x57   : > { %p12011_p1 = scmp.ne.s32.totalorder %s12315_s26, %s12010_s10  ;;  %s12015_s21 = sshll.u32 %s12101_s13, 4  ;;  %s12016_s21 = int_to_ptr.vmem [resolvable:$false] %s12015_s21 }
  0x58   : > { %s12017_s22 = scalar_lea.vmem %s12016_s21, 9216  ;;  %p12018_p2 = scmp.lt.s32.totalorder %s12315_s26, %s12016_s21 }
  0x59   : > { %p12013_p0 = pnand %p12011_p1, %p11997_p4  ;;  %p12019_p5 = scmp.lt.s32.totalorder %s12017_s22, %s12010_s10 }
  0x5b   : > { %p12014_p7 = pneg %p12013_p0  ;;  %p12020_p11 = por %p12019_p5, %p12018_p2 }
  0x5d   : > { %p12021_p12 = pnand %p12020_p11, %p12014_p7 }
  0x5f   : > { %12024 = shalt.err (!%p12021_p12)
}
  0x60   : > { %s12102_s18 = smov 512   ;;  %s12103_s24 = smov 256  }
  0x61   : > { %s12104_s25 = smov 16   ;;  %p14319_p4 = scmp.ne.s32.totalorder %s14313_s19, 0 }
  0x62   : > { %11350 = dma.hbm_to_vmem [thread:$0]  (!%p14318_p8), %s12313_s15, 4608, %s12315_s26, %s12317_s11, %s12102_s18, %s12103_s24, %s12104_s25  }
  0x63   : > { %306 = sbr.rel (%p14319_p4) target bundleno = 12340 (0x3034), region = 52 }
  0x6a   : > { %s12348_s14 = sand.u32 1, %s12087_s28   ;;  %p14320_p6 = scmp.ne.s32.totalorder %s14309_s16, 0 }
  0x6b   : > { %s11327_s20 = smul.u32 288, %s12348_s14  ;;  %s309_s23 = scalar_lea.sflag [#allocation3], %s12348_s14 }
  0x6d   : > { %s12352_s10 = scalar_lea.vmem [#allocation2], %s11327_s20 }
  0x6e   : > { %12070 = dma.done.wait (%p14320_p6), %s309_s23, 4608  }
  0x6f   : > { %12072 = vsyncadd (%p14320_p6), %s309_s23, 4294962688  ;;  %p14321_p8 = scmp.eq.s32.totalorder %s12205_s9, 0 }
  0x71   : > { %12074 = dma.done.wait (%p14321_p8), [#allocation6], 10240   ;;  %p14322_p13 = pmov %p14321_p8 }
  0x72   : > { %v12105_v0 = vmov 0   ;;  %v355_v1 = vld [vmem:[%s12352_s10] sm:$0xff]  ;;  %v356_v2 = vld [vmem:[%s12352_s10 + $0x10] sm:$0xff]  ;;  %vm415_vm0 = vcmask 523264   ;;  %v12388_v15 = vld [vmem:[%s14281_s7 + $0x8] sm:$0xff]  ;;  %vm569_vm1 = vcmask 261120  }
  0x73   : > { %12076 = vsyncadd (%p14322_p13), [#allocation6], 4294957056  ;;  %11433 = vset.pattern.permute.xlu0 %v12105_v0  ;;  %11434 = vset.pattern.permute.xlu1 %v12105_v0  ;;  %v357_v3 = vld [vmem:[%s12352_s10 + $0x20] sm:$0xff]  ;;  %v10766_v4 = vpack.c.bf16 %v356_v2, %v355_v1  ;;  %v358_v5 = vld [vmem:[%s12352_s10 + $0x30] sm:$0xff]  ;;  %v12106_v22 = vmov 1   ;;  %vm1774_vm2 = vcmask 588800  }
  0x74   : > { %v10770_v6 = vpack.c.bf16 %v358_v5, %v357_v3  ;;  %v359_v7 = vld [vmem:[%s12352_s10 + $0x40] sm:$0xff]  ;;  %v360_v8 = vld [vmem:[%s12352_s10 + $0x50] sm:$0xff]  ;;  %v12393_v16 = vld [vmem:[%s14281_s7 + $0x18] sm:$0xff]  ;;  %s9024_s16 = sshll.u32 %s12348_s14, 7  ;;  %s9299_s18 = sshll.u32 %s12205_s9, 8 }
  0x75   : > { %v387_v9 = vld [vmem:[#allocation7] sm:$0xff]  ;;  %10767 = vmatprep.subr.bf16.mxu0 %v10766_v4  ;;  %v12379_v11 = vld [vmem:[%s14281_s7 + $0x10] sm:$0xff]  ;;  %v10774_v12 = vpack.c.bf16 %v360_v8, %v359_v7  ;;  %v388_v18 = vld [vmem:[#allocation7 + $0x8] sm:$0xff]  ;;  %s13754_s19 = scalar_lea.vmem [#allocation8], %s9024_s16  ;;  %s14226_s23 = scalar_lea.hbm %s14282_s8, %s9299_s18 }
  0x76   : > { %9846 = vmatprep.mubr.msk.f32.mxu0 %vm415_vm0, %v387_v9  ;;  %10769 = vmatpush3.bf16.msra.mxu0 %v10766_v4  ;;  %v12374_v10 = vld [vmem:[%s14281_s7] sm:$0xff]  ;;  %v362_v14 = vld [vmem:[%s12352_s10 + $0x70] sm:$0xff]  ;;  %v390_v20 = vld [vmem:[#allocation7 + $0x18] sm:$0xff]  ;;  %s8922_s24 = sshll.u32 %s13754_s19, 4  ;;  %s8909_s9 = scalar_lea.sflag [#allocation4], %s12348_s14  ;;  %s14228_s24 = int_to_ptr.vmem [resolvable:$true] %s8922_s24 }
  0x77   : > { %10771 = vmatprep.subr.bf16.mxu0 %v10770_v6  ;;  %397 = vperm.xlu0 %11433, %v12374_v10   ;;  %v361_v13 = vld [vmem:[%s12352_s10 + $0x60] sm:$0xff]  ;;  %v389_v19 = vld [vmem:[#allocation7 + $0x10] sm:$0xff]  ;;  %s12025_s16 = scalar_lea.vmem %s14228_s24, 2048  ;;  %p14495_p9 = scmp.ne.s32.totalorder %s14310_s17, 0 }
  0x78   : > { %407 = vperm.xlu1 %11434, %v12379_v11   ;;  %v10778_v17 = vpack.c.bf16 %v362_v14, %v361_v13  ;;  %v549_v21 = vld [vmem:[#allocation5] sm:$0xff]  ;;  %v551_v13 = vld [vmem:[#allocation5 + $0x10] sm:$0xff]  ;;  %v552_v14 = vld [vmem:[#allocation5 + $0x18] sm:$0xff]  ;;  %p12026_p3 = scmp.ne.s32.totalorder %s14228_s24, %s12025_s16  ;;  %s12135_s12 = smov [#allocation8]  }
  0x79   : > { %9860 = vmatprep.mubr.msk.f32.mxu1 %vm569_vm1, %v549_v21  ;;  %s12029_s15 = sshll.u32 %s12135_s12, 4  ;;  %s12030_s15 = int_to_ptr.vmem [resolvable:$false] %s12029_s15 }
  0x7a   : > { %10773 = vmatpush3.bf16.msra.mxu0 %v10770_v6  ;;  %p12027_p10 = pnand %p12026_p3, %p14495_p9  ;;  %s12031_s26 = scalar_lea.vmem %s12030_s15, 4096 }
  0x7b   : > { %10775 = vmatprep.subr.bf16.mxu0 %v10774_v12  ;;  %402 = vperm.xlu0 %11433, %v12388_v15   ;;  %p12032_p0 = scmp.lt.s32.totalorder %s14228_s24, %s12030_s15  ;;  %p12033_p7 = scmp.lt.s32.totalorder %s12031_s26, %s12025_s16 }
  0x7c   : > { %412 = vperm.xlu1 %11434, %v12393_v16   ;;  %p12028_p1 = pneg %p12027_p10 }
  0x7d   : > { %p12034_p2 = por %p12033_p7, %p12032_p0 }
  0x7e   : > { %10777 = vmatpush3.bf16.msra.mxu0 %v10774_v12  ;;  %v550_v12 = vld [vmem:[#allocation5 + $0x8] sm:$0xff] }
  0x7f   : > { %10779 = vmatprep.subr.bf16.mxu0 %v10778_v17  ;;  %11435 = vset.pattern.permute.xlu0 %v12106_v22  ;;  %p12035_p5 = pnand %p12034_p2, %p12028_p1 }
  0x80   : > { %11436 = vset.pattern.permute.xlu1 %v12106_v22  ;;  %554 = vperm.xlu0 %11435, %v12374_v10  }
  0x81   : > { %558 = vperm.xlu1 %11436, %v12388_v15  }
  0x82   : > { %10781 = vmatpush3.bf16.msra.mxu0 %v10778_v17  ;;  %v713_v17 = vld [vmem:[#allocation5 + $0x20] sm:$0xff] }
  0x84   : > { %566 = vperm.xlu0 %11435, %v12393_v16  }
  0x85   : > { %9847 = vmatmul.mubr.msk.f32.vlgmr.msra.gmra.mrb[0].mxu0 %vm415_vm0, %v388_v18  ;;  %562 = vperm.xlu1 %11436, %v12379_v11   ;;  %v12107_v18 = vmov 2  }
  0x86   : > { %9849 = vmatprep.mubr.msk.f32.mxu0 %vm415_vm0, %v389_v19 }
  0x88   : > { %11438 = vset.pattern.permute.xlu0 %v12107_v18 }
  0x89   : > { %9850 = vmatmul.mubr.msk.f32.gmra.mrb[2].mxu0 %vm415_vm0, %v390_v20  ;;  %11437 = vset.pattern.permute.xlu1 %v12107_v18 }
  0x8a   : > { %718 = vperm.xlu1 %11437, %v12374_v10   ;;  %722 = vperm.xlu0 %11438, %v12388_v15  }
  0x8e   : > { %726 = vperm.xlu1 %11437, %v12379_v11  }
  0x92   : > { %730 = vperm.xlu1 %11437, %v12393_v16  }
  0xf6   : > { %v398_v23 = vpop.permute.xlu0 %397 }
  0xf7   : > { %v408_v24 = vpop.permute.xlu1 %407 }
  0xfa   : > { %v403_v25 = vpop.permute.xlu0 %402 }
  0xfb   : > { %v413_v31 = vpop.permute.xlu1 %412 }
  0xff   : > { %v555_v19 = vpop.permute.xlu0 %554 }
 0x100   : > { %v559_v20 = vpop.permute.xlu1 %558 }
 0x158   : > { %v9848_v26 = vpop.f32.mrb[0].mxu0 }
 0x159   : > { %v500_v27 = vadd.f32 %v9848_v26, %v403_v25  ;;  %v494_v28 = vpop.f32.mrb[1].mxu0 }
 0x15a   : > { %v495_v29 = vadd.f32 %v494_v28, %v398_v23 }
 0x15b   : > { %v514_v30 = vmul.f32 %v500_v27, %v500_v27 }
 0x15c   : > { %v513_v32 = vmul.f32 %v495_v29, %v495_v29  ;;  %v9851_v33 = vpop.f32.mrb[2].mxu0 }
 0x15d   : > { %v518_v34 = vmul.f32 %v514_v30, %v500_v27  ;;  %v510_v35 = vadd.f32 %v9851_v33, %v413_v31  ;;  %v504_v36 = vpop.f32.mrb[3].mxu0  ;;  %v563_v31 = vpop.permute.xlu1 %562 }
 0x15e   : > { %v517_v37 = vmul.f32 %v513_v32, %v495_v29  ;;  %v505_v38 = vadd.f32 %v504_v36, %v408_v24 }
 0x15f   : > { %v522_v39 = vmul.f32 0.044715, %v518_v34  ;;  %v516_v40 = vmul.f32 %v510_v35, %v510_v35 }
 0x160   : > { %v521_v41 = vmul.f32 0.044715, %v517_v37  ;;  %v515_v42 = vmul.f32 %v505_v38, %v505_v38 }
 0x161   : > { %v526_v43 = vadd.f32 %v522_v39, %v500_v27  ;;  %v520_v44 = vmul.f32 %v516_v40, %v510_v35 }
 0x162   : > { %v525_v45 = vadd.f32 %v521_v41, %v495_v29  ;;  %v519_v46 = vmul.f32 %v515_v42, %v505_v38 }
 0x163   : > { %v530_v47 = vmul.f32 0.7978846, %v526_v43  ;;  %v524_v48 = vmul.f32 0.044715, %v520_v44 }
 0x164   : > { %v529_v49 = vmul.f32 0.7978846, %v525_v45  ;;  %v523_v50 = vmul.f32 0.044715, %v519_v46 }
 0x165   : > { %v528_v51 = vadd.f32 %v524_v48, %v510_v35  ;;  %11576 = vtanh.f32 %v530_v47 }
 0x166   : > { %v527_v52 = vadd.f32 %v523_v50, %v505_v38  ;;  %11578 = vtanh.f32 %v529_v49 }
 0x167   : > { %v532_v53 = vmul.f32 0.7978846, %v528_v51 }
 0x168   : > { %v531_v54 = vmul.f32 0.7978846, %v527_v52 }
 0x169   : > { %11580 = vtanh.f32 %v532_v53 }
 0x16a   : > { %11582 = vtanh.f32 %v531_v54 }
 0x16f   : > { %v11577_v55 = vpop.eup %11576 }
 0x170   : > { %v11579_v56 = vpop.eup %11578  ;;  %v538_v57 = vadd.f32 1.0, %v11577_v55 }
 0x171   : > { %v537_v58 = vadd.f32 1.0, %v11579_v56 }
 0x172   : > { %v542_v59 = vmul.f32 0.5, %v538_v57 }
 0x173   : > { %v11581_v60 = vpop.eup %11580  ;;  %v541_v61 = vmul.f32 0.5, %v537_v58 }
 0x174   : > { %v11583_v62 = vpop.eup %11582  ;;  %v12407_v63 = vmul.f32 %v542_v59, %v500_v27  ;;  %v540_v1 = vadd.f32 1.0, %v11581_v60  ;;  %v567_v27 = vpop.permute.xlu0 %566 }
 0x175   : > { %v12409_v2 = vmul.f32 %v541_v61, %v495_v29  ;;  %v539_v3 = vadd.f32 1.0, %v11583_v62 }
 0x176   : > { %v544_v4 = vmul.f32 0.5, %v540_v1 }
 0x177   : > { %v10782_v5 = vpack.c.bf16 %v12407_v63, %v12409_v2  ;;  %v543_v6 = vmul.f32 0.5, %v539_v3 }
 0x178   : > { %v12413_v7 = vmul.f32 %v544_v4, %v510_v35 }
 0x179   : > { %10783 = vmatprep.subr.bf16.mxu1 %v10782_v5  ;;  %v12415_v8 = vmul.f32 %v543_v6, %v505_v38 }
 0x17a   : > { %10785 = vmatpush3.bf16.msra.mxu1 %v10782_v5 }
 0x17b   : > { %v10786_v9 = vpack.c.bf16 %v12413_v7, %v12415_v8 }
 0x17d   : > { %10787 = vmatprep.subr.bf16.mxu1 %v10786_v9 }
 0x17e   : > { %10789 = vmatpush3.bf16.msra.mxu1 %v10786_v9 }
 0x181   : > { %9861 = vmatmul.mubr.msk.f32.vlgmr.msra.gmra.mrb[0].mxu1 %vm569_vm1, %v550_v12 }
 0x182   : > { %9863 = vmatprep.mubr.msk.f32.mxu1 %vm569_vm1, %v551_v13 }
 0x185   : > { %9864 = vmatmul.mubr.msk.f32.gmra.mrb[2].mxu1 %vm569_vm1, %v552_v14 }
 0x186   : > { %9874 = vmatprep.mubr.msk.f32.mxu1 %vm569_vm1, %v713_v17 }
 0x254   : > { %v9862_v21 = vpop.f32.mrb[0].mxu1 }
 0x255   : > { %v654_v23 = vadd.f32 %v9862_v21, %v559_v20  ;;  %v648_v24 = vpop.f32.mrb[1].mxu1 }
 0x256   : > { %v649_v25 = vadd.f32 %v648_v24, %v555_v19 }
 0x257   : > { %v668_v26 = vmul.f32 %v654_v23, %v654_v23 }
 0x258   : > { %v667_v28 = vmul.f32 %v649_v25, %v649_v25  ;;  %v9865_v29 = vpop.f32.mrb[2].mxu1 }
 0x259   : > { %v672_v30 = vmul.f32 %v668_v26, %v654_v23  ;;  %v664_v32 = vadd.f32 %v9865_v29, %v567_v27  ;;  %v658_v33 = vpop.f32.mrb[3].mxu1  ;;  %v719_v26 = vpop.permute.xlu1 %718 }
 0x25a   : > { %v671_v34 = vmul.f32 %v667_v28, %v649_v25  ;;  %v659_v35 = vadd.f32 %v658_v33, %v563_v31  ;;  %v723_v28 = vpop.permute.xlu0 %722 }
 0x25b   : > { %v676_v36 = vmul.f32 0.044715, %v672_v30  ;;  %v670_v37 = vmul.f32 %v664_v32, %v664_v32 }
 0x25c   : > { %v675_v38 = vmul.f32 0.044715, %v671_v34  ;;  %v669_v39 = vmul.f32 %v659_v35, %v659_v35 }
 0x25d   : > { %v680_v40 = vadd.f32 %v676_v36, %v654_v23  ;;  %v674_v41 = vmul.f32 %v670_v37, %v664_v32  ;;  %v727_v27 = vpop.permute.xlu1 %726 }
 0x25e   : > { %v679_v42 = vadd.f32 %v675_v38, %v649_v25  ;;  %v673_v43 = vmul.f32 %v669_v39, %v659_v35 }
 0x25f   : > { %v684_v44 = vmul.f32 0.7978846, %v680_v40  ;;  %v678_v45 = vmul.f32 0.044715, %v674_v41 }
 0x260   : > { %v683_v46 = vmul.f32 0.7978846, %v679_v42  ;;  %v677_v47 = vmul.f32 0.044715, %v673_v43 }
 0x261   : > { %11584 = vtanh.f32 %v684_v44  ;;  %v682_v48 = vadd.f32 %v678_v45, %v664_v32  ;;  %v731_v34 = vpop.permute.xlu1 %730 }
 0x262   : > { %11586 = vtanh.f32 %v683_v46  ;;  %v681_v49 = vadd.f32 %v677_v47, %v659_v35 }
 0x263   : > { %v686_v50 = vmul.f32 0.7978846, %v682_v48 }
 0x264   : > { %v685_v51 = vmul.f32 0.7978846, %v681_v49 }
 0x265   : > { %11588 = vtanh.f32 %v686_v50 }
 0x266   : > { %11590 = vtanh.f32 %v685_v51 }
 0x26b   : > { %v11585_v52 = vpop.eup %11584 }
 0x26c   : > { %v11587_v53 = vpop.eup %11586  ;;  %v692_v54 = vadd.f32 1.0, %v11585_v52 }
 0x26d   : > { %v691_v55 = vadd.f32 1.0, %v11587_v53 }
 0x26e   : > { %v696_v56 = vmul.f32 0.5, %v692_v54 }
 0x26f   : > { %v11589_v57 = vpop.eup %11588  ;;  %v695_v58 = vmul.f32 0.5, %v691_v55 }
 0x270   : > { %v11591_v59 = vpop.eup %11590  ;;  %v700_v60 = vmul.f32 %v696_v56, %v654_v23  ;;  %v694_v61 = vadd.f32 1.0, %v11589_v57 }
 0x271   : > { %v699_v62 = vmul.f32 %v695_v58, %v649_v25  ;;  %v693_v1 = vadd.f32 1.0, %v11591_v59  ;;  %v715_v25 = vld [vmem:[#allocation5 + $0x30] sm:$0xff] }
 0x272   : > { %v704_v3 = vadd.f32 %v700_v60, %v12407_v63  ;;  %v698_v4 = vmul.f32 0.5, %v694_v61  ;;  %v714_v63 = vld [vmem:[#allocation5 + $0x28] sm:$0xff] }
 0x273   : > { %v703_v5 = vadd.f32 %v699_v62, %v12409_v2  ;;  %v697_v6 = vmul.f32 0.5, %v693_v1  ;;  %v716_v2 = vld [vmem:[#allocation5 + $0x38] sm:$0xff] }
 0x274   : > { %v709_v9 = vmul.f32 0.7072136, %v704_v3  ;;  %v702_v12 = vmul.f32 %v698_v4, %v664_v32 }
 0x275   : > { %v708_v13 = vmul.f32 0.7072136, %v703_v5  ;;  %v701_v14 = vmul.f32 %v697_v6, %v659_v35 }
 0x276   : > { %v706_v17 = vadd.f32 %v702_v12, %v12413_v7  ;;  %v867_v7 = vld [vmem:[#allocation5 + $0x40] sm:$0xff] }
 0x277   : > { %v10790_v19 = vpack.c.bf16 %v709_v9, %v708_v13  ;;  %v705_v20 = vadd.f32 %v701_v14, %v12415_v8  ;;  %v12108_v8 = vmov 3  }
 0x278   : > { %v711_v21 = vmul.f32 0.7072136, %v706_v17  ;;  %11440 = vset.pattern.permute.xlu1 %v12108_v8  ;;  %11439 = vset.pattern.permute.xlu0 %v12108_v8 }
 0x279   : > { %10791 = vmatprep.subr.bf16.mxu1 %v10790_v19  ;;  %v710_v23 = vmul.f32 0.7072136, %v705_v20  ;;  %876 = vperm.xlu1 %11440, %v12388_v15  }
 0x27a   : > { %10793 = vmatpush3.bf16.msra.mxu1 %v10790_v19  ;;  %872 = vperm.xlu0 %11439, %v12374_v10  }
 0x27b   : > { %v10794_v24 = vpack.c.bf16 %v711_v21, %v710_v23  ;;  %v868_v23 = vld [vmem:[#allocation5 + $0x48] sm:$0xff] }
 0x27d   : > { %10795 = vmatprep.subr.bf16.mxu1 %v10794_v24  ;;  %880 = vperm.xlu1 %11440, %v12379_v11  }
 0x27e   : > { %10797 = vmatpush3.bf16.msra.mxu1 %v10794_v24  ;;  %884 = vperm.xlu0 %11439, %v12393_v16   ;;  %v869_v24 = vld [vmem:[#allocation5 + $0x50] sm:$0xff] }
 0x281   : > { %9875 = vmatmul.mubr.msk.f32.vlgmr.msra.gmra.mrb[4].mxu1 %vm569_vm1, %v714_v63  ;;  %v870_v63 = vld [vmem:[#allocation5 + $0x58] sm:$0xff] }
 0x282   : > { %9877 = vmatprep.mubr.msk.f32.mxu1 %vm569_vm1, %v715_v25  ;;  %v1021_v25 = vld [vmem:[#allocation5 + $0x60] sm:$0xff] }
 0x285   : > { %9878 = vmatmul.mubr.msk.f32.gmra.mrb[6].mxu1 %vm569_vm1, %v716_v2  ;;  %v12109_v2 = vmov 4  }
 0x286   : > { %9888 = vmatprep.mubr.msk.f32.mxu1 %vm569_vm1, %v867_v7  ;;  %11441 = vset.pattern.permute.xlu1 %v12109_v2 }
 0x287   : > { %11442 = vset.pattern.permute.xlu0 %v12109_v2  ;;  %1026 = vperm.xlu1 %11441, %v12374_v10  }
 0x288   : > { %1030 = vperm.xlu0 %11442, %v12388_v15  }
 0x28b   : > { %1034 = vperm.xlu1 %11441, %v12379_v11  }
 0x28f   : > { %1038 = vperm.xlu1 %11441, %v12393_v16  }
 0x2f9   : > { %v873_v7 = vpop.permute.xlu0 %872 }
 0x354   : > { %v9876_v29 = vpop.f32.mrb[4].mxu1 }
 0x355   : > { %v817_v30 = vadd.f32 %v9876_v29, %v723_v28  ;;  %v811_v31 = vpop.f32.mrb[5].mxu1 }
 0x356   : > { %v812_v32 = vadd.f32 %v811_v31, %v719_v26  ;;  %v877_v26 = vpop.permute.xlu1 %876 }
 0x357   : > { %v831_v33 = vmul.f32 %v817_v30, %v817_v30 }
 0x358   : > { %v830_v35 = vmul.f32 %v812_v32, %v812_v32  ;;  %v9879_v36 = vpop.f32.mrb[6].mxu1 }
 0x359   : > { %v835_v37 = vmul.f32 %v831_v33, %v817_v30  ;;  %v827_v38 = vadd.f32 %v9879_v36, %v731_v34  ;;  %v821_v39 = vpop.f32.mrb[7].mxu1 }
 0x35a   : > { %v834_v40 = vmul.f32 %v830_v35, %v812_v32  ;;  %v822_v41 = vadd.f32 %v821_v39, %v727_v27  ;;  %v881_v36 = vpop.permute.xlu1 %880 }
 0x35b   : > { %v839_v42 = vmul.f32 0.044715, %v835_v37  ;;  %v833_v43 = vmul.f32 %v827_v38, %v827_v38 }
 0x35c   : > { %v838_v44 = vmul.f32 0.044715, %v834_v40  ;;  %v832_v45 = vmul.f32 %v822_v41, %v822_v41 }
 0x35d   : > { %v843_v46 = vadd.f32 %v839_v42, %v817_v30  ;;  %v837_v47 = vmul.f32 %v833_v43, %v827_v38 }
 0x35e   : > { %v842_v48 = vadd.f32 %v838_v44, %v812_v32  ;;  %v836_v49 = vmul.f32 %v832_v45, %v822_v41 }
 0x35f   : > { %v847_v50 = vmul.f32 0.7978846, %v843_v46  ;;  %v841_v51 = vmul.f32 0.044715, %v837_v47 }
 0x360   : > { %v846_v52 = vmul.f32 0.7978846, %v842_v48  ;;  %v840_v53 = vmul.f32 0.044715, %v836_v49 }
 0x361   : > { %11592 = vtanh.f32 %v847_v50  ;;  %v845_v54 = vadd.f32 %v841_v51, %v827_v38 }
 0x362   : > { %11594 = vtanh.f32 %v846_v52  ;;  %v844_v55 = vadd.f32 %v840_v53, %v822_v41 }
 0x363   : > { %v849_v56 = vmul.f32 0.7978846, %v845_v54 }
 0x364   : > { %v848_v57 = vmul.f32 0.7978846, %v844_v55 }
 0x365   : > { %11596 = vtanh.f32 %v849_v56 }
 0x366   : > { %11598 = vtanh.f32 %v848_v57 }
 0x36b   : > { %v11593_v58 = vpop.eup %11592 }
 0x36c   : > { %v11595_v59 = vpop.eup %11594  ;;  %v855_v60 = vadd.f32 1.0, %v11593_v58 }
 0x36d   : > { %v854_v61 = vadd.f32 1.0, %v11595_v59 }
 0x36e   : > { %v859_v62 = vmul.f32 0.5, %v855_v60 }
 0x36f   : > { %v11597_v1 = vpop.eup %11596  ;;  %v858_v3 = vmul.f32 0.5, %v854_v61 }
 0x370   : > { %v11599_v4 = vpop.eup %11598  ;;  %v863_v5 = vmul.f32 %v859_v62, %v817_v30  ;;  %v857_v6 = vadd.f32 1.0, %v11597_v1 }
 0x371   : > { %v862_v9 = vmul.f32 %v858_v3, %v812_v32  ;;  %v856_v12 = vadd.f32 1.0, %v11599_v4  ;;  %v885_v32 = vpop.permute.xlu0 %884 }
 0x372   : > { %v861_v13 = vmul.f32 0.5, %v857_v6 }
 0x373   : > { %v10798_v14 = vpack.c.bf16 %v863_v5, %v862_v9  ;;  %v860_v17 = vmul.f32 0.5, %v856_v12 }
 0x374   : > { %v865_v19 = vmul.f32 %v861_v13, %v827_v38 }
 0x375   : > { %10799 = vmatprep.subr.bf16.mxu1 %v10798_v14  ;;  %v864_v20 = vmul.f32 %v860_v17, %v822_v41 }
 0x376   : > { %10801 = vmatpush3.bf16.msra.mxu1 %v10798_v14 }
 0x377   : > { %v10802_v21 = vpack.c.bf16 %v865_v19, %v864_v20 }
 0x379   : > { %10803 = vmatprep.subr.bf16.mxu1 %v10802_v21 }
 0x37a   : > { %10805 = vmatpush3.bf16.msra.mxu1 %v10802_v21  ;;  %v1022_v21 = vld [vmem:[#allocation5 + $0x68] sm:$0xff] }
 0x37d   : > { %9889 = vmatmul.mubr.msk.f32.vlgmr.msra.gmra.mrb[8].mxu1 %vm569_vm1, %v868_v23  ;;  %v1023_v23 = vld [vmem:[#allocation5 + $0x70] sm:$0xff] }
 0x37e   : > { %9891 = vmatprep.mubr.msk.f32.mxu1 %vm569_vm1, %v869_v24  ;;  %v1024_v24 = vld [vmem:[#allocation5 + $0x78] sm:$0xff] }
 0x381   : > { %9892 = vmatmul.mubr.msk.f32.gmra.mrb[10].mxu1 %vm569_vm1, %v870_v63  ;;  %v1139_v63 = vld [vmem:[#allocation5 + $0x80] sm:$0xff] }
 0x382   : > { %9902 = vmatprep.mubr.msk.f32.mxu1 %vm569_vm1, %v1021_v25  ;;  %9916 = vmatprep.mubr.msk.f32.mxu0 %vm569_vm1, %v1139_v63  ;;  %v12110_v25 = vmov 5  }
 0x383   : > { %11444 = vset.pattern.permute.xlu1 %v12110_v25  ;;  %11443 = vset.pattern.permute.xlu0 %v12110_v25 }
 0x384   : > { %1148 = vperm.xlu1 %11444, %v12388_v15   ;;  %1144 = vperm.xlu0 %11443, %v12374_v10  }
 0x388   : > { %1152 = vperm.xlu1 %11444, %v12379_v11   ;;  %1156 = vperm.xlu0 %11443, %v12393_v16  }
 0x450   : > { %v9890_v27 = vpop.f32.mrb[8].mxu1 }
 0x451   : > { %v971_v28 = vadd.f32 %v9890_v27, %v877_v26  ;;  %v965_v29 = vpop.f32.mrb[9].mxu1  ;;  %v1031_v27 = vpop.permute.xlu0 %1030 }
 0x452   : > { %v966_v30 = vadd.f32 %v965_v29, %v873_v7  ;;  %v1027_v7 = vpop.permute.xlu1 %1026 }
 0x453   : > { %v985_v31 = vmul.f32 %v971_v28, %v971_v28 }
 0x454   : > { %v984_v33 = vmul.f32 %v966_v30, %v966_v30  ;;  %v9893_v34 = vpop.f32.mrb[10].mxu1 }
 0x455   : > { %v989_v35 = vmul.f32 %v985_v31, %v971_v28  ;;  %v981_v37 = vadd.f32 %v9893_v34, %v885_v32  ;;  %v975_v38 = vpop.f32.mrb[11].mxu1 }
 0x456   : > { %v988_v39 = vmul.f32 %v984_v33, %v966_v30  ;;  %v976_v40 = vadd.f32 %v975_v38, %v881_v36  ;;  %v1035_v26 = vpop.permute.xlu1 %1034 }
 0x457   : > { %v993_v41 = vmul.f32 0.044715, %v989_v35  ;;  %v987_v42 = vmul.f32 %v981_v37, %v981_v37 }
 0x458   : > { %v992_v43 = vmul.f32 0.044715, %v988_v39  ;;  %v986_v44 = vmul.f32 %v976_v40, %v976_v40  ;;  %v1140_v39 = vld [vmem:[#allocation5 + $0x88] sm:$0xff] }
 0x459   : > { %v997_v45 = vadd.f32 %v993_v41, %v971_v28  ;;  %v991_v46 = vmul.f32 %v987_v42, %v981_v37  ;;  %v1142_v41 = vld [vmem:[#allocation5 + $0x98] sm:$0xff]  ;;  %v1293_v42 = vld [vmem:[#allocation5 + $0xa0] sm:$0xff] }
 0x45a   : > { %v996_v47 = vadd.f32 %v992_v43, %v966_v30  ;;  %v990_v48 = vmul.f32 %v986_v44, %v976_v40  ;;  %v1039_v32 = vpop.permute.xlu1 %1038  ;;  %v12111_v43 = vmov 6   ;;  %v1145_v44 = vpop.permute.xlu0 %1144 }
 0x45b   : > { %v1001_v49 = vmul.f32 0.7978846, %v997_v45  ;;  %v995_v50 = vmul.f32 0.044715, %v991_v46  ;;  %11445 = vset.pattern.permute.xlu1 %v12111_v43  ;;  %11446 = vset.pattern.permute.xlu0 %v12111_v43 }
 0x45c   : > { %v1000_v51 = vmul.f32 0.7978846, %v996_v47  ;;  %v994_v52 = vmul.f32 0.044715, %v990_v48  ;;  %1298 = vperm.xlu1 %11445, %v12374_v10   ;;  %1302 = vperm.xlu0 %11446, %v12388_v15  }
 0x45d   : > { %11600 = vtanh.f32 %v1001_v49  ;;  %v999_v53 = vadd.f32 %v995_v50, %v981_v37 }
 0x45e   : > { %11602 = vtanh.f32 %v1000_v51  ;;  %v998_v54 = vadd.f32 %v994_v52, %v976_v40  ;;  %v1149_v45 = vpop.permute.xlu1 %1148  ;;  %v1157_v51 = vpop.permute.xlu0 %1156 }
 0x45f   : > { %v1003_v55 = vmul.f32 0.7978846, %v999_v53 }
 0x460   : > { %v1002_v56 = vmul.f32 0.7978846, %v998_v54  ;;  %1306 = vperm.xlu1 %11445, %v12379_v11  }
 0x461   : > { %11604 = vtanh.f32 %v1003_v55 }
 0x462   : > { %11606 = vtanh.f32 %v1002_v56  ;;  %v1153_v55 = vpop.permute.xlu1 %1152 }
 0x464   : > { %1310 = vperm.xlu1 %11445, %v12393_v16  }
 0x467   : > { %v11601_v57 = vpop.eup %11600 }
 0x468   : > { %v11603_v58 = vpop.eup %11602  ;;  %v1009_v59 = vadd.f32 1.0, %v11601_v57 }
 0x469   : > { %v1008_v60 = vadd.f32 1.0, %v11603_v58 }
 0x46a   : > { %v1013_v61 = vmul.f32 0.5, %v1009_v59 }
 0x46b   : > { %v11605_v62 = vpop.eup %11604  ;;  %v1012_v1 = vmul.f32 0.5, %v1008_v60 }
 0x46c   : > { %v11607_v3 = vpop.eup %11606  ;;  %v1017_v4 = vmul.f32 %v1013_v61, %v971_v28  ;;  %v1011_v5 = vadd.f32 1.0, %v11605_v62 }
 0x46d   : > { %v1016_v6 = vmul.f32 %v1012_v1, %v966_v30  ;;  %v1010_v9 = vadd.f32 1.0, %v11607_v3 }
 0x46e   : > { %v1015_v12 = vmul.f32 0.5, %v1011_v5 }
 0x46f   : > { %v10806_v13 = vpack.c.bf16 %v1017_v4, %v1016_v6  ;;  %v1014_v14 = vmul.f32 0.5, %v1010_v9 }
 0x470   : > { %v1019_v17 = vmul.f32 %v1015_v12, %v981_v37 }
 0x471   : > { %10807 = vmatprep.subr.bf16.mxu1 %v10806_v13  ;;  %v1018_v19 = vmul.f32 %v1014_v14, %v976_v40  ;;  %v1141_v40 = vld [vmem:[#allocation5 + $0x90] sm:$0xff] }
 0x472   : > { %10809 = vmatpush3.bf16.msra.mxu1 %v10806_v13 }
 0x473   : > { %v10810_v20 = vpack.c.bf16 %v1019_v17, %v1018_v19 }
 0x475   : > { %10811 = vmatprep.subr.bf16.mxu1 %v10810_v20 }
 0x476   : > { %10813 = vmatpush3.bf16.msra.mxu1 %v10810_v20 }
 0x479   : > { %9903 = vmatmul.mubr.msk.f32.vlgmr.msra.gmra.mrb[12].mxu1 %vm569_vm1, %v1022_v21 }
 0x47a   : > { %9905 = vmatprep.mubr.msk.f32.mxu1 %vm569_vm1, %v1023_v23 }
 0x47d   : > { %9906 = vmatmul.mubr.msk.f32.gmra.mrb[14].mxu1 %vm569_vm1, %v1024_v24 }
 0x47e   : > { %9930 = vmatprep.mubr.msk.f32.mxu1 %vm569_vm1, %v1293_v42  ;;  %v1294_v42 = vld [vmem:[#allocation5 + $0xa8] sm:$0xff] }
 0x54c   : > { %v9904_v28 = vpop.f32.mrb[12].mxu1 }
 0x54d   : > { %v1125_v29 = vadd.f32 %v9904_v28, %v1031_v27  ;;  %v1119_v30 = vpop.f32.mrb[13].mxu1 }
 0x54e   : > { %v1120_v31 = vadd.f32 %v1119_v30, %v1027_v7 }
 0x550   : > { %v12463_v33 = vpack.c.bf16 %v1125_v29, %v1120_v31  ;;  %v9907_v34 = vpop.f32.mrb[14].mxu1 }
 0x551   : > { %v1135_v35 = vadd.f32 %v9907_v34, %v1039_v32  ;;  %v1129_v36 = vpop.f32.mrb[15].mxu1 }
 0x552   : > { %v1130_v37 = vadd.f32 %v1129_v36, %v1035_v26  ;;  %10815 = vmatprep.subr.bf16.mxu0 %v12463_v33 }
 0x553   : > { %10817 = vmatpush3.bf16.msra.mxu0 %v12463_v33 }
 0x554   : > { %v12467_v38 = vpack.c.bf16 %v1135_v35, %v1130_v37 }
 0x556   : > { %10819 = vmatprep.subr.bf16.mxu0 %v12467_v38 }
 0x557   : > { %10821 = vmatpush3.bf16.msra.mxu0 %v12467_v38 }
 0x55a   : > { %9917 = vmatmul.mubr.msk.f32.vlgmr.msra.gmra.mrb[4].mxu0 %vm569_vm1, %v1140_v39 }
 0x55b   : > { %9919 = vmatprep.mubr.msk.f32.mxu0 %vm569_vm1, %v1141_v40 }
 0x55e   : > { %9920 = vmatmul.mubr.msk.f32.gmra.mrb[6].mxu0 %vm569_vm1, %v1142_v41 }
 0x62d   : > { %v9918_v46 = vpop.f32.mrb[4].mxu0 }
 0x62e   : > { %v1243_v47 = vadd.f32 %v9918_v46, %v1149_v45  ;;  %v1237_v48 = vpop.f32.mrb[5].mxu0  ;;  %v1296_v45 = vld [vmem:[#allocation5 + $0xb8] sm:$0xff]  ;;  %v1447_v46 = vld [vmem:[#allocation5 + $0xc0] sm:$0xff] }
 0x62f   : > { %v1238_v49 = vadd.f32 %v1237_v48, %v1145_v44  ;;  %v1295_v44 = vld [vmem:[#allocation5 + $0xb0] sm:$0xff]  ;;  %9944 = vmatprep.mubr.msk.f32.mxu0 %vm569_vm1, %v1447_v46  ;;  %v1299_v48 = vpop.permute.xlu1 %1298 }
 0x630   : > { %v1257_v50 = vmul.f32 %v1243_v47, %v1243_v47  ;;  %v1449_v46 = vld [vmem:[#allocation5 + $0xd0] sm:$0xff] }
 0x631   : > { %v1256_v52 = vmul.f32 %v1238_v49, %v1238_v49  ;;  %v9921_v53 = vpop.f32.mrb[6].mxu0 }
 0x632   : > { %v1261_v54 = vmul.f32 %v1257_v50, %v1243_v47  ;;  %v1253_v56 = vadd.f32 %v9921_v53, %v1157_v51  ;;  %v1247_v57 = vpop.f32.mrb[7].mxu0  ;;  %v1303_v50 = vpop.permute.xlu0 %1302 }
 0x633   : > { %v1260_v58 = vmul.f32 %v1256_v52, %v1238_v49  ;;  %v1248_v59 = vadd.f32 %v1247_v57, %v1153_v55 }
 0x634   : > { %v1265_v60 = vmul.f32 0.044715, %v1261_v54  ;;  %v1259_v61 = vmul.f32 %v1253_v56, %v1253_v56 }
 0x635   : > { %v1264_v62 = vmul.f32 0.044715, %v1260_v58  ;;  %v1258_v1 = vmul.f32 %v1248_v59, %v1248_v59 }
 0x636   : > { %v1269_v3 = vadd.f32 %v1265_v60, %v1243_v47  ;;  %v1263_v4 = vmul.f32 %v1259_v61, %v1253_v56 }
 0x637   : > { %v1268_v5 = vadd.f32 %v1264_v62, %v1238_v49  ;;  %v1262_v6 = vmul.f32 %v1258_v1, %v1248_v59 }
 0x638   : > { %v1273_v9 = vmul.f32 0.7978846, %v1269_v3  ;;  %v1267_v12 = vmul.f32 0.044715, %v1263_v4 }
 0x639   : > { %v1272_v13 = vmul.f32 0.7978846, %v1268_v5  ;;  %v1266_v14 = vmul.f32 0.044715, %v1262_v6 }
 0x63a   : > { %11608 = vtanh.f32 %v1273_v9  ;;  %v1271_v17 = vadd.f32 %v1267_v12, %v1253_v56 }
 0x63b   : > { %11610 = vtanh.f32 %v1272_v13  ;;  %v1270_v19 = vadd.f32 %v1266_v14, %v1248_v59 }
 0x63c   : > { %v1275_v20 = vmul.f32 0.7978846, %v1271_v17 }
 0x63d   : > { %v1274_v21 = vmul.f32 0.7978846, %v1270_v19 }
 0x63e   : > { %11612 = vtanh.f32 %v1275_v20 }
 0x63f   : > { %11614 = vtanh.f32 %v1274_v21 }
 0x644   : > { %v11609_v23 = vpop.eup %11608 }
 0x645   : > { %v11611_v24 = vpop.eup %11610  ;;  %v1281_v63 = vadd.f32 1.0, %v11609_v23 }
 0x646   : > { %v1280_v7 = vadd.f32 1.0, %v11611_v24 }
 0x647   : > { %v1285_v26 = vmul.f32 0.5, %v1281_v63 }
 0x648   : > { %v11613_v27 = vpop.eup %11612  ;;  %v1284_v28 = vmul.f32 0.5, %v1280_v7 }
 0x649   : > { %v11615_v29 = vpop.eup %11614  ;;  %v1289_v30 = vmul.f32 %v1285_v26, %v1243_v47  ;;  %v1283_v31 = vadd.f32 1.0, %v11613_v27  ;;  %v12112_v47 = vmov 7  }
 0x64a   : > { %v1288_v32 = vmul.f32 %v1284_v28, %v1238_v49  ;;  %v1282_v34 = vadd.f32 1.0, %v11615_v29  ;;  %11448 = vset.pattern.permute.xlu1 %v12112_v47  ;;  %11447 = vset.pattern.permute.xlu0 %v12112_v47  ;;  %v1307_v49 = vpop.permute.xlu1 %1306 }
 0x64b   : > { %v1287_v35 = vmul.f32 0.5, %v1283_v31  ;;  %1456 = vperm.xlu1 %11448, %v12388_v15   ;;  %1452 = vperm.xlu0 %11447, %v12374_v10  }
 0x64c   : > { %v10822_v36 = vpack.c.bf16 %v1289_v30, %v1288_v32  ;;  %v1286_v37 = vmul.f32 0.5, %v1282_v34 }
 0x64d   : > { %v1291_v39 = vmul.f32 %v1287_v35, %v1253_v56 }
 0x64e   : > { %10823 = vmatprep.subr.bf16.mxu1 %v10822_v36  ;;  %v1290_v40 = vmul.f32 %v1286_v37, %v1248_v59  ;;  %v1311_v56 = vpop.permute.xlu1 %1310 }
 0x64f   : > { %10825 = vmatpush3.bf16.msra.mxu1 %v10822_v36  ;;  %1460 = vperm.xlu1 %11448, %v12379_v11  }
 0x650   : > { %v10826_v41 = vpack.c.bf16 %v1291_v39, %v1290_v40  ;;  %1464 = vperm.xlu0 %11447, %v12393_v16  }
 0x652   : > { %10827 = vmatprep.subr.bf16.mxu1 %v10826_v41 }
 0x653   : > { %10829 = vmatpush3.bf16.msra.mxu1 %v10826_v41 }
 0x656   : > { %9931 = vmatmul.mubr.msk.f32.vlgmr.msra.gmra.mrb[16].mxu1 %vm569_vm1, %v1294_v42 }
 0x657   : > { %9933 = vmatprep.mubr.msk.f32.mxu1 %vm569_vm1, %v1295_v44 }
 0x65a   : > { %9934 = vmatmul.mubr.msk.f32.gmra.mrb[18].mxu1 %vm569_vm1, %v1296_v45  ;;  %v1448_v45 = vld [vmem:[#allocation5 + $0xc8] sm:$0xff] }
 0x729   : > { %v9932_v51 = vpop.f32.mrb[16].mxu1 }
 0x72a   : > { %v1397_v52 = vadd.f32 %v9932_v51, %v1303_v50  ;;  %v1391_v53 = vpop.f32.mrb[17].mxu1  ;;  %v12496_v50 = vld [vmem:[%s12352_s10 + $0x110] sm:$0xff]  ;;  %v374_v51 = vlaneseq }
 0x72b   : > { %v1392_v54 = vadd.f32 %v1391_v53, %v1299_v48  ;;  %v1450_v48 = vld [vmem:[#allocation5 + $0xd8] sm:$0xff]  ;;  %v9025_v53 = vadd.f32 -1.0, %v12496_v50 }
 0x72c   : > { %v1411_v55 = vmul.f32 %v1397_v52, %v1397_v52 }
 0x72d   : > { %v1410_v57 = vmul.f32 %v1392_v54, %v1392_v54  ;;  %v9935_v58 = vpop.f32.mrb[18].mxu1 }
 0x72e   : > { %v1415_v59 = vmul.f32 %v1411_v55, %v1397_v52  ;;  %v1407_v60 = vadd.f32 %v9935_v58, %v1311_v56  ;;  %v1401_v61 = vpop.f32.mrb[19].mxu1  ;;  %v364_v55 = vld [vmem:[%s12352_s10 + $0x80] sm:$0xff] }
 0x72f   : > { %v1414_v62 = vmul.f32 %v1410_v57, %v1392_v54  ;;  %v1402_v1 = vadd.f32 %v1401_v61, %v1307_v49  ;;  %v1565_v49 = vld [vmem:[#allocation5 + $0xe0] sm:$0xff]  ;;  %v365_v57 = vld [vmem:[%s12352_s10 + $0x90] sm:$0xff] }
 0x730   : > { %v1419_v3 = vmul.f32 0.044715, %v1415_v59  ;;  %v1413_v11 = vmul.f32 %v1407_v60, %v1407_v60  ;;  %9958 = vmatprep.mubr.msk.f32.mxu1 %vm569_vm1, %v1565_v49  ;;  %v366_v58 = vld [vmem:[%s12352_s10 + $0xa0] sm:$0xff]  ;;  %v367_v59 = vld [vmem:[%s12352_s10 + $0xb0] sm:$0xff]  ;;  %v1723_v49 = vld [vmem:[%s14277_s3 + $0x28] sm:$0xff] }
 0x731   : > { %v1418_v4 = vmul.f32 0.044715, %v1414_v62  ;;  %v1412_v16 = vmul.f32 %v1402_v1, %v1402_v1  ;;  %v369_v61 = vld [vmem:[%s12352_s10 + $0xd0] sm:$0xff] }
 0x732   : > { %v1423_v5 = vadd.f32 %v1419_v3, %v1397_v52  ;;  %v1417_v6 = vmul.f32 %v1413_v11, %v1407_v60 }
 0x733   : > { %v1422_v9 = vadd.f32 %v1418_v4, %v1392_v54  ;;  %v1416_v12 = vmul.f32 %v1412_v16, %v1402_v1  ;;  %v1718_v16 = vld [vmem:[%s14277_s3] sm:$0xff] }
 0x734   : > { %v1427_v13 = vmul.f32 0.7978846, %v1423_v5  ;;  %v1421_v14 = vmul.f32 0.044715, %v1417_v6  ;;  %v12526_v5 = vld [vmem:[%s14281_s7 + $0x18] sm:$0xff] }
 0x735   : > { %v1426_v17 = vmul.f32 0.7978846, %v1422_v9  ;;  %v1420_v19 = vmul.f32 0.044715, %v1416_v12 }
 0x736   : > { %11616 = vtanh.f32 %v1427_v13  ;;  %v1425_v20 = vadd.f32 %v1421_v14, %v1407_v60  ;;  %v370_v13 = vld [vmem:[%s12352_s10 + $0xe0] sm:$0xff]  ;;  %v371_v14 = vld [vmem:[%s12352_s10 + $0xf0] sm:$0xff] }
 0x737   : > { %11618 = vtanh.f32 %v1426_v17  ;;  %v1424_v21 = vadd.f32 %v1420_v19, %v1402_v1 }
 0x738   : > { %v1429_v23 = vmul.f32 0.7978846, %v1425_v20 }
 0x739   : > { %v1428_v24 = vmul.f32 0.7978846, %v1424_v21 }
 0x73a   : > { %11620 = vtanh.f32 %v1429_v23  ;;  %v372_v23 = vld [vmem:[%s12352_s10 + $0x100] sm:$0xff] }
 0x73b   : > { %11622 = vtanh.f32 %v1428_v24 }
 0x740   : > { %v11617_v63 = vpop.eup %11616 }
 0x741   : > { %v11619_v7 = vpop.eup %11618  ;;  %v1435_v26 = vadd.f32 1.0, %v11617_v63  ;;  %v1719_v63 = vld [vmem:[%s14277_s3 + $0x8] sm:$0xff] }
 0x742   : > { %v1434_v27 = vadd.f32 1.0, %v11619_v7  ;;  %v1453_v7 = vpop.permute.xlu0 %1452 }
 0x743   : > { %v1439_v28 = vmul.f32 0.5, %v1435_v26  ;;  %v1457_v26 = vpop.permute.xlu1 %1456 }
 0x744   : > { %v11621_v29 = vpop.eup %11620  ;;  %v1438_v30 = vmul.f32 0.5, %v1434_v27 }
 0x745   : > { %v11623_v31 = vpop.eup %11622  ;;  %v1443_v32 = vmul.f32 %v1439_v28, %v1397_v52  ;;  %v1437_v34 = vadd.f32 1.0, %v11621_v29  ;;  %v12113_v52 = vmov 8  }
 0x746   : > { %v1442_v35 = vmul.f32 %v1438_v30, %v1392_v54  ;;  %v1436_v36 = vadd.f32 1.0, %v11623_v31  ;;  %11449 = vset.pattern.permute.xlu1 %v12113_v52  ;;  %11450 = vset.pattern.permute.xlu0 %v12113_v52  ;;  %v12503_v54 = vshrl.u32 %v374_v51, 7  ;;  %v1465_v31 = vpop.permute.xlu0 %1464  ;;  %v1724_v51 = vld [vmem:[%s14277_s3 + $0x30] sm:$0xff] }
 0x747   : > { %v1441_v37 = vmul.f32 0.5, %v1437_v34  ;;  %1570 = vperm.xlu1 %11449, %v12374_v10   ;;  %1574 = vperm.xlu0 %11450, %v12388_v15   ;;  %v368_v15 = vld [vmem:[%s12352_s10 + $0xc0] sm:$0xff] }
 0x748   : > { %v10830_v39 = vpack.c.bf16 %v1443_v32, %v1442_v35  ;;  %v1440_v40 = vmul.f32 0.5, %v1436_v36  ;;  %v14291_v56 = vsub.s32 1, %v12503_v54  ;;  %v1461_v35 = vpop.permute.xlu1 %1460 }
 0x749   : > { %v1445_v41 = vmul.f32 %v1441_v37, %v1407_v60  ;;  %v12513_v60 = vld [vmem:[%s14281_s7 + $0x10] sm:$0xff] }
 0x74a   : > { %10831 = vmatprep.subr.bf16.mxu0 %v10830_v39  ;;  %v1444_v42 = vmul.f32 %v1440_v40, %v1402_v1  ;;  %v377_v10 = vrot.slane %v9025_v53, %v14291_v56  ;;  %v1725_v53 = vld [vmem:[%s14277_s3 + $0x38] sm:$0xff] }
 0x74b   : > { %10833 = vmatpush3.bf16.msra.mxu0 %v10830_v39  ;;  %1578 = vperm.xlu1 %11449, %v12513_v60  }
 0x74c   : > { %v10834_v44 = vpack.c.bf16 %v1445_v41, %v1444_v42  ;;  %v378_v62 = vmul.f32 %v377_v10, %v364_v55  ;;  %v379_v1 = vmul.f32 %v377_v10, %v365_v57  ;;  %v380_v3 = vmul.f32 %v377_v10, %v366_v58  ;;  %v1566_v41 = vld [vmem:[#allocation5 + $0xe8] sm:$0xff]  ;;  %v1567_v42 = vld [vmem:[#allocation5 + $0xf0] sm:$0xff]  ;;  %v2278_v55 = vld [vmem:[#allocation5 + $0x100] sm:$0xff] }
 0x74d   : > { %v381_v11 = vmul.f32 %v377_v10, %v367_v59  ;;  %v382_v4 = vmul.f32 %v377_v10, %v368_v15  ;;  %v383_v12 = vmul.f32 %v377_v10, %v369_v61  ;;  %v384_v19 = vmul.f32 %v377_v10, %v370_v13  ;;  %v12578_v58 = vld [vmem:[%s14281_s7 + $0x8] sm:$0xff]  ;;  %v12584_v59 = vld [vmem:[%s14281_s7] sm:$0xff] }
 0x74e   : > { %10835 = vmatprep.subr.bf16.mxu0 %v10834_v44  ;;  %v10846_v6 = vpack.c.bf16 %v379_v1, %v378_v62  ;;  %v385_v20 = vmul.f32 %v377_v10, %v371_v14  ;;  %v386_v24 = vmul.f32 %v377_v10, %v372_v23  ;;  %v12114_v57 = vmov 13   ;;  %v12592_v10 = vld [vmem:[%s14281_s7] sm:$0xff]  ;;  %v12597_v15 = vld [vmem:[%s14281_s7 + $0x8] sm:$0xff]  ;;  %v12608_v1 = vld [vmem:[%s14281_s7 + $0x10] sm:$0xff] }
 0x74f   : > { %10837 = vmatpush3.bf16.msra.mxu0 %v10834_v44  ;;  %1582 = vperm.xlu1 %11449, %v12526_v5   ;;  %v10850_v9 = vpack.c.bf16 %v381_v11, %v380_v3  ;;  %v10854_v17 = vpack.c.bf16 %v383_v12, %v382_v4  ;;  %v1568_v44 = vld [vmem:[#allocation5 + $0xf8] sm:$0xff]  ;;  %v12115_v61 = vmov 11   ;;  %v12613_v3 = vld [vmem:[%s14281_s7 + $0x20] sm:$0xff]  ;;  %v12625_v4 = vld [vmem:[%s14281_s7 + $0x30] sm:$0xff]  ;;  %v12116_v12 = vmov 9  }
 0x750   : > { %10847 = vmatprep.subr.bf16.mxu0 %v10846_v6  ;;  %v10858_v21 = vpack.c.bf16 %v385_v20, %v384_v19  ;;  %11451 = vset.pattern.permute.xlu0 %v12114_v57  ;;  %v12620_v11 = vld [vmem:[%s14281_s7 + $0x18] sm:$0xff]  ;;  %v14293_v13 = vmov 10  }
 0x751   : > { %2283 = vperm.xlu0 %11451, %v12584_v59  }
 0x752   : > { %9945 = vmatmul.mubr.msk.f32.vlgmr.msra.gmra.mrb[8].mxu0 %vm569_vm1, %v1448_v45  ;;  %v1720_v45 = vld [vmem:[%s14277_s3 + $0x10] sm:$0xff] }
 0x753   : > { %9947 = vmatprep.mubr.msk.f32.mxu0 %vm569_vm1, %v1449_v46  ;;  %10849 = vmatpush3.bf16.msra.mxu0 %v10846_v6  ;;  %v1721_v46 = vld [vmem:[%s14277_s3 + $0x18] sm:$0xff] }
 0x754   : > { %10851 = vmatprep.subr.bf16.mxu0 %v10850_v9  ;;  %11452 = vset.pattern.permute.xlu1 %v12114_v57 }
 0x755   : > { %2287 = vperm.xlu1 %11452, %v12578_v58   ;;  %2295 = vperm.xlu0 %11451, %v12526_v5  }
 0x756   : > { %9948 = vmatmul.mubr.msk.f32.gmra.mrb[10].mxu0 %vm569_vm1, %v1450_v48  ;;  %v1722_v48 = vld [vmem:[%s14277_s3 + $0x20] sm:$0xff] }
 0x757   : > { %9982 = vmatprep.mubr.msk.f32.mxu0 %vm1774_vm2, %v1718_v16  ;;  %10853 = vmatpush3.bf16.msra.mxu0 %v10850_v9  ;;  %v12632_v16 = vld [vmem:[%s14281_s7 + $0x28] sm:$0xff]  ;;  %v12640_v9 = vld [vmem:[%s14281_s7 + $0x38] sm:$0xff] }
 0x758   : > { %10855 = vmatprep.subr.bf16.mxu0 %v10854_v17 }
 0x759   : > { %2291 = vperm.xlu1 %11452, %v12513_v60   ;;  %11454 = vset.pattern.permute.xlu0 %v12115_v61 }
 0x75a   : > { %1741 = vperm.xlu0 %11454, %v12597_v15  }
 0x75b   : > { %10857 = vmatpush3.bf16.msra.mxu0 %v10854_v17 }
 0x75c   : > { %10859 = vmatprep.subr.bf16.mxu0 %v10858_v21 }
 0x75d   : > { %11453 = vset.pattern.permute.xlu1 %v12115_v61 }
 0x75e   : > { %1736 = vperm.xlu1 %11453, %v12592_v10   ;;  %1756 = vperm.xlu0 %11454, %v12613_v3  }
 0x75f   : > { %10861 = vmatpush3.bf16.msra.mxu0 %v10858_v21 }
 0x760   : > { %9980 = vmatprep.subr.mxu0 %v386_v24 }
 0x762   : > { %1746 = vperm.xlu1 %11453, %v12608_v1   ;;  %1766 = vperm.xlu0 %11454, %v12625_v4  }
 0x763   : > { %9981 = vmatpush3.msra.mxu0 %v386_v24 }
 0x764   : > { %9983 = vmatmul.mubr.msk.f32.vlgmr.msra.gmra.mrb[12].mxu0 %vm1774_vm2, %v1719_v63 }
 0x765   : > { %9985 = vmatprep.mubr.msk.f32.mxu0 %vm1774_vm2, %v1720_v45 }
 0x766   : > { %1751 = vperm.xlu1 %11453, %v12620_v11   ;;  %11455 = vset.pattern.permute.xlu0 %v12116_v12 }
 0x767   : > { %1977 = vperm.xlu0 %11455, %v12592_v10  }
 0x768   : > { %9986 = vmatmul.mubr.msk.f32.gmra.mrb[14].mxu0 %vm1774_vm2, %v1721_v46 }
 0x769   : > { %9988 = vmatprep.mubr.msk.f32.mxu0 %vm1774_vm2, %v1722_v48 }
 0x76a   : > { %1761 = vperm.xlu1 %11453, %v12632_v16  }
 0x76b   : > { %1993 = vperm.xlu0 %11455, %v12613_v3  }
 0x76c   : > { %9989 = vmatmul.mubr.msk.f32.gmra.mrb[16].mxu0 %vm1774_vm2, %v1723_v49 }
 0x76d   : > { %9991 = vmatprep.mubr.msk.f32.mxu0 %vm1774_vm2, %v1724_v51 }
 0x76e   : > { %1771 = vperm.xlu1 %11453, %v12640_v9  }
 0x76f   : > { %11460 = vset.pattern.permute.xlu0 %v14293_v13 }
 0x770   : > { %9992 = vmatmul.mubr.msk.f32.gmra.mrb[18].mxu0 %vm1774_vm2, %v1725_v53  ;;  %2025 = vperm.xlu0 %11460, %v12597_v15  }
 0x771   : > { %10046 = vmatprep.mubr.msk.f32.mxu0 %vm569_vm1, %v2278_v55 }
 0x772   : > { %11456 = vset.pattern.permute.xlu1 %v12116_v12 }
 0x773   : > { %1981 = vperm.xlu1 %11456, %v12597_v15  }
 0x774   : > { %2029 = vperm.xlu0 %11460, %v12608_v1  }
 0x777   : > { %11457 = vset.pattern.permute.xlu1 %v14293_v13 }
 0x778   : > { %2021 = vperm.xlu1 %11457, %v12592_v10   ;;  %2041 = vperm.xlu0 %11460, %v12632_v16  }
 0x77c   : > { %11458 = vset.pattern.permute.xlu1 %v12116_v12  ;;  %2045 = vperm.xlu0 %11460, %v12625_v4  }
 0x77d   : > { %1985 = vperm.xlu1 %11458, %v12608_v1  }
 0x781   : > { %1989 = vperm.xlu1 %11458, %v12620_v11  }
 0x785   : > { %11459 = vset.pattern.permute.xlu1 %v14293_v13 }
 0x786   : > { %2033 = vperm.xlu1 %11459, %v12620_v11  }
 0x78a   : > { %11461 = vset.pattern.permute.xlu1 %v12116_v12 }
 0x78b   : > { %1997 = vperm.xlu1 %11461, %v12632_v16  }
 0x78f   : > { %11462 = vset.pattern.permute.xlu1 %v14293_v13 }
 0x790   : > { %2037 = vperm.xlu1 %11462, %v12613_v3  }
 0x794   : > { %11463 = vset.pattern.permute.xlu1 %v12116_v12 }
 0x795   : > { %2001 = vperm.xlu1 %11463, %v12625_v4  }
 0x799   : > { %2005 = vperm.xlu1 %11463, %v12640_v9  }
 0x79d   : > { %11464 = vset.pattern.permute.xlu1 %v14293_v13 }
 0x79e   : > { %2049 = vperm.xlu1 %11464, %v12640_v9  }
 0x7c6   : > { %v1571_v14 = vpop.permute.xlu1 %1570  ;;  %v1575_v19 = vpop.permute.xlu0 %1574 }
 0x7ca   : > { %v1579_v17 = vpop.permute.xlu1 %1578 }
 0x825   : > { %v9946_v27 = vpop.f32.mrb[8].mxu0 }
 0x826   : > { %v1551_v28 = vadd.f32 %v9946_v27, %v1457_v26  ;;  %v1545_v29 = vpop.f32.mrb[9].mxu0 }
 0x827   : > { %v1546_v30 = vadd.f32 %v1545_v29, %v1453_v7  ;;  %v1583_v7 = vpop.permute.xlu1 %1582 }
 0x829   : > { %v12537_v32 = vpack.c.bf16 %v1551_v28, %v1546_v30  ;;  %v9949_v34 = vpop.f32.mrb[10].mxu0 }
 0x82a   : > { %v1561_v36 = vadd.f32 %v9949_v34, %v1465_v31  ;;  %v1555_v37 = vpop.f32.mrb[11].mxu0 }
 0x82b   : > { %v1556_v39 = vadd.f32 %v1555_v37, %v1461_v35  ;;  %10839 = vmatprep.subr.bf16.mxu1 %v12537_v32 }
 0x82c   : > { %10841 = vmatpush3.bf16.msra.mxu1 %v12537_v32 }
 0x82d   : > { %v12541_v40 = vpack.c.bf16 %v1561_v36, %v1556_v39 }
 0x82f   : > { %10843 = vmatprep.subr.bf16.mxu1 %v12541_v40 }
 0x830   : > { %10845 = vmatpush3.bf16.msra.mxu1 %v12541_v40 }
 0x833   : > { %9959 = vmatmul.mubr.msk.f32.vlgmr.msra.gmra.mrb[20].mxu1 %vm569_vm1, %v1566_v41 }
 0x834   : > { %9961 = vmatprep.mubr.msk.f32.mxu1 %vm569_vm1, %v1567_v42 }
 0x837   : > { %9962 = vmatmul.mubr.msk.f32.gmra.mrb[22].mxu1 %vm569_vm1, %v1568_v44  ;;  %v12601_v62 = vpop.f32.mrb[12].mxu0 }
 0x838   : > { %v12635_v6 = vpop.f32.mrb[13].mxu0 }
 0x906   : > { %v9960_v20 = vpop.f32.mrb[20].mxu1 }
 0x907   : > { %v1669_v21 = vadd.f32 %v9960_v20, %v1575_v19  ;;  %v1663_v23 = vpop.f32.mrb[21].mxu1 }
 0x908   : > { %v1664_v24 = vadd.f32 %v1663_v23, %v1571_v14 }
 0x909   : > { %v1683_v63 = vmul.f32 %v1669_v21, %v1669_v21 }
 0x90a   : > { %v1682_v26 = vmul.f32 %v1664_v24, %v1664_v24  ;;  %v9963_v27 = vpop.f32.mrb[22].mxu1 }
 0x90b   : > { %v1687_v28 = vmul.f32 %v1683_v63, %v1669_v21  ;;  %v1679_v29 = vadd.f32 %v9963_v27, %v1583_v7  ;;  %v1673_v30 = vpop.f32.mrb[23].mxu1 }
 0x90c   : > { %v1686_v31 = vmul.f32 %v1682_v26, %v1664_v24  ;;  %v1674_v34 = vadd.f32 %v1673_v30, %v1579_v17 }
 0x90d   : > { %v1691_v35 = vmul.f32 0.044715, %v1687_v28  ;;  %v1685_v36 = vmul.f32 %v1679_v29, %v1679_v29 }
 0x90e   : > { %v1690_v37 = vmul.f32 0.044715, %v1686_v31  ;;  %v1684_v39 = vmul.f32 %v1674_v34, %v1674_v34 }
 0x90f   : > { %v1695_v41 = vadd.f32 %v1691_v35, %v1669_v21  ;;  %v1689_v42 = vmul.f32 %v1685_v36, %v1679_v29 }
 0x910   : > { %v1694_v44 = vadd.f32 %v1690_v37, %v1664_v24  ;;  %v1688_v45 = vmul.f32 %v1684_v39, %v1674_v34 }
 0x911   : > { %v1699_v46 = vmul.f32 0.7978846, %v1695_v41  ;;  %v1693_v48 = vmul.f32 0.044715, %v1689_v42 }
 0x912   : > { %v1698_v49 = vmul.f32 0.7978846, %v1694_v44  ;;  %v1692_v51 = vmul.f32 0.044715, %v1688_v45 }
 0x913   : > { %11624 = vtanh.f32 %v1699_v46  ;;  %v1697_v53 = vadd.f32 %v1693_v48, %v1679_v29  ;;  %v2279_v46 = vld [vmem:[#allocation5 + $0x108] sm:$0xff]  ;;  %v2280_v48 = vld [vmem:[#allocation5 + $0x110] sm:$0xff] }
 0x914   : > { %11626 = vtanh.f32 %v1698_v49  ;;  %v1696_v55 = vadd.f32 %v1692_v51, %v1674_v34  ;;  %v12674_v49 = vpop.permute.xlu0 %2283 }
 0x915   : > { %v1701_v14 = vmul.f32 0.7978846, %v1697_v53 }
 0x916   : > { %v1700_v17 = vmul.f32 0.7978846, %v1696_v55 }
 0x917   : > { %11628 = vtanh.f32 %v1701_v14 }
 0x918   : > { %11630 = vtanh.f32 %v1700_v17 }
 0x91d   : > { %v11625_v19 = vpop.eup %11624 }
 0x91e   : > { %v11627_v20 = vpop.eup %11626  ;;  %v1707_v23 = vadd.f32 1.0, %v11625_v19 }
 0x91f   : > { %v1706_v63 = vadd.f32 1.0, %v11627_v20 }
 0x920   : > { %v1711_v7 = vmul.f32 0.5, %v1707_v23 }
 0x921   : > { %v11629_v26 = vpop.eup %11628  ;;  %v1710_v27 = vmul.f32 0.5, %v1706_v63 }
 0x922   : > { %v11631_v28 = vpop.eup %11630  ;;  %v1715_v30 = vmul.f32 %v1711_v7, %v1669_v21  ;;  %v1709_v31 = vadd.f32 1.0, %v11629_v26  ;;  %v2281_v21 = vld [vmem:[#allocation5 + $0x118] sm:$0xff] }
 0x923   : > { %v1714_v35 = vmul.f32 %v1710_v27, %v1664_v24  ;;  %v1708_v36 = vadd.f32 1.0, %v11631_v28  ;;  %v12672_v24 = vpop.permute.xlu1 %2287 }
 0x924   : > { %v1713_v37 = vmul.f32 0.5, %v1709_v31 }
 0x925   : > { %v10894_v39 = vpack.c.bf16 %v1715_v30, %v1714_v35  ;;  %v1712_v41 = vmul.f32 0.5, %v1708_v36 }
 0x926   : > { %v1717_v42 = vmul.f32 %v1713_v37, %v1679_v29 }
 0x927   : > { %10895 = vmatprep.subr.bf16.mxu0 %v10894_v39  ;;  %v1716_v44 = vmul.f32 %v1712_v41, %v1674_v34  ;;  %v12676_v29 = vpop.permute.xlu1 %2291  ;;  %v12678_v34 = vpop.permute.xlu0 %2295 }
 0x928   : > { %10897 = vmatpush3.bf16.msra.mxu0 %v10894_v39 }
 0x929   : > { %v10898_v45 = vpack.c.bf16 %v1717_v42, %v1716_v44 }
 0x92b   : > { %10899 = vmatprep.subr.bf16.mxu0 %v10898_v45  ;;  %v1737_v51 = vpop.permute.xlu1 %1736  ;;  %v1742_v53 = vpop.permute.xlu0 %1741 }
 0x92c   : > { %10901 = vmatpush3.bf16.msra.mxu0 %v10898_v45  ;;  %v1871_v55 = vadd.f32 %v12601_v62, %v1742_v53  ;;  %v1866_v14 = vadd.f32 %v12635_v6, %v1737_v51  ;;  %v9987_v45 = vpop.f32.mrb[14].mxu0 }
 0x92e   : > { %v1905_v17 = vmul.f32 %v1871_v55, %v1871_v55  ;;  %v1904_v19 = vmul.f32 %v1866_v14, %v1866_v14 }
 0x92f   : > { %10047 = vmatmul.mubr.msk.f32.vlgmr.msra.gmra.mrb[20].mxu0 %vm569_vm1, %v2279_v46  ;;  %v1747_v31 = vpop.permute.xlu1 %1746  ;;  %v1757_v51 = vpop.permute.xlu0 %1756 }
 0x930   : > { %10049 = vmatprep.mubr.msk.f32.mxu0 %vm569_vm1, %v2280_v48  ;;  %v1913_v20 = vmul.f32 %v1905_v17, %v1871_v55  ;;  %v1912_v23 = vmul.f32 %v1904_v19, %v1866_v14 }
 0x932   : > { %v1921_v63 = vmul.f32 0.044715, %v1913_v20  ;;  %v1920_v7 = vmul.f32 0.044715, %v1912_v23 }
 0x933   : > { %10050 = vmatmul.mubr.msk.f32.gmra.mrb[22].mxu0 %vm569_vm1, %v2281_v21  ;;  %v1752_v37 = vpop.permute.xlu1 %1751  ;;  %v1875_v21 = vpop.f32.mrb[15].mxu0 }
 0x934   : > { %v1929_v26 = vadd.f32 %v1921_v63, %v1871_v55  ;;  %v1928_v27 = vadd.f32 %v1920_v7, %v1866_v14  ;;  %v1881_v48 = vadd.f32 %v9987_v45, %v1752_v37  ;;  %v1876_v17 = vadd.f32 %v1875_v21, %v1747_v31  ;;  %v9990_v23 = vpop.f32.mrb[16].mxu0 }
 0x936   : > { %v1937_v28 = vmul.f32 0.7978846, %v1929_v26  ;;  %v1936_v30 = vmul.f32 0.7978846, %v1928_v27  ;;  %v1907_v19 = vmul.f32 %v1881_v48, %v1881_v48  ;;  %v1906_v20 = vmul.f32 %v1876_v17, %v1876_v17  ;;  %v1885_v26 = vpop.f32.mrb[17].mxu0 }
 0x937   : > { %v1762_v46 = vpop.permute.xlu1 %1761 }
 0x938   : > { %11632 = vtanh.f32 %v1937_v28  ;;  %v1915_v63 = vmul.f32 %v1907_v19, %v1881_v48  ;;  %v1891_v7 = vadd.f32 %v9990_v23, %v1762_v46  ;;  %v1914_v27 = vmul.f32 %v1906_v20, %v1876_v17 }
 0x939   : > { %11634 = vtanh.f32 %v1936_v30  ;;  %v1886_v28 = vadd.f32 %v1885_v26, %v1757_v51 }
 0x93b   : > { %v1772_v30 = vpop.permute.xlu1 %1771  ;;  %v1908_v37 = vmul.f32 %v1886_v28, %v1886_v28 }
 0x942   : > { %v11633_v35 = vpop.eup %11632 }
 0x943   : > { %v11635_v36 = vpop.eup %11634  ;;  %v1953_v39 = vadd.f32 1.0, %v11633_v35  ;;  %v1767_v35 = vpop.permute.xlu0 %1766 }
 0x944   : > { %v1952_v62 = vadd.f32 1.0, %v11635_v36  ;;  %v1922_v36 = vmul.f32 0.044715, %v1914_v27 }
 0x945   : > { %v1961_v41 = vmul.f32 0.5, %v1953_v39  ;;  %v9993_v39 = vpop.f32.mrb[18].mxu0 }
 0x946   : > { %v1960_v6 = vmul.f32 0.5, %v1952_v62  ;;  %v1901_v31 = vadd.f32 %v9993_v39, %v1772_v30 }
 0x947   : > { %v1969_v42 = vmul.f32 %v1961_v41, %v1871_v55  ;;  %v1923_v55 = vmul.f32 0.044715, %v1915_v63 }
 0x948   : > { %v1968_v44 = vmul.f32 %v1960_v6, %v1866_v14  ;;  %v1909_v14 = vmul.f32 %v1891_v7, %v1891_v7  ;;  %v1895_v6 = vpop.f32.mrb[19].mxu0  ;;  %v1911_v46 = vmul.f32 %v1901_v31, %v1901_v31 }
 0x949   : > { %v1931_v62 = vadd.f32 %v1923_v55, %v1881_v48  ;;  %v1896_v45 = vadd.f32 %v1895_v6, %v1767_v35 }
 0x94a   : > { %v10862_v53 = vpack.c.bf16 %v1969_v42, %v1968_v44  ;;  %v1917_v41 = vmul.f32 %v1909_v14, %v1891_v7  ;;  %v1930_v42 = vadd.f32 %v1922_v36, %v1876_v17  ;;  %v1916_v44 = vmul.f32 %v1908_v37, %v1886_v28 }
 0x94b   : > { %v1939_v21 = vmul.f32 0.7978846, %v1931_v62  ;;  %v1910_v51 = vmul.f32 %v1896_v45, %v1896_v45  ;;  %v1919_v63 = vmul.f32 %v1911_v46, %v1901_v31 }
 0x94c   : > { %10863 = vmatprep.subr.bf16.mxu1 %v10862_v53  ;;  %v1938_v19 = vmul.f32 0.7978846, %v1930_v42  ;;  %v1924_v20 = vmul.f32 0.044715, %v1916_v44 }
 0x94d   : > { %10865 = vmatpush3.bf16.msra.mxu1 %v10862_v53  ;;  %v1925_v53 = vmul.f32 0.044715, %v1917_v41  ;;  %11636 = vtanh.f32 %v1939_v21  ;;  %v1918_v27 = vmul.f32 %v1910_v51, %v1896_v45  ;;  %v1927_v55 = vmul.f32 0.044715, %v1919_v63 }
 0x94e   : > { %11638 = vtanh.f32 %v1938_v19  ;;  %v1932_v26 = vadd.f32 %v1924_v20, %v1886_v28 }
 0x94f   : > { %v1933_v23 = vadd.f32 %v1925_v53, %v1891_v7  ;;  %v1926_v30 = vmul.f32 0.044715, %v1918_v27  ;;  %v1935_v36 = vadd.f32 %v1927_v55, %v1901_v31 }
 0x950   : > { %v1940_v14 = vmul.f32 0.7978846, %v1932_v26 }
 0x951   : > { %v1941_v56 = vmul.f32 0.7978846, %v1933_v23  ;;  %v1934_v35 = vadd.f32 %v1926_v30, %v1896_v45  ;;  %v1943_v37 = vmul.f32 0.7978846, %v1935_v36 }
 0x953   : > { %11640 = vtanh.f32 %v1941_v56  ;;  %v1942_v39 = vmul.f32 0.7978846, %v1934_v35 }
 0x954   : > { %11642 = vtanh.f32 %v1940_v14 }
 0x955   : > { %11644 = vtanh.f32 %v1943_v37 }
 0x956   : > { %11646 = vtanh.f32 %v1942_v39 }
 0x957   : > { %v11637_v62 = vpop.eup %11636 }
 0x958   : > { %v11639_v41 = vpop.eup %11638  ;;  %v1955_v6 = vadd.f32 1.0, %v11637_v62 }
 0x959   : > { %v1954_v42 = vadd.f32 1.0, %v11639_v41 }
 0x95a   : > { %v1963_v44 = vmul.f32 0.5, %v1955_v6  ;;  %v12682_v6 = vld [vmem:[#allocation5 + $0x240] sm:$0xff] }
 0x95b   : > { %v1962_v53 = vmul.f32 0.5, %v1954_v42  ;;  %10060 = vmatprep.mubr.msk.f32.mxu0 %vm569_vm1, %v12682_v6  ;;  %v1982_v42 = vpop.permute.xlu1 %1981 }
 0x95c   : > { %v1971_v19 = vmul.f32 %v1963_v44, %v1881_v48  ;;  %v2132_v44 = vld [vmem:[%s14278_s4] sm:$0xff] }
 0x95d   : > { %v11641_v21 = vpop.eup %11640  ;;  %v1970_v51 = vmul.f32 %v1962_v53, %v1876_v17  ;;  %10026 = vmatprep.mubr.f32.mxu1 %v2132_v44 }
 0x95e   : > { %v11643_v46 = vpop.eup %11642  ;;  %v1957_v20 = vadd.f32 1.0, %v11641_v21  ;;  %v12118_v21 = vmov 14  }
 0x95f   : > { %v1956_v23 = vadd.f32 1.0, %v11643_v46  ;;  %v11645_v63 = vpop.eup %11644  ;;  %v10866_v26 = vpack.c.bf16 %v1971_v19, %v1970_v51  ;;  %11466 = vset.pattern.permute.xlu1 %v12118_v21  ;;  %11465 = vset.pattern.permute.xlu0 %v12118_v21  ;;  %v2022_v46 = vpop.permute.xlu1 %2021 }
 0x960   : > { %v1965_v56 = vmul.f32 0.5, %v1957_v20  ;;  %v11647_v55 = vpop.eup %11646  ;;  %v1959_v35 = vadd.f32 1.0, %v11645_v63  ;;  %2603 = vperm.xlu1 %11466, %v12578_v58   ;;  %2599 = vperm.xlu0 %11465, %v12584_v59  }
 0x961   : > { %v1964_v27 = vmul.f32 0.5, %v1956_v23  ;;  %10867 = vmatprep.subr.bf16.mxu1 %v10866_v26  ;;  %v1958_v36 = vadd.f32 1.0, %v11647_v55 }
 0x962   : > { %v1973_v14 = vmul.f32 %v1965_v56, %v1891_v7  ;;  %10869 = vmatpush3.bf16.msra.mxu1 %v10866_v26  ;;  %v1967_v62 = vmul.f32 0.5, %v1959_v35  ;;  %v14292_v7 = vsub.s32 0, %v12503_v54 }
 0x963   : > { %v1972_v30 = vmul.f32 %v1964_v27, %v1886_v28  ;;  %v1966_v39 = vmul.f32 0.5, %v1958_v36  ;;  %v1978_v28 = vpop.permute.xlu0 %1977  ;;  %v1986_v23 = vpop.permute.xlu1 %1985 }
 0x964   : > { %v1975_v48 = vmul.f32 %v1967_v62, %v1901_v31  ;;  %v12694_v31 = vrot.slane %v12496_v50, %v14292_v7  ;;  %2607 = vperm.xlu0 %11465, %v12513_v60  }
 0x965   : > { %v10870_v37 = vpack.c.bf16 %v1973_v14, %v1972_v30  ;;  %v1974_v41 = vmul.f32 %v1966_v39, %v1896_v45 }
 0x966   : > { %v2012_v45 = vmul.f32 %v12694_v31, %v1978_v28  ;;  %v2013_v19 = vmul.f32 %v12694_v31, %v1982_v42  ;;  %v2014_v63 = vmul.f32 %v12694_v31, %v1986_v23 }
 0x967   : > { %10871 = vmatprep.subr.bf16.mxu1 %v10870_v37  ;;  %v10874_v17 = vpack.c.bf16 %v1975_v48, %v1974_v41  ;;  %v1994_v53 = vpop.permute.xlu0 %1993  ;;  %v1990_v14 = vpop.permute.xlu1 %1989 }
 0x968   : > { %10873 = vmatpush3.bf16.msra.mxu1 %v10870_v37  ;;  %v12701_v20 = vadd.f32 %v2022_v46, %v2012_v45  ;;  %v2015_v35 = vmul.f32 %v12694_v31, %v1990_v14 }
 0x969   : > { %10875 = vmatprep.subr.bf16.mxu1 %v10874_v17 }
 0x96a   : > { %v2060_v50 = vmul.f32 %v12701_v20, %v12701_v20 }
 0x96b   : > { %v2026_v51 = vpop.permute.xlu0 %2025 }
 0x96c   : > { %10877 = vmatpush3.bf16.msra.mxu1 %v10874_v17  ;;  %v12706_v56 = vadd.f32 %v2026_v51, %v2013_v19  ;;  %v2068_v26 = vmul.f32 %v2060_v50, %v12701_v20  ;;  %v2034_v17 = vpop.permute.xlu1 %2033  ;;  %v2016_v50 = vmul.f32 %v12694_v31, %v1994_v53 }
 0x96d   : > { %v12720_v42 = vadd.f32 %v2034_v17, %v2015_v35 }
 0x96e   : > { %v2061_v27 = vmul.f32 %v12706_v56, %v12706_v56  ;;  %v2076_v55 = vmul.f32 0.044715, %v2068_v26 }
 0x96f   : > { %v2030_v30 = vpop.permute.xlu0 %2029  ;;  %v2063_v46 = vmul.f32 %v12720_v42, %v12720_v42 }
 0x970   : > { %v2069_v36 = vmul.f32 %v2061_v27, %v12706_v56  ;;  %v12714_v37 = vadd.f32 %v2030_v30, %v2014_v63  ;;  %v2084_v39 = vadd.f32 %v2076_v55, %v12701_v20  ;;  %v1998_v51 = vpop.permute.xlu1 %1997 }
 0x971   : > { %v2071_v63 = vmul.f32 %v2063_v46, %v12720_v42  ;;  %v2017_v27 = vmul.f32 %v12694_v31, %v1998_v51 }
 0x972   : > { %v2077_v62 = vmul.f32 0.044715, %v2069_v36  ;;  %v2062_v41 = vmul.f32 %v12714_v37, %v12714_v37  ;;  %v2092_v48 = vmul.f32 0.7978846, %v2084_v39 }
 0x973   : > { %v2042_v23 = vpop.permute.xlu0 %2041  ;;  %v2079_v55 = vmul.f32 0.044715, %v2071_v63 }
 0x974   : > { %v2085_v28 = vadd.f32 %v2077_v62, %v12706_v56  ;;  %v2070_v44 = vmul.f32 %v2062_v41, %v12714_v37  ;;  %11648 = vtanh.f32 %v2092_v48  ;;  %v12729_v30 = vadd.f32 %v2042_v23, %v2017_v27  ;;  %v2038_v36 = vpop.permute.xlu1 %2037 }
 0x975   : > { %v2087_v35 = vadd.f32 %v2079_v55, %v12720_v42  ;;  %v12732_v39 = vadd.f32 %v2038_v36, %v2016_v50 }
 0x976   : > { %v2093_v45 = vmul.f32 0.7978846, %v2085_v28  ;;  %v2078_v19 = vmul.f32 0.044715, %v2070_v44  ;;  %v2065_v53 = vmul.f32 %v12729_v30, %v12729_v30 }
 0x977   : > { %v2095_v62 = vmul.f32 0.7978846, %v2087_v35  ;;  %v2064_v41 = vmul.f32 %v12732_v39, %v12732_v39  ;;  %v2046_v44 = vpop.permute.xlu0 %2045 }
 0x978   : > { %11650 = vtanh.f32 %v2093_v45  ;;  %v2086_v26 = vadd.f32 %v2078_v19, %v12714_v37  ;;  %v2073_v48 = vmul.f32 %v2065_v53, %v12729_v30  ;;  %v2002_v28 = vpop.permute.xlu1 %2001 }
 0x979   : > { %v2072_v45 = vmul.f32 %v2064_v41, %v12732_v39  ;;  %v2018_v46 = vmul.f32 %v12694_v31, %v2002_v28 }
 0x97a   : > { %v2094_v14 = vmul.f32 0.7978846, %v2086_v26  ;;  %v2081_v19 = vmul.f32 0.044715, %v2073_v48 }
 0x97b   : > { %v2080_v23 = vmul.f32 0.044715, %v2072_v45  ;;  %v2058_v26 = vadd.f32 %v2046_v44, %v2018_v46 }
 0x97c   : > { %11652 = vtanh.f32 %v2094_v14  ;;  %v2089_v63 = vadd.f32 %v2081_v19, %v12729_v30  ;;  %v2006_v27 = vpop.permute.xlu1 %2005 }
 0x97d   : > { %11654 = vtanh.f32 %v2095_v62  ;;  %v2088_v36 = vadd.f32 %v2080_v23, %v12732_v39  ;;  %v2019_v53 = vmul.f32 %v12694_v31, %v2006_v27  ;;  %v2066_v62 = vmul.f32 %v2058_v26, %v2058_v26 }
 0x97e   : > { %v11649_v17 = vpop.eup %11648  ;;  %v2097_v35 = vmul.f32 0.7978846, %v2089_v63 }
 0x97f   : > { %v2108_v50 = vadd.f32 1.0, %v11649_v17  ;;  %v2096_v48 = vmul.f32 0.7978846, %v2088_v36  ;;  %v2074_v17 = vmul.f32 %v2066_v62, %v2058_v26 }
 0x980   : > { %11656 = vtanh.f32 %v2097_v35  ;;  %v2050_v45 = vpop.permute.xlu1 %2049 }
 0x981   : > { %v2116_v14 = vmul.f32 0.5, %v2108_v50  ;;  %11658 = vtanh.f32 %v2096_v48  ;;  %v2059_v46 = vadd.f32 %v2050_v45, %v2019_v53  ;;  %v2082_v50 = vmul.f32 0.044715, %v2074_v17 }
 0x982   : > { %v11651_v51 = vpop.eup %11650 }
 0x983   : > { %v2109_v55 = vadd.f32 1.0, %v11651_v51  ;;  %v2124_v41 = vmul.f32 %v2116_v14, %v12701_v20  ;;  %v2067_v13 = vmul.f32 %v2059_v46, %v2059_v46  ;;  %v2090_v31 = vadd.f32 %v2082_v50, %v2058_v26 }
 0x985   : > { %v2117_v7 = vmul.f32 0.5, %v2109_v55  ;;  %v2075_v55 = vmul.f32 %v2067_v13, %v2059_v46  ;;  %v2098_v20 = vmul.f32 0.7978846, %v2090_v31 }
 0x986   : > { %v11653_v28 = vpop.eup %11652 }
 0x987   : > { %v2125_v19 = vmul.f32 %v2117_v7, %v12706_v56  ;;  %v2110_v44 = vadd.f32 1.0, %v11653_v28  ;;  %v11655_v63 = vpop.eup %11654  ;;  %v2083_v35 = vmul.f32 0.044715, %v2075_v55  ;;  %11660 = vtanh.f32 %v2098_v20 }
 0x988   : > { %v2111_v27 = vadd.f32 1.0, %v11655_v63 }
 0x989   : > { %v10878_v51 = vpack.c.bf16 %v2125_v19, %v2124_v41  ;;  %v2118_v23 = vmul.f32 0.5, %v2110_v44  ;;  %v2091_v53 = vadd.f32 %v2083_v35, %v2059_v46 }
 0x98a   : > { %v2119_v14 = vmul.f32 0.5, %v2111_v27  ;;  %v11657_v56 = vpop.eup %11656 }
 0x98b   : > { %10879 = vmatprep.subr.bf16.mxu1 %v10878_v51  ;;  %v2126_v36 = vmul.f32 %v2118_v23, %v12714_v37  ;;  %v2113_v41 = vadd.f32 1.0, %v11657_v56  ;;  %v11659_v28 = vpop.eup %11658  ;;  %v2099_v48 = vmul.f32 0.7978846, %v2091_v53 }
 0x98c   : > { %10881 = vmatpush3.bf16.msra.mxu1 %v10878_v51  ;;  %v2127_v7 = vmul.f32 %v2119_v14, %v12720_v42  ;;  %v2112_v17 = vadd.f32 1.0, %v11659_v28  ;;  %v2135_v28 = vld [vmem:[%s14278_s4 + $0x18] sm:$0xff] }
 0x98d   : > { %v2121_v45 = vmul.f32 0.5, %v2113_v41  ;;  %11662 = vtanh.f32 %v2099_v48  ;;  %v2134_v41 = vld [vmem:[%s14278_s4 + $0x10] sm:$0xff]  ;;  %v2136_v48 = vld [vmem:[%s14278_s4 + $0x20] sm:$0xff] }
 0x98e   : > { %v10882_v62 = vpack.c.bf16 %v2127_v7, %v2126_v36  ;;  %v2120_v13 = vmul.f32 0.5, %v2112_v17  ;;  %v12120_v17 = vmov 12  }
 0x98f   : > { %v2129_v19 = vmul.f32 %v2121_v45, %v12729_v30  ;;  %v2133_v30 = vld [vmem:[%s14278_s4 + $0x8] sm:$0xff] }
 0x990   : > { %10883 = vmatprep.subr.bf16.mxu1 %v10882_v62  ;;  %v2128_v37 = vmul.f32 %v2120_v13, %v12732_v39  ;;  %v2137_v45 = vld [vmem:[%s14278_s4 + $0x28] sm:$0xff]  ;;  %v2138_v13 = vld [vmem:[%s14278_s4 + $0x30] sm:$0xff] }
 0x991   : > { %10885 = vmatpush3.bf16.msra.mxu1 %v10882_v62  ;;  %v11661_v44 = vpop.eup %11660  ;;  %v12771_v62 = vld [vmem:[#allocation5 + $0x250] sm:$0xff] }
 0x992   : > { %v10886_v50 = vpack.c.bf16 %v2129_v19, %v2128_v37  ;;  %v2114_v51 = vadd.f32 1.0, %v11661_v44  ;;  %v2139_v19 = vld [vmem:[%s14278_s4 + $0x38] sm:$0xff] }
 0x994   : > { %10887 = vmatprep.subr.bf16.mxu1 %v10886_v50  ;;  %v2122_v42 = vmul.f32 0.5, %v2114_v51 }
 0x995   : > { %10889 = vmatpush3.bf16.msra.mxu1 %v10886_v50 }
 0x996   : > { %v2130_v27 = vmul.f32 %v2122_v42, %v2058_v26 }
 0x997   : > { %v11663_v23 = vpop.eup %11662 }
 0x998   : > { %v2115_v63 = vadd.f32 1.0, %v11663_v23 }
 0x99a   : > { %v2123_v31 = vmul.f32 0.5, %v2115_v63 }
 0x99c   : > { %v2131_v55 = vmul.f32 %v2123_v31, %v2059_v46 }
 0x99e   : > { %v10890_v20 = vpack.c.bf16 %v2131_v55, %v2130_v27 }
 0x9a0   : > { %10891 = vmatprep.subr.bf16.mxu1 %v10890_v20 }
 0x9a1   : > { %10893 = vmatpush3.bf16.msra.mxu1 %v10890_v20 }
 0x9a4   : > { %10027 = vmatmul.mubr.f32.vlgmr.msra.gmra.mrb[24].mxu1 %v2133_v30 }
 0x9a5   : > { %10029 = vmatprep.mubr.f32.mxu1 %v2134_v41 }
 0x9a8   : > { %10030 = vmatmul.mubr.f32.gmra.mrb[26].mxu1 %v2135_v28 }
 0x9a9   : > { %10032 = vmatprep.mubr.f32.mxu1 %v2136_v48 }
 0x9ac   : > { %10033 = vmatmul.mubr.f32.gmra.mrb[28].mxu1 %v2137_v45 }
 0x9ad   : > { %10035 = vmatprep.mubr.f32.mxu1 %v2138_v13 }
 0x9b0   : > { %10036 = vmatmul.mubr.f32.gmra.mrb[30].mxu1 %v2139_v19 }
 0x9b1   : > { %10074 = vmatprep.mubr.msk.f32.mxu1 %vm569_vm1, %v12682_v6  ;;  %v14295_v6 = vmov 20  }
 0x9df   : > { %v2600_v41 = vpop.permute.xlu0 %2599 }
 0xa02   : > { %v10048_v39 = vpop.f32.mrb[20].mxu0 }
 0xa03   : > { %v12754_v14 = vadd.f32 %v10048_v39, %v12672_v24  ;;  %v2376_v36 = vpop.f32.mrb[21].mxu0 }
 0xa04   : > { %v12757_v35 = vadd.f32 %v2376_v36, %v12674_v49  ;;  %v12769_v49 = vld [vmem:[#allocation5 + $0x248] sm:$0xff] }
 0xa06   : > { %v10902_v26 = vpack.c.bf16 %v12754_v14, %v12757_v35  ;;  %v10051_v46 = vpop.f32.mrb[22].mxu0 }
 0xa07   : > { %v12762_v7 = vadd.f32 %v10051_v46, %v12678_v34  ;;  %v2386_v56 = vpop.f32.mrb[23].mxu0  ;;  %v12777_v34 = vld [vmem:[#allocation5 + $0x258] sm:$0xff]  ;;  %v2604_v46 = vpop.permute.xlu1 %2603 }
 0xa08   : > { %v12765_v53 = vadd.f32 %v2386_v56, %v12676_v29  ;;  %10903 = vmatprep.subr.bf16.mxu0 %v10902_v26  ;;  %v12119_v29 = vmov 15  }
 0xa09   : > { %10905 = vmatpush3.bf16.msra.mxu0 %v10902_v26  ;;  %11467 = vset.pattern.permute.xlu1 %v12119_v29  ;;  %v2646_v26 = vld [vmem:[%s14279_s5] sm:$0xff] }
 0xa0a   : > { %v10906_v24 = vpack.c.bf16 %v12762_v7, %v12765_v53  ;;  %11469 = vset.pattern.permute.xlu0 %v12119_v29  ;;  %2619 = vperm.xlu1 %11467, %v12584_v59  }
 0xa0b   : > { %2623 = vperm.xlu0 %11469, %v12578_v58  }
 0xa0c   : > { %10907 = vmatprep.subr.bf16.mxu0 %v10906_v24 }
 0xa0d   : > { %10909 = vmatpush3.bf16.msra.mxu0 %v10906_v24 }
 0xa0e   : > { %11468 = vset.pattern.permute.xlu1 %v12120_v17 }
 0xa0f   : > { %2141 = vperm.xlu1 %11468, %v12592_v10   ;;  %2631 = vperm.xlu0 %11469, %v12526_v5   ;;  %v12121_v10 = vmov 16  }
 0xa10   : > { %10061 = vmatmul.mubr.msk.f32.vlgmr.msra.gmra.mrb[24].mxu0 %vm569_vm1, %v12769_v49 }
 0xa11   : > { %10063 = vmatprep.mubr.msk.f32.mxu0 %vm569_vm1, %v12771_v62 }
 0xa13   : > { %2145 = vperm.xlu1 %11468, %v12597_v15   ;;  %11473 = vset.pattern.permute.xlu0 %v12121_v10  ;;  %v12122_v15 = vmov 17  }
 0xa14   : > { %10064 = vmatmul.mubr.msk.f32.gmra.mrb[26].mxu0 %vm569_vm1, %v12777_v34  ;;  %2651 = vperm.xlu0 %11473, %v12584_v59  }
 0xa15   : > { %10096 = vmatprep.mubr.msk.f32.mxu0 %vm415_vm0, %v2646_v26 }
 0xa17   : > { %11470 = vset.pattern.permute.xlu1 %v12118_v21 }
 0xa18   : > { %2611 = vperm.xlu1 %11470, %v12526_v5   ;;  %2663 = vperm.xlu0 %11473, %v12526_v5  }
 0xa1c   : > { %11471 = vset.pattern.permute.xlu1 %v12119_v29  ;;  %11476 = vset.pattern.permute.xlu0 %v12122_v15 }
 0xa1d   : > { %2627 = vperm.xlu1 %11471, %v12513_v60   ;;  %2773 = vperm.xlu0 %11476, %v12578_v58   ;;  %v14299_v60 = vmov 18  }
 0xa21   : > { %11472 = vset.pattern.permute.xlu1 %v12120_v17  ;;  %11477 = vset.pattern.permute.xlu0 %v14299_v60 }
 0xa22   : > { %2149 = vperm.xlu1 %11472, %v12608_v1   ;;  %2923 = vperm.xlu0 %11477, %v12584_v59   ;;  %v12828_v1 = vld [vmem:[%s14281_s7 + $0x10] sm:$0xff] }
 0xa26   : > { %2153 = vperm.xlu1 %11472, %v12620_v11   ;;  %2935 = vperm.xlu0 %11477, %v12526_v5   ;;  %v14297_v11 = vmov 19   ;;  %v12842_v5 = vld [vmem:[%s14281_s7 + $0x18] sm:$0xff] }
 0xa2a   : > { %11474 = vset.pattern.permute.xlu1 %v12121_v10  ;;  %11480 = vset.pattern.permute.xlu0 %v14297_v11 }
 0xa2b   : > { %2655 = vperm.xlu1 %11474, %v12578_v58   ;;  %3081 = vperm.xlu0 %11480, %v12578_v58  }
 0xa2f   : > { %2659 = vperm.xlu1 %11474, %v12828_v1   ;;  %11481 = vset.pattern.permute.xlu0 %v14295_v6 }
 0xa30   : > { %3231 = vperm.xlu0 %11481, %v12584_v59  }
 0xa33   : > { %11475 = vset.pattern.permute.xlu1 %v12122_v15 }
 0xa34   : > { %2769 = vperm.xlu1 %11475, %v12584_v59   ;;  %3243 = vperm.xlu0 %11481, %v12842_v5  }
 0xa38   : > { %2777 = vperm.xlu1 %11475, %v12828_v1   ;;  %11484 = vset.pattern.permute.xlu0 %v12120_v17 }
 0xa39   : > { %2161 = vperm.xlu0 %11484, %v12632_v16  }
 0xa3c   : > { %2781 = vperm.xlu1 %11475, %v12842_v5  }
 0xa40   : > { %11478 = vset.pattern.permute.xlu1 %v14299_v60 }
 0xa41   : > { %2927 = vperm.xlu1 %11478, %v12578_v58  }
 0xa45   : > { %2931 = vperm.xlu1 %11478, %v12828_v1  }
 0xa49   : > { %11479 = vset.pattern.permute.xlu1 %v14297_v11 }
 0xa4a   : > { %3077 = vperm.xlu1 %11479, %v12584_v59  }
 0xa4e   : > { %3085 = vperm.xlu1 %11479, %v12828_v1  }
 0xa52   : > { %3089 = vperm.xlu1 %11479, %v12842_v5  }
 0xa56   : > { %11482 = vset.pattern.permute.xlu1 %v14295_v6 }
 0xa57   : > { %3235 = vperm.xlu1 %11482, %v12578_v58  }
 0xa5b   : > { %3239 = vperm.xlu1 %11482, %v12828_v1  }
 0xa5f   : > { %11483 = vset.pattern.permute.xlu1 %v12120_v17 }
 0xa60   : > { %2157 = vperm.xlu1 %11483, %v12613_v3  }
 0xa64   : > { %2165 = vperm.xlu1 %11483, %v12625_v4  }
 0xa68   : > { %2169 = vperm.xlu1 %11483, %v12640_v9  }
 0xa77   : > { %v12856_v37 = vpop.f32.mrb[24].mxu1 }
 0xa78   : > { %v12859_v44 = vpop.f32.mrb[25].mxu1 }
 0xa7b   : > { %v10031_v9 = vpop.f32.mrb[26].mxu1 }
 0xa7c   : > { %v2248_v30 = vpop.f32.mrb[27].mxu1 }
 0xa7f   : > { %v12876_v39 = vpop.f32.mrb[28].mxu1 }
 0xae3   : > { %v10062_v59 = vpop.f32.mrb[24].mxu0 }
 0xae4   : > { %v2498_v16 = vsub.f32 %v12754_v14, %v10062_v59  ;;  %v2478_v50 = vpop.f32.mrb[25].mxu0  ;;  %v12878_v14 = vpop.f32.mrb[29].mxu1 }
 0xae5   : > { %v2497_v51 = vsub.f32 %v12757_v35, %v2478_v50  ;;  %v12880_v36 = vpop.f32.mrb[30].mxu1  ;;  %v2608_v59 = vpop.permute.xlu0 %2607 }
 0xae6   : > { %v2502_v42 = vmul.f32 %v2498_v16, %v2498_v16  ;;  %v12882_v35 = vpop.f32.mrb[31].mxu1 }
 0xae7   : > { %v2501_v58 = vmul.f32 %v2497_v51, %v2497_v51  ;;  %v10065_v23 = vpop.f32.mrb[26].mxu0 }
 0xae8   : > { %v2500_v63 = vsub.f32 %v12762_v7, %v10065_v23  ;;  %v2488_v31 = vpop.f32.mrb[27].mxu0  ;;  %v2620_v7 = vpop.permute.xlu1 %2619 }
 0xae9   : > { %v2499_v27 = vsub.f32 %v12765_v53, %v2488_v31  ;;  %v10910_v55 = vpack.c.bf16 %v2502_v42, %v2501_v58  ;;  %v2624_v31 = vpop.permute.xlu0 %2623 }
 0xaea   : > { %v2504_v3 = vmul.f32 %v2500_v63, %v2500_v63 }
 0xaeb   : > { %v2503_v20 = vmul.f32 %v2499_v27, %v2499_v27  ;;  %10911 = vmatprep.subr.bf16.mxu1 %v10910_v55 }
 0xaec   : > { %10913 = vmatpush3.bf16.msra.mxu1 %v10910_v55  ;;  %v2142_v56 = vpop.permute.xlu1 %2141 }
 0xaed   : > { %v10914_v4 = vpack.c.bf16 %v2504_v3, %v2503_v20  ;;  %v2632_v6 = vpop.permute.xlu0 %2631  ;;  %v2239_v11 = vadd.f32 %v12859_v44, %v2142_v56 }
 0xaef   : > { %10915 = vmatprep.subr.bf16.mxu1 %v10914_v4 }
 0xaf0   : > { %10917 = vmatpush3.bf16.msra.mxu1 %v10914_v4  ;;  %v2146_v53 = vpop.permute.xlu1 %2145 }
 0xaf3   : > { %10075 = vmatmul.mubr.msk.f32.vlgmr.msra.gmra.mrb[32].mxu1 %vm569_vm1, %v12769_v49 }
 0xaf4   : > { %10077 = vmatprep.mubr.msk.f32.mxu1 %vm569_vm1, %v12771_v62  ;;  %v2612_v48 = vpop.permute.xlu1 %2611 }
 0xaf7   : > { %10078 = vmatmul.mubr.msk.f32.gmra.mrb[34].mxu1 %vm569_vm1, %v12777_v34 }
 0xaf8   : > { %v2628_v50 = vpop.permute.xlu1 %2627 }
 0xafc   : > { %v2150_v4 = vpop.permute.xlu1 %2149 }
 0xbc6   : > { %v10076_v24 = vpop.f32.mrb[32].mxu1 }
 0xbc7   : > { %v2577_v49 = vadd.f32 1e-05, %v10076_v24  ;;  %v2571_v62 = vpop.f32.mrb[33].mxu1 }
 0xbc8   : > { %v2572_v34 = vadd.f32 1e-05, %v2571_v62 }
 0xbc9   : > { %11664 = vrsqrt.f32 %v2577_v49 }
 0xbca   : > { %11666 = vrsqrt.f32 %v2572_v34  ;;  %v10079_v28 = vpop.f32.mrb[34].mxu1 }
 0xbcb   : > { %v2587_v45 = vadd.f32 1e-05, %v10079_v28  ;;  %v2581_v13 = vpop.f32.mrb[35].mxu1 }
 0xbcc   : > { %v2582_v19 = vadd.f32 1e-05, %v2581_v13  ;;  %v2244_v13 = vadd.f32 %v12856_v37, %v2146_v53 }
 0xbcd   : > { %11668 = vrsqrt.f32 %v2587_v45 }
 0xbce   : > { %11670 = vrsqrt.f32 %v2582_v19 }
 0xbd3   : > { %v11665_v42 = vpop.eup %11664 }
 0xbd4   : > { %v11667_v58 = vpop.eup %11666  ;;  %v2595_v23 = vmul.f32 %v11665_v42, %v2498_v16 }
 0xbd5   : > { %v2594_v55 = vmul.f32 %v11667_v58, %v2497_v51 }
 0xbd6   : > { %v2615_v3 = vmul.f32 %v2604_v46, %v2595_v23  ;;  %v2154_v46 = vpop.permute.xlu1 %2153 }
 0xbd7   : > { %v11669_v20 = vpop.eup %11668  ;;  %v2614_v26 = vmul.f32 %v2600_v41, %v2594_v55  ;;  %v2254_v41 = vadd.f32 %v10031_v9, %v2154_v46 }
 0xbd8   : > { %v11671_v24 = vpop.eup %11670  ;;  %v2597_v49 = vmul.f32 %v11669_v20, %v2500_v63  ;;  %v2635_v62 = vadd.f32 %v2624_v31, %v2615_v3  ;;  %v2249_v63 = vadd.f32 %v2248_v30, %v2150_v4 }
 0xbd9   : > { %v2596_v34 = vmul.f32 %v11671_v24, %v2499_v27  ;;  %v2634_v28 = vadd.f32 %v2620_v7, %v2614_v26 }
 0xbda   : > { %v2639_v45 = vmax.f32 %v2635_v62, 0.0  ;;  %v2617_v19 = vmul.f32 %v2612_v48, %v2597_v49  ;;  %v2656_v44 = vpop.permute.xlu1 %2655  ;;  %v2765_v62 = vld [vmem:[#allocation5 + $0x128] sm:$0xff] }
 0xbdb   : > { %v2638_v60 = vmax.f32 %v2634_v28, 0.0  ;;  %v2616_v16 = vmul.f32 %v2608_v59, %v2596_v34  ;;  %v2766_v34 = vld [vmem:[#allocation5 + $0x130] sm:$0xff]  ;;  %v2767_v28 = vld [vmem:[#allocation5 + $0x138] sm:$0xff] }
 0xbdc   : > { %v2643_v42 = vadd.f32 %v2639_v45, %v2244_v13  ;;  %v2637_v51 = vadd.f32 %v2632_v6, %v2617_v19  ;;  %v2764_v6 = vld [vmem:[#allocation5 + $0x120] sm:$0xff] }
 0xbdd   : > { %v2642_v58 = vadd.f32 %v2638_v60, %v2239_v11  ;;  %v2636_v23 = vadd.f32 %v2628_v50, %v2616_v16  ;;  %v2647_v60 = vld [vmem:[%s14279_s5 + $0x8] sm:$0xff]  ;;  %v2648_v11 = vld [vmem:[%s14279_s5 + $0x10] sm:$0xff]  ;;  %10110 = vmatprep.mubr.msk.f32.mxu1 %vm569_vm1, %v2764_v6  ;;  %v2918_v13 = vld [vmem:[#allocation5 + $0x140] sm:$0xff] }
 0xbde   : > { %v2641_v55 = vmax.f32 %v2637_v51, 0.0  ;;  %v2660_v20 = vpop.permute.xlu1 %2659 }
 0xbdf   : > { %v10918_v31 = vpack.c.bf16 %v2643_v42, %v2642_v58  ;;  %v2640_v27 = vmax.f32 %v2636_v23, 0.0 }
 0xbe0   : > { %v2645_v7 = vadd.f32 %v2641_v55, %v2254_v41 }
 0xbe1   : > { %10919 = vmatprep.subr.bf16.mxu0 %v10918_v31  ;;  %v2644_v37 = vadd.f32 %v2640_v27, %v2249_v63 }
 0xbe2   : > { %10921 = vmatpush3.bf16.msra.mxu0 %v10918_v31  ;;  %v2770_v45 = vpop.permute.xlu1 %2769 }
 0xbe3   : > { %v10922_v53 = vpack.c.bf16 %v2645_v7, %v2644_v37 }
 0xbe5   : > { %10923 = vmatprep.subr.bf16.mxu0 %v10922_v53 }
 0xbe6   : > { %10925 = vmatpush3.bf16.msra.mxu0 %v10922_v53  ;;  %v2778_v19 = vpop.permute.xlu1 %2777 }
 0xbe7   : > { %10927 = vmatprep.subr.bf16.mxu0 %v12537_v32 }
 0xbea   : > { %10929 = vmatpush3.bf16.msra.mxu0 %v12537_v32  ;;  %v2649_v32 = vld [vmem:[%s14279_s5 + $0x18] sm:$0xff]  ;;  %v2782_v41 = vpop.permute.xlu1 %2781 }
 0xbeb   : > { %10931 = vmatprep.subr.bf16.mxu0 %v12541_v40 }
 0xbee   : > { %10933 = vmatpush3.bf16.msra.mxu0 %v12541_v40  ;;  %v2652_v40 = vpop.permute.xlu0 %2651 }
 0xbf1   : > { %10097 = vmatmul.mubr.msk.f32.vlgmr.msra.gmra.mrb[28].mxu0 %vm415_vm0, %v2647_v60 }
 0xbf2   : > { %10099 = vmatprep.mubr.msk.f32.mxu0 %vm415_vm0, %v2648_v11  ;;  %v2664_v59 = vpop.permute.xlu0 %2663 }
 0xbf5   : > { %10100 = vmatmul.mubr.msk.f32.gmra.mrb[30].mxu0 %vm415_vm0, %v2649_v32 }
 0xbf6   : > { %v2774_v16 = vpop.permute.xlu0 %2773 }
 0xcc4   : > { %v10098_v9 = vpop.f32.mrb[28].mxu0 }
 0xcc5   : > { %v2750_v30 = vadd.f32 %v10098_v9, %v2656_v44  ;;  %v2744_v56 = vpop.f32.mrb[29].mxu0 }
 0xcc6   : > { %v2745_v48 = vadd.f32 %v2744_v56, %v2652_v40 }
 0xcc8   : > { %v10934_v50 = vpack.c.bf16 %v2750_v30, %v2745_v48  ;;  %v10101_v3 = vpop.f32.mrb[30].mxu0 }
 0xcc9   : > { %v2760_v4 = vadd.f32 %v10101_v3, %v2664_v59  ;;  %v2754_v26 = vpop.f32.mrb[31].mxu0 }
 0xcca   : > { %v2755_v24 = vadd.f32 %v2754_v26, %v2660_v20  ;;  %10935 = vmatprep.subr.bf16.mxu1 %v10934_v50 }
 0xccb   : > { %10937 = vmatpush3.bf16.msra.mxu1 %v10934_v50 }
 0xccc   : > { %v10938_v49 = vpack.c.bf16 %v2760_v4, %v2755_v24 }
 0xcce   : > { %10939 = vmatprep.subr.bf16.mxu1 %v10938_v49 }
 0xccf   : > { %10941 = vmatpush3.bf16.msra.mxu1 %v10938_v49 }
 0xcd2   : > { %10111 = vmatmul.mubr.msk.f32.vlgmr.msra.gmra.mrb[36].mxu1 %vm569_vm1, %v2765_v62 }
 0xcd3   : > { %10113 = vmatprep.mubr.msk.f32.mxu1 %vm569_vm1, %v2766_v34 }
 0xcd6   : > { %10114 = vmatmul.mubr.msk.f32.gmra.mrb[38].mxu1 %vm569_vm1, %v2767_v28 }
 0xcd7   : > { %10124 = vmatprep.mubr.msk.f32.mxu1 %vm569_vm1, %v2918_v13 }
 0xda5   : > { %v10112_v42 = vpop.f32.mrb[36].mxu1 }
 0xda6   : > { %v2868_v51 = vadd.f32 %v10112_v42, %v2774_v16  ;;  %v2862_v46 = vpop.f32.mrb[37].mxu1 }
 0xda7   : > { %v2863_v58 = vadd.f32 %v2862_v46, %v2770_v45 }
 0xda8   : > { %v2882_v23 = vmul.f32 %v2868_v51, %v2868_v51 }
 0xda9   : > { %v2881_v55 = vmul.f32 %v2863_v58, %v2863_v58  ;;  %v10115_v63 = vpop.f32.mrb[38].mxu1 }
 0xdaa   : > { %v2886_v31 = vmul.f32 %v2882_v23, %v2868_v51  ;;  %v2878_v27 = vadd.f32 %v10115_v63, %v2782_v41  ;;  %v2872_v7 = vpop.f32.mrb[39].mxu1 }
 0xdab   : > { %v2885_v37 = vmul.f32 %v2881_v55, %v2863_v58  ;;  %v2873_v53 = vadd.f32 %v2872_v7, %v2778_v19 }
 0xdac   : > { %v2890_v60 = vmul.f32 0.044715, %v2886_v31  ;;  %v2884_v11 = vmul.f32 %v2878_v27, %v2878_v27 }
 0xdad   : > { %v2889_v32 = vmul.f32 0.044715, %v2885_v37  ;;  %v2883_v6 = vmul.f32 %v2873_v53, %v2873_v53 }
 0xdae   : > { %v2894_v40 = vadd.f32 %v2890_v60, %v2868_v51  ;;  %v2888_v44 = vmul.f32 %v2884_v11, %v2878_v27  ;;  %v2919_v60 = vld [vmem:[#allocation5 + $0x148] sm:$0xff]  ;;  %v2920_v11 = vld [vmem:[#allocation5 + $0x150] sm:$0xff] }
 0xdaf   : > { %v2893_v9 = vadd.f32 %v2889_v32, %v2863_v58  ;;  %v2887_v30 = vmul.f32 %v2883_v6, %v2873_v53  ;;  %v2924_v32 = vpop.permute.xlu0 %2923 }
 0xdb0   : > { %v2898_v56 = vmul.f32 0.7978846, %v2894_v40  ;;  %v2892_v48 = vmul.f32 0.044715, %v2888_v44 }
 0xdb1   : > { %v2897_v59 = vmul.f32 0.7978846, %v2893_v9  ;;  %v2891_v50 = vmul.f32 0.044715, %v2887_v30 }
 0xdb2   : > { %11672 = vtanh.f32 %v2898_v56  ;;  %v2896_v3 = vadd.f32 %v2892_v48, %v2878_v27 }
 0xdb3   : > { %11674 = vtanh.f32 %v2897_v59  ;;  %v2895_v20 = vadd.f32 %v2891_v50, %v2873_v53  ;;  %v2936_v30 = vpop.permute.xlu0 %2935 }
 0xdb4   : > { %v2900_v4 = vmul.f32 0.7978846, %v2896_v3 }
 0xdb5   : > { %v2899_v26 = vmul.f32 0.7978846, %v2895_v20 }
 0xdb6   : > { %11676 = vtanh.f32 %v2900_v4 }
 0xdb7   : > { %11678 = vtanh.f32 %v2899_v26 }
 0xdbc   : > { %v11673_v24 = vpop.eup %11672 }
 0xdbd   : > { %v11675_v49 = vpop.eup %11674  ;;  %v2906_v62 = vadd.f32 1.0, %v11673_v24 }
 0xdbe   : > { %v2905_v34 = vadd.f32 1.0, %v11675_v49 }
 0xdbf   : > { %v2910_v28 = vmul.f32 0.5, %v2906_v62 }
 0xdc0   : > { %v11677_v13 = vpop.eup %11676  ;;  %v2909_v45 = vmul.f32 0.5, %v2905_v34 }
 0xdc1   : > { %v11679_v19 = vpop.eup %11678  ;;  %v2914_v16 = vmul.f32 %v2910_v28, %v2868_v51  ;;  %v2908_v42 = vadd.f32 1.0, %v11677_v13  ;;  %v2921_v51 = vld [vmem:[#allocation5 + $0x158] sm:$0xff] }
 0xdc2   : > { %v2913_v46 = vmul.f32 %v2909_v45, %v2863_v58  ;;  %v2907_v23 = vadd.f32 1.0, %v11679_v19  ;;  %v3072_v58 = vld [vmem:[#allocation5 + $0x160] sm:$0xff] }
 0xdc3   : > { %v2912_v41 = vmul.f32 0.5, %v2908_v42  ;;  %10138 = vmatprep.mubr.msk.f32.mxu0 %vm569_vm1, %v3072_v58 }
 0xdc4   : > { %v10942_v55 = vpack.c.bf16 %v2914_v16, %v2913_v46  ;;  %v2911_v63 = vmul.f32 0.5, %v2907_v23 }
 0xdc5   : > { %v2916_v31 = vmul.f32 %v2912_v41, %v2878_v27  ;;  %v2928_v27 = vpop.permute.xlu1 %2927 }
 0xdc6   : > { %10943 = vmatprep.subr.bf16.mxu1 %v10942_v55  ;;  %v2915_v7 = vmul.f32 %v2911_v63, %v2873_v53 }
 0xdc7   : > { %10945 = vmatpush3.bf16.msra.mxu1 %v10942_v55 }
 0xdc8   : > { %v10946_v37 = vpack.c.bf16 %v2916_v31, %v2915_v7 }
 0xdc9   : > { %v2932_v59 = vpop.permute.xlu1 %2931 }
 0xdca   : > { %10947 = vmatprep.subr.bf16.mxu1 %v10946_v37 }
 0xdcb   : > { %10949 = vmatpush3.bf16.msra.mxu1 %v10946_v37 }
 0xdce   : > { %10125 = vmatmul.mubr.msk.f32.vlgmr.msra.gmra.mrb[40].mxu1 %vm569_vm1, %v2919_v60 }
 0xdcf   : > { %10127 = vmatprep.mubr.msk.f32.mxu1 %vm569_vm1, %v2920_v11 }
 0xdd2   : > { %10128 = vmatmul.mubr.msk.f32.gmra.mrb[42].mxu1 %vm569_vm1, %v2921_v51 }
 0xea1   : > { %v10126_v6 = vpop.f32.mrb[40].mxu1 }
 0xea2   : > { %v3022_v53 = vadd.f32 %v10126_v6, %v2928_v27  ;;  %v3016_v40 = vpop.f32.mrb[41].mxu1 }
 0xea3   : > { %v3017_v44 = vadd.f32 %v3016_v40, %v2924_v32 }
 0xea4   : > { %v3036_v9 = vmul.f32 %v3022_v53, %v3022_v53 }
 0xea5   : > { %v3035_v56 = vmul.f32 %v3017_v44, %v3017_v44  ;;  %v10129_v48 = vpop.f32.mrb[42].mxu1 }
 0xea6   : > { %v3040_v50 = vmul.f32 %v3036_v9, %v3022_v53  ;;  %v3032_v3 = vadd.f32 %v10129_v48, %v2936_v30  ;;  %v3026_v20 = vpop.f32.mrb[43].mxu1 }
 0xea7   : > { %v3039_v4 = vmul.f32 %v3035_v56, %v3017_v44  ;;  %v3027_v26 = vadd.f32 %v3026_v20, %v2932_v59 }
 0xea8   : > { %v3044_v24 = vmul.f32 0.044715, %v3040_v50  ;;  %v3038_v49 = vmul.f32 %v3032_v3, %v3032_v3 }
 0xea9   : > { %v3043_v62 = vmul.f32 0.044715, %v3039_v4  ;;  %v3037_v34 = vmul.f32 %v3027_v26, %v3027_v26 }
 0xeaa   : > { %v3048_v28 = vadd.f32 %v3044_v24, %v3022_v53  ;;  %v3042_v13 = vmul.f32 %v3038_v49, %v3032_v3  ;;  %v3073_v24 = vld [vmem:[#allocation5 + $0x168] sm:$0xff]  ;;  %v3074_v49 = vld [vmem:[#allocation5 + $0x170] sm:$0xff] }
 0xeab   : > { %v3047_v45 = vadd.f32 %v3043_v62, %v3017_v44  ;;  %v3041_v19 = vmul.f32 %v3037_v34, %v3027_v26  ;;  %v3078_v62 = vpop.permute.xlu1 %3077  ;;  %v3082_v34 = vpop.permute.xlu0 %3081 }
 0xeac   : > { %v3052_v16 = vmul.f32 0.7978846, %v3048_v28  ;;  %v3046_v42 = vmul.f32 0.044715, %v3042_v13 }
 0xead   : > { %v3051_v46 = vmul.f32 0.7978846, %v3047_v45  ;;  %v3045_v23 = vmul.f32 0.044715, %v3041_v19 }
 0xeae   : > { %11680 = vtanh.f32 %v3052_v16  ;;  %v3050_v41 = vadd.f32 %v3046_v42, %v3032_v3 }
 0xeaf   : > { %11682 = vtanh.f32 %v3051_v46  ;;  %v3049_v55 = vadd.f32 %v3045_v23, %v3027_v26 }
 0xeb0   : > { %v3054_v63 = vmul.f32 0.7978846, %v3050_v41 }
 0xeb1   : > { %v3053_v31 = vmul.f32 0.7978846, %v3049_v55 }
 0xeb2   : > { %11684 = vtanh.f32 %v3054_v63 }
 0xeb3   : > { %11686 = vtanh.f32 %v3053_v31 }
 0xeb8   : > { %v11681_v7 = vpop.eup %11680 }
 0xeb9   : > { %v11683_v37 = vpop.eup %11682  ;;  %v3060_v60 = vadd.f32 1.0, %v11681_v7 }
 0xeba   : > { %v3059_v11 = vadd.f32 1.0, %v11683_v37 }
 0xebb   : > { %v3064_v51 = vmul.f32 0.5, %v3060_v60 }
 0xebc   : > { %v11685_v58 = vpop.eup %11684  ;;  %v3063_v32 = vmul.f32 0.5, %v3059_v11 }
 0xebd   : > { %v11687_v27 = vpop.eup %11686  ;;  %v3068_v6 = vmul.f32 %v3064_v51, %v3022_v53  ;;  %v3062_v40 = vadd.f32 1.0, %v11685_v58  ;;  %v3075_v53 = vld [vmem:[#allocation5 + $0x178] sm:$0xff] }
 0xebe   : > { %v3067_v9 = vmul.f32 %v3063_v32, %v3017_v44  ;;  %v3061_v30 = vadd.f32 1.0, %v11687_v27  ;;  %v3226_v44 = vld [vmem:[#allocation5 + $0x180] sm:$0xff] }
 0xebf   : > { %v3066_v56 = vmul.f32 0.5, %v3062_v40  ;;  %10152 = vmatprep.mubr.msk.f32.mxu1 %vm569_vm1, %v3226_v44 }
 0xec0   : > { %v10950_v48 = vpack.c.bf16 %v3068_v6, %v3067_v9  ;;  %v3065_v59 = vmul.f32 0.5, %v3061_v30 }
 0xec1   : > { %v3070_v50 = vmul.f32 %v3066_v56, %v3032_v3  ;;  %v3086_v3 = vpop.permute.xlu1 %3085 }
 0xec2   : > { %10951 = vmatprep.subr.bf16.mxu0 %v10950_v48  ;;  %v3069_v20 = vmul.f32 %v3065_v59, %v3027_v26 }
 0xec3   : > { %10953 = vmatpush3.bf16.msra.mxu0 %v10950_v48 }
 0xec4   : > { %v10954_v4 = vpack.c.bf16 %v3070_v50, %v3069_v20 }
 0xec5   : > { %v3090_v16 = vpop.permute.xlu1 %3089 }
 0xec6   : > { %10955 = vmatprep.subr.bf16.mxu0 %v10954_v4 }
 0xec7   : > { %10957 = vmatpush3.bf16.msra.mxu0 %v10954_v4 }
 0xeca   : > { %10139 = vmatmul.mubr.msk.f32.vlgmr.msra.gmra.mrb[32].mxu0 %vm569_vm1, %v3073_v24 }
 0xecb   : > { %10141 = vmatprep.mubr.msk.f32.mxu0 %vm569_vm1, %v3074_v49 }
 0xece   : > { %10142 = vmatmul.mubr.msk.f32.gmra.mrb[34].mxu0 %vm569_vm1, %v3075_v53 }
 0xf9d   : > { %v10140_v26 = vpop.f32.mrb[32].mxu0 }
 0xf9e   : > { %v3176_v28 = vadd.f32 %v10140_v26, %v3082_v34  ;;  %v3170_v13 = vpop.f32.mrb[33].mxu0 }
 0xf9f   : > { %v3171_v45 = vadd.f32 %v3170_v13, %v3078_v62 }
 0xfa0   : > { %v3190_v19 = vmul.f32 %v3176_v28, %v3176_v28 }
 0xfa1   : > { %v3189_v42 = vmul.f32 %v3171_v45, %v3171_v45  ;;  %v10143_v46 = vpop.f32.mrb[34].mxu0 }
 0xfa2   : > { %v3194_v23 = vmul.f32 %v3190_v19, %v3176_v28  ;;  %v3186_v41 = vadd.f32 %v10143_v46, %v3090_v16  ;;  %v3180_v55 = vpop.f32.mrb[35].mxu0 }
 0xfa3   : > { %v3193_v63 = vmul.f32 %v3189_v42, %v3171_v45  ;;  %v3181_v31 = vadd.f32 %v3180_v55, %v3086_v3 }
 0xfa4   : > { %v3198_v7 = vmul.f32 0.044715, %v3194_v23  ;;  %v3192_v37 = vmul.f32 %v3186_v41, %v3186_v41 }
 0xfa5   : > { %v3197_v60 = vmul.f32 0.044715, %v3193_v63  ;;  %v3191_v11 = vmul.f32 %v3181_v31, %v3181_v31 }
 0xfa6   : > { %v3202_v51 = vadd.f32 %v3198_v7, %v3176_v28  ;;  %v3196_v58 = vmul.f32 %v3192_v37, %v3186_v41  ;;  %v3227_v7 = vld [vmem:[#allocation5 + $0x188] sm:$0xff]  ;;  %v3228_v37 = vld [vmem:[#allocation5 + $0x190] sm:$0xff] }
 0xfa7   : > { %v3201_v32 = vadd.f32 %v3197_v60, %v3171_v45  ;;  %v3195_v27 = vmul.f32 %v3191_v11, %v3181_v31  ;;  %v12937_v60 = vld [vmem:[%s14281_s7] sm:$0xff]  ;;  %v3232_v11 = vpop.permute.xlu0 %3231 }
 0xfa8   : > { %v3206_v6 = vmul.f32 0.7978846, %v3202_v51  ;;  %v3200_v40 = vmul.f32 0.044715, %v3196_v58  ;;  %v3236_v51 = vpop.permute.xlu1 %3235 }
 0xfa9   : > { %v3205_v9 = vmul.f32 0.7978846, %v3201_v32  ;;  %v3199_v30 = vmul.f32 0.044715, %v3195_v27 }
 0xfaa   : > { %11688 = vtanh.f32 %v3206_v6  ;;  %v3204_v56 = vadd.f32 %v3200_v40, %v3186_v41 }
 0xfab   : > { %11690 = vtanh.f32 %v3205_v9  ;;  %v3203_v48 = vadd.f32 %v3199_v30, %v3181_v31  ;;  %v3244_v9 = vpop.permute.xlu0 %3243 }
 0xfac   : > { %v3208_v59 = vmul.f32 0.7978846, %v3204_v56 }
 0xfad   : > { %v3207_v50 = vmul.f32 0.7978846, %v3203_v48  ;;  %v3240_v48 = vpop.permute.xlu1 %3239 }
 0xfae   : > { %11692 = vtanh.f32 %v3208_v59 }
 0xfaf   : > { %11694 = vtanh.f32 %v3207_v50 }
 0xfb4   : > { %v11689_v20 = vpop.eup %11688 }
 0xfb5   : > { %v11691_v4 = vpop.eup %11690  ;;  %v3214_v24 = vadd.f32 1.0, %v11689_v20 }
 0xfb6   : > { %v3213_v49 = vadd.f32 1.0, %v11691_v4 }
 0xfb7   : > { %v3218_v53 = vmul.f32 0.5, %v3214_v24 }
 0xfb8   : > { %v11693_v44 = vpop.eup %11692  ;;  %v3217_v62 = vmul.f32 0.5, %v3213_v49 }
 0xfb9   : > { %v11695_v3 = vpop.eup %11694  ;;  %v3222_v34 = vmul.f32 %v3218_v53, %v3176_v28  ;;  %v3216_v26 = vadd.f32 1.0, %v11693_v44  ;;  %v3229_v28 = vld [vmem:[#allocation5 + $0x198] sm:$0xff] }
 0xfba   : > { %v3221_v13 = vmul.f32 %v3217_v62, %v3171_v45  ;;  %v3215_v19 = vadd.f32 1.0, %v11695_v3  ;;  %v9102_v45 = vld [vmem:[%s14279_s5 + $0x20] sm:$0xff] }
 0xfbb   : > { %v3220_v16 = vmul.f32 0.5, %v3216_v26  ;;  %10174 = vmatprep.mubr.msk.f32.mxu0 %vm415_vm0, %v9102_v45 }
 0xfbc   : > { %v10958_v42 = vpack.c.bf16 %v3222_v34, %v3221_v13  ;;  %v3219_v46 = vmul.f32 0.5, %v3215_v19 }
 0xfbd   : > { %v3224_v23 = vmul.f32 %v3220_v16, %v3186_v41  ;;  %v12126_v41 = vmov 21  }
 0xfbe   : > { %10959 = vmatprep.subr.bf16.mxu1 %v10958_v42  ;;  %v3223_v55 = vmul.f32 %v3219_v46, %v3181_v31  ;;  %11486 = vset.pattern.permute.xlu1 %v12126_v41  ;;  %v12931_v31 = vld [vmem:[%s14281_s7 + $0x8] sm:$0xff] }
 0xfbf   : > { %10961 = vmatpush3.bf16.msra.mxu1 %v10958_v42  ;;  %11485 = vset.pattern.permute.xlu0 %v12126_v41 }
 0xfc0   : > { %v10962_v63 = vpack.c.bf16 %v3224_v23, %v3223_v55  ;;  %3393 = vperm.xlu1 %11486, %v12931_v31   ;;  %3389 = vperm.xlu0 %11485, %v12937_v60  }
 0xfc2   : > { %10963 = vmatprep.subr.bf16.mxu1 %v10962_v63 }
 0xfc3   : > { %10965 = vmatpush3.bf16.msra.mxu1 %v10962_v63 }
 0xfc4   : > { %3397 = vperm.xlu1 %11486, %v12828_v1   ;;  %3401 = vperm.xlu0 %11485, %v12842_v5  }
 0xfc6   : > { %10153 = vmatmul.mubr.msk.f32.vlgmr.msra.gmra.mrb[44].mxu1 %vm569_vm1, %v3227_v7 }
 0xfc7   : > { %10155 = vmatprep.mubr.msk.f32.mxu1 %vm569_vm1, %v3228_v37  ;;  %v2158_v37 = vpop.permute.xlu1 %2157 }
 0xfca   : > { %10156 = vmatmul.mubr.msk.f32.gmra.mrb[46].mxu1 %vm569_vm1, %v3229_v28 }
 0xfcb   : > { %v2166_v45 = vpop.permute.xlu1 %2165 }
0x1099   : > { %v10154_v58 = vpop.f32.mrb[44].mxu1 }
0x109a   : > { %v3330_v32 = vadd.f32 %v10154_v58, %v3236_v51  ;;  %v3324_v27 = vpop.f32.mrb[45].mxu1  ;;  %v2162_v58 = vpop.permute.xlu0 %2161 }
0x109b   : > { %v3325_v6 = vadd.f32 %v3324_v27, %v3232_v11 }
0x109c   : > { %v3344_v40 = vmul.f32 %v3330_v32, %v3330_v32 }
0x109d   : > { %v3343_v30 = vmul.f32 %v3325_v6, %v3325_v6  ;;  %v10157_v56 = vpop.f32.mrb[46].mxu1 }
0x109e   : > { %v3348_v59 = vmul.f32 %v3344_v40, %v3330_v32  ;;  %v3340_v50 = vadd.f32 %v10157_v56, %v3244_v9  ;;  %v3334_v20 = vpop.f32.mrb[47].mxu1 }
0x109f   : > { %v3347_v4 = vmul.f32 %v3343_v30, %v3325_v6  ;;  %v3335_v24 = vadd.f32 %v3334_v20, %v3240_v48  ;;  %v2264_v48 = vadd.f32 %v12876_v39, %v2162_v58 }
0x10a0   : > { %v3352_v49 = vmul.f32 0.044715, %v3348_v59  ;;  %v3346_v53 = vmul.f32 %v3340_v50, %v3340_v50 }
0x10a1   : > { %v3351_v44 = vmul.f32 0.044715, %v3347_v4  ;;  %v3345_v62 = vmul.f32 %v3335_v24, %v3335_v24  ;;  %v2259_v4 = vadd.f32 %v12878_v14, %v2158_v37  ;;  %v9103_v14 = vld [vmem:[%s14279_s5 + $0x28] sm:$0xff] }
0x10a2   : > { %v3356_v3 = vadd.f32 %v3352_v49, %v3330_v32  ;;  %v3350_v34 = vmul.f32 %v3346_v53, %v3340_v50  ;;  %v2170_v49 = vpop.permute.xlu1 %2169 }
0x10a3   : > { %v3355_v26 = vadd.f32 %v3351_v44, %v3325_v6  ;;  %v3349_v13 = vmul.f32 %v3345_v62, %v3335_v24 }
0x10a4   : > { %v3360_v19 = vmul.f32 0.7978846, %v3356_v3  ;;  %v3354_v16 = vmul.f32 0.044715, %v3350_v34 }
0x10a5   : > { %v3359_v42 = vmul.f32 0.7978846, %v3355_v26  ;;  %v3353_v46 = vmul.f32 0.044715, %v3349_v13  ;;  %v2274_v13 = vadd.f32 %v12880_v36, %v2170_v49  ;;  %v9104_v36 = vld [vmem:[%s14279_s5 + $0x30] sm:$0xff] }
0x10a6   : > { %11696 = vtanh.f32 %v3360_v19  ;;  %v3358_v23 = vadd.f32 %v3354_v16, %v3340_v50  ;;  %v2269_v16 = vadd.f32 %v12882_v35, %v2166_v45  ;;  %v3502_v35 = vld [vmem:[#allocation5 + $0x1a0] sm:$0xff] }
0x10a7   : > { %11698 = vtanh.f32 %v3359_v42  ;;  %v3357_v55 = vadd.f32 %v3353_v46, %v3335_v24  ;;  %10188 = vmatprep.mubr.msk.f32.mxu1 %vm569_vm1, %v3502_v35 }
0x10a8   : > { %v3362_v63 = vmul.f32 0.7978846, %v3358_v23 }
0x10a9   : > { %v3361_v7 = vmul.f32 0.7978846, %v3357_v55 }
0x10aa   : > { %11700 = vtanh.f32 %v3362_v63 }
0x10ab   : > { %11702 = vtanh.f32 %v3361_v7 }
0x10b0   : > { %v11697_v28 = vpop.eup %11696 }
0x10b1   : > { %v11699_v11 = vpop.eup %11698  ;;  %v3368_v51 = vadd.f32 1.0, %v11697_v28 }
0x10b2   : > { %v3367_v27 = vadd.f32 1.0, %v11699_v11 }
0x10b3   : > { %v3372_v40 = vmul.f32 0.5, %v3368_v51 }
0x10b4   : > { %v11701_v9 = vpop.eup %11700  ;;  %v3371_v30 = vmul.f32 0.5, %v3367_v27 }
0x10b5   : > { %v11703_v56 = vpop.eup %11702  ;;  %v3376_v59 = vmul.f32 %v3372_v40, %v3330_v32  ;;  %v3370_v20 = vadd.f32 1.0, %v11701_v9  ;;  %v3503_v9 = vld [vmem:[#allocation5 + $0x1a8] sm:$0xff] }
0x10b6   : > { %v3375_v53 = vmul.f32 %v3371_v30, %v3325_v6  ;;  %v3369_v44 = vadd.f32 1.0, %v11703_v56  ;;  %v3390_v6 = vpop.permute.xlu0 %3389  ;;  %v3504_v30 = vld [vmem:[#allocation5 + $0x1b0] sm:$0xff]  ;;  %v3505_v56 = vld [vmem:[#allocation5 + $0x1b8] sm:$0xff] }
0x10b7   : > { %v3380_v62 = vadd.f32 %v3376_v59, %v2264_v48  ;;  %v3374_v3 = vmul.f32 0.5, %v3370_v20  ;;  %v3656_v48 = vld [vmem:[#allocation5 + $0x1c0] sm:$0xff]  ;;  %v12128_v59 = vmov 23  }
0x10b8   : > { %v3379_v34 = vadd.f32 %v3375_v53, %v2259_v4  ;;  %v3373_v26 = vmul.f32 0.5, %v3369_v44 }
0x10b9   : > { %v3378_v19 = vmul.f32 %v3374_v3, %v3340_v50  ;;  %v3394_v50 = vpop.permute.xlu1 %3393 }
0x10ba   : > { %v10966_v42 = vpack.c.bf16 %v3380_v62, %v3379_v34  ;;  %v3377_v46 = vmul.f32 %v3373_v26, %v3335_v24  ;;  %v3402_v37 = vpop.permute.xlu0 %3401 }
0x10bb   : > { %v3382_v23 = vadd.f32 %v3378_v19, %v2274_v13 }
0x10bc   : > { %10967 = vmatprep.subr.bf16.mxu0 %v10966_v42  ;;  %v3381_v39 = vadd.f32 %v3377_v46, %v2269_v16 }
0x10bd   : > { %10969 = vmatpush3.bf16.msra.mxu0 %v10966_v42  ;;  %v3398_v11 = vpop.permute.xlu1 %3397 }
0x10be   : > { %v10970_v32 = vpack.c.bf16 %v3382_v23, %v3381_v39 }
0x10c0   : > { %10971 = vmatprep.subr.bf16.mxu0 %v10970_v32 }
0x10c1   : > { %10973 = vmatpush3.bf16.msra.mxu0 %v10970_v32 }
0x10c2   : > { %10975 = vmatprep.subr.bf16.mxu0 %v12463_v33 }
0x10c5   : > { %10977 = vmatpush3.bf16.msra.mxu0 %v12463_v33  ;;  %v9105_v33 = vld [vmem:[%s14279_s5 + $0x38] sm:$0xff] }
0x10c6   : > { %10979 = vmatprep.subr.bf16.mxu0 %v12467_v38 }
0x10c9   : > { %10981 = vmatpush3.bf16.msra.mxu0 %v12467_v38  ;;  %v12127_v38 = vmov 22  }
0x10ca   : > { %11487 = vset.pattern.permute.xlu1 %v12127_v38  ;;  %11488 = vset.pattern.permute.xlu0 %v12127_v38 }
0x10cb   : > { %3507 = vperm.xlu1 %11487, %v12937_v60   ;;  %3511 = vperm.xlu0 %11488, %v12931_v31  }
0x10cc   : > { %10175 = vmatmul.mubr.msk.f32.vlgmr.msra.gmra.mrb[36].mxu0 %vm415_vm0, %v9103_v14 }
0x10cd   : > { %10177 = vmatprep.mubr.msk.f32.mxu0 %vm415_vm0, %v9104_v36 }
0x10cf   : > { %3515 = vperm.xlu1 %11487, %v12828_v1   ;;  %11489 = vset.pattern.permute.xlu0 %v12128_v59 }
0x10d0   : > { %10178 = vmatmul.mubr.msk.f32.gmra.mrb[38].mxu0 %vm415_vm0, %v9105_v33  ;;  %3661 = vperm.xlu0 %11489, %v12937_v60  }
0x10d3   : > { %3519 = vperm.xlu1 %11487, %v12842_v5  }
0x10d4   : > { %3673 = vperm.xlu0 %11489, %v12842_v5  }
0x10d7   : > { %11490 = vset.pattern.permute.xlu1 %v12128_v59 }
0x10d8   : > { %3665 = vperm.xlu1 %11490, %v12931_v31  }
0x10dc   : > { %3669 = vperm.xlu1 %11490, %v12828_v1  }
0x114a   : > { %v3508_v20 = vpop.permute.xlu1 %3507  ;;  %v3512_v49 = vpop.permute.xlu0 %3511 }
0x114e   : > { %v3516_v4 = vpop.permute.xlu1 %3515 }
0x1152   : > { %v3520_v26 = vpop.permute.xlu1 %3519 }
0x119f   : > { %v10176_v24 = vpop.f32.mrb[36].mxu0 }
0x11a0   : > { %v3488_v55 = vadd.f32 %v10176_v24, %v3394_v50  ;;  %v3482_v63 = vpop.f32.mrb[37].mxu0 }
0x11a1   : > { %v3483_v7 = vadd.f32 %v3482_v63, %v3390_v6 }
0x11a3   : > { %v10982_v28 = vpack.c.bf16 %v3488_v55, %v3483_v7  ;;  %v10179_v45 = vpop.f32.mrb[38].mxu0 }
0x11a4   : > { %v3498_v51 = vadd.f32 %v10179_v45, %v3402_v37  ;;  %v3492_v58 = vpop.f32.mrb[39].mxu0 }
0x11a5   : > { %v3493_v27 = vadd.f32 %v3492_v58, %v3398_v11  ;;  %10983 = vmatprep.subr.bf16.mxu1 %v10982_v28 }
0x11a6   : > { %10985 = vmatpush3.bf16.msra.mxu1 %v10982_v28 }
0x11a7   : > { %v10986_v40 = vpack.c.bf16 %v3498_v51, %v3493_v27 }
0x11a9   : > { %10987 = vmatprep.subr.bf16.mxu1 %v10986_v40 }
0x11aa   : > { %10989 = vmatpush3.bf16.msra.mxu1 %v10986_v40 }
0x11ad   : > { %10189 = vmatmul.mubr.msk.f32.vlgmr.msra.gmra.mrb[48].mxu1 %vm569_vm1, %v3503_v9 }
0x11ae   : > { %10191 = vmatprep.mubr.msk.f32.mxu1 %vm569_vm1, %v3504_v30 }
0x11b1   : > { %10192 = vmatmul.mubr.msk.f32.gmra.mrb[50].mxu1 %vm569_vm1, %v3505_v56 }
0x11b2   : > { %10202 = vmatprep.mubr.msk.f32.mxu1 %vm569_vm1, %v3656_v48 }
0x1280   : > { %v10190_v53 = vpop.f32.mrb[48].mxu1 }
0x1281   : > { %v3606_v44 = vadd.f32 %v10190_v53, %v3512_v49  ;;  %v3600_v62 = vpop.f32.mrb[49].mxu1 }
0x1282   : > { %v3601_v3 = vadd.f32 %v3600_v62, %v3508_v20 }
0x1283   : > { %v3620_v34 = vmul.f32 %v3606_v44, %v3606_v44 }
0x1284   : > { %v3619_v13 = vmul.f32 %v3601_v3, %v3601_v3  ;;  %v10193_v19 = vpop.f32.mrb[50].mxu1 }
0x1285   : > { %v3624_v16 = vmul.f32 %v3620_v34, %v3606_v44  ;;  %v3616_v42 = vadd.f32 %v10193_v19, %v3520_v26  ;;  %v3610_v46 = vpop.f32.mrb[51].mxu1 }
0x1286   : > { %v3623_v23 = vmul.f32 %v3619_v13, %v3601_v3  ;;  %v3611_v39 = vadd.f32 %v3610_v46, %v3516_v4  ;;  %v3658_v46 = vld [vmem:[#allocation5 + $0x1d0] sm:$0xff] }
0x1287   : > { %v3628_v32 = vmul.f32 0.044715, %v3624_v16  ;;  %v3622_v1 = vmul.f32 %v3616_v42, %v3616_v42  ;;  %v3657_v16 = vld [vmem:[#allocation5 + $0x1c8] sm:$0xff] }
0x1288   : > { %v3627_v14 = vmul.f32 0.044715, %v3623_v23  ;;  %v3621_v5 = vmul.f32 %v3611_v39, %v3611_v39  ;;  %v12129_v23 = vmov 24  }
0x1289   : > { %v3632_v36 = vadd.f32 %v3628_v32, %v3606_v44  ;;  %v3626_v33 = vmul.f32 %v3622_v1, %v3616_v42  ;;  %11491 = vset.pattern.permute.xlu1 %v12129_v23  ;;  %11492 = vset.pattern.permute.xlu0 %v12129_v23  ;;  %v3662_v32 = vpop.permute.xlu0 %3661  ;;  %v3666_v1 = vpop.permute.xlu1 %3665 }
0x128a   : > { %v3631_v35 = vadd.f32 %v3627_v14, %v3601_v3  ;;  %v3625_v6 = vmul.f32 %v3621_v5, %v3611_v39  ;;  %3815 = vperm.xlu1 %11491, %v12937_v60   ;;  %3819 = vperm.xlu0 %11492, %v12931_v31  }
0x128b   : > { %v3636_v50 = vmul.f32 0.7978846, %v3632_v36  ;;  %v3630_v24 = vmul.f32 0.044715, %v3626_v33 }
0x128c   : > { %v3635_v55 = vmul.f32 0.7978846, %v3631_v35  ;;  %v3629_v63 = vmul.f32 0.044715, %v3625_v6 }
0x128d   : > { %11704 = vtanh.f32 %v3636_v50  ;;  %v3634_v7 = vadd.f32 %v3630_v24, %v3616_v42  ;;  %v3674_v6 = vpop.permute.xlu0 %3673 }
0x128e   : > { %11706 = vtanh.f32 %v3635_v55  ;;  %v3633_v37 = vadd.f32 %v3629_v63, %v3611_v39  ;;  %v3670_v63 = vpop.permute.xlu1 %3669 }
0x128f   : > { %v3638_v28 = vmul.f32 0.7978846, %v3634_v7 }
0x1290   : > { %v3637_v45 = vmul.f32 0.7978846, %v3633_v37 }
0x1291   : > { %11708 = vtanh.f32 %v3638_v28 }
0x1292   : > { %11710 = vtanh.f32 %v3637_v45 }
0x1297   : > { %v11705_v11 = vpop.eup %11704 }
0x1298   : > { %v11707_v51 = vpop.eup %11706  ;;  %v3644_v58 = vadd.f32 1.0, %v11705_v11 }
0x1299   : > { %v3643_v27 = vadd.f32 1.0, %v11707_v51 }
0x129a   : > { %v3648_v40 = vmul.f32 0.5, %v3644_v58 }
0x129b   : > { %v11709_v9 = vpop.eup %11708  ;;  %v3647_v30 = vmul.f32 0.5, %v3643_v27 }
0x129c   : > { %v11711_v56 = vpop.eup %11710  ;;  %v3652_v48 = vmul.f32 %v3648_v40, %v3606_v44  ;;  %v3646_v20 = vadd.f32 1.0, %v11709_v9  ;;  %v3659_v44 = vld [vmem:[#allocation5 + $0x1d8] sm:$0xff] }
0x129d   : > { %v3651_v4 = vmul.f32 %v3647_v30, %v3601_v3  ;;  %v3645_v49 = vadd.f32 1.0, %v11711_v56  ;;  %v3810_v3 = vld [vmem:[#allocation5 + $0x1e0] sm:$0xff] }
0x129e   : > { %v3650_v53 = vmul.f32 0.5, %v3646_v20  ;;  %10216 = vmatprep.mubr.msk.f32.mxu0 %vm569_vm1, %v3810_v3 }
0x129f   : > { %v10990_v62 = vpack.c.bf16 %v3652_v48, %v3651_v4  ;;  %v3649_v34 = vmul.f32 0.5, %v3645_v49 }
0x12a0   : > { %v3654_v26 = vmul.f32 %v3650_v53, %v3616_v42  ;;  %v12990_v42 = vld [vmem:[%s14281_s7 + $0x10] sm:$0xff] }
0x12a1   : > { %10991 = vmatprep.subr.bf16.mxu1 %v10990_v62  ;;  %v3653_v13 = vmul.f32 %v3649_v34, %v3611_v39  ;;  %3823 = vperm.xlu1 %11491, %v12990_v42   ;;  %v12996_v39 = vld [vmem:[%s14281_s7 + $0x18] sm:$0xff] }
0x12a2   : > { %10993 = vmatpush3.bf16.msra.mxu1 %v10990_v62 }
0x12a3   : > { %v10994_v19 = vpack.c.bf16 %v3654_v26, %v3653_v13 }
0x12a5   : > { %10995 = vmatprep.subr.bf16.mxu1 %v10994_v19  ;;  %3827 = vperm.xlu1 %11491, %v12996_v39  }
0x12a6   : > { %10997 = vmatpush3.bf16.msra.mxu1 %v10994_v19 }
0x12a9   : > { %10203 = vmatmul.mubr.msk.f32.vlgmr.msra.gmra.mrb[52].mxu1 %vm569_vm1, %v3657_v16 }
0x12aa   : > { %10205 = vmatprep.mubr.msk.f32.mxu1 %vm569_vm1, %v3658_v46 }
0x12ad   : > { %10206 = vmatmul.mubr.msk.f32.gmra.mrb[54].mxu1 %vm569_vm1, %v3659_v44 }
0x137c   : > { %v10204_v14 = vpop.f32.mrb[52].mxu1 }
0x137d   : > { %v3760_v5 = vadd.f32 %v10204_v14, %v3666_v1  ;;  %v3754_v36 = vpop.f32.mrb[53].mxu1 }
0x137e   : > { %v3755_v33 = vadd.f32 %v3754_v36, %v3662_v32 }
0x137f   : > { %v3774_v35 = vmul.f32 %v3760_v5, %v3760_v5 }
0x1380   : > { %v3773_v50 = vmul.f32 %v3755_v33, %v3755_v33  ;;  %v10207_v24 = vpop.f32.mrb[54].mxu1 }
0x1381   : > { %v3778_v55 = vmul.f32 %v3774_v35, %v3760_v5  ;;  %v3770_v7 = vadd.f32 %v10207_v24, %v3674_v6  ;;  %v3764_v37 = vpop.f32.mrb[55].mxu1 }
0x1382   : > { %v3777_v28 = vmul.f32 %v3773_v50, %v3755_v33  ;;  %v3765_v45 = vadd.f32 %v3764_v37, %v3670_v63 }
0x1383   : > { %v3782_v11 = vmul.f32 0.044715, %v3778_v55  ;;  %v3776_v51 = vmul.f32 %v3770_v7, %v3770_v7 }
0x1384   : > { %v3781_v58 = vmul.f32 0.044715, %v3777_v28  ;;  %v3775_v27 = vmul.f32 %v3765_v45, %v3765_v45 }
0x1385   : > { %v3786_v40 = vadd.f32 %v3782_v11, %v3760_v5  ;;  %v3780_v9 = vmul.f32 %v3776_v51, %v3770_v7  ;;  %v3811_v11 = vld [vmem:[#allocation5 + $0x1e8] sm:$0xff]  ;;  %v3812_v51 = vld [vmem:[#allocation5 + $0x1f0] sm:$0xff] }
0x1386   : > { %v3785_v30 = vadd.f32 %v3781_v58, %v3755_v33  ;;  %v3779_v56 = vmul.f32 %v3775_v27, %v3765_v45  ;;  %v12130_v58 = vmov 25   ;;  %v3820_v27 = vpop.permute.xlu0 %3819 }
0x1387   : > { %v3790_v48 = vmul.f32 0.7978846, %v3786_v40  ;;  %v3784_v20 = vmul.f32 0.044715, %v3780_v9  ;;  %11494 = vset.pattern.permute.xlu1 %v12130_v58  ;;  %11493 = vset.pattern.permute.xlu0 %v12130_v58 }
0x1388   : > { %v3789_v4 = vmul.f32 0.7978846, %v3785_v30  ;;  %v3783_v49 = vmul.f32 0.044715, %v3779_v56  ;;  %3973 = vperm.xlu1 %11494, %v12931_v31   ;;  %3969 = vperm.xlu0 %11493, %v12937_v60  }
0x1389   : > { %11712 = vtanh.f32 %v3790_v48  ;;  %v3788_v53 = vadd.f32 %v3784_v20, %v3770_v7 }
0x138a   : > { %11714 = vtanh.f32 %v3789_v4  ;;  %v3787_v62 = vadd.f32 %v3783_v49, %v3765_v45 }
0x138b   : > { %v3792_v34 = vmul.f32 0.7978846, %v3788_v53 }
0x138c   : > { %v3791_v26 = vmul.f32 0.7978846, %v3787_v62  ;;  %3977 = vperm.xlu1 %11494, %v12990_v42   ;;  %3981 = vperm.xlu0 %11493, %v12996_v39  }
0x138d   : > { %11716 = vtanh.f32 %v3792_v34 }
0x138e   : > { %11718 = vtanh.f32 %v3791_v26 }
0x1393   : > { %v11713_v13 = vpop.eup %11712 }
0x1394   : > { %v11715_v19 = vpop.eup %11714  ;;  %v3798_v16 = vadd.f32 1.0, %v11713_v13 }
0x1395   : > { %v3797_v46 = vadd.f32 1.0, %v11715_v19 }
0x1396   : > { %v3802_v44 = vmul.f32 0.5, %v3798_v16 }
0x1397   : > { %v11717_v3 = vpop.eup %11716  ;;  %v3801_v32 = vmul.f32 0.5, %v3797_v46 }
0x1398   : > { %v11719_v1 = vpop.eup %11718  ;;  %v3806_v14 = vmul.f32 %v3802_v44, %v3760_v5  ;;  %v3800_v36 = vadd.f32 1.0, %v11717_v3  ;;  %v3813_v5 = vld [vmem:[#allocation5 + $0x1f8] sm:$0xff] }
0x1399   : > { %v3805_v35 = vmul.f32 %v3801_v32, %v3755_v33  ;;  %v3799_v6 = vadd.f32 1.0, %v11719_v1  ;;  %v3964_v33 = vld [vmem:[#allocation5 + $0x200] sm:$0xff] }
0x139a   : > { %v3804_v50 = vmul.f32 0.5, %v3800_v36  ;;  %10230 = vmatprep.mubr.msk.f32.mxu1 %vm569_vm1, %v3964_v33 }
0x139b   : > { %v10998_v24 = vpack.c.bf16 %v3806_v14, %v3805_v35  ;;  %v3803_v55 = vmul.f32 0.5, %v3799_v6 }
0x139c   : > { %v3808_v63 = vmul.f32 %v3804_v50, %v3770_v7  ;;  %v3816_v7 = vpop.permute.xlu1 %3815 }
0x139d   : > { %10999 = vmatprep.subr.bf16.mxu0 %v10998_v24  ;;  %v3807_v37 = vmul.f32 %v3803_v55, %v3765_v45 }
0x139e   : > { %11001 = vmatpush3.bf16.msra.mxu0 %v10998_v24 }
0x139f   : > { %v11002_v28 = vpack.c.bf16 %v3808_v63, %v3807_v37 }
0x13a0   : > { %v3824_v45 = vpop.permute.xlu1 %3823 }
0x13a1   : > { %11003 = vmatprep.subr.bf16.mxu0 %v11002_v28 }
0x13a2   : > { %11005 = vmatpush3.bf16.msra.mxu0 %v11002_v28 }
0x13a4   : > { %v3828_v20 = vpop.permute.xlu1 %3827 }
0x13a5   : > { %10217 = vmatmul.mubr.msk.f32.vlgmr.msra.gmra.mrb[40].mxu0 %vm569_vm1, %v3811_v11 }
0x13a6   : > { %10219 = vmatprep.mubr.msk.f32.mxu0 %vm569_vm1, %v3812_v51 }
0x13a9   : > { %10220 = vmatmul.mubr.msk.f32.gmra.mrb[42].mxu0 %vm569_vm1, %v3813_v5 }
0x1478   : > { %v10218_v40 = vpop.f32.mrb[40].mxu0 }
0x1479   : > { %v3914_v9 = vadd.f32 %v10218_v40, %v3820_v27  ;;  %v3908_v30 = vpop.f32.mrb[41].mxu0 }
0x147a   : > { %v3909_v56 = vadd.f32 %v3908_v30, %v3816_v7 }
0x147b   : > { %v3928_v48 = vmul.f32 %v3914_v9, %v3914_v9 }
0x147c   : > { %v3927_v4 = vmul.f32 %v3909_v56, %v3909_v56  ;;  %v10221_v49 = vpop.f32.mrb[42].mxu0 }
0x147d   : > { %v3932_v53 = vmul.f32 %v3928_v48, %v3914_v9  ;;  %v3924_v62 = vadd.f32 %v10221_v49, %v3828_v20  ;;  %v3918_v34 = vpop.f32.mrb[43].mxu0 }
0x147e   : > { %v3931_v26 = vmul.f32 %v3927_v4, %v3909_v56  ;;  %v3919_v13 = vadd.f32 %v3918_v34, %v3824_v45 }
0x147f   : > { %v3936_v19 = vmul.f32 0.044715, %v3932_v53  ;;  %v3930_v16 = vmul.f32 %v3924_v62, %v3924_v62 }
0x1480   : > { %v3935_v46 = vmul.f32 0.044715, %v3931_v26  ;;  %v3929_v44 = vmul.f32 %v3919_v13, %v3919_v13 }
0x1481   : > { %v3940_v3 = vadd.f32 %v3936_v19, %v3914_v9  ;;  %v3934_v32 = vmul.f32 %v3930_v16, %v3924_v62  ;;  %v3965_v16 = vld [vmem:[#allocation5 + $0x208] sm:$0xff] }
0x1482   : > { %v3939_v1 = vadd.f32 %v3935_v46, %v3909_v56  ;;  %v3933_v14 = vmul.f32 %v3929_v44, %v3919_v13  ;;  %v3966_v46 = vld [vmem:[#allocation5 + $0x210] sm:$0xff]  ;;  %v3970_v44 = vpop.permute.xlu0 %3969 }
0x1483   : > { %v3944_v36 = vmul.f32 0.7978846, %v3940_v3  ;;  %v3938_v35 = vmul.f32 0.044715, %v3934_v32  ;;  %v3974_v3 = vpop.permute.xlu1 %3973 }
0x1484   : > { %v3943_v6 = vmul.f32 0.7978846, %v3939_v1  ;;  %v3937_v50 = vmul.f32 0.044715, %v3933_v14 }
0x1485   : > { %11720 = vtanh.f32 %v3944_v36  ;;  %v3942_v24 = vadd.f32 %v3938_v35, %v3924_v62 }
0x1486   : > { %11722 = vtanh.f32 %v3943_v6  ;;  %v3941_v55 = vadd.f32 %v3937_v50, %v3919_v13  ;;  %v3982_v6 = vpop.permute.xlu0 %3981 }
0x1487   : > { %v3946_v63 = vmul.f32 0.7978846, %v3942_v24 }
0x1488   : > { %v3945_v37 = vmul.f32 0.7978846, %v3941_v55 }
0x1489   : > { %11724 = vtanh.f32 %v3946_v63  ;;  %v3978_v63 = vpop.permute.xlu1 %3977 }
0x148a   : > { %11726 = vtanh.f32 %v3945_v37 }
0x148f   : > { %v11721_v28 = vpop.eup %11720 }
0x1490   : > { %v11723_v11 = vpop.eup %11722  ;;  %v3952_v51 = vadd.f32 1.0, %v11721_v28 }
0x1491   : > { %v3951_v5 = vadd.f32 1.0, %v11723_v11 }
0x1492   : > { %v3956_v33 = vmul.f32 0.5, %v3952_v51 }
0x1493   : > { %v11725_v7 = vpop.eup %11724  ;;  %v3955_v45 = vmul.f32 0.5, %v3951_v5 }
0x1494   : > { %v11727_v27 = vpop.eup %11726  ;;  %v3960_v40 = vmul.f32 %v3956_v33, %v3914_v9  ;;  %v3954_v30 = vadd.f32 1.0, %v11725_v7  ;;  %v3967_v9 = vld [vmem:[#allocation5 + $0x218] sm:$0xff] }
0x1495   : > { %v3959_v48 = vmul.f32 %v3955_v45, %v3909_v56  ;;  %v3953_v20 = vadd.f32 1.0, %v11727_v27  ;;  %v13012_v56 = vld [vmem:[#allocation5 + $0x240] sm:$0xff] }
0x1496   : > { %v3958_v4 = vmul.f32 0.5, %v3954_v30 }
0x1497   : > { %v11006_v49 = vpack.c.bf16 %v3960_v40, %v3959_v48  ;;  %v3957_v53 = vmul.f32 0.5, %v3953_v20 }
0x1498   : > { %v3962_v34 = vmul.f32 %v3958_v4, %v3924_v62  ;;  %v4118_v62 = vld [vmem:[#allocation5 + $0x220] sm:$0xff] }
0x1499   : > { %11007 = vmatprep.subr.bf16.mxu1 %v11006_v49  ;;  %v3961_v26 = vmul.f32 %v3957_v53, %v3919_v13  ;;  %10244 = vmatprep.mubr.msk.f32.mxu0 %vm569_vm1, %v4118_v62  ;;  %v12131_v13 = vmov 26  }
0x149a   : > { %11009 = vmatpush3.bf16.msra.mxu1 %v11006_v49  ;;  %11495 = vset.pattern.permute.xlu1 %v12131_v13 }
0x149b   : > { %v11010_v19 = vpack.c.bf16 %v3962_v34, %v3961_v26  ;;  %11496 = vset.pattern.permute.xlu0 %v12131_v13  ;;  %4123 = vperm.xlu1 %11495, %v12937_v60  }
0x149c   : > { %4127 = vperm.xlu0 %11496, %v12931_v31  }
0x149d   : > { %11011 = vmatprep.subr.bf16.mxu1 %v11010_v19 }
0x149e   : > { %11013 = vmatpush3.bf16.msra.mxu1 %v11010_v19 }
0x149f   : > { %4131 = vperm.xlu1 %11495, %v12990_v42  }
0x14a0   : > { %11497 = vset.pattern.permute.xlu0 %v12105_v0 }
0x14a1   : > { %10231 = vmatmul.mubr.msk.f32.vlgmr.msra.gmra.mrb[56].mxu1 %vm569_vm1, %v3965_v16 }
0x14a2   : > { %10233 = vmatprep.mubr.msk.f32.mxu1 %vm569_vm1, %v3966_v46 }
0x14a3   : > { %4135 = vperm.xlu1 %11495, %v12996_v39  }
0x14a5   : > { %10234 = vmatmul.mubr.msk.f32.gmra.mrb[58].mxu1 %vm569_vm1, %v3967_v9 }
0x14a6   : > { %10258 = vmatprep.mubr.msk.f32.mxu1 %vm569_vm1, %v13012_v56 }
0x14a7   : > { %11498 = vset.pattern.permute.xlu1 %v12105_v0 }
0x1574   : > { %v10232_v32 = vpop.f32.mrb[56].mxu1 }
0x1575   : > { %v4068_v1 = vadd.f32 %v10232_v32, %v3974_v3  ;;  %v4062_v14 = vpop.f32.mrb[57].mxu1 }
0x1576   : > { %v4063_v36 = vadd.f32 %v4062_v14, %v3970_v44 }
0x1577   : > { %v4082_v35 = vmul.f32 %v4068_v1, %v4068_v1 }
0x1578   : > { %v4081_v50 = vmul.f32 %v4063_v36, %v4063_v36  ;;  %v10235_v24 = vpop.f32.mrb[58].mxu1 }
0x1579   : > { %v4086_v55 = vmul.f32 %v4082_v35, %v4068_v1  ;;  %v4078_v37 = vadd.f32 %v10235_v24, %v3982_v6  ;;  %v4072_v28 = vpop.f32.mrb[59].mxu1 }
0x157a   : > { %v4085_v11 = vmul.f32 %v4081_v50, %v4063_v36  ;;  %v4073_v51 = vadd.f32 %v4072_v28, %v3978_v63 }
0x157b   : > { %v4090_v5 = vmul.f32 0.044715, %v4086_v55  ;;  %v4084_v33 = vmul.f32 %v4078_v37, %v4078_v37 }
0x157c   : > { %v4089_v7 = vmul.f32 0.044715, %v4085_v11  ;;  %v4083_v0 = vmul.f32 %v4073_v51, %v4073_v51 }
0x157d   : > { %v4094_v45 = vadd.f32 %v4090_v5, %v4068_v1  ;;  %v4088_v27 = vmul.f32 %v4084_v33, %v4078_v37 }
0x157e   : > { %v4093_v40 = vadd.f32 %v4089_v7, %v4063_v36  ;;  %v4087_v30 = vmul.f32 %v4083_v0, %v4073_v51  ;;  %v4119_v7 = vld [vmem:[#allocation5 + $0x228] sm:$0xff]  ;;  %v4120_v0 = vld [vmem:[#allocation5 + $0x230] sm:$0xff] }
0x157f   : > { %v4098_v48 = vmul.f32 0.7978846, %v4094_v45  ;;  %v4092_v20 = vmul.f32 0.044715, %v4088_v27  ;;  %v12132_v45 = vmov 27   ;;  %v12133_v27 = vmov 28  }
0x1580   : > { %v4097_v4 = vmul.f32 0.7978846, %v4093_v40  ;;  %v4091_v49 = vmul.f32 0.044715, %v4087_v30 }
0x1581   : > { %11728 = vtanh.f32 %v4098_v48  ;;  %v4096_v53 = vadd.f32 %v4092_v20, %v4078_v37  ;;  %v13139_v20 = vld [vmem:[#allocation5 + $0x250] sm:$0xff] }
0x1582   : > { %11730 = vtanh.f32 %v4097_v4  ;;  %v4095_v34 = vadd.f32 %v4091_v49, %v4073_v51  ;;  %v13144_v4 = vld [vmem:[#allocation5 + $0x258] sm:$0xff]  ;;  %v13160_v49 = vld [vmem:[%s14281_s7 + $0x28] sm:$0xff] }
0x1583   : > { %v4100_v26 = vmul.f32 0.7978846, %v4096_v53  ;;  %v13172_v53 = vld [vmem:[%s14281_s7 + $0x38] sm:$0xff] }
0x1584   : > { %v4099_v19 = vmul.f32 0.7978846, %v4095_v34  ;;  %v14323_v34 = vmov 10  }
0x1585   : > { %11732 = vtanh.f32 %v4100_v26 }
0x1586   : > { %11734 = vtanh.f32 %v4099_v19 }
0x158b   : > { %v11729_v16 = vpop.eup %11728 }
0x158c   : > { %v11731_v46 = vpop.eup %11730  ;;  %v4106_v9 = vadd.f32 1.0, %v11729_v16 }
0x158d   : > { %v4105_v62 = vadd.f32 1.0, %v11731_v46 }
0x158e   : > { %v4110_v44 = vmul.f32 0.5, %v4106_v9  ;;  %v14324_v9 = vmov 18  }
0x158f   : > { %v11733_v3 = vpop.eup %11732  ;;  %v4109_v32 = vmul.f32 0.5, %v4105_v62 }
0x1590   : > { %v11735_v14 = vpop.eup %11734  ;;  %v4114_v35 = vmul.f32 %v4110_v44, %v4068_v1  ;;  %v4108_v6 = vadd.f32 1.0, %v11733_v3  ;;  %v4121_v1 = vld [vmem:[#allocation5 + $0x238] sm:$0xff]  ;;  %v14325_v44 = vmov 19  }
0x1591   : > { %v4113_v50 = vmul.f32 %v4109_v32, %v4063_v36  ;;  %v4107_v24 = vadd.f32 1.0, %v11735_v14  ;;  %v13033_v36 = vld [vmem:[%s14281_s7 + $0x8] sm:$0xff]  ;;  %v14326_v14 = vmov 20  }
0x1592   : > { %v4112_v55 = vmul.f32 0.5, %v4108_v6  ;;  %4690 = vperm.xlu1 %11498, %v13033_v36  }
0x1593   : > { %v11014_v63 = vpack.c.bf16 %v4114_v35, %v4113_v50  ;;  %v4111_v28 = vmul.f32 0.5, %v4107_v24 }
0x1594   : > { %v4116_v11 = vmul.f32 %v4112_v55, %v4078_v37  ;;  %v13038_v37 = vld [vmem:[%s14281_s7] sm:$0xff] }
0x1595   : > { %11015 = vmatprep.subr.bf16.mxu0 %v11014_v63  ;;  %v4115_v5 = vmul.f32 %v4111_v28, %v4073_v51  ;;  %4685 = vperm.xlu0 %11497, %v13038_v37   ;;  %v13045_v51 = vld [vmem:[%s14281_s7 + $0x10] sm:$0xff] }
0x1596   : > { %11017 = vmatpush3.bf16.msra.mxu0 %v11014_v63  ;;  %4695 = vperm.xlu1 %11498, %v13045_v51  }
0x1597   : > { %v11018_v33 = vpack.c.bf16 %v4116_v11, %v4115_v5 }
0x1599   : > { %11019 = vmatprep.subr.bf16.mxu0 %v11018_v33 }
0x159a   : > { %11021 = vmatpush3.bf16.msra.mxu0 %v11018_v33  ;;  %11499 = vset.pattern.permute.xlu1 %v12132_v45 }
0x159b   : > { %4422 = vperm.xlu1 %11499, %v12937_v60  }
0x159d   : > { %10245 = vmatmul.mubr.msk.f32.vlgmr.msra.gmra.mrb[44].mxu0 %vm569_vm1, %v4119_v7 }
0x159e   : > { %10247 = vmatprep.mubr.msk.f32.mxu0 %vm569_vm1, %v4120_v0  ;;  %v9146_v0 = vld [vmem:[%s12352_s10 + $0x8] sm:$0xff] }
0x159f   : > { %11501 = vset.pattern.permute.xlu1 %v12133_v27 }
0x15a0   : > { %4442 = vperm.xlu1 %11501, %v12937_v60  }
0x15a1   : > { %10248 = vmatmul.mubr.msk.f32.gmra.mrb[46].mxu0 %vm569_vm1, %v4121_v1  ;;  %v9147_v1 = vld [vmem:[%s12352_s10 + $0x18] sm:$0xff] }
0x15a2   : > { %10272 = vmatprep.mubr.msk.f32.mxu0 %vm569_vm1, %v13012_v56  ;;  %v13050_v56 = vld [vmem:[%s14281_s7 + $0x18] sm:$0xff] }
0x15a3   : > { %4700 = vperm.xlu0 %11497, %v13050_v56  }
0x15a4   : > { %4446 = vperm.xlu1 %11501, %v12931_v31  }
0x15a7   : > { %11500 = vset.pattern.permute.xlu0 %v12132_v45 }
0x15a8   : > { %4426 = vperm.xlu0 %11500, %v12931_v31   ;;  %11502 = vset.pattern.permute.xlu1 %v12132_v45 }
0x15a9   : > { %4434 = vperm.xlu1 %11502, %v12996_v39  }
0x15ac   : > { %4430 = vperm.xlu0 %11500, %v12990_v42  }
0x15ad   : > { %11504 = vset.pattern.permute.xlu1 %v12133_v27 }
0x15ae   : > { %4454 = vperm.xlu1 %11504, %v12996_v39  }
0x15b0   : > { %11503 = vset.pattern.permute.xlu0 %v12133_v27 }
0x15b1   : > { %4450 = vperm.xlu0 %11503, %v12990_v42  }
0x15b2   : > { %11505 = vset.pattern.permute.xlu1 %v12106_v22 }
0x15b3   : > { %4841 = vperm.xlu1 %11505, %v13038_v37  }
0x15b5   : > { %11506 = vset.pattern.permute.xlu0 %v12106_v22  ;;  %v4124_v22 = vpop.permute.xlu1 %4123 }
0x15b6   : > { %4845 = vperm.xlu0 %11506, %v13033_v36  }
0x15b7   : > { %4849 = vperm.xlu1 %11505, %v13045_v51  }
0x15ba   : > { %11507 = vset.pattern.permute.xlu0 %v12107_v18 }
0x15bb   : > { %5002 = vperm.xlu0 %11507, %v13038_v37   ;;  %4853 = vperm.xlu1 %11505, %v13050_v56  }
0x15bf   : > { %5014 = vperm.xlu0 %11507, %v13050_v56   ;;  %11508 = vset.pattern.permute.xlu1 %v12107_v18  ;;  %v4132_v18 = vpop.permute.xlu1 %4131 }
0x15c0   : > { %5006 = vperm.xlu1 %11508, %v13033_v36  }
0x15c3   : > { %11510 = vset.pattern.permute.xlu0 %v12108_v8 }
0x15c4   : > { %5159 = vperm.xlu0 %11510, %v13033_v36   ;;  %5010 = vperm.xlu1 %11508, %v13045_v51  }
0x15c8   : > { %11511 = vset.pattern.permute.xlu0 %v12109_v2  ;;  %11509 = vset.pattern.permute.xlu1 %v12108_v8  ;;  %v4128_v8 = vpop.permute.xlu0 %4127 }
0x15c9   : > { %5308 = vperm.xlu0 %11511, %v13038_v37   ;;  %5155 = vperm.xlu1 %11509, %v13038_v37  }
0x15cd   : > { %5320 = vperm.xlu0 %11511, %v13050_v56   ;;  %5163 = vperm.xlu1 %11509, %v13045_v51  }
0x15d1   : > { %11514 = vset.pattern.permute.xlu0 %v12110_v25  ;;  %5167 = vperm.xlu1 %11509, %v13050_v56  }
0x15d2   : > { %5429 = vperm.xlu0 %11514, %v13033_v36  }
0x15d5   : > { %11512 = vset.pattern.permute.xlu1 %v12109_v2 }
0x15d6   : > { %11515 = vset.pattern.permute.xlu0 %v12111_v43  ;;  %5312 = vperm.xlu1 %11512, %v13033_v36  }
0x15d7   : > { %5578 = vperm.xlu0 %11515, %v13038_v37  }
0x15da   : > { %5316 = vperm.xlu1 %11512, %v13045_v51  }
0x15db   : > { %5590 = vperm.xlu0 %11515, %v13050_v56  }
0x15de   : > { %11513 = vset.pattern.permute.xlu1 %v12110_v25 }
0x15df   : > { %11518 = vset.pattern.permute.xlu0 %v12112_v47  ;;  %5425 = vperm.xlu1 %11513, %v13038_v37  }
0x15e0   : > { %5735 = vperm.xlu0 %11518, %v13033_v36  }
0x15e3   : > { %5433 = vperm.xlu1 %11513, %v13045_v51  }
0x15e4   : > { %11519 = vset.pattern.permute.xlu0 %v12113_v52 }
0x15e5   : > { %5848 = vperm.xlu0 %11519, %v13038_v37  }
0x15e7   : > { %5437 = vperm.xlu1 %11513, %v13050_v56  }
0x15e9   : > { %5860 = vperm.xlu0 %11519, %v13050_v56  }
0x15eb   : > { %11516 = vset.pattern.permute.xlu1 %v12111_v43 }
0x15ec   : > { %5582 = vperm.xlu1 %11516, %v13033_v36  }
0x15ed   : > { %11522 = vset.pattern.permute.xlu0 %v12114_v57 }
0x15ee   : > { %6563 = vperm.xlu0 %11522, %v13033_v36  }
0x15f0   : > { %5586 = vperm.xlu1 %11516, %v13045_v51  }
0x15f2   : > { %11523 = vset.pattern.permute.xlu0 %v12115_v61 }
0x15f3   : > { %6014 = vperm.xlu0 %11523, %v13038_v37  }
0x15f4   : > { %11517 = vset.pattern.permute.xlu1 %v12112_v47  ;;  %v4136_v47 = vpop.permute.xlu1 %4135 }
0x15f5   : > { %5731 = vperm.xlu1 %11517, %v13038_v37  }
0x15f7   : > { %6029 = vperm.xlu0 %11523, %v13050_v56  }
0x15f9   : > { %5739 = vperm.xlu1 %11517, %v13045_v51  }
0x15fb   : > { %6039 = vperm.xlu0 %11523, %v13160_v49  }
0x15fd   : > { %5743 = vperm.xlu1 %11517, %v13050_v56  }
0x15ff   : > { %6049 = vperm.xlu0 %11523, %v13172_v53  }
0x1601   : > { %11520 = vset.pattern.permute.xlu1 %v12113_v52  ;;  %v13135_v52 = vld [vmem:[#allocation5 + $0x248] sm:$0xff] }
0x1602   : > { %5852 = vperm.xlu1 %11520, %v13033_v36  }
0x1603   : > { %11528 = vset.pattern.permute.xlu0 %v14323_v34 }
0x1604   : > { %6306 = vperm.xlu0 %11528, %v13045_v51  }
0x1606   : > { %5856 = vperm.xlu1 %11520, %v13045_v51  }
0x1608   : > { %11529 = vset.pattern.permute.xlu0 %v12116_v12 }
0x1609   : > { %6258 = vperm.xlu0 %11529, %v13033_v36  }
0x160a   : > { %11521 = vset.pattern.permute.xlu1 %v12114_v57  ;;  %v13155_v57 = vld [vmem:[%s14281_s7 + $0x20] sm:$0xff] }
0x160b   : > { %6559 = vperm.xlu1 %11521, %v13038_v37  }
0x160d   : > { %6262 = vperm.xlu0 %11529, %v13045_v51  }
0x160f   : > { %6567 = vperm.xlu1 %11521, %v13045_v51  }
0x1611   : > { %6274 = vperm.xlu0 %11529, %v13160_v49   ;;  %v13199_v26 = vpop.permute.xlu1 %4690 }
0x1613   : > { %6571 = vperm.xlu1 %11521, %v13050_v56  }
0x1615   : > { %v13204_v19 = vpop.permute.xlu1 %4695 }
0x1617   : > { %11524 = vset.pattern.permute.xlu1 %v12115_v61  ;;  %v13167_v61 = vld [vmem:[%s14281_s7 + $0x30] sm:$0xff] }
0x1618   : > { %6019 = vperm.xlu1 %11524, %v13033_v36   ;;  %6278 = vperm.xlu0 %11529, %v13167_v61  }
0x161a   : > { %v13211_v16 = vpop.permute.xlu1 %4422 }
0x161c   : > { %6024 = vperm.xlu1 %11524, %v13045_v51   ;;  %11534 = vset.pattern.permute.xlu0 %v14323_v34 }
0x161d   : > { %6322 = vperm.xlu0 %11534, %v13167_v61  }
0x161f   : > { %v13217_v46 = vpop.permute.xlu1 %4442 }
0x1620   : > { %6034 = vperm.xlu1 %11524, %v13155_v57  }
0x1621   : > { %11537 = vset.pattern.permute.xlu0 %v12118_v21 }
0x1622   : > { %6878 = vperm.xlu0 %11537, %v13033_v36  }
0x1624   : > { %6044 = vperm.xlu1 %11524, %v13167_v61  }
0x1626   : > { %6886 = vperm.xlu0 %11537, %v13050_v56  }
0x1628   : > { %11525 = vset.pattern.permute.xlu1 %v12116_v12 }
0x1629   : > { %6254 = vperm.xlu1 %11525, %v13038_v37  }
0x162a   : > { %11541 = vset.pattern.permute.xlu0 %v12120_v17 }
0x162b   : > { %6418 = vperm.xlu0 %11541, %v13038_v37  }
0x162d   : > { %11526 = vset.pattern.permute.xlu1 %v14323_v34 }
0x162e   : > { %6298 = vperm.xlu1 %11526, %v13038_v37  }
0x162f   : > { %6426 = vperm.xlu0 %11541, %v13045_v51  }
0x1632   : > { %6302 = vperm.xlu1 %11526, %v13033_v36  }
0x1633   : > { %11545 = vset.pattern.permute.xlu0 %v12121_v10 }
0x1634   : > { %6930 = vperm.xlu0 %11545, %v13033_v36  }
0x1636   : > { %11527 = vset.pattern.permute.xlu1 %v12116_v12 }
0x1637   : > { %6266 = vperm.xlu1 %11527, %v13050_v56  }
0x1638   : > { %11546 = vset.pattern.permute.xlu0 %v12122_v15 }
0x1639   : > { %7043 = vperm.xlu0 %11546, %v13038_v37  }
0x163b   : > { %11530 = vset.pattern.permute.xlu1 %v14323_v34 }
0x163c   : > { %6310 = vperm.xlu1 %11530, %v13050_v56  }
0x163d   : > { %7055 = vperm.xlu0 %11546, %v13050_v56  }
0x1640   : > { %11531 = vset.pattern.permute.xlu1 %v12116_v12 }
0x1641   : > { %6270 = vperm.xlu1 %11531, %v13155_v57   ;;  %11549 = vset.pattern.permute.xlu0 %v14324_v9 }
0x1642   : > { %7200 = vperm.xlu0 %11549, %v13033_v36  }
0x1645   : > { %11532 = vset.pattern.permute.xlu1 %v14323_v34 }
0x1646   : > { %6314 = vperm.xlu1 %11532, %v13155_v57   ;;  %11550 = vset.pattern.permute.xlu0 %v14325_v44 }
0x1647   : > { %7349 = vperm.xlu0 %11550, %v13038_v37  }
0x164a   : > { %6318 = vperm.xlu1 %11532, %v13160_v49  }
0x164b   : > { %7361 = vperm.xlu0 %11550, %v13050_v56  }
0x164e   : > { %11533 = vset.pattern.permute.xlu1 %v12116_v12  ;;  %v13224_v12 = vpop.permute.xlu1 %4446 }
0x164f   : > { %6282 = vperm.xlu1 %11533, %v13172_v53   ;;  %11553 = vset.pattern.permute.xlu0 %v14326_v14 }
0x1650   : > { %7506 = vperm.xlu0 %11553, %v13033_v36  }
0x1652   : > { %v13230_v62 = vpop.permute.xlu1 %4434 }
0x1653   : > { %11535 = vset.pattern.permute.xlu1 %v14323_v34 }
0x1654   : > { %6326 = vperm.xlu1 %11535, %v13172_v53   ;;  %11554 = vset.pattern.permute.xlu0 %v12120_v17 }
0x1655   : > { %6434 = vperm.xlu0 %11554, %v13155_v57  }
0x1656   : > { %v13237_v3 = vpop.permute.xlu1 %4454 }
0x1658   : > { %11536 = vset.pattern.permute.xlu1 %v12118_v21 }
0x1659   : > { %6874 = vperm.xlu1 %11536, %v13038_v37   ;;  %6446 = vperm.xlu0 %11554, %v13172_v53  }
0x165a   : > { %v13242_v32 = vpop.permute.xlu1 %4841 }
0x165d   : > { %11538 = vset.pattern.permute.xlu1 %v12119_v29  ;;  %11557 = vset.pattern.permute.xlu0 %v12126_v41 }
0x165e   : > { %6894 = vperm.xlu1 %11538, %v13038_v37   ;;  %v13249_v35 = vpop.permute.xlu1 %4849  ;;  %7663 = vperm.xlu0 %11557, %v13033_v36  }
0x1662   : > { %6898 = vperm.xlu1 %11538, %v13033_v36   ;;  %v13259_v50 = vpop.permute.xlu1 %4853  ;;  %11558 = vset.pattern.permute.xlu0 %v12127_v38 }
0x1663   : > { %7776 = vperm.xlu0 %11558, %v13038_v37  }
0x1666   : > { %11539 = vset.pattern.permute.xlu1 %v12120_v17 }
0x1667   : > { %6422 = vperm.xlu1 %11539, %v13033_v36   ;;  %7788 = vperm.xlu0 %11558, %v13050_v56  }
0x166b   : > { %11540 = vset.pattern.permute.xlu1 %v12118_v21  ;;  %11561 = vset.pattern.permute.xlu0 %v12128_v59 }
0x166c   : > { %6882 = vperm.xlu1 %11540, %v13045_v51   ;;  %7933 = vperm.xlu0 %11561, %v13033_v36  }
0x1670   : > { %v10246_v2 = vpop.f32.mrb[44].mxu0  ;;  %11542 = vset.pattern.permute.xlu1 %v12119_v29  ;;  %11562 = vset.pattern.permute.xlu0 %v12129_v23 }
0x1671   : > { %v13118_v25 = vadd.f32 %v10246_v2, %v4128_v8  ;;  %v4216_v31 = vpop.f32.mrb[45].mxu0  ;;  %6902 = vperm.xlu1 %11542, %v13045_v51   ;;  %v11046_v2 = vpack.c.bf16 %v9147_v1, %v9146_v0  ;;  %8082 = vperm.xlu0 %11562, %v13038_v37  }
0x1672   : > { %v13120_v43 = vadd.f32 %v4216_v31, %v4124_v22  ;;  %v13282_v22 = vpop.permute.xlu1 %5006  ;;  %v9149_v31 = vld [vmem:[%s12352_s10 + $0x38] sm:$0xff] }
0x1674   : > { %v11022_v60 = vpack.c.bf16 %v13118_v25, %v13120_v43  ;;  %v10249_v42 = vpop.f32.mrb[46].mxu0 }
0x1675   : > { %v13126_v39 = vadd.f32 %v10249_v42, %v4136_v47  ;;  %v4226_v40 = vpop.f32.mrb[47].mxu0  ;;  %6906 = vperm.xlu1 %11542, %v13050_v56   ;;  %v9151_v42 = vld [vmem:[%s12352_s10 + $0x58] sm:$0xff]  ;;  %8094 = vperm.xlu0 %11562, %v13050_v56  }
0x1676   : > { %v13128_v30 = vadd.f32 %v4226_v40, %v4132_v18  ;;  %11023 = vmatprep.subr.bf16.mxu1 %v11022_v60  ;;  %v4675_v40 = vld [vmem:[#allocation7] sm:$0xff] }
0x1677   : > { %11025 = vmatpush3.bf16.msra.mxu1 %v11022_v60  ;;  %v9150_v60 = vld [vmem:[%s12352_s10 + $0x48] sm:$0xff] }
0x1678   : > { %v11026_v48 = vpack.c.bf16 %v13126_v39, %v13128_v30 }
0x1679   : > { %11543 = vset.pattern.permute.xlu1 %v12120_v17  ;;  %11565 = vset.pattern.permute.xlu0 %v12130_v58 }
0x167a   : > { %11027 = vmatprep.subr.bf16.mxu1 %v11026_v48  ;;  %6430 = vperm.xlu1 %11543, %v13050_v56  }
0x167b   : > { %11029 = vmatpush3.bf16.msra.mxu1 %v11026_v48  ;;  %v9153_v48 = vld [vmem:[%s12352_s10 + $0x78] sm:$0xff]  ;;  %8239 = vperm.xlu0 %11565, %v13033_v36  }
0x167e   : > { %10259 = vmatmul.mubr.msk.f32.vlgmr.msra.gmra.mrb[60].mxu1 %vm569_vm1, %v13135_v52  ;;  %11544 = vset.pattern.permute.xlu1 %v12121_v10 }
0x167f   : > { %10261 = vmatprep.mubr.msk.f32.mxu1 %vm569_vm1, %v13139_v20  ;;  %6926 = vperm.xlu1 %11544, %v13038_v37  }
0x1680   : > { %11566 = vset.pattern.permute.xlu0 %v12131_v13 }
0x1681   : > { %8388 = vperm.xlu0 %11566, %v13038_v37  }
0x1682   : > { %10262 = vmatmul.mubr.msk.f32.gmra.mrb[62].mxu1 %vm569_vm1, %v13144_v4 }
0x1683   : > { %6934 = vperm.xlu1 %11544, %v13045_v51  }
0x1687   : > { %6938 = vperm.xlu1 %11544, %v13050_v56  }
0x168b   : > { %11547 = vset.pattern.permute.xlu1 %v12122_v15 }
0x168c   : > { %7047 = vperm.xlu1 %11547, %v13033_v36  }
0x1690   : > { %7051 = vperm.xlu1 %11547, %v13045_v51  }
0x1694   : > { %11548 = vset.pattern.permute.xlu1 %v14324_v9 }
0x1695   : > { %7196 = vperm.xlu1 %11548, %v13038_v37  }
0x1699   : > { %7204 = vperm.xlu1 %11548, %v13045_v51  }
0x169d   : > { %7208 = vperm.xlu1 %11548, %v13050_v56  }
0x16a1   : > { %11551 = vset.pattern.permute.xlu1 %v14325_v44 }
0x1751   : > { %v10260_v21 = vpop.f32.mrb[60].mxu1 }
0x1752   : > { %v13257_v29 = vsub.f32 %v13118_v25, %v10260_v21  ;;  %v4301_v6 = vpop.f32.mrb[61].mxu1  ;;  %v9148_v25 = vld [vmem:[%s12352_s10 + $0x28] sm:$0xff] }
0x1753   : > { %v13262_v24 = vsub.f32 %v13120_v43, %v4301_v6  ;;  %v13292_v43 = vpop.permute.xlu1 %5010  ;;  %v11050_v47 = vpack.c.bf16 %v9149_v31, %v9148_v25  ;;  %v4678_v6 = vld [vmem:[#allocation7 + $0x18] sm:$0xff]  ;;  %7353 = vperm.xlu1 %11551, %v13033_v36  }
0x1754   : > { %v4325_v55 = vmul.f32 %v13257_v29, %v13257_v29 }
0x1755   : > { %v4324_v63 = vmul.f32 %v13262_v24, %v13262_v24  ;;  %v10263_v28 = vpop.f32.mrb[62].mxu1 }
0x1756   : > { %v13272_v11 = vsub.f32 %v13126_v39, %v10263_v28  ;;  %v4311_v5 = vpop.f32.mrb[63].mxu1  ;;  %v11054_v39 = vpack.c.bf16 %v9151_v42, %v9150_v60  ;;  %v9154_v60 = vld [vmem:[%s12352_s10 + $0x118] sm:$0xff]  ;;  %v4465_v42 = vld [vmem:[%s14280_s6] sm:$0xff] }
0x1757   : > { %v13276_v33 = vsub.f32 %v13128_v30, %v4311_v5  ;;  %v11030_v10 = vpack.c.bf16 %v4325_v55, %v4324_v63  ;;  %v9152_v30 = vld [vmem:[%s12352_s10 + $0x68] sm:$0xff]  ;;  %v13305_v34 = vpop.permute.xlu1 %5155  ;;  %7357 = vperm.xlu1 %11551, %v13045_v51   ;;  %10286 = vmatprep.mubr.msk.f32.mxu1 %vm569_vm1, %v4465_v42 }
0x1758   : > { %v4327_v7 = vmul.f32 %v13272_v11, %v13272_v11  ;;  %v11058_v15 = vpack.c.bf16 %v9153_v48, %v9152_v30 }
0x1759   : > { %v4326_v18 = vmul.f32 %v13276_v33, %v13276_v33  ;;  %11031 = vmatprep.subr.bf16.mxu0 %v11030_v10 }
0x175a   : > { %11033 = vmatpush3.bf16.msra.mxu0 %v11030_v10 }
0x175b   : > { %v11034_v8 = vpack.c.bf16 %v4327_v7, %v4326_v18  ;;  %11552 = vset.pattern.permute.xlu1 %v14326_v14 }
0x175d   : > { %11035 = vmatprep.subr.bf16.mxu0 %v11034_v8 }
0x175e   : > { %11037 = vmatpush3.bf16.msra.mxu0 %v11034_v8 }
0x175f   : > { %11047 = vmatprep.subr.bf16.mxu0 %v11046_v2 }
0x1761   : > { %10273 = vmatmul.mubr.msk.f32.vlgmr.msra.gmra.mrb[48].mxu0 %vm569_vm1, %v13135_v52  ;;  %v13314_v52 = vpop.permute.xlu1 %5163  ;;  %7502 = vperm.xlu1 %11552, %v13038_v37  }
0x1762   : > { %11049 = vmatpush3.bf16.msra.mxu0 %v11046_v2  ;;  %10275 = vmatprep.mubr.msk.f32.mxu0 %vm569_vm1, %v13139_v20  ;;  %v4676_v20 = vld [vmem:[#allocation7 + $0x8] sm:$0xff] }
0x1763   : > { %11051 = vmatprep.subr.bf16.mxu0 %v11050_v47 }
0x1765   : > { %10276 = vmatmul.mubr.msk.f32.gmra.mrb[50].mxu0 %vm569_vm1, %v13144_v4  ;;  %v4677_v4 = vld [vmem:[#allocation7 + $0x10] sm:$0xff]  ;;  %v13320_v21 = vpop.permute.xlu1 %5167  ;;  %7510 = vperm.xlu1 %11552, %v13045_v51  }
0x1766   : > { %11053 = vmatpush3.bf16.msra.mxu0 %v11050_v47  ;;  %10314 = vmatprep.mubr.msk.f32.mxu0 %vm415_vm0, %v4675_v40 }
0x1767   : > { %11055 = vmatprep.subr.bf16.mxu0 %v11054_v39 }
0x1769   : > { %v13329_v9 = vpop.permute.xlu1 %5312  ;;  %7514 = vperm.xlu1 %11552, %v13050_v56  }
0x176a   : > { %11057 = vmatpush3.bf16.msra.mxu0 %v11054_v39  ;;  %v14334_v39 = vsub.s32 0, %v12503_v54 }
0x176b   : > { %11059 = vmatprep.subr.bf16.mxu0 %v11058_v15 }
0x176c   : > { %v13420_v40 = vrot.slane %v9154_v60, %v14334_v39 }
0x176d   : > { %v13335_v55 = vpop.permute.xlu1 %5316  ;;  %11555 = vset.pattern.permute.xlu1 %v12120_v17 }
0x176e   : > { %11061 = vmatpush3.bf16.msra.mxu0 %v11058_v15  ;;  %6438 = vperm.xlu1 %11555, %v13160_v49  }
0x1771   : > { %10315 = vmatmul.mubr.msk.f32.vlgmr.msra.gmra.mrb[52].mxu0 %vm415_vm0, %v4676_v20  ;;  %v13339_v63 = vpop.permute.xlu1 %5425 }
0x1772   : > { %10317 = vmatprep.mubr.msk.f32.mxu0 %vm415_vm0, %v4677_v4  ;;  %6442 = vperm.xlu1 %11555, %v13167_v61  }
0x1775   : > { %10318 = vmatmul.mubr.msk.f32.gmra.mrb[54].mxu0 %vm415_vm0, %v4678_v6  ;;  %v13343_v28 = vpop.permute.xlu1 %5433 }
0x1776   : > { %11556 = vset.pattern.permute.xlu1 %v12126_v41 }
0x1777   : > { %7659 = vperm.xlu1 %11556, %v13038_v37  }
0x1779   : > { %v13346_v44 = vpop.permute.xlu1 %5437 }
0x177b   : > { %7667 = vperm.xlu1 %11556, %v13045_v51  }
0x177d   : > { %v13351_v5 = vpop.permute.xlu1 %5582 }
0x177f   : > { %7671 = vperm.xlu1 %11556, %v13050_v56  }
0x1781   : > { %v13355_v14 = vpop.permute.xlu1 %5586 }
0x1783   : > { %11559 = vset.pattern.permute.xlu1 %v12127_v38  ;;  %v13376_v38 = vpop.permute.xlu0 %4685  ;;  %8400 = vperm.xlu0 %11566, %v13050_v56  }
0x1784   : > { %7780 = vperm.xlu1 %11559, %v13033_v36  }
0x1785   : > { %v13358_v10 = vpop.permute.xlu1 %5731 }
0x1787   : > { %11569 = vset.pattern.permute.xlu0 %v12132_v45 }
0x1788   : > { %7784 = vperm.xlu1 %11559, %v13045_v51  }
0x1789   : > { %v13363_v17 = vpop.permute.xlu1 %5739 }
0x178c   : > { %11560 = vset.pattern.permute.xlu1 %v12128_v59  ;;  %v13383_v59 = vpop.permute.xlu0 %4700  ;;  %8691 = vperm.xlu0 %11569, %v13033_v36  }
0x178d   : > { %v13366_v7 = vpop.permute.xlu1 %5743  ;;  %7929 = vperm.xlu1 %11560, %v13038_v37  }
0x1790   : > { %v13390_v8 = vpop.permute.xlu0 %4426  ;;  %8695 = vperm.xlu0 %11569, %v13045_v51  }
0x1791   : > { %v13370_v41 = vpop.permute.xlu1 %5852  ;;  %7937 = vperm.xlu1 %11560, %v13045_v51  }
0x1794   : > { %11572 = vset.pattern.permute.xlu0 %v12133_v27  ;;  %v13398_v2 = vpop.permute.xlu0 %4430 }
0x1795   : > { %7941 = vperm.xlu1 %11560, %v13050_v56   ;;  %v13374_v0 = vpop.permute.xlu1 %5856  ;;  %8715 = vperm.xlu0 %11572, %v13045_v51  }
0x1796   : > { %14327 = vst [vmem:[#allocation15_spill] sm:$0xff] %v13374_v0 }
0x1798   : > { %v13436_v42 = vpop.permute.xlu0 %4450 }
0x1799   : > { %11563 = vset.pattern.permute.xlu1 %v12129_v23  ;;  %v13381_v1 = vpop.permute.xlu1 %6559 }
0x179a   : > { %8086 = vperm.xlu1 %11563, %v13033_v36   ;;  %14328 = vst [vmem:[#allocation16_spill] sm:$0xff] %v13381_v1 }
0x179d   : > { %v13388_v18 = vpop.permute.xlu1 %6567 }
0x179e   : > { %8090 = vperm.xlu1 %11563, %v13045_v51   ;;  %14329 = vst [vmem:[#allocation17_spill] sm:$0xff] %v13388_v18 }
0x17a1   : > { %v13394_v23 = vpop.permute.xlu1 %6571 }
0x17a2   : > { %11564 = vset.pattern.permute.xlu1 %v12130_v58  ;;  %14330 = vst [vmem:[#allocation18_spill] sm:$0xff] %v13394_v23  ;;  %v12134_v23 = vmov 29  }
0x17a3   : > { %8235 = vperm.xlu1 %11564, %v13038_v37   ;;  %11575 = vset.pattern.permute.xlu0 %v12134_v23 }
0x17a5   : > { %v13400_v25 = vpop.permute.xlu1 %6019 }
0x17a7   : > { %8243 = vperm.xlu1 %11564, %v13045_v51  }
0x17a9   : > { %v13404_v31 = vpop.permute.xlu1 %6024 }
0x17aa   : > { %14331 = vst [vmem:[#allocation19_spill] sm:$0xff] %v13404_v31 }
0x17ab   : > { %8247 = vperm.xlu1 %11564, %v13050_v56  }
0x17ad   : > { %v13407_v58 = vpop.permute.xlu1 %6034 }
0x17ae   : > { %14332 = vst [vmem:[#allocation20_spill] sm:$0xff] %v13407_v58 }
0x17af   : > { %11567 = vset.pattern.permute.xlu1 %v12131_v13 }
0x17b0   : > { %8392 = vperm.xlu1 %11567, %v13033_v36  }
0x17b1   : > { %v13411_v47 = vpop.permute.xlu1 %6044 }
0x17b2   : > { %14333 = vst [vmem:[#allocation21_spill] sm:$0xff] %v13411_v47 }
0x17b4   : > { %8396 = vperm.xlu1 %11567, %v13045_v51  }
0x17b5   : > { %v6255_v30 = vpop.permute.xlu1 %6254 }
0x17b6   : > { %v6289_v13 = vmul.f32 %v13420_v40, %v6255_v30 }
0x17b8   : > { %11568 = vset.pattern.permute.xlu1 %v12132_v45 }
0x17b9   : > { %8687 = vperm.xlu1 %11568, %v13038_v37   ;;  %v6299_v48 = vpop.permute.xlu1 %6298 }
0x17ba   : > { %v13426_v15 = vadd.f32 %v6299_v48, %v6289_v13  ;;  %v13442_v48 = vpop.permute.xlu0 %4845 }
0x17bc   : > { %14335 = vst [vmem:[#allocation22_spill] sm:$0xff] %v13426_v15 }
0x17bd   : > { %11570 = vset.pattern.permute.xlu1 %v12133_v27  ;;  %v13430_v20 = vpop.permute.xlu1 %6302 }
0x17be   : > { %8707 = vperm.xlu1 %11570, %v13038_v37   ;;  %14336 = vst [vmem:[#allocation23_spill] sm:$0xff] %v13430_v20 }
0x17c1   : > { %v6267_v4 = vpop.permute.xlu1 %6266 }
0x17c2   : > { %8711 = vperm.xlu1 %11570, %v13033_v36   ;;  %v6292_v6 = vmul.f32 %v13420_v40, %v6267_v4 }
0x17c5   : > { %v6311_v60 = vpop.permute.xlu1 %6310 }
0x17c6   : > { %11571 = vset.pattern.permute.xlu1 %v12132_v45  ;;  %v13438_v39 = vadd.f32 %v6311_v60, %v6292_v6  ;;  %v13447_v45 = vpop.permute.xlu0 %5002  ;;  %v11926_v6 = vld [vmem:[%s14281_s7] sm:$0xff] }
0x17c7   : > { %8699 = vperm.xlu1 %11571, %v13050_v56  }
0x17c8   : > { %14337 = vst [vmem:[#allocation24_spill] sm:$0xff] %v13438_v39 }
0x17c9   : > { %v6271_v30 = vpop.permute.xlu1 %6270 }
0x17ca   : > { %v6293_v13 = vmul.f32 %v13420_v40, %v6271_v30  ;;  %v13457_v30 = vpop.permute.xlu0 %5014 }
0x17cb   : > { %11573 = vset.pattern.permute.xlu1 %v12133_v27  ;;  %v11927_v27 = vld [vmem:[%s14281_s7 + $0x8] sm:$0xff] }
0x17cc   : > { %8719 = vperm.xlu1 %11573, %v13050_v56   ;;  %4478 = vperm.xlu0 %11575, %v11927_v27   ;;  %v11930_v27 = vld [vmem:[%s14281_s7 + $0x18] sm:$0xff] }
0x17cd   : > { %v6315_v18 = vpop.permute.xlu1 %6314 }
0x17ce   : > { %v13445_v4 = vadd.f32 %v6315_v18, %v6293_v13  ;;  %v11928_v18 = vld [vmem:[%s14281_s7 + $0x10] sm:$0xff]  ;;  %v13466_v1 = vpop.permute.xlu0 %5159 }
0x17d0   : > { %14338 = vst [vmem:[#allocation25_spill] sm:$0xff] %v13445_v4  ;;  %11574 = vset.pattern.permute.xlu1 %v12134_v23  ;;  %v11929_v23 = vld [vmem:[%s14281_s7 + $0x20] sm:$0xff] }
0x17d1   : > { %4474 = vperm.xlu1 %11574, %v11926_v6   ;;  %v13455_v60 = vpop.permute.xlu1 %6318  ;;  %4490 = vperm.xlu0 %11575, %v11929_v23   ;;  %v11932_v23 = vld [vmem:[%s14281_s7 + $0x28] sm:$0xff] }
0x17d2   : > { %14339 = vst [vmem:[#allocation26_spill] sm:$0xff] %v13455_v60  ;;  %v11931_v60 = vld [vmem:[%s14281_s7 + $0x30] sm:$0xff]  ;;  %v13476_v4 = vpop.permute.xlu0 %5308 }
0x17d5   : > { %4482 = vperm.xlu1 %11574, %v11928_v18   ;;  %v6283_v13 = vpop.permute.xlu1 %6282  ;;  %4498 = vperm.xlu0 %11575, %v11931_v60  }
0x17d6   : > { %v6296_v6 = vmul.f32 %v13420_v40, %v6283_v13  ;;  %v13482_v13 = vpop.permute.xlu0 %5320 }
0x17d9   : > { %4486 = vperm.xlu1 %11574, %v11930_v27   ;;  %v6327_v18 = vpop.permute.xlu1 %6326  ;;  %8739 = vperm.xlu0 %11575, %v13038_v37   ;;  %v11933_v27 = vld [vmem:[%s14281_s7 + $0x38] sm:$0xff] }
0x17da   : > { %v13474_v20 = vadd.f32 %v6327_v18, %v6296_v6  ;;  %v13488_v60 = vpop.permute.xlu0 %5429 }
0x17dc   : > { %14340 = vst [vmem:[#allocation27_spill] sm:$0xff] %v13474_v20 }
0x17dd   : > { %4494 = vperm.xlu1 %11574, %v11932_v23   ;;  %8747 = vperm.xlu0 %11575, %v13045_v51   ;;  %v13490_v6 = vpop.permute.xlu1 %6874 }
0x17de   : > { %14341 = vst [vmem:[#allocation28_spill] sm:$0xff] %v13490_v6  ;;  %v13494_v18 = vpop.permute.xlu0 %5578 }
0x17e1   : > { %4502 = vperm.xlu1 %11574, %v11933_v27   ;;  %8755 = vperm.xlu0 %11575, %v13155_v57   ;;  %v13498_v37 = vpop.permute.xlu1 %6894 }
0x17e2   : > { %14342 = vst [vmem:[#allocation29_spill] sm:$0xff] %v13498_v37  ;;  %v13500_v23 = vpop.permute.xlu0 %5590 }
0x17e5   : > { %8743 = vperm.xlu1 %11574, %v13033_v36   ;;  %8763 = vperm.xlu0 %11575, %v13167_v61   ;;  %v13505_v27 = vpop.permute.xlu1 %6898 }
0x17e6   : > { %v13503_v51 = vpop.permute.xlu0 %5735  ;;  %14343 = vst [vmem:[#allocation30_spill] sm:$0xff] %v13505_v27 }
0x17e9   : > { %8751 = vperm.xlu1 %11574, %v13050_v56   ;;  %v13520_v39 = vpop.permute.xlu1 %6422 }
0x17ea   : > { %v13508_v36 = vpop.permute.xlu0 %5848  ;;  %14349 = vst [vmem:[#allocation36_spill] sm:$0xff] %v13520_v39 }
0x17eb   : > { %14344 = vst [vmem:[#allocation31_spill] sm:$0xff] %v13508_v36 }
0x17ed   : > { %8759 = vperm.xlu1 %11574, %v13160_v49   ;;  %v13524_v15 = vpop.permute.xlu1 %6882 }
0x17ee   : > { %v13510_v57 = vpop.permute.xlu0 %5860  ;;  %14351 = vst [vmem:[#allocation38_spill] sm:$0xff] %v13524_v15 }
0x17ef   : > { %14345 = vst [vmem:[#allocation32_spill] sm:$0xff] %v13510_v57 }
0x17f1   : > { %8767 = vperm.xlu1 %11574, %v13172_v53   ;;  %v13526_v0 = vpop.permute.xlu1 %6902 }
0x17f2   : > { %v13512_v6 = vpop.permute.xlu0 %6563  ;;  %14352 = vst [vmem:[#allocation39_spill] sm:$0xff] %v13526_v0 }
0x17f3   : > { %14346 = vst [vmem:[#allocation33_spill] sm:$0xff] %v13512_v6 }
0x17f6   : > { %v13514_v56 = vpop.permute.xlu0 %6014 }
0x17fa   : > { %v13516_v61 = vpop.permute.xlu0 %6029 }
0x17fb   : > { %14347 = vst [vmem:[#allocation34_spill] sm:$0xff] %v13516_v61 }
0x17fe   : > { %v13518_v37 = vpop.permute.xlu0 %6039 }
0x17ff   : > { %14348 = vst [vmem:[#allocation35_spill] sm:$0xff] %v13518_v37 }
0x1802   : > { %v13522_v49 = vpop.permute.xlu0 %6049 }
0x1803   : > { %14350 = vst [vmem:[#allocation37_spill] sm:$0xff] %v13522_v49 }
0x1806   : > { %v6307_v27 = vpop.permute.xlu0 %6306 }
0x180a   : > { %v6259_v58 = vpop.permute.xlu0 %6258 }
0x180b   : > { %v13529_v6 = vmul.f32 %v13420_v40, %v6259_v58 }
0x180d   : > { %14353 = vst [vmem:[#allocation40_spill] sm:$0xff] %v13529_v6 }
0x180e   : > { %v6263_v57 = vpop.permute.xlu0 %6262 }
0x180f   : > { %v6291_v15 = vmul.f32 %v13420_v40, %v6263_v57 }
0x1811   : > { %v13534_v36 = vadd.f32 %v6307_v27, %v6291_v15 }
0x1813   : > { %14355 = vst [vmem:[#allocation42_spill] sm:$0xff] %v13534_v36 }
0x1834   : > { %v10274_v53 = vpop.f32.mrb[48].mxu0 }
0x1835   : > { %v4400_v20 = vadd.f32 1e-05, %v10274_v53  ;;  %v4394_v47 = vpop.f32.mrb[49].mxu0  ;;  %v13532_v53 = vpop.permute.xlu1 %6906 }
0x1836   : > { %v4395_v31 = vadd.f32 1e-05, %v4394_v47  ;;  %14354 = vst [vmem:[#allocation41_spill] sm:$0xff] %v13532_v53  ;;  %v6275_v47 = vpop.permute.xlu0 %6274 }
0x1837   : > { %11736 = vrsqrt.f32 %v4400_v20  ;;  %v13537_v0 = vmul.f32 %v13420_v40, %v6275_v47 }
0x1838   : > { %11738 = vrsqrt.f32 %v4395_v31  ;;  %v10277_v37 = vpop.f32.mrb[50].mxu0 }
0x1839   : > { %v4410_v61 = vadd.f32 1e-05, %v10277_v37  ;;  %v4404_v39 = vpop.f32.mrb[51].mxu0  ;;  %14356 = vst [vmem:[#allocation43_spill] sm:$0xff] %v13537_v0  ;;  %v13540_v6 = vpop.permute.xlu1 %6430 }
0x183a   : > { %v4405_v49 = vadd.f32 1e-05, %v4404_v39  ;;  %v6279_v20 = vpop.permute.xlu0 %6278 }
0x183b   : > { %11740 = vrsqrt.f32 %v4410_v61  ;;  %v6295_v57 = vmul.f32 %v13420_v40, %v6279_v20 }
0x183c   : > { %11742 = vrsqrt.f32 %v4405_v49 }
0x1841   : > { %v11737_v58 = vpop.eup %11736 }
0x1842   : > { %v11739_v31 = vpop.eup %11738  ;;  %v4418_v37 = vmul.f32 %v11737_v58, %v13257_v29 }
0x1843   : > { %v4417_v39 = vmul.f32 %v11739_v31, %v13262_v24 }
0x1844   : > { %v4438_v61 = vmul.f32 %v13390_v8, %v4418_v37  ;;  %v10316_v49 = vpop.f32.mrb[52].mxu0  ;;  %v13561_v37 = vpop.permute.xlu1 %6926 }
0x1845   : > { %v11741_v15 = vpop.eup %11740  ;;  %v13546_v27 = vadd.f32 %v10316_v49, %v13199_v26  ;;  %v4781_v47 = vpop.f32.mrb[53].mxu0  ;;  %v4437_v53 = vmul.f32 %v13211_v16, %v4417_v39 }
0x1846   : > { %v11743_v36 = vpop.eup %11742  ;;  %v4458_v0 = vadd.f32 %v13224_v12, %v4438_v61  ;;  %v13551_v29 = vadd.f32 %v4781_v47, %v13376_v38  ;;  %v4420_v24 = vmul.f32 %v11741_v15, %v13272_v11  ;;  %v6323_v26 = vpop.permute.xlu0 %6322 }
0x1847   : > { %v4801_v40 = vmul.f32 %v13546_v27, %v13546_v27  ;;  %v4419_v8 = vmul.f32 %v11743_v36, %v13276_v33  ;;  %v4457_v58 = vadd.f32 %v13217_v46, %v4437_v53  ;;  %v13563_v38 = vadd.f32 %v6323_v26, %v6295_v57 }
0x1848   : > { %v4462_v20 = vmax.f32 %v4458_v0, 0.0  ;;  %v4800_v16 = vmul.f32 %v13551_v29, %v13551_v29  ;;  %v10319_v31 = vpop.f32.mrb[54].mxu0  ;;  %v4440_v12 = vmul.f32 %v13230_v62, %v4420_v24 }
0x1849   : > { %v4805_v11 = vmul.f32 %v4801_v40, %v13546_v27  ;;  %v4439_v39 = vmul.f32 %v13398_v2, %v4419_v8  ;;  %v13568_v33 = vadd.f32 %v10319_v31, %v13383_v59  ;;  %v4791_v46 = vpop.f32.mrb[55].mxu0  ;;  %v4461_v36 = vmax.f32 %v4457_v58, 0.0  ;;  %v13584_v58 = vpop.permute.xlu1 %6934 }
0x184a   : > { %v4804_v0 = vmul.f32 %v4800_v16, %v13551_v29  ;;  %v13572_v53 = vadd.f32 %v4791_v46, %v13204_v19  ;;  %v4460_v62 = vadd.f32 %v13237_v3, %v4440_v12  ;;  %14357 = vst [vmem:[#allocation44_spill] sm:$0xff] %v13584_v58 }
0x184b   : > { %v4809_v61 = vmul.f32 0.044715, %v4805_v11  ;;  %v4803_v57 = vmul.f32 %v13568_v33, %v13568_v33  ;;  %v4459_v49 = vadd.f32 %v13436_v42, %v4439_v39  ;;  %v11038_v15 = vpack.c.bf16 %v4462_v20, %v4461_v36  ;;  %v4466_v39 = vld [vmem:[%s14280_s6 + $0x8] sm:$0xff]  ;;  %v4467_v36 = vld [vmem:[%s14280_s6 + $0x10] sm:$0xff] }
0x184c   : > { %v4808_v2 = vmul.f32 0.044715, %v4804_v0  ;;  %v4802_v59 = vmul.f32 %v13572_v53, %v13572_v53  ;;  %v4464_v47 = vmax.f32 %v4460_v62, 0.0 }
0x184d   : > { %v4813_v24 = vadd.f32 %v4809_v61, %v13546_v27  ;;  %v4807_v40 = vmul.f32 %v4803_v57, %v13568_v33  ;;  %v4463_v19 = vmax.f32 %v4459_v49, 0.0  ;;  %11039 = vmatprep.subr.bf16.mxu1 %v11038_v15  ;;  %v13594_v62 = vpop.permute.xlu1 %6938  ;;  %v4468_v61 = vld [vmem:[%s14280_s6 + $0x18] sm:$0xff]  ;;  %v4469_v57 = vld [vmem:[%s14280_s6 + $0x20] sm:$0xff]  ;;  %v4470_v49 = vld [vmem:[%s14280_s6 + $0x28] sm:$0xff] }
0x184e   : > { %v4812_v3 = vadd.f32 %v4808_v2, %v13551_v29  ;;  %v4806_v8 = vmul.f32 %v4802_v59, %v13572_v53  ;;  %11041 = vmatpush3.bf16.msra.mxu1 %v11038_v15  ;;  %14358 = vst [vmem:[#allocation45_spill] sm:$0xff] %v13594_v62  ;;  %v4471_v59 = vld [vmem:[%s14280_s6 + $0x30] sm:$0xff] }
0x184f   : > { %v4817_v42 = vmul.f32 0.7978846, %v4813_v24  ;;  %v4811_v26 = vmul.f32 0.044715, %v4807_v40  ;;  %v11042_v20 = vpack.c.bf16 %v4464_v47, %v4463_v19 }
0x1850   : > { %v4816_v16 = vmul.f32 0.7978846, %v4812_v3  ;;  %v4810_v31 = vmul.f32 0.044715, %v4806_v8  ;;  %v4472_v3 = vld [vmem:[%s14280_s6 + $0x38] sm:$0xff] }
0x1851   : > { %11744 = vtanh.f32 %v4817_v42  ;;  %v4815_v12 = vadd.f32 %v4811_v26, %v13568_v33  ;;  %11043 = vmatprep.subr.bf16.mxu1 %v11042_v20  ;;  %v13609_v15 = vpop.permute.xlu1 %7047  ;;  %v4836_v26 = vld [vmem:[#allocation5] sm:$0xff] }
0x1852   : > { %11746 = vtanh.f32 %v4816_v16  ;;  %v4814_v11 = vadd.f32 %v4810_v31, %v13572_v53  ;;  %11045 = vmatpush3.bf16.msra.mxu1 %v11042_v20  ;;  %14359 = vst [vmem:[#allocation46_spill] sm:$0xff] %v13609_v15 }
0x1853   : > { %v4819_v46 = vmul.f32 0.7978846, %v4815_v12 }
0x1854   : > { %v4818_v0 = vmul.f32 0.7978846, %v4814_v11 }
0x1855   : > { %11748 = vtanh.f32 %v4819_v46  ;;  %10287 = vmatmul.mubr.msk.f32.vlgmr.msra.gmra.mrb[64].mxu1 %vm569_vm1, %v4466_v39  ;;  %v13622_v12 = vpop.permute.xlu1 %7051 }
0x1856   : > { %11750 = vtanh.f32 %v4818_v0  ;;  %10289 = vmatprep.mubr.msk.f32.mxu1 %vm569_vm1, %v4467_v36  ;;  %14360 = vst [vmem:[#allocation47_spill] sm:$0xff] %v13622_v12 }
0x1859   : > { %10290 = vmatmul.mubr.msk.f32.gmra.mrb[66].mxu1 %vm569_vm1, %v4468_v61 }
0x185a   : > { %10292 = vmatprep.mubr.msk.f32.mxu1 %vm569_vm1, %v4469_v57 }
0x185b   : > { %v11745_v2 = vpop.eup %11744 }
0x185c   : > { %v11747_v47 = vpop.eup %11746  ;;  %v4825_v24 = vadd.f32 1.0, %v11745_v2  ;;  %v4838_v2 = vld [vmem:[#allocation5 + $0x10] sm:$0xff] }
0x185d   : > { %10293 = vmatmul.mubr.msk.f32.gmra.mrb[68].mxu1 %vm569_vm1, %v4470_v49  ;;  %v4824_v40 = vadd.f32 1.0, %v11747_v47  ;;  %v4837_v49 = vld [vmem:[#allocation5 + $0x8] sm:$0xff] }
0x185e   : > { %v4829_v19 = vmul.f32 0.5, %v4825_v24  ;;  %10295 = vmatprep.mubr.msk.f32.mxu1 %vm569_vm1, %v4471_v59 }
0x185f   : > { %v11749_v8 = vpop.eup %11748  ;;  %v4828_v42 = vmul.f32 0.5, %v4824_v40 }
0x1860   : > { %v11751_v20 = vpop.eup %11750  ;;  %v13620_v16 = vmul.f32 %v4829_v19, %v13546_v27  ;;  %v4827_v31 = vadd.f32 1.0, %v11749_v8 }
0x1861   : > { %v13625_v11 = vmul.f32 %v4828_v42, %v13551_v29  ;;  %10296 = vmatmul.mubr.msk.f32.gmra.mrb[70].mxu1 %vm569_vm1, %v4472_v3  ;;  %v4826_v39 = vadd.f32 1.0, %v11751_v20  ;;  %v13637_v29 = vpop.permute.xlu1 %7196  ;;  %v13656_v3 = vpop.permute.xlu0 %6878 }
0x1862   : > { %v4831_v46 = vmul.f32 0.5, %v4827_v31  ;;  %10328 = vmatprep.mubr.msk.f32.mxu1 %vm569_vm1, %v4836_v26  ;;  %14361 = vst [vmem:[#allocation48_spill] sm:$0xff] %v13637_v29 }
0x1863   : > { %v11062_v36 = vpack.c.bf16 %v13620_v16, %v13625_v11  ;;  %v4830_v0 = vmul.f32 0.5, %v4826_v39 }
0x1864   : > { %v13632_v61 = vmul.f32 %v4831_v46, %v13568_v33  ;;  %v4839_v33 = vld [vmem:[#allocation5 + $0x18] sm:$0xff] }
0x1865   : > { %11063 = vmatprep.subr.bf16.mxu1 %v11062_v36  ;;  %v13635_v27 = vmul.f32 %v4830_v0, %v13572_v53  ;;  %v13641_v59 = vpop.permute.xlu1 %7204  ;;  %v13660_v42 = vpop.permute.xlu0 %6886 }
0x1866   : > { %11065 = vmatpush3.bf16.msra.mxu1 %v11062_v36  ;;  %14362 = vst [vmem:[#allocation49_spill] sm:$0xff] %v13641_v59 }
0x1867   : > { %v11066_v57 = vpack.c.bf16 %v13632_v61, %v13635_v27 }
0x1869   : > { %11067 = vmatprep.subr.bf16.mxu1 %v11066_v57  ;;  %v13646_v53 = vpop.permute.xlu1 %7208  ;;  %v13664_v20 = vpop.permute.xlu0 %6418 }
0x186a   : > { %11069 = vmatpush3.bf16.msra.mxu1 %v11066_v57  ;;  %14363 = vst [vmem:[#allocation50_spill] sm:$0xff] %v13646_v53 }
0x186d   : > { %10329 = vmatmul.mubr.msk.f32.vlgmr.msra.gmra.mrb[72].mxu1 %vm569_vm1, %v4837_v49  ;;  %v13648_v47 = vpop.permute.xlu1 %7353  ;;  %v13668_v39 = vpop.permute.xlu0 %6426 }
0x186e   : > { %10331 = vmatprep.mubr.msk.f32.mxu1 %vm569_vm1, %v4838_v2  ;;  %14364 = vst [vmem:[#allocation51_spill] sm:$0xff] %v13648_v47 }
0x1871   : > { %10332 = vmatmul.mubr.msk.f32.gmra.mrb[74].mxu1 %vm569_vm1, %v4839_v33  ;;  %v13650_v24 = vpop.permute.xlu1 %7357  ;;  %v13672_v36 = vpop.permute.xlu0 %6930 }
0x1872   : > { %14365 = vst [vmem:[#allocation52_spill] sm:$0xff] %v13650_v24 }
0x1875   : > { %v13652_v40 = vpop.permute.xlu1 %7502  ;;  %v13676_v57 = vpop.permute.xlu0 %7043 }
0x1876   : > { %14366 = vst [vmem:[#allocation53_spill] sm:$0xff] %v13652_v40  ;;  %14373 = vst [vmem:[#allocation60_spill] sm:$0xff] %v13676_v57 }
0x1879   : > { %v13654_v19 = vpop.permute.xlu1 %7510  ;;  %v13680_v2 = vpop.permute.xlu0 %7055 }
0x187a   : > { %14367 = vst [vmem:[#allocation54_spill] sm:$0xff] %v13654_v19  ;;  %14375 = vst [vmem:[#allocation62_spill] sm:$0xff] %v13680_v2 }
0x187d   : > { %v13658_v8 = vpop.permute.xlu1 %7514 }
0x187e   : > { %14368 = vst [vmem:[#allocation55_spill] sm:$0xff] %v13658_v8 }
0x1881   : > { %v13662_v26 = vpop.permute.xlu1 %6438 }
0x1882   : > { %14369 = vst [vmem:[#allocation56_spill] sm:$0xff] %v13662_v26  ;;  %v13684_v26 = vpop.permute.xlu0 %7200 }
0x1883   : > { %14377 = vst [vmem:[#allocation64_spill] sm:$0xff] %v13684_v26 }
0x1885   : > { %v13666_v31 = vpop.permute.xlu1 %6442 }
0x1886   : > { %14370 = vst [vmem:[#allocation57_spill] sm:$0xff] %v13666_v31  ;;  %v13688_v31 = vpop.permute.xlu0 %7349 }
0x1887   : > { %14379 = vst [vmem:[#allocation66_spill] sm:$0xff] %v13688_v31 }
0x1889   : > { %v13670_v46 = vpop.permute.xlu1 %7659 }
0x188a   : > { %14371 = vst [vmem:[#allocation58_spill] sm:$0xff] %v13670_v46  ;;  %v13692_v46 = vpop.permute.xlu0 %7361 }
0x188b   : > { %14381 = vst [vmem:[#allocation68_spill] sm:$0xff] %v13692_v46 }
0x188d   : > { %v13674_v0 = vpop.permute.xlu1 %7667 }
0x188e   : > { %14372 = vst [vmem:[#allocation59_spill] sm:$0xff] %v13674_v0  ;;  %v13696_v0 = vpop.permute.xlu0 %7506 }
0x188f   : > { %14383 = vst [vmem:[#allocation70_spill] sm:$0xff] %v13696_v0 }
0x1891   : > { %v13678_v49 = vpop.permute.xlu1 %7671 }
0x1892   : > { %14374 = vst [vmem:[#allocation61_spill] sm:$0xff] %v13678_v49  ;;  %v13700_v49 = vpop.permute.xlu0 %6434 }
0x1893   : > { %14385 = vst [vmem:[#allocation72_spill] sm:$0xff] %v13700_v49 }
0x1895   : > { %v13682_v33 = vpop.permute.xlu1 %7780 }
0x1896   : > { %14376 = vst [vmem:[#allocation63_spill] sm:$0xff] %v13682_v33  ;;  %v13704_v33 = vpop.permute.xlu0 %6446 }
0x1897   : > { %14387 = vst [vmem:[#allocation74_spill] sm:$0xff] %v13704_v33 }
0x1899   : > { %v13686_v19 = vpop.permute.xlu1 %7784 }
0x189a   : > { %14378 = vst [vmem:[#allocation65_spill] sm:$0xff] %v13686_v19  ;;  %v13708_v19 = vpop.permute.xlu0 %7663 }
0x189b   : > { %14389 = vst [vmem:[#allocation76_spill] sm:$0xff] %v13708_v19 }
0x189d   : > { %v13690_v8 = vpop.permute.xlu1 %7929 }
0x189e   : > { %14380 = vst [vmem:[#allocation67_spill] sm:$0xff] %v13690_v8  ;;  %v13712_v8 = vpop.permute.xlu0 %7776 }
0x189f   : > { %14391 = vst [vmem:[#allocation78_spill] sm:$0xff] %v13712_v8 }
0x18a1   : > { %v13694_v40 = vpop.permute.xlu1 %7937 }
0x18a2   : > { %14382 = vst [vmem:[#allocation69_spill] sm:$0xff] %v13694_v40  ;;  %v13716_v40 = vpop.permute.xlu0 %7788 }
0x18a3   : > { %14393 = vst [vmem:[#allocation80_spill] sm:$0xff] %v13716_v40 }
0x18a5   : > { %v13698_v24 = vpop.permute.xlu1 %7941 }
0x18a6   : > { %14384 = vst [vmem:[#allocation71_spill] sm:$0xff] %v13698_v24  ;;  %v4997_v24 = vld [vmem:[#allocation5 + $0x20] sm:$0xff] }
0x18a7   : > { %10342 = vmatprep.mubr.msk.f32.mxu0 %vm569_vm1, %v4997_v24 }
0x18a9   : > { %v13702_v47 = vpop.permute.xlu1 %8086 }
0x18aa   : > { %14386 = vst [vmem:[#allocation73_spill] sm:$0xff] %v13702_v47  ;;  %v13721_v47 = vpop.permute.xlu0 %7933 }
0x18ab   : > { %14395 = vst [vmem:[#allocation82_spill] sm:$0xff] %v13721_v47 }
0x18ad   : > { %v13706_v59 = vpop.permute.xlu1 %8090 }
0x18ae   : > { %14388 = vst [vmem:[#allocation75_spill] sm:$0xff] %v13706_v59  ;;  %v13725_v59 = vpop.permute.xlu0 %8082 }
0x18af   : > { %14397 = vst [vmem:[#allocation84_spill] sm:$0xff] %v13725_v59 }
0x18b1   : > { %v13710_v31 = vpop.permute.xlu1 %8235 }
0x18b2   : > { %14390 = vst [vmem:[#allocation77_spill] sm:$0xff] %v13710_v31  ;;  %v13729_v31 = vpop.permute.xlu0 %8094 }
0x18b3   : > { %14399 = vst [vmem:[#allocation86_spill] sm:$0xff] %v13729_v31 }
0x18b5   : > { %v13714_v46 = vpop.permute.xlu1 %8243 }
0x18b6   : > { %14392 = vst [vmem:[#allocation79_spill] sm:$0xff] %v13714_v46  ;;  %v13733_v46 = vpop.permute.xlu0 %8239 }
0x18b7   : > { %14401 = vst [vmem:[#allocation88_spill] sm:$0xff] %v13733_v46 }
0x18b9   : > { %v13718_v0 = vpop.permute.xlu1 %8247 }
0x18ba   : > { %14394 = vst [vmem:[#allocation81_spill] sm:$0xff] %v13718_v0  ;;  %v13737_v0 = vpop.permute.xlu0 %8388 }
0x18bb   : > { %14403 = vst [vmem:[#allocation90_spill] sm:$0xff] %v13737_v0 }
0x18bd   : > { %v13723_v33 = vpop.permute.xlu1 %8392 }
0x18be   : > { %14396 = vst [vmem:[#allocation83_spill] sm:$0xff] %v13723_v33  ;;  %v13741_v47 = vpop.permute.xlu0 %8400 }
0x18bf   : > { %14405 = vst [vmem:[#allocation92_spill] sm:$0xff] %v13741_v47 }
0x18c1   : > { %v13727_v19 = vpop.permute.xlu1 %8396 }
0x18c2   : > { %14398 = vst [vmem:[#allocation85_spill] sm:$0xff] %v13727_v19  ;;  %v13745_v59 = vpop.permute.xlu0 %8691 }
0x18c3   : > { %14407 = vst [vmem:[#allocation94_spill] sm:$0xff] %v13745_v59 }
0x18c5   : > { %v13731_v8 = vpop.permute.xlu1 %8687 }
0x18c6   : > { %14400 = vst [vmem:[#allocation87_spill] sm:$0xff] %v13731_v8  ;;  %v13749_v19 = vpop.permute.xlu0 %8695 }
0x18c7   : > { %14409 = vst [vmem:[#allocation96_spill] sm:$0xff] %v13749_v19 }
0x18c9   : > { %v13735_v40 = vpop.permute.xlu1 %8707 }
0x18ca   : > { %14402 = vst [vmem:[#allocation89_spill] sm:$0xff] %v13735_v40  ;;  %v13751_v8 = vpop.permute.xlu0 %8715 }
0x18cb   : > { %14410 = vst [vmem:[#allocation97_spill] sm:$0xff] %v13751_v8 }
0x18cd   : > { %v13739_v24 = vpop.permute.xlu1 %8711 }
0x18ce   : > { %14404 = vst [vmem:[#allocation91_spill] sm:$0xff] %v13739_v24  ;;  %v4479_v40 = vpop.permute.xlu0 %4478 }
0x18d1   : > { %v13743_v33 = vpop.permute.xlu1 %8699 }
0x18d2   : > { %14406 = vst [vmem:[#allocation93_spill] sm:$0xff] %v13743_v33  ;;  %v4491_v59 = vpop.permute.xlu0 %4490 }
0x18d5   : > { %v13747_v49 = vpop.permute.xlu1 %8719 }
0x18d6   : > { %14408 = vst [vmem:[#allocation95_spill] sm:$0xff] %v13747_v49  ;;  %v4499_v2 = vpop.permute.xlu0 %4498 }
0x18d9   : > { %v4475_v31 = vpop.permute.xlu1 %4474 }
0x18dd   : > { %v4483_v46 = vpop.permute.xlu1 %4482 }
0x18e1   : > { %v4487_v53 = vpop.permute.xlu1 %4486 }
0x18e5   : > { %v4495_v8 = vpop.permute.xlu1 %4494 }
0x18e9   : > { %v4503_v12 = vpop.permute.xlu1 %4502 }
0x1928   : > { %v10288_v0 = vpop.f32.mrb[64].mxu1 }
0x1929   : > { %v4601_v29 = vadd.f32 %v10288_v0, %v4479_v40  ;;  %v4595_v24 = vpop.f32.mrb[65].mxu1 }
0x192a   : > { %v4596_v26 = vadd.f32 %v4595_v24, %v4475_v31 }
0x192b   : > { %4635 = vst [vmem:[%s13754_s19 + $0x10] sm:$0xff] %v4601_v29 }
0x192c   : > { %4634 = vst [vmem:[%s13754_s19] sm:$0xff] %v4596_v26  ;;  %v10291_v49 = vpop.f32.mrb[66].mxu1 }
0x192d   : > { %v4611_v19 = vadd.f32 %v10291_v49, %v4487_v53  ;;  %v4605_v33 = vpop.f32.mrb[67].mxu1 }
0x192e   : > { %v4606_v47 = vadd.f32 %v4605_v33, %v4483_v46 }
0x192f   : > { %4637 = vst [vmem:[%s13754_s19 + $0x30] sm:$0xff] %v4611_v19 }
0x1930   : > { %4636 = vst [vmem:[%s13754_s19 + $0x20] sm:$0xff] %v4606_v47  ;;  %v10294_v40 = vpop.f32.mrb[68].mxu1 }
0x1931   : > { %v4621_v31 = vadd.f32 %v10294_v40, %v4495_v8  ;;  %v4615_v0 = vpop.f32.mrb[69].mxu1 }
0x1932   : > { %v4616_v24 = vadd.f32 %v4615_v0, %v4491_v59 }
0x1933   : > { %4639 = vst [vmem:[%s13754_s19 + $0x50] sm:$0xff] %v4621_v31 }
0x1934   : > { %4638 = vst [vmem:[%s13754_s19 + $0x40] sm:$0xff] %v4616_v24  ;;  %v10297_v29 = vpop.f32.mrb[70].mxu1 }
0x1935   : > { %v4631_v26 = vadd.f32 %v10297_v29, %v4503_v12  ;;  %v4625_v57 = vpop.f32.mrb[71].mxu1 }
0x1936   : > { %v4626_v15 = vadd.f32 %v4625_v57, %v4499_v2 }
0x1937   : > { %4641 = vst [vmem:[%s13754_s19 + $0x70] sm:$0xff] %v4631_v26 }
0x1938   : > { %4640 = vst [vmem:[%s13754_s19 + $0x60] sm:$0xff] %v4626_v15 }
0x1940   : > { %v10330_v53 = vpop.f32.mrb[72].mxu1 }
0x1941   : > { %v4940_v46 = vadd.f32 %v10330_v53, %v13442_v48  ;;  %v4934_v49 = vpop.f32.mrb[73].mxu1 }
0x1942   : > { %v4935_v47 = vadd.f32 %v4934_v49, %v13242_v32 }
0x1943   : > { %v4954_v19 = vmul.f32 %v4940_v46, %v4940_v46 }
0x1944   : > { %v4953_v8 = vmul.f32 %v4935_v47, %v4935_v47  ;;  %v10333_v33 = vpop.f32.mrb[74].mxu1 }
0x1945   : > { %v4958_v59 = vmul.f32 %v4954_v19, %v4940_v46  ;;  %v4950_v40 = vadd.f32 %v10333_v33, %v13259_v50  ;;  %v4944_v31 = vpop.f32.mrb[75].mxu1 }
0x1946   : > { %v4957_v0 = vmul.f32 %v4953_v8, %v4935_v47  ;;  %v4945_v12 = vadd.f32 %v4944_v31, %v13249_v35 }
0x1947   : > { %v4962_v24 = vmul.f32 0.044715, %v4958_v59  ;;  %v4956_v57 = vmul.f32 %v4950_v40, %v4950_v40 }
0x1948   : > { %v4961_v2 = vmul.f32 0.044715, %v4957_v0  ;;  %v4955_v15 = vmul.f32 %v4945_v12, %v4945_v12 }
0x1949   : > { %v4966_v29 = vadd.f32 %v4962_v24, %v4940_v46  ;;  %v4960_v26 = vmul.f32 %v4956_v57, %v4950_v40 }
0x194a   : > { %v4965_v48 = vadd.f32 %v4961_v2, %v4935_v47  ;;  %v4959_v53 = vmul.f32 %v4955_v15, %v4945_v12 }
0x194b   : > { %v4970_v58 = vmul.f32 0.7978846, %v4966_v29  ;;  %v4964_v32 = vmul.f32 0.044715, %v4960_v26 }
0x194c   : > { %v4969_v49 = vmul.f32 0.7978846, %v4965_v48  ;;  %v4963_v62 = vmul.f32 0.044715, %v4959_v53 }
0x194d   : > { %11752 = vtanh.f32 %v4970_v58  ;;  %v4968_v19 = vadd.f32 %v4964_v32, %v4950_v40 }
0x194e   : > { %11754 = vtanh.f32 %v4969_v49  ;;  %v4967_v50 = vadd.f32 %v4963_v62, %v4945_v12 }
0x194f   : > { %v4972_v33 = vmul.f32 0.7978846, %v4968_v19 }
0x1950   : > { %v4971_v8 = vmul.f32 0.7978846, %v4967_v50 }
0x1951   : > { %11756 = vtanh.f32 %v4972_v33 }
0x1952   : > { %11758 = vtanh.f32 %v4971_v8 }
0x1957   : > { %v11753_v35 = vpop.eup %11752 }
0x1958   : > { %v11755_v59 = vpop.eup %11754  ;;  %v4978_v31 = vadd.f32 1.0, %v11753_v35 }
0x1959   : > { %v4977_v0 = vadd.f32 1.0, %v11755_v59 }
0x195a   : > { %v4982_v24 = vmul.f32 0.5, %v4978_v31 }
0x195b   : > { %v11757_v57 = vpop.eup %11756  ;;  %v4981_v2 = vmul.f32 0.5, %v4977_v0 }
0x195c   : > { %v11759_v15 = vpop.eup %11758  ;;  %v4986_v29 = vmul.f32 %v4982_v24, %v4940_v46  ;;  %v4980_v26 = vadd.f32 1.0, %v11757_v57  ;;  %v4999_v24 = vld [vmem:[#allocation5 + $0x30] sm:$0xff] }
0x195d   : > { %v4985_v48 = vmul.f32 %v4981_v2, %v4935_v47  ;;  %v4979_v53 = vadd.f32 1.0, %v11759_v15 }
0x195e   : > { %v4990_v58 = vadd.f32 %v4986_v29, %v13620_v16  ;;  %v4984_v32 = vmul.f32 0.5, %v4980_v26  ;;  %v4998_v16 = vld [vmem:[#allocation5 + $0x28] sm:$0xff] }
0x195f   : > { %v4989_v62 = vadd.f32 %v4985_v48, %v13625_v11  ;;  %v4983_v49 = vmul.f32 0.5, %v4979_v53  ;;  %v5000_v11 = vld [vmem:[#allocation5 + $0x38] sm:$0xff] }
0x1960   : > { %v4994_v19 = vmul.f32 0.7072136, %v4990_v58  ;;  %v4988_v50 = vmul.f32 %v4984_v32, %v4950_v40 }
0x1961   : > { %v4993_v33 = vmul.f32 0.7072136, %v4989_v62  ;;  %v4987_v8 = vmul.f32 %v4983_v49, %v4945_v12 }
0x1962   : > { %v4992_v35 = vadd.f32 %v4988_v50, %v13632_v61  ;;  %v5150_v61 = vld [vmem:[#allocation5 + $0x40] sm:$0xff] }
0x1963   : > { %v11070_v59 = vpack.c.bf16 %v4994_v19, %v4993_v33  ;;  %v4991_v31 = vadd.f32 %v4987_v8, %v13635_v27  ;;  %10356 = vmatprep.mubr.msk.f32.mxu1 %vm569_vm1, %v5150_v61 }
0x1964   : > { %v4996_v0 = vmul.f32 0.7072136, %v4992_v35 }
0x1965   : > { %11071 = vmatprep.subr.bf16.mxu0 %v11070_v59  ;;  %v4995_v46 = vmul.f32 0.7072136, %v4991_v31 }
0x1966   : > { %11073 = vmatpush3.bf16.msra.mxu0 %v11070_v59 }
0x1967   : > { %v11074_v47 = vpack.c.bf16 %v4996_v0, %v4995_v46 }
0x1969   : > { %11075 = vmatprep.subr.bf16.mxu0 %v11074_v47 }
0x196a   : > { %11077 = vmatpush3.bf16.msra.mxu0 %v11074_v47 }
0x196d   : > { %10343 = vmatmul.mubr.msk.f32.vlgmr.msra.gmra.mrb[56].mxu0 %vm569_vm1, %v4998_v16 }
0x196e   : > { %10345 = vmatprep.mubr.msk.f32.mxu0 %vm569_vm1, %v4999_v24 }
0x1971   : > { %10346 = vmatmul.mubr.msk.f32.gmra.mrb[58].mxu0 %vm569_vm1, %v5000_v11 }
0x1a40   : > { %v10344_v27 = vpop.f32.mrb[56].mxu0 }
0x1a41   : > { %v5101_v40 = vadd.f32 %v10344_v27, %v13282_v22  ;;  %v5095_v12 = vpop.f32.mrb[57].mxu0 }
0x1a42   : > { %v5096_v57 = vadd.f32 %v5095_v12, %v13447_v45 }
0x1a43   : > { %v5115_v2 = vmul.f32 %v5101_v40, %v5101_v40 }
0x1a44   : > { %v5114_v15 = vmul.f32 %v5096_v57, %v5096_v57  ;;  %v10347_v29 = vpop.f32.mrb[58].mxu0 }
0x1a45   : > { %v5119_v26 = vmul.f32 %v5115_v2, %v5101_v40  ;;  %v5111_v48 = vadd.f32 %v10347_v29, %v13457_v30  ;;  %v5105_v53 = vpop.f32.mrb[59].mxu0 }
0x1a46   : > { %v5118_v58 = vmul.f32 %v5114_v15, %v5096_v57  ;;  %v5106_v32 = vadd.f32 %v5105_v53, %v13292_v43 }
0x1a47   : > { %v5123_v62 = vmul.f32 0.044715, %v5119_v26  ;;  %v5117_v49 = vmul.f32 %v5111_v48, %v5111_v48 }
0x1a48   : > { %v5122_v19 = vmul.f32 0.044715, %v5118_v58  ;;  %v5116_v50 = vmul.f32 %v5106_v32, %v5106_v32 }
0x1a49   : > { %v5127_v33 = vadd.f32 %v5123_v62, %v5101_v40  ;;  %v5121_v8 = vmul.f32 %v5117_v49, %v5111_v48 }
0x1a4a   : > { %v5126_v22 = vadd.f32 %v5122_v19, %v5096_v57  ;;  %v5120_v35 = vmul.f32 %v5116_v50, %v5106_v32 }
0x1a4b   : > { %v5131_v59 = vmul.f32 0.7978846, %v5127_v33  ;;  %v5125_v45 = vmul.f32 0.044715, %v5121_v8 }
0x1a4c   : > { %v5130_v31 = vmul.f32 0.7978846, %v5126_v22  ;;  %v5124_v0 = vmul.f32 0.044715, %v5120_v35  ;;  %v5151_v22 = vld [vmem:[#allocation5 + $0x48] sm:$0xff]  ;;  %v5152_v35 = vld [vmem:[#allocation5 + $0x50] sm:$0xff] }
0x1a4d   : > { %11760 = vtanh.f32 %v5131_v59  ;;  %v5129_v46 = vadd.f32 %v5125_v45, %v5111_v48 }
0x1a4e   : > { %11762 = vtanh.f32 %v5130_v31  ;;  %v5128_v30 = vadd.f32 %v5124_v0, %v5106_v32 }
0x1a4f   : > { %v5133_v47 = vmul.f32 0.7978846, %v5129_v46 }
0x1a50   : > { %v5132_v16 = vmul.f32 0.7978846, %v5128_v30 }
0x1a51   : > { %11764 = vtanh.f32 %v5133_v47 }
0x1a52   : > { %11766 = vtanh.f32 %v5132_v16 }
0x1a57   : > { %v11761_v43 = vpop.eup %11760 }
0x1a58   : > { %v11763_v24 = vpop.eup %11762  ;;  %v5139_v11 = vadd.f32 1.0, %v11761_v43 }
0x1a59   : > { %v5138_v61 = vadd.f32 1.0, %v11763_v24 }
0x1a5a   : > { %v5143_v27 = vmul.f32 0.5, %v5139_v11 }
0x1a5b   : > { %v11765_v12 = vpop.eup %11764  ;;  %v5142_v2 = vmul.f32 0.5, %v5138_v61 }
0x1a5c   : > { %v11767_v15 = vpop.eup %11766  ;;  %v5147_v29 = vmul.f32 %v5143_v27, %v5101_v40  ;;  %v5141_v26 = vadd.f32 1.0, %v11765_v12  ;;  %v5153_v40 = vld [vmem:[#allocation5 + $0x58] sm:$0xff] }
0x1a5d   : > { %v5146_v53 = vmul.f32 %v5142_v2, %v5096_v57  ;;  %v5140_v58 = vadd.f32 1.0, %v11767_v15  ;;  %v5303_v57 = vld [vmem:[#allocation5 + $0x60] sm:$0xff] }
0x1a5e   : > { %v5145_v62 = vmul.f32 0.5, %v5141_v26  ;;  %10370 = vmatprep.mubr.msk.f32.mxu0 %vm569_vm1, %v5303_v57 }
0x1a5f   : > { %v11078_v49 = vpack.c.bf16 %v5147_v29, %v5146_v53  ;;  %v5144_v19 = vmul.f32 0.5, %v5140_v58 }
0x1a60   : > { %v5149_v50 = vmul.f32 %v5145_v62, %v5111_v48 }
0x1a61   : > { %11079 = vmatprep.subr.bf16.mxu1 %v11078_v49  ;;  %v5148_v33 = vmul.f32 %v5144_v19, %v5106_v32 }
0x1a62   : > { %11081 = vmatpush3.bf16.msra.mxu1 %v11078_v49 }
0x1a63   : > { %v11082_v8 = vpack.c.bf16 %v5149_v50, %v5148_v33 }
0x1a65   : > { %11083 = vmatprep.subr.bf16.mxu1 %v11082_v8 }
0x1a66   : > { %11085 = vmatpush3.bf16.msra.mxu1 %v11082_v8 }
0x1a69   : > { %10357 = vmatmul.mubr.msk.f32.vlgmr.msra.gmra.mrb[76].mxu1 %vm569_vm1, %v5151_v22 }
0x1a6a   : > { %10359 = vmatprep.mubr.msk.f32.mxu1 %vm569_vm1, %v5152_v35 }
0x1a6d   : > { %10360 = vmatmul.mubr.msk.f32.gmra.mrb[78].mxu1 %vm569_vm1, %v5153_v40 }
0x1b3c   : > { %v10358_v59 = vpop.f32.mrb[76].mxu1 }
0x1b3d   : > { %v5254_v48 = vadd.f32 %v10358_v59, %v13466_v1  ;;  %v5248_v32 = vpop.f32.mrb[77].mxu1 }
0x1b3e   : > { %v5249_v45 = vadd.f32 %v5248_v32, %v13305_v34 }
0x1b3f   : > { %v5268_v31 = vmul.f32 %v5254_v48, %v5254_v48 }
0x1b40   : > { %v5267_v0 = vmul.f32 %v5249_v45, %v5249_v45  ;;  %v10361_v46 = vpop.f32.mrb[78].mxu1 }
0x1b41   : > { %v5272_v30 = vmul.f32 %v5268_v31, %v5254_v48  ;;  %v5264_v47 = vadd.f32 %v10361_v46, %v13320_v21  ;;  %v5258_v16 = vpop.f32.mrb[79].mxu1 }
0x1b42   : > { %v5271_v43 = vmul.f32 %v5267_v0, %v5249_v45  ;;  %v5259_v24 = vadd.f32 %v5258_v16, %v13314_v52 }
0x1b43   : > { %v5276_v11 = vmul.f32 0.044715, %v5272_v30  ;;  %v5270_v61 = vmul.f32 %v5264_v47, %v5264_v47 }
0x1b44   : > { %v5275_v27 = vmul.f32 0.044715, %v5271_v43  ;;  %v5269_v12 = vmul.f32 %v5259_v24, %v5259_v24 }
0x1b45   : > { %v5280_v2 = vadd.f32 %v5276_v11, %v5254_v48  ;;  %v5274_v15 = vmul.f32 %v5270_v61, %v5264_v47 }
0x1b46   : > { %v5279_v1 = vadd.f32 %v5275_v27, %v5249_v45  ;;  %v5273_v29 = vmul.f32 %v5269_v12, %v5259_v24  ;;  %v5304_v27 = vld [vmem:[#allocation5 + $0x68] sm:$0xff]  ;;  %v5305_v12 = vld [vmem:[#allocation5 + $0x70] sm:$0xff] }
0x1b47   : > { %v5284_v26 = vmul.f32 0.7978846, %v5280_v2  ;;  %v5278_v34 = vmul.f32 0.044715, %v5274_v15 }
0x1b48   : > { %v5283_v53 = vmul.f32 0.7978846, %v5279_v1  ;;  %v5277_v58 = vmul.f32 0.044715, %v5273_v29 }
0x1b49   : > { %11768 = vtanh.f32 %v5284_v26  ;;  %v5282_v62 = vadd.f32 %v5278_v34, %v5264_v47 }
0x1b4a   : > { %11770 = vtanh.f32 %v5283_v53  ;;  %v5281_v21 = vadd.f32 %v5277_v58, %v5259_v24 }
0x1b4b   : > { %v5286_v49 = vmul.f32 0.7978846, %v5282_v62 }
0x1b4c   : > { %v5285_v19 = vmul.f32 0.7978846, %v5281_v21 }
0x1b4d   : > { %11772 = vtanh.f32 %v5286_v49 }
0x1b4e   : > { %11774 = vtanh.f32 %v5285_v19 }
0x1b53   : > { %v11769_v52 = vpop.eup %11768 }
0x1b54   : > { %v11771_v50 = vpop.eup %11770  ;;  %v5292_v33 = vadd.f32 1.0, %v11769_v52 }
0x1b55   : > { %v5291_v8 = vadd.f32 1.0, %v11771_v50 }
0x1b56   : > { %v5296_v22 = vmul.f32 0.5, %v5292_v33 }
0x1b57   : > { %v11773_v35 = vpop.eup %11772  ;;  %v5295_v40 = vmul.f32 0.5, %v5291_v8 }
0x1b58   : > { %v11775_v57 = vpop.eup %11774  ;;  %v5300_v59 = vmul.f32 %v5296_v22, %v5254_v48  ;;  %v5294_v32 = vadd.f32 1.0, %v11773_v35  ;;  %v5306_v48 = vld [vmem:[#allocation5 + $0x78] sm:$0xff] }
0x1b59   : > { %v5299_v31 = vmul.f32 %v5295_v40, %v5249_v45  ;;  %v5293_v0 = vadd.f32 1.0, %v11775_v57  ;;  %v5420_v45 = vld [vmem:[#allocation5 + $0x80] sm:$0xff] }
0x1b5a   : > { %v5298_v46 = vmul.f32 0.5, %v5294_v32  ;;  %10384 = vmatprep.mubr.msk.f32.mxu1 %vm569_vm1, %v5420_v45 }
0x1b5b   : > { %v11086_v30 = vpack.c.bf16 %v5300_v59, %v5299_v31  ;;  %v5297_v16 = vmul.f32 0.5, %v5293_v0 }
0x1b5c   : > { %v5302_v43 = vmul.f32 %v5298_v46, %v5264_v47 }
0x1b5d   : > { %11087 = vmatprep.subr.bf16.mxu0 %v11086_v30  ;;  %v5301_v11 = vmul.f32 %v5297_v16, %v5259_v24 }
0x1b5e   : > { %11089 = vmatpush3.bf16.msra.mxu0 %v11086_v30 }
0x1b5f   : > { %v11090_v61 = vpack.c.bf16 %v5302_v43, %v5301_v11 }
0x1b61   : > { %11091 = vmatprep.subr.bf16.mxu0 %v11090_v61 }
0x1b62   : > { %11093 = vmatpush3.bf16.msra.mxu0 %v11090_v61 }
0x1b65   : > { %10371 = vmatmul.mubr.msk.f32.vlgmr.msra.gmra.mrb[60].mxu0 %vm569_vm1, %v5304_v27 }
0x1b66   : > { %10373 = vmatprep.mubr.msk.f32.mxu0 %vm569_vm1, %v5305_v12 }
0x1b69   : > { %10374 = vmatmul.mubr.msk.f32.gmra.mrb[62].mxu0 %vm569_vm1, %v5306_v48 }
0x1c38   : > { %v10372_v2 = vpop.f32.mrb[60].mxu0 }
0x1c39   : > { %v5407_v47 = vadd.f32 %v10372_v2, %v13329_v9  ;;  %v5401_v24 = vpop.f32.mrb[61].mxu0  ;;  %v5421_v9 = vld [vmem:[#allocation5 + $0x88] sm:$0xff] }
0x1c3a   : > { %v5402_v15 = vadd.f32 %v5401_v24, %v13476_v4  ;;  %v5422_v4 = vld [vmem:[#allocation5 + $0x90] sm:$0xff] }
0x1c3c   : > { %v13794_v1 = vpack.c.bf16 %v5407_v47, %v5402_v15  ;;  %v10375_v29 = vpop.f32.mrb[62].mxu0 }
0x1c3d   : > { %v5417_v26 = vadd.f32 %v10375_v29, %v13482_v13  ;;  %v5411_v34 = vpop.f32.mrb[63].mxu0  ;;  %v5423_v13 = vld [vmem:[#allocation5 + $0x98] sm:$0xff] }
0x1c3e   : > { %v5412_v53 = vadd.f32 %v5411_v34, %v13335_v55  ;;  %11095 = vmatprep.subr.bf16.mxu1 %v13794_v1  ;;  %v5573_v55 = vld [vmem:[#allocation5 + $0xa0] sm:$0xff] }
0x1c3f   : > { %11097 = vmatpush3.bf16.msra.mxu1 %v13794_v1  ;;  %10398 = vmatprep.mubr.msk.f32.mxu0 %vm569_vm1, %v5573_v55 }
0x1c40   : > { %v13800_v58 = vpack.c.bf16 %v5417_v26, %v5412_v53 }
0x1c42   : > { %11099 = vmatprep.subr.bf16.mxu1 %v13800_v58 }
0x1c43   : > { %11101 = vmatpush3.bf16.msra.mxu1 %v13800_v58 }
0x1c46   : > { %10385 = vmatmul.mubr.msk.f32.vlgmr.msra.gmra.mrb[80].mxu1 %vm569_vm1, %v5421_v9 }
0x1c47   : > { %10387 = vmatprep.mubr.msk.f32.mxu1 %vm569_vm1, %v5422_v4 }
0x1c4a   : > { %10388 = vmatmul.mubr.msk.f32.gmra.mrb[82].mxu1 %vm569_vm1, %v5423_v13 }
0x1d19   : > { %v10386_v62 = vpop.f32.mrb[80].mxu1 }
0x1d1a   : > { %v5524_v21 = vadd.f32 %v10386_v62, %v13488_v60  ;;  %v5518_v49 = vpop.f32.mrb[81].mxu1 }
0x1d1b   : > { %v5519_v19 = vadd.f32 %v5518_v49, %v13339_v63 }
0x1d1c   : > { %v5538_v52 = vmul.f32 %v5524_v21, %v5524_v21 }
0x1d1d   : > { %v5537_v50 = vmul.f32 %v5519_v19, %v5519_v19  ;;  %v10389_v33 = vpop.f32.mrb[82].mxu1 }
0x1d1e   : > { %v5542_v8 = vmul.f32 %v5538_v52, %v5524_v21  ;;  %v5534_v22 = vadd.f32 %v10389_v33, %v13346_v44  ;;  %v5528_v35 = vpop.f32.mrb[83].mxu1  ;;  %v5574_v33 = vld [vmem:[#allocation5 + $0xa8] sm:$0xff] }
0x1d1f   : > { %v5541_v40 = vmul.f32 %v5537_v50, %v5519_v19  ;;  %v5529_v57 = vadd.f32 %v5528_v35, %v13343_v28 }
0x1d20   : > { %v5546_v59 = vmul.f32 0.044715, %v5542_v8  ;;  %v5540_v32 = vmul.f32 %v5534_v22, %v5534_v22  ;;  %v5575_v8 = vld [vmem:[#allocation5 + $0xb0] sm:$0xff] }
0x1d21   : > { %v5545_v31 = vmul.f32 0.044715, %v5541_v40  ;;  %v5539_v0 = vmul.f32 %v5529_v57, %v5529_v57 }
0x1d22   : > { %v5550_v46 = vadd.f32 %v5546_v59, %v5524_v21  ;;  %v5544_v30 = vmul.f32 %v5540_v32, %v5534_v22 }
0x1d23   : > { %v5549_v60 = vadd.f32 %v5545_v31, %v5519_v19  ;;  %v5543_v16 = vmul.f32 %v5539_v0, %v5529_v57 }
0x1d24   : > { %v5554_v43 = vmul.f32 0.7978846, %v5550_v46  ;;  %v5548_v63 = vmul.f32 0.044715, %v5544_v30 }
0x1d25   : > { %v5553_v11 = vmul.f32 0.7978846, %v5549_v60  ;;  %v5547_v61 = vmul.f32 0.044715, %v5543_v16 }
0x1d26   : > { %11776 = vtanh.f32 %v5554_v43  ;;  %v5552_v27 = vadd.f32 %v5548_v63, %v5534_v22 }
0x1d27   : > { %11778 = vtanh.f32 %v5553_v11  ;;  %v5551_v44 = vadd.f32 %v5547_v61, %v5529_v57 }
0x1d28   : > { %v5556_v12 = vmul.f32 0.7978846, %v5552_v27 }
0x1d29   : > { %v5555_v48 = vmul.f32 0.7978846, %v5551_v44 }
0x1d2a   : > { %11780 = vtanh.f32 %v5556_v12 }
0x1d2b   : > { %11782 = vtanh.f32 %v5555_v48 }
0x1d30   : > { %v11777_v28 = vpop.eup %11776 }
0x1d31   : > { %v11779_v45 = vpop.eup %11778  ;;  %v5562_v2 = vadd.f32 1.0, %v11777_v28 }
0x1d32   : > { %v5561_v47 = vadd.f32 1.0, %v11779_v45 }
0x1d33   : > { %v5566_v24 = vmul.f32 0.5, %v5562_v2 }
0x1d34   : > { %v11781_v15 = vpop.eup %11780  ;;  %v5565_v29 = vmul.f32 0.5, %v5561_v47 }
0x1d35   : > { %v11783_v26 = vpop.eup %11782  ;;  %v5570_v34 = vmul.f32 %v5566_v24, %v5524_v21  ;;  %v5564_v53 = vadd.f32 1.0, %v11781_v15  ;;  %v5576_v21 = vld [vmem:[#allocation5 + $0xb8] sm:$0xff] }
0x1d36   : > { %v5569_v9 = vmul.f32 %v5565_v29, %v5519_v19  ;;  %v5563_v4 = vadd.f32 1.0, %v11783_v26  ;;  %v5726_v19 = vld [vmem:[#allocation5 + $0xc0] sm:$0xff] }
0x1d37   : > { %v5568_v13 = vmul.f32 0.5, %v5564_v53  ;;  %10412 = vmatprep.mubr.msk.f32.mxu1 %vm569_vm1, %v5726_v19 }
0x1d38   : > { %v11102_v55 = vpack.c.bf16 %v5570_v34, %v5569_v9  ;;  %v5567_v62 = vmul.f32 0.5, %v5563_v4 }
0x1d39   : > { %v5572_v49 = vmul.f32 %v5568_v13, %v5534_v22 }
0x1d3a   : > { %11103 = vmatprep.subr.bf16.mxu0 %v11102_v55  ;;  %v5571_v52 = vmul.f32 %v5567_v62, %v5529_v57 }
0x1d3b   : > { %11105 = vmatpush3.bf16.msra.mxu0 %v11102_v55 }
0x1d3c   : > { %v11106_v50 = vpack.c.bf16 %v5572_v49, %v5571_v52 }
0x1d3e   : > { %11107 = vmatprep.subr.bf16.mxu0 %v11106_v50 }
0x1d3f   : > { %11109 = vmatpush3.bf16.msra.mxu0 %v11106_v50 }
0x1d42   : > { %10399 = vmatmul.mubr.msk.f32.vlgmr.msra.gmra.mrb[64].mxu0 %vm569_vm1, %v5574_v33 }
0x1d43   : > { %10401 = vmatprep.mubr.msk.f32.mxu0 %vm569_vm1, %v5575_v8 }
0x1d46   : > { %10402 = vmatmul.mubr.msk.f32.gmra.mrb[66].mxu0 %vm569_vm1, %v5576_v21 }
0x1e15   : > { %v10400_v35 = vpop.f32.mrb[64].mxu0 }
0x1e16   : > { %v5677_v22 = vadd.f32 %v10400_v35, %v13351_v5  ;;  %v5671_v40 = vpop.f32.mrb[65].mxu0  ;;  %v5727_v35 = vld [vmem:[#allocation5 + $0xc8] sm:$0xff] }
0x1e17   : > { %v5672_v57 = vadd.f32 %v5671_v40, %v13494_v18  ;;  %v5729_v40 = vld [vmem:[#allocation5 + $0xd8] sm:$0xff] }
0x1e18   : > { %v5691_v59 = vmul.f32 %v5677_v22, %v5677_v22 }
0x1e19   : > { %v5690_v32 = vmul.f32 %v5672_v57, %v5672_v57  ;;  %v10403_v31 = vpop.f32.mrb[66].mxu0 }
0x1e1a   : > { %v5695_v0 = vmul.f32 %v5691_v59, %v5677_v22  ;;  %v5687_v46 = vadd.f32 %v10403_v31, %v13500_v23  ;;  %v5681_v30 = vpop.f32.mrb[67].mxu0  ;;  %v14411_v31 = vsub.s32 1, %v12503_v54  ;;  %v5996_v54 = vld [vmem:[%s14277_s3] sm:$0xff] }
0x1e1b   : > { %v5694_v60 = vmul.f32 %v5690_v32, %v5672_v57  ;;  %v5682_v16 = vadd.f32 %v5681_v30, %v13355_v14  ;;  %v5843_v32 = vld [vmem:[#allocation5 + $0xe0] sm:$0xff]  ;;  %v9156_v30 = vld [vmem:[%s12352_s10 + $0x98] sm:$0xff] }
0x1e1c   : > { %v5699_v43 = vmul.f32 0.044715, %v5695_v0  ;;  %v5693_v63 = vmul.f32 %v5687_v46, %v5687_v46  ;;  %10426 = vmatprep.mubr.msk.f32.mxu0 %vm569_vm1, %v5843_v32 }
0x1e1d   : > { %v5698_v11 = vmul.f32 0.044715, %v5694_v60  ;;  %v5692_v61 = vmul.f32 %v5682_v16, %v5682_v16  ;;  %v9157_v60 = vld [vmem:[%s12352_s10 + $0xa8] sm:$0xff] }
0x1e1e   : > { %v5703_v27 = vadd.f32 %v5699_v43, %v5677_v22  ;;  %v5697_v44 = vmul.f32 %v5693_v63, %v5687_v46  ;;  %v9158_v63 = vld [vmem:[%s12352_s10 + $0xb8] sm:$0xff] }
0x1e1f   : > { %v5702_v5 = vadd.f32 %v5698_v11, %v5672_v57  ;;  %v5696_v12 = vmul.f32 %v5692_v61, %v5682_v16  ;;  %v9159_v61 = vld [vmem:[%s12352_s10 + $0xc8] sm:$0xff] }
0x1e20   : > { %v5707_v48 = vmul.f32 0.7978846, %v5703_v27  ;;  %v5701_v18 = vmul.f32 0.044715, %v5697_v44  ;;  %v9160_v27 = vld [vmem:[%s12352_s10 + $0xd8] sm:$0xff] }
0x1e21   : > { %v5706_v28 = vmul.f32 0.7978846, %v5702_v5  ;;  %v5700_v45 = vmul.f32 0.044715, %v5696_v12 }
0x1e22   : > { %11784 = vtanh.f32 %v5707_v48  ;;  %v5705_v2 = vadd.f32 %v5701_v18, %v5687_v46 }
0x1e23   : > { %11786 = vtanh.f32 %v5706_v28  ;;  %v5704_v23 = vadd.f32 %v5700_v45, %v5682_v16  ;;  %v9161_v28 = vld [vmem:[%s12352_s10 + $0xe8] sm:$0xff]  ;;  %v9162_v45 = vld [vmem:[%s12352_s10 + $0xf8] sm:$0xff] }
0x1e24   : > { %v5709_v47 = vmul.f32 0.7978846, %v5705_v2 }
0x1e25   : > { %v5708_v24 = vmul.f32 0.7978846, %v5704_v23 }
0x1e26   : > { %11788 = vtanh.f32 %v5709_v47 }
0x1e27   : > { %11790 = vtanh.f32 %v5708_v24 }
0x1e2c   : > { %v11785_v14 = vpop.eup %11784 }
0x1e2d   : > { %v11787_v15 = vpop.eup %11786  ;;  %v5715_v29 = vadd.f32 1.0, %v11785_v14  ;;  %v9163_v14 = vld [vmem:[%s12352_s10 + $0x108] sm:$0xff] }
0x1e2e   : > { %v5714_v26 = vadd.f32 1.0, %v11787_v15 }
0x1e2f   : > { %v5719_v34 = vmul.f32 0.5, %v5715_v29  ;;  %v5997_v29 = vld [vmem:[%s14277_s3 + $0x8] sm:$0xff] }
0x1e30   : > { %v11789_v53 = vpop.eup %11788  ;;  %v5718_v9 = vmul.f32 0.5, %v5714_v26 }
0x1e31   : > { %v11791_v4 = vpop.eup %11790  ;;  %v5723_v13 = vmul.f32 %v5719_v34, %v5677_v22  ;;  %v5717_v55 = vadd.f32 1.0, %v11789_v53  ;;  %v5728_v22 = vld [vmem:[#allocation5 + $0xd0] sm:$0xff] }
0x1e32   : > { %v5722_v62 = vmul.f32 %v5718_v9, %v5672_v57  ;;  %v5716_v49 = vadd.f32 1.0, %v11791_v4  ;;  %v11934_v57 = vld [vmem:[%s12352_s10 + $0x118] sm:$0xff] }
0x1e33   : > { %v5721_v52 = vmul.f32 0.5, %v5717_v55  ;;  %v9164_v59 = vadd.f32 -1.0, %v11934_v57 }
0x1e34   : > { %v11110_v50 = vpack.c.bf16 %v5723_v13, %v5722_v62  ;;  %v5720_v33 = vmul.f32 0.5, %v5716_v49 }
0x1e35   : > { %v5725_v8 = vmul.f32 %v5721_v52, %v5687_v46  ;;  %v4665_v0 = vrot.slane %v9164_v59, %v14411_v31  ;;  %v9155_v46 = vld [vmem:[%s12352_s10 + $0x88] sm:$0xff] }
0x1e36   : > { %11111 = vmatprep.subr.bf16.mxu1 %v11110_v50  ;;  %v5724_v21 = vmul.f32 %v5720_v33, %v5682_v16  ;;  %v6000_v33 = vld [vmem:[%s14277_s3 + $0x20] sm:$0xff] }
0x1e37   : > { %11113 = vmatpush3.bf16.msra.mxu1 %v11110_v50  ;;  %v4666_v16 = vmul.f32 %v9155_v46, %v4665_v0  ;;  %v4667_v43 = vmul.f32 %v9156_v30, %v4665_v0  ;;  %v4668_v11 = vmul.f32 %v9157_v60, %v4665_v0  ;;  %v4669_v44 = vmul.f32 %v9158_v63, %v4665_v0  ;;  %v5999_v50 = vld [vmem:[%s14277_s3 + $0x18] sm:$0xff] }
0x1e38   : > { %v11114_v19 = vpack.c.bf16 %v5725_v8, %v5724_v21  ;;  %v4670_v12 = vmul.f32 %v9159_v61, %v4665_v0  ;;  %v4671_v48 = vmul.f32 %v9160_v27, %v4665_v0  ;;  %v4672_v23 = vmul.f32 %v9161_v28, %v4665_v0  ;;  %v6001_v8 = vld [vmem:[%s14277_s3 + $0x28] sm:$0xff]  ;;  %v6002_v21 = vld [vmem:[%s14277_s3 + $0x30] sm:$0xff] }
0x1e39   : > { %v11126_v5 = vpack.c.bf16 %v4667_v43, %v4666_v16  ;;  %v11130_v18 = vpack.c.bf16 %v4669_v44, %v4668_v11  ;;  %v4673_v47 = vmul.f32 %v9162_v45, %v4665_v0  ;;  %v4674_v15 = vmul.f32 %v9163_v14, %v4665_v0 }
0x1e3a   : > { %11115 = vmatprep.subr.bf16.mxu1 %v11114_v19  ;;  %v11134_v2 = vpack.c.bf16 %v4671_v48, %v4670_v12 }
0x1e3b   : > { %11117 = vmatpush3.bf16.msra.mxu1 %v11114_v19  ;;  %v11138_v24 = vpack.c.bf16 %v4673_v47, %v4672_v23  ;;  %v6003_v19 = vld [vmem:[%s14277_s3 + $0x38] sm:$0xff] }
0x1e3c   : > { %11127 = vmatprep.subr.bf16.mxu1 %v11126_v5 }
0x1e3e   : > { %10413 = vmatmul.mubr.msk.f32.vlgmr.msra.gmra.mrb[84].mxu1 %vm569_vm1, %v5727_v35  ;;  %v6554_v35 = vld [vmem:[#allocation5 + $0x100] sm:$0xff] }
0x1e3f   : > { %10415 = vmatprep.mubr.msk.f32.mxu1 %vm569_vm1, %v5728_v22  ;;  %11129 = vmatpush3.bf16.msra.mxu1 %v11126_v5 }
0x1e40   : > { %11131 = vmatprep.subr.bf16.mxu1 %v11130_v18 }
0x1e42   : > { %10416 = vmatmul.mubr.msk.f32.gmra.mrb[86].mxu1 %vm569_vm1, %v5729_v40 }
0x1e43   : > { %10450 = vmatprep.mubr.msk.f32.mxu1 %vm1774_vm2, %v5996_v54  ;;  %11133 = vmatpush3.bf16.msra.mxu1 %v11130_v18 }
0x1e44   : > { %11135 = vmatprep.subr.bf16.mxu1 %v11134_v2 }
0x1e47   : > { %11137 = vmatpush3.bf16.msra.mxu1 %v11134_v2  ;;  %v14412_v2 = vld [vmem:[#allocation31_spill] sm:$0xff] }
0x1e48   : > { %11139 = vmatprep.subr.bf16.mxu1 %v11138_v24 }
0x1e4b   : > { %11141 = vmatpush3.bf16.msra.mxu1 %v11138_v24 }
0x1e4c   : > { %10448 = vmatprep.subr.mxu1 %v4674_v15 }
0x1e4f   : > { %10449 = vmatpush3.msra.mxu1 %v4674_v15 }
0x1e50   : > { %10451 = vmatmul.mubr.msk.f32.vlgmr.msra.gmra.mrb[88].mxu1 %vm1774_vm2, %v5997_v29  ;;  %v14413_v29 = vld [vmem:[#allocation32_spill] sm:$0xff] }
0x1f11   : > { %v10414_v26 = vpop.f32.mrb[84].mxu1 }
0x1f12   : > { %v5830_v34 = vadd.f32 %v10414_v26, %v13503_v51  ;;  %v5824_v53 = vpop.f32.mrb[85].mxu1  ;;  %v5844_v51 = vld [vmem:[#allocation5 + $0xe8] sm:$0xff] }
0x1f13   : > { %v5825_v9 = vadd.f32 %v5824_v53, %v13358_v10  ;;  %v5845_v10 = vld [vmem:[#allocation5 + $0xf0] sm:$0xff] }
0x1f15   : > { %v13846_v4 = vpack.c.bf16 %v5830_v34, %v5825_v9  ;;  %v10417_v13 = vpop.f32.mrb[86].mxu1  ;;  %v14414_v9 = vld [vmem:[#allocation15_spill] sm:$0xff] }
0x1f16   : > { %v5840_v55 = vadd.f32 %v10417_v13, %v13366_v7  ;;  %v5834_v62 = vpop.f32.mrb[87].mxu1  ;;  %v5846_v7 = vld [vmem:[#allocation5 + $0xf8] sm:$0xff] }
0x1f17   : > { %v5835_v49 = vadd.f32 %v5834_v62, %v13363_v17  ;;  %11119 = vmatprep.subr.bf16.mxu0 %v13846_v4  ;;  %v5998_v17 = vld [vmem:[%s14277_s3 + $0x10] sm:$0xff] }
0x1f18   : > { %11121 = vmatpush3.bf16.msra.mxu0 %v13846_v4  ;;  %10453 = vmatprep.mubr.msk.f32.mxu1 %vm1774_vm2, %v5998_v17 }
0x1f19   : > { %v13852_v52 = vpack.c.bf16 %v5840_v55, %v5835_v49  ;;  %10454 = vmatmul.mubr.msk.f32.gmra.mrb[90].mxu1 %vm1774_vm2, %v5999_v50 }
0x1f1a   : > { %10456 = vmatprep.mubr.msk.f32.mxu1 %vm1774_vm2, %v6000_v33 }
0x1f1b   : > { %11123 = vmatprep.subr.bf16.mxu0 %v13852_v52 }
0x1f1c   : > { %11125 = vmatpush3.bf16.msra.mxu0 %v13852_v52 }
0x1f1d   : > { %10457 = vmatmul.mubr.msk.f32.gmra.mrb[92].mxu1 %vm1774_vm2, %v6001_v8 }
0x1f1e   : > { %10459 = vmatprep.mubr.msk.f32.mxu1 %vm1774_vm2, %v6002_v21 }
0x1f1f   : > { %10427 = vmatmul.mubr.msk.f32.vlgmr.msra.gmra.mrb[68].mxu0 %vm569_vm1, %v5844_v51 }
0x1f20   : > { %10429 = vmatprep.mubr.msk.f32.mxu0 %vm569_vm1, %v5845_v10 }
0x1f21   : > { %10460 = vmatmul.mubr.msk.f32.gmra.mrb[94].mxu1 %vm1774_vm2, %v6003_v19 }
0x1f22   : > { %10514 = vmatprep.mubr.msk.f32.mxu1 %vm569_vm1, %v6554_v35 }
0x1f23   : > { %10430 = vmatmul.mubr.msk.f32.gmra.mrb[70].mxu0 %vm569_vm1, %v5846_v7  ;;  %v10452_v22 = vpop.f32.mrb[88].mxu1 }
0x1f24   : > { %v6142_v40 = vpop.f32.mrb[89].mxu1  ;;  %v6148_v57 = vadd.f32 %v10452_v22, %v13400_v25 }
0x1f25   : > { %v6143_v59 = vadd.f32 %v6142_v40, %v13514_v56 }
0x1f26   : > { %v6182_v32 = vmul.f32 %v6148_v57, %v6148_v57 }
0x1f27   : > { %v6181_v31 = vmul.f32 %v6143_v59, %v6143_v59 }
0x1f28   : > { %v6190_v0 = vmul.f32 %v6182_v32, %v6148_v57 }
0x1f29   : > { %v6189_v46 = vmul.f32 %v6181_v31, %v6143_v59 }
0x1f2a   : > { %v6198_v30 = vmul.f32 0.044715, %v6190_v0 }
0x1f2b   : > { %v6197_v60 = vmul.f32 0.044715, %v6189_v46 }
0x1f2c   : > { %v6206_v16 = vadd.f32 %v6198_v30, %v6148_v57 }
0x1f2d   : > { %v6205_v43 = vadd.f32 %v6197_v60, %v6143_v59 }
0x1f2e   : > { %v6214_v63 = vmul.f32 0.7978846, %v6206_v16 }
0x1f2f   : > { %v6213_v11 = vmul.f32 0.7978846, %v6205_v43 }
0x1f30   : > { %11792 = vtanh.f32 %v6214_v63 }
0x1f31   : > { %11794 = vtanh.f32 %v6213_v11 }
0x1f3a   : > { %v11793_v61 = vpop.eup %11792 }
0x1f3b   : > { %v11795_v27 = vpop.eup %11794  ;;  %v6230_v5 = vadd.f32 1.0, %v11793_v61 }
0x1f3c   : > { %v6229_v44 = vadd.f32 1.0, %v11795_v27 }
0x1f3d   : > { %v6238_v25 = vmul.f32 0.5, %v6230_v5 }
0x1f3e   : > { %v6237_v12 = vmul.f32 0.5, %v6229_v44 }
0x1f3f   : > { %v6246_v56 = vmul.f32 %v6238_v25, %v6148_v57 }
0x1f40   : > { %v6245_v48 = vmul.f32 %v6237_v12, %v6143_v59 }
0x1f42   : > { %v11142_v54 = vpack.c.bf16 %v6246_v56, %v6245_v48  ;;  %v6555_v48 = vld [vmem:[#allocation5 + $0x108] sm:$0xff]  ;;  %v6556_v56 = vld [vmem:[#allocation5 + $0x110] sm:$0xff] }
0x1f44   : > { %11143 = vmatprep.subr.bf16.mxu0 %v11142_v54 }
0x1f45   : > { %11145 = vmatpush3.bf16.msra.mxu0 %v11142_v54  ;;  %v6557_v54 = vld [vmem:[#allocation5 + $0x118] sm:$0xff] }
0x1ff2   : > { %v10428_v18 = vpop.f32.mrb[68].mxu0 }
0x1ff3   : > { %v5947_v28 = vadd.f32 %v10428_v18, %v13370_v41  ;;  %v5941_v45 = vpop.f32.mrb[69].mxu0  ;;  %v10455_v18 = vpop.f32.mrb[90].mxu1 }
0x1ff4   : > { %v5942_v23 = vadd.f32 %v5941_v45, %v14412_v2  ;;  %v6152_v2 = vpop.f32.mrb[91].mxu1 }
0x1ff5   : > { %v5961_v47 = vmul.f32 %v5947_v28, %v5947_v28 }
0x1ff6   : > { %v5960_v24 = vmul.f32 %v5942_v23, %v5942_v23  ;;  %v10431_v14 = vpop.f32.mrb[70].mxu0 }
0x1ff7   : > { %v5965_v15 = vmul.f32 %v5961_v47, %v5947_v28  ;;  %v5957_v26 = vadd.f32 %v10431_v14, %v14413_v29  ;;  %v5951_v34 = vpop.f32.mrb[71].mxu0 }
0x1ff8   : > { %v5964_v53 = vmul.f32 %v5960_v24, %v5942_v23  ;;  %v5952_v13 = vadd.f32 %v5951_v34, %v14414_v9 }
0x1ff9   : > { %v5969_v55 = vmul.f32 0.044715, %v5965_v15  ;;  %v5963_v62 = vmul.f32 %v5957_v26, %v5957_v26  ;;  %v10458_v15 = vpop.f32.mrb[92].mxu1 }
0x1ffa   : > { %v5968_v49 = vmul.f32 0.044715, %v5964_v53  ;;  %v5962_v51 = vmul.f32 %v5952_v13, %v5952_v13  ;;  %v6162_v53 = vpop.f32.mrb[93].mxu1 }
0x1ffb   : > { %v5973_v10 = vadd.f32 %v5969_v55, %v5947_v28  ;;  %v5967_v7 = vmul.f32 %v5963_v62, %v5957_v26 }
0x1ffc   : > { %v5972_v41 = vadd.f32 %v5968_v49, %v5942_v23  ;;  %v5966_v17 = vmul.f32 %v5962_v51, %v5952_v13 }
0x1ffd   : > { %v5977_v50 = vmul.f32 0.7978846, %v5973_v10  ;;  %v5971_v33 = vmul.f32 0.044715, %v5967_v7  ;;  %v10461_v7 = vpop.f32.mrb[94].mxu1 }
0x1ffe   : > { %v5976_v8 = vmul.f32 0.7978846, %v5972_v41  ;;  %v5970_v21 = vmul.f32 0.044715, %v5966_v17 }
0x1fff   : > { %11796 = vtanh.f32 %v5977_v50  ;;  %v5975_v19 = vadd.f32 %v5971_v33, %v5957_v26  ;;  %v14419_v50 = vld [vmem:[#allocation37_spill] sm:$0xff] }
0x2000   : > { %11798 = vtanh.f32 %v5976_v8  ;;  %v5974_v35 = vadd.f32 %v5970_v21, %v5952_v13  ;;  %v13907_v33 = vadd.f32 %v10461_v7, %v14419_v50  ;;  %v6172_v8 = vpop.f32.mrb[95].mxu1 }
0x2001   : > { %v5979_v22 = vmul.f32 0.7978846, %v5975_v19 }
0x2002   : > { %v5978_v40 = vmul.f32 0.7978846, %v5974_v35  ;;  %v14420_v35 = vld [vmem:[#allocation21_spill] sm:$0xff] }
0x2003   : > { %11800 = vtanh.f32 %v5979_v22  ;;  %v13911_v22 = vadd.f32 %v6172_v8, %v14420_v35 }
0x2004   : > { %11802 = vtanh.f32 %v5978_v40 }
0x2009   : > { %v11797_v57 = vpop.eup %11796 }
0x200a   : > { %v11799_v59 = vpop.eup %11798  ;;  %v5985_v32 = vadd.f32 1.0, %v11797_v57 }
0x200b   : > { %v5984_v31 = vadd.f32 1.0, %v11799_v59  ;;  %v6188_v59 = vmul.f32 %v13907_v33, %v13907_v33 }
0x200c   : > { %v5989_v0 = vmul.f32 0.5, %v5985_v32 }
0x200d   : > { %v11801_v46 = vpop.eup %11800  ;;  %v5988_v30 = vmul.f32 0.5, %v5984_v31 }
0x200e   : > { %v11803_v60 = vpop.eup %11802  ;;  %v5993_v16 = vmul.f32 %v5989_v0, %v5947_v28  ;;  %v5987_v43 = vadd.f32 1.0, %v11801_v46  ;;  %v14415_v28 = vld [vmem:[#allocation34_spill] sm:$0xff]  ;;  %v6187_v0 = vmul.f32 %v13911_v22, %v13911_v22 }
0x200f   : > { %v5992_v63 = vmul.f32 %v5988_v30, %v5942_v23  ;;  %v5986_v11 = vadd.f32 1.0, %v11803_v60  ;;  %v6158_v45 = vadd.f32 %v10455_v18, %v14415_v28  ;;  %v14416_v23 = vld [vmem:[#allocation19_spill] sm:$0xff]  ;;  %v6196_v30 = vmul.f32 %v6188_v59, %v13907_v33 }
0x2010   : > { %v5991_v61 = vmul.f32 0.5, %v5987_v43  ;;  %v6153_v47 = vadd.f32 %v6152_v2, %v14416_v23  ;;  %v6343_v28 = vmul.f32 %v13563_v38, %v13563_v38  ;;  %v14426_v59 = vld [vmem:[#allocation23_spill] sm:$0xff] }
0x2011   : > { %v11174_v27 = vpack.c.bf16 %v5993_v16, %v5992_v63  ;;  %v5990_v44 = vmul.f32 0.5, %v5986_v11  ;;  %v6184_v24 = vmul.f32 %v6158_v45, %v6158_v45  ;;  %v6195_v16 = vmul.f32 %v6187_v0, %v13911_v22 }
0x2012   : > { %v5995_v5 = vmul.f32 %v5991_v61, %v5957_v26  ;;  %v6183_v14 = vmul.f32 %v6153_v47, %v6153_v47  ;;  %v14417_v26 = vld [vmem:[#allocation35_spill] sm:$0xff]  ;;  %v6204_v63 = vmul.f32 0.044715, %v6196_v30 }
0x2013   : > { %11175 = vmatprep.subr.bf16.mxu1 %v11174_v27  ;;  %v5994_v12 = vmul.f32 %v5990_v44, %v5952_v13  ;;  %v6192_v29 = vmul.f32 %v6184_v24, %v6158_v45  ;;  %v13896_v34 = vadd.f32 %v10458_v15, %v14417_v26  ;;  %v14418_v13 = vld [vmem:[#allocation20_spill] sm:$0xff]  ;;  %v6203_v61 = vmul.f32 0.044715, %v6195_v16 }
0x2014   : > { %11177 = vmatpush3.bf16.msra.mxu1 %v11174_v27  ;;  %v6191_v9 = vmul.f32 %v6183_v14, %v6153_v47  ;;  %v13899_v55 = vadd.f32 %v6162_v53, %v14418_v13  ;;  %v6212_v27 = vadd.f32 %v6204_v63, %v13907_v33  ;;  %v14428_v63 = vld [vmem:[#allocation26_spill] sm:$0xff] }
0x2015   : > { %v11178_v25 = vpack.c.bf16 %v5995_v5, %v5994_v12  ;;  %v6200_v62 = vmul.f32 0.044715, %v6192_v29  ;;  %v6186_v49 = vmul.f32 %v13896_v34, %v13896_v34  ;;  %v6211_v44 = vadd.f32 %v6203_v61, %v13911_v22  ;;  %v14422_v29 = vld [vmem:[#allocation22_spill] sm:$0xff] }
0x2016   : > { %v6199_v51 = vmul.f32 0.044715, %v6191_v9  ;;  %v6185_v10 = vmul.f32 %v13899_v55, %v13899_v55  ;;  %v6220_v5 = vmul.f32 0.7978846, %v6212_v27  ;;  %v6337_v26 = vmul.f32 %v14422_v29, %v14422_v29 }
0x2017   : > { %11179 = vmatprep.subr.bf16.mxu1 %v11178_v25  ;;  %v6208_v41 = vadd.f32 %v6200_v62, %v6158_v45  ;;  %v6194_v17 = vmul.f32 %v6186_v49, %v13896_v34  ;;  %v6219_v12 = vmul.f32 0.7978846, %v6211_v44  ;;  %v6351_v62 = vmul.f32 %v6343_v28, %v13563_v38 }
0x2018   : > { %11181 = vmatpush3.bf16.msra.mxu1 %v11178_v25  ;;  %v6207_v21 = vadd.f32 %v6199_v51, %v6153_v47  ;;  %v6193_v19 = vmul.f32 %v6185_v10, %v13899_v55  ;;  %v14423_v10 = vld [vmem:[#allocation24_spill] sm:$0xff] }
0x2019   : > { %v6216_v40 = vmul.f32 0.7978846, %v6208_v41  ;;  %v6202_v57 = vmul.f32 0.044715, %v6194_v17  ;;  %v6340_v7 = vmul.f32 %v14423_v10, %v14423_v10  ;;  %v14424_v41 = vld [vmem:[#allocation25_spill] sm:$0xff] }
0x201a   : > { %v6215_v32 = vmul.f32 0.7978846, %v6207_v21  ;;  %v6201_v31 = vmul.f32 0.044715, %v6193_v19  ;;  %v6341_v17 = vmul.f32 %v14424_v41, %v14424_v41 }
0x201b   : > { %10515 = vmatmul.mubr.msk.f32.vlgmr.msra.gmra.mrb[96].mxu1 %vm569_vm1, %v6555_v48  ;;  %11804 = vtanh.f32 %v6216_v40  ;;  %v6210_v46 = vadd.f32 %v6202_v57, %v13896_v34  ;;  %v6345_v40 = vmul.f32 %v6337_v26, %v14422_v29 }
0x201c   : > { %10517 = vmatprep.mubr.msk.f32.mxu1 %vm569_vm1, %v6556_v56  ;;  %11806 = vtanh.f32 %v6215_v32  ;;  %v6209_v60 = vadd.f32 %v6201_v31, %v13899_v55  ;;  %v14421_v56 = vld [vmem:[#allocation27_spill] sm:$0xff]  ;;  %v6359_v31 = vmul.f32 0.044715, %v6351_v62  ;;  %v6349_v16 = vmul.f32 %v6341_v17, %v14424_v41 }
0x201d   : > { %v6218_v43 = vmul.f32 0.7978846, %v6210_v46 }
0x201e   : > { %v6217_v11 = vmul.f32 0.7978846, %v6209_v60  ;;  %v6348_v60 = vmul.f32 %v6340_v7, %v14423_v10 }
0x201f   : > { %10518 = vmatmul.mubr.msk.f32.gmra.mrb[98].mxu1 %vm569_vm1, %v6557_v54  ;;  %11808 = vtanh.f32 %v6218_v43  ;;  %v6344_v54 = vmul.f32 %v14421_v56, %v14421_v56  ;;  %v14427_v43 = vld [vmem:[#allocation43_spill] sm:$0xff] }
0x2020   : > { %11810 = vtanh.f32 %v6217_v11  ;;  %v13946_v11 = vadd.f32 %v14428_v63, %v14427_v43 }
0x2021   : > { %11812 = vtanh.f32 %v6220_v5  ;;  %v6352_v53 = vmul.f32 %v6344_v54, %v14421_v56  ;;  %v6353_v5 = vmul.f32 0.044715, %v6345_v40  ;;  %v6356_v54 = vmul.f32 0.044715, %v6348_v60 }
0x2022   : > { %11814 = vtanh.f32 %v6219_v12  ;;  %v6367_v12 = vadd.f32 %v6359_v31, %v13563_v38  ;;  %v6409_v31 = vld [vmem:[%s14278_s4] sm:$0xff] }
0x2023   : > { %v6360_v57 = vmul.f32 0.044715, %v6352_v53  ;;  %10494 = vmatprep.mubr.f32.mxu0 %v6409_v31  ;;  %v6674_v31 = vld [vmem:[#allocation5 + $0x258] sm:$0xff] }
0x2024   : > { %v6375_v53 = vmul.f32 0.7978846, %v6367_v12 }
0x2025   : > { %v11805_v25 = vpop.eup %11804 }
0x2026   : > { %v11807_v48 = vpop.eup %11806  ;;  %v6232_v18 = vadd.f32 1.0, %v11805_v25 }
0x2027   : > { %v6231_v2 = vadd.f32 1.0, %v11807_v48 }
0x2028   : > { %v6240_v23 = vmul.f32 0.5, %v6232_v18  ;;  %v14429_v18 = vld [vmem:[#allocation42_spill] sm:$0xff] }
0x2029   : > { %v11809_v24 = vpop.eup %11808  ;;  %v6239_v14 = vmul.f32 0.5, %v6231_v2  ;;  %v6339_v28 = vmul.f32 %v14429_v18, %v14429_v18  ;;  %v6357_v2 = vmul.f32 0.044715, %v6349_v16 }
0x202a   : > { %v11811_v15 = vpop.eup %11810  ;;  %v6248_v9 = vmul.f32 %v6240_v23, %v6158_v45  ;;  %v6234_v13 = vadd.f32 1.0, %v11809_v24  ;;  %v14425_v45 = vld [vmem:[#allocation40_spill] sm:$0xff]  ;;  %v6342_v23 = vmul.f32 %v13946_v11, %v13946_v11 }
0x202b   : > { %v6247_v49 = vmul.f32 %v6239_v14, %v6153_v47  ;;  %v6233_v51 = vadd.f32 1.0, %v11811_v15  ;;  %v11813_v8 = vpop.eup %11812  ;;  %v13938_v32 = vadd.f32 %v14426_v59, %v14425_v45  ;;  %v6361_v15 = vadd.f32 %v6353_v5, %v14422_v29 }
0x202c   : > { %v6242_v50 = vmul.f32 0.5, %v6234_v13  ;;  %v11815_v35 = vpop.eup %11814  ;;  %v6236_v30 = vadd.f32 1.0, %v11813_v8  ;;  %v6350_v13 = vmul.f32 %v6342_v23, %v13946_v11 }
0x202d   : > { %v11146_v21 = vpack.c.bf16 %v6248_v9, %v6247_v49  ;;  %v6241_v19 = vmul.f32 0.5, %v6233_v51  ;;  %v6235_v46 = vadd.f32 1.0, %v11815_v35  ;;  %v6365_v9 = vadd.f32 %v6357_v2, %v14424_v41 }
0x202e   : > { %v6250_v47 = vmul.f32 %v6242_v50, %v13896_v34  ;;  %v6244_v44 = vmul.f32 0.5, %v6236_v30  ;;  %v6368_v34 = vadd.f32 %v6360_v57, %v14421_v56  ;;  %v6369_v62 = vmul.f32 0.7978846, %v6361_v15 }
0x202f   : > { %11147 = vmatprep.subr.bf16.mxu0 %v11146_v21  ;;  %v6249_v0 = vmul.f32 %v6241_v19, %v13899_v55  ;;  %v6243_v27 = vmul.f32 0.5, %v6235_v46  ;;  %v6338_v55 = vmul.f32 %v13938_v32, %v13938_v32  ;;  %v6373_v17 = vmul.f32 0.7978846, %v6365_v9  ;;  %v13966_v19 = vld [vmem:[#allocation5 + $0x240] sm:$0xff] }
0x2030   : > { %11149 = vmatpush3.bf16.msra.mxu0 %v11146_v21  ;;  %v6252_v48 = vmul.f32 %v6244_v44, %v13907_v33  ;;  %v6376_v14 = vmul.f32 0.7978846, %v6368_v34  ;;  %v6347_v33 = vmul.f32 %v6339_v28, %v14429_v18  ;;  %v6358_v50 = vmul.f32 0.044715, %v6350_v13  ;;  %10528 = vmatprep.mubr.msk.f32.mxu1 %vm569_vm1, %v13966_v19 }
0x2031   : > { %v11150_v61 = vpack.c.bf16 %v6250_v47, %v6249_v0  ;;  %v6251_v25 = vmul.f32 %v6243_v27, %v13911_v22  ;;  %v6346_v26 = vmul.f32 %v6338_v55, %v13938_v32  ;;  %v6364_v22 = vadd.f32 %v6356_v54, %v14423_v10 }
0x2032   : > { %11816 = vtanh.f32 %v6376_v14  ;;  %v6355_v7 = vmul.f32 0.044715, %v6347_v33  ;;  %v6366_v35 = vadd.f32 %v6358_v50, %v13946_v11 }
0x2033   : > { %11151 = vmatprep.subr.bf16.mxu0 %v11150_v61  ;;  %v11154_v24 = vpack.c.bf16 %v6252_v48, %v6251_v25  ;;  %v6354_v49 = vmul.f32 0.044715, %v6346_v26  ;;  %11818 = vtanh.f32 %v6375_v53  ;;  %v6372_v51 = vmul.f32 0.7978846, %v6364_v22 }
0x2034   : > { %11153 = vmatpush3.bf16.msra.mxu0 %v11150_v61  ;;  %11820 = vtanh.f32 %v6369_v62  ;;  %v6363_v21 = vadd.f32 %v6355_v7, %v14429_v18  ;;  %v6374_v47 = vmul.f32 0.7978846, %v6366_v35 }
0x2035   : > { %11155 = vmatprep.subr.bf16.mxu0 %v11154_v24  ;;  %v6362_v8 = vadd.f32 %v6354_v49, %v13938_v32  ;;  %11822 = vtanh.f32 %v6372_v51 }
0x2036   : > { %11824 = vtanh.f32 %v6373_v17  ;;  %v6371_v45 = vmul.f32 0.7978846, %v6363_v21 }
0x2037   : > { %v6370_v40 = vmul.f32 0.7978846, %v6362_v8  ;;  %v14432_v8 = vld [vmem:[#allocation18_spill] sm:$0xff] }
0x2038   : > { %11157 = vmatpush3.bf16.msra.mxu0 %v11154_v24 }
0x2039   : > { %11826 = vtanh.f32 %v6370_v40  ;;  %v14433_v40 = vld [vmem:[#allocation17_spill] sm:$0xff] }
0x203a   : > { %11828 = vtanh.f32 %v6371_v45 }
0x203b   : > { %11830 = vtanh.f32 %v6374_v47  ;;  %v6673_v47 = vld [vmem:[#allocation5 + $0x250] sm:$0xff] }
0x203c   : > { %v11817_v57 = vpop.eup %11816 }
0x203d   : > { %v11819_v59 = vpop.eup %11818  ;;  %v6392_v46 = vadd.f32 1.0, %v11817_v57 }
0x203e   : > { %v6391_v0 = vadd.f32 1.0, %v11819_v59  ;;  %v11821_v30 = vpop.eup %11820  ;;  %v6672_v59 = vld [vmem:[#allocation5 + $0x248] sm:$0xff] }
0x203f   : > { %v11823_v60 = vpop.eup %11822  ;;  %v6400_v43 = vmul.f32 0.5, %v6392_v46  ;;  %v6385_v61 = vadd.f32 1.0, %v11821_v30  ;;  %v6412_v46 = vld [vmem:[%s14278_s4 + $0x18] sm:$0xff]  ;;  %v6413_v30 = vld [vmem:[%s14278_s4 + $0x20] sm:$0xff] }
0x2040   : > { %v6399_v16 = vmul.f32 0.5, %v6391_v0  ;;  %v11825_v63 = vpop.eup %11824  ;;  %v6388_v5 = vadd.f32 1.0, %v11823_v60  ;;  %v6411_v0 = vld [vmem:[%s14278_s4 + $0x10] sm:$0xff]  ;;  %v6414_v60 = vld [vmem:[%s14278_s4 + $0x28] sm:$0xff] }
0x2041   : > { %v6408_v44 = vmul.f32 %v6400_v43, %v14421_v56  ;;  %v6389_v34 = vadd.f32 1.0, %v11825_v63  ;;  %v6393_v12 = vmul.f32 0.5, %v6385_v61  ;;  %v6416_v43 = vld [vmem:[%s14278_s4 + $0x38] sm:$0xff] }
0x2042   : > { %v6407_v27 = vmul.f32 %v6399_v16, %v13563_v38  ;;  %v6396_v48 = vmul.f32 0.5, %v6388_v5  ;;  %v6415_v16 = vld [vmem:[%s14278_s4 + $0x30] sm:$0xff] }
0x2043   : > { %v11827_v25 = vpop.eup %11826  ;;  %v6397_v2 = vmul.f32 0.5, %v6389_v34  ;;  %v6401_v15 = vmul.f32 %v6393_v12, %v14422_v29  ;;  %v6410_v29 = vld [vmem:[%s14278_s4 + $0x8] sm:$0xff] }
0x2044   : > { %v11170_v55 = vpack.c.bf16 %v6408_v44, %v6407_v27  ;;  %v11829_v54 = vpop.eup %11828  ;;  %v6386_v28 = vadd.f32 1.0, %v11827_v25  ;;  %v6404_v38 = vmul.f32 %v6396_v48, %v14423_v10 }
0x2045   : > { %v11831_v23 = vpop.eup %11830  ;;  %v6387_v24 = vadd.f32 1.0, %v11829_v54  ;;  %v6405_v33 = vmul.f32 %v6397_v2, %v14424_v41  ;;  %v14430_v41 = vld [vmem:[#allocation33_spill] sm:$0xff] }
0x2046   : > { %v6394_v14 = vmul.f32 0.5, %v6386_v28  ;;  %v6390_v26 = vadd.f32 1.0, %v11831_v23 }
0x2047   : > { %v6395_v53 = vmul.f32 0.5, %v6387_v24 }
0x2048   : > { %v6402_v56 = vmul.f32 %v6394_v14, %v13938_v32  ;;  %v6398_v22 = vmul.f32 0.5, %v6390_v26 }
0x2049   : > { %v6403_v9 = vmul.f32 %v6395_v53, %v14429_v18 }
0x204a   : > { %v11158_v13 = vpack.c.bf16 %v6402_v56, %v6401_v15  ;;  %v6406_v62 = vmul.f32 %v6398_v22, %v13946_v11  ;;  %v14431_v11 = vld [vmem:[#allocation16_spill] sm:$0xff]  ;;  %v6921_v22 = vld [vmem:[%s14279_s5] sm:$0xff] }
0x204b   : > { %v11162_v49 = vpack.c.bf16 %v6404_v38, %v6403_v9 }
0x204c   : > { %11159 = vmatprep.subr.bf16.mxu0 %v11158_v13  ;;  %v11166_v51 = vpack.c.bf16 %v6406_v62, %v6405_v33 }
0x204d   : > { %11161 = vmatpush3.bf16.msra.mxu0 %v11158_v13 }
0x204e   : > { %11163 = vmatprep.subr.bf16.mxu0 %v11162_v49 }
0x2051   : > { %11165 = vmatpush3.bf16.msra.mxu0 %v11162_v49 }
0x2052   : > { %11167 = vmatprep.subr.bf16.mxu0 %v11166_v51 }
0x2055   : > { %11169 = vmatpush3.bf16.msra.mxu0 %v11166_v51 }
0x2056   : > { %11171 = vmatprep.subr.bf16.mxu0 %v11170_v55 }
0x2059   : > { %11173 = vmatpush3.bf16.msra.mxu0 %v11170_v55 }
0x205c   : > { %10495 = vmatmul.mubr.f32.vlgmr.msra.gmra.mrb[72].mxu0 %v6410_v29 }
0x205d   : > { %10497 = vmatprep.mubr.f32.mxu0 %v6411_v0 }
0x2060   : > { %10498 = vmatmul.mubr.f32.gmra.mrb[74].mxu0 %v6412_v46 }
0x2061   : > { %10500 = vmatprep.mubr.f32.mxu0 %v6413_v30 }
0x2064   : > { %10501 = vmatmul.mubr.f32.gmra.mrb[76].mxu0 %v6414_v60 }
0x2065   : > { %10503 = vmatprep.mubr.f32.mxu0 %v6415_v16 }
0x2068   : > { %10504 = vmatmul.mubr.f32.gmra.mrb[78].mxu0 %v6416_v43  ;;  %v14438_v43 = vld [vmem:[#allocation38_spill] sm:$0xff] }
0x2069   : > { %10542 = vmatprep.mubr.msk.f32.mxu0 %vm569_vm1, %v13966_v19 }
0x20ee   : > { %v10516_v10 = vpop.f32.mrb[96].mxu1 }
0x20ef   : > { %v6658_v32 = vadd.f32 %v10516_v10, %v14430_v41  ;;  %v6652_v18 = vpop.f32.mrb[97].mxu1 }
0x20f0   : > { %v6653_v7 = vadd.f32 %v6652_v18, %v14431_v11 }
0x20f2   : > { %v11182_v17 = vpack.c.bf16 %v6658_v32, %v6653_v7  ;;  %v10519_v50 = vpop.f32.mrb[98].mxu1 }
0x20f3   : > { %v6668_v21 = vadd.f32 %v10519_v50, %v14432_v8  ;;  %v6662_v35 = vpop.f32.mrb[99].mxu1  ;;  %v14434_v50 = vld [vmem:[#allocation28_spill] sm:$0xff] }
0x20f4   : > { %v6663_v57 = vadd.f32 %v6662_v35, %v14433_v40  ;;  %11183 = vmatprep.subr.bf16.mxu1 %v11182_v17  ;;  %v14435_v40 = vld [vmem:[#allocation30_spill] sm:$0xff] }
0x20f5   : > { %11185 = vmatpush3.bf16.msra.mxu1 %v11182_v17 }
0x20f6   : > { %v11186_v45 = vpack.c.bf16 %v6668_v21, %v6663_v57 }
0x20f8   : > { %11187 = vmatprep.subr.bf16.mxu1 %v11186_v45 }
0x20f9   : > { %11189 = vmatpush3.bf16.msra.mxu1 %v11186_v45 }
0x20fc   : > { %10529 = vmatmul.mubr.msk.f32.vlgmr.msra.gmra.mrb[100].mxu1 %vm569_vm1, %v6672_v59 }
0x20fd   : > { %10531 = vmatprep.mubr.msk.f32.mxu1 %vm569_vm1, %v6673_v47 }
0x2100   : > { %10532 = vmatmul.mubr.msk.f32.gmra.mrb[102].mxu1 %vm569_vm1, %v6674_v31 }
0x2101   : > { %10564 = vmatprep.mubr.msk.f32.mxu1 %vm415_vm0, %v6921_v22  ;;  %v14441_v22 = vld [vmem:[#allocation45_spill] sm:$0xff] }
0x212f   : > { %v10496_v63 = vpop.f32.mrb[72].mxu0 }
0x2130   : > { %v6515_v61 = vpop.f32.mrb[73].mxu0 }
0x2131   : > { %v6516_v60 = vadd.f32 %v6515_v61, %v13664_v20  ;;  %v7038_v61 = vld [vmem:[#allocation5 + $0x120] sm:$0xff] }
0x2133   : > { %v10499_v19 = vpop.f32.mrb[74].mxu0 }
0x2134   : > { %v6525_v15 = vpop.f32.mrb[75].mxu0 }
0x2137   : > { %v14015_v26 = vpop.f32.mrb[76].mxu0 }
0x2138   : > { %v14017_v53 = vpop.f32.mrb[77].mxu0 }
0x213b   : > { %v14019_v38 = vpop.f32.mrb[78].mxu0 }
0x213c   : > { %v14021_v56 = vpop.f32.mrb[79].mxu0 }
0x21cf   : > { %v10530_v27 = vpop.f32.mrb[100].mxu1 }
0x21d0   : > { %v6773_v44 = vsub.f32 %v6658_v32, %v10530_v27  ;;  %v6753_v5 = vpop.f32.mrb[101].mxu1 }
0x21d1   : > { %v6772_v34 = vsub.f32 %v6653_v7, %v6753_v5 }
0x21d2   : > { %v6777_v55 = vmul.f32 %v6773_v44, %v6773_v44 }
0x21d3   : > { %v6776_v12 = vmul.f32 %v6772_v34, %v6772_v34  ;;  %v10533_v25 = vpop.f32.mrb[102].mxu1 }
0x21d4   : > { %v6775_v48 = vsub.f32 %v6668_v21, %v10533_v25  ;;  %v6763_v54 = vpop.f32.mrb[103].mxu1  ;;  %v6531_v25 = vadd.f32 %v10499_v19, %v13540_v6  ;;  %v6922_v6 = vld [vmem:[%s14279_s5 + $0x8] sm:$0xff] }
0x21d5   : > { %v6774_v28 = vsub.f32 %v6663_v57, %v6763_v54  ;;  %v11190_v2 = vpack.c.bf16 %v6777_v55, %v6776_v12  ;;  %v14440_v55 = vld [vmem:[#allocation39_spill] sm:$0xff]  ;;  %v6526_v54 = vadd.f32 %v6525_v15, %v13668_v39  ;;  %v6923_v39 = vld [vmem:[%s14279_s5 + $0x10] sm:$0xff] }
0x21d6   : > { %v6779_v23 = vmul.f32 %v6775_v48, %v6775_v48 }
0x21d7   : > { %v6778_v24 = vmul.f32 %v6774_v28, %v6774_v28  ;;  %11191 = vmatprep.subr.bf16.mxu0 %v11190_v2 }
0x21d8   : > { %11193 = vmatpush3.bf16.msra.mxu0 %v11190_v2 }
0x21d9   : > { %v11194_v14 = vpack.c.bf16 %v6779_v23, %v6778_v24 }
0x21db   : > { %11195 = vmatprep.subr.bf16.mxu0 %v11194_v14 }
0x21dc   : > { %11197 = vmatpush3.bf16.msra.mxu0 %v11194_v14 }
0x21df   : > { %10543 = vmatmul.mubr.msk.f32.vlgmr.msra.gmra.mrb[80].mxu0 %vm569_vm1, %v6672_v59  ;;  %v14436_v59 = vld [vmem:[#allocation29_spill] sm:$0xff] }
0x21e0   : > { %10545 = vmatprep.mubr.msk.f32.mxu0 %vm569_vm1, %v6673_v47 }
0x21e3   : > { %10546 = vmatmul.mubr.msk.f32.gmra.mrb[82].mxu0 %vm569_vm1, %v6674_v31  ;;  %v14437_v31 = vld [vmem:[#allocation36_spill] sm:$0xff] }
0x21e4   : > { %v6521_v0 = vadd.f32 %v10496_v63, %v14437_v31  ;;  %10578 = vmatprep.mubr.msk.f32.mxu0 %vm569_vm1, %v7038_v61 }
0x22b2   : > { %v10544_v33 = vpop.f32.mrb[80].mxu0 }
0x22b3   : > { %v6852_v9 = vadd.f32 1e-05, %v10544_v33  ;;  %v6846_v13 = vpop.f32.mrb[81].mxu0 }
0x22b4   : > { %v6847_v62 = vadd.f32 1e-05, %v6846_v13  ;;  %v14442_v13 = vld [vmem:[#allocation44_spill] sm:$0xff] }
0x22b5   : > { %11832 = vrsqrt.f32 %v6852_v9 }
0x22b6   : > { %11834 = vrsqrt.f32 %v6847_v62  ;;  %v10547_v49 = vpop.f32.mrb[82].mxu0 }
0x22b7   : > { %v6862_v51 = vadd.f32 1e-05, %v10547_v49  ;;  %v6856_v29 = vpop.f32.mrb[83].mxu0 }
0x22b8   : > { %v6857_v10 = vadd.f32 1e-05, %v6856_v29  ;;  %v7040_v29 = vld [vmem:[#allocation5 + $0x130] sm:$0xff] }
0x22b9   : > { %11836 = vrsqrt.f32 %v6862_v51  ;;  %v7039_v51 = vld [vmem:[#allocation5 + $0x128] sm:$0xff] }
0x22ba   : > { %11838 = vrsqrt.f32 %v6857_v10 }
0x22bf   : > { %v11833_v41 = vpop.eup %11832 }
0x22c0   : > { %v11835_v32 = vpop.eup %11834  ;;  %v6870_v18 = vmul.f32 %v11833_v41, %v6773_v44  ;;  %v14439_v44 = vld [vmem:[#allocation41_spill] sm:$0xff]  ;;  %v14443_v41 = vld [vmem:[#allocation46_spill] sm:$0xff] }
0x22c1   : > { %v6869_v11 = vmul.f32 %v11835_v32, %v6772_v34 }
0x22c2   : > { %v6890_v7 = vmul.f32 %v13656_v3, %v6870_v18 }
0x22c3   : > { %v11837_v17 = vpop.eup %11836  ;;  %v6889_v8 = vmul.f32 %v14434_v50, %v6869_v11  ;;  %v14444_v11 = vld [vmem:[#allocation60_spill] sm:$0xff] }
0x22c4   : > { %v11839_v21 = vpop.eup %11838  ;;  %v6872_v35 = vmul.f32 %v11837_v17, %v6775_v48  ;;  %v6910_v57 = vadd.f32 %v14435_v40, %v6890_v7 }
0x22c5   : > { %v6871_v45 = vmul.f32 %v11839_v21, %v6774_v28  ;;  %v6909_v47 = vadd.f32 %v14436_v59, %v6889_v8  ;;  %v14446_v59 = vld [vmem:[#allocation47_spill] sm:$0xff] }
0x22c6   : > { %v6914_v46 = vmax.f32 %v6910_v57, 0.0  ;;  %v6892_v30 = vmul.f32 %v13660_v42, %v6872_v35  ;;  %v14445_v35 = vld [vmem:[#allocation62_spill] sm:$0xff] }
0x22c7   : > { %v6913_v16 = vmax.f32 %v6909_v47, 0.0  ;;  %v6891_v3 = vmul.f32 %v14438_v43, %v6871_v45 }
0x22c8   : > { %v6918_v27 = vadd.f32 %v6914_v46, %v6521_v0  ;;  %v6912_v5 = vadd.f32 %v14439_v44, %v6892_v30 }
0x22c9   : > { %v6917_v34 = vadd.f32 %v6913_v16, %v6516_v60  ;;  %v6911_v12 = vadd.f32 %v14440_v55, %v6891_v3 }
0x22ca   : > { %v6916_v48 = vmax.f32 %v6912_v5, 0.0 }
0x22cb   : > { %v11198_v63 = vpack.c.bf16 %v6918_v27, %v6917_v34  ;;  %v6915_v28 = vmax.f32 %v6911_v12, 0.0 }
0x22cc   : > { %v6920_v2 = vadd.f32 %v6916_v48, %v6531_v25 }
0x22cd   : > { %11199 = vmatprep.subr.bf16.mxu1 %v11198_v63  ;;  %v6919_v42 = vadd.f32 %v6915_v28, %v6526_v54 }
0x22ce   : > { %11201 = vmatpush3.bf16.msra.mxu1 %v11198_v63 }
0x22cf   : > { %v11202_v20 = vpack.c.bf16 %v6920_v2, %v6919_v42 }
0x22d1   : > { %11203 = vmatprep.subr.bf16.mxu1 %v11202_v20 }
0x22d2   : > { %11205 = vmatpush3.bf16.msra.mxu1 %v11202_v20 }
0x22d3   : > { %11207 = vmatprep.subr.bf16.mxu1 %v13846_v4 }
0x22d6   : > { %11209 = vmatpush3.bf16.msra.mxu1 %v13846_v4  ;;  %v6924_v4 = vld [vmem:[%s14279_s5 + $0x18] sm:$0xff] }
0x22d7   : > { %11211 = vmatprep.subr.bf16.mxu1 %v13852_v52 }
0x22da   : > { %11213 = vmatpush3.bf16.msra.mxu1 %v13852_v52 }
0x22dd   : > { %10565 = vmatmul.mubr.msk.f32.vlgmr.msra.gmra.mrb[104].mxu1 %vm415_vm0, %v6922_v6 }
0x22de   : > { %10567 = vmatprep.mubr.msk.f32.mxu1 %vm415_vm0, %v6923_v39 }
0x22e1   : > { %10568 = vmatmul.mubr.msk.f32.gmra.mrb[106].mxu1 %vm415_vm0, %v6924_v4 }
0x23b0   : > { %v10566_v52 = vpop.f32.mrb[104].mxu1 }
0x23b1   : > { %v7025_v23 = vadd.f32 %v10566_v52, %v13672_v36  ;;  %v7019_v24 = vpop.f32.mrb[105].mxu1  ;;  %v7041_v36 = vld [vmem:[#allocation5 + $0x138] sm:$0xff] }
0x23b2   : > { %v7020_v14 = vadd.f32 %v7019_v24, %v13561_v37  ;;  %v7191_v37 = vld [vmem:[#allocation5 + $0x140] sm:$0xff] }
0x23b4   : > { %v11214_v19 = vpack.c.bf16 %v7025_v23, %v7020_v14  ;;  %v10569_v15 = vpop.f32.mrb[106].mxu1 }
0x23b5   : > { %v7035_v33 = vadd.f32 %v10569_v15, %v14441_v22  ;;  %v7029_v9 = vpop.f32.mrb[107].mxu1 }
0x23b6   : > { %v7030_v62 = vadd.f32 %v7029_v9, %v14442_v13  ;;  %11215 = vmatprep.subr.bf16.mxu0 %v11214_v19  ;;  %v7192_v9 = vld [vmem:[#allocation5 + $0x148] sm:$0xff]  ;;  %v7193_v13 = vld [vmem:[#allocation5 + $0x150] sm:$0xff] }
0x23b7   : > { %11217 = vmatpush3.bf16.msra.mxu0 %v11214_v19 }
0x23b8   : > { %v11218_v49 = vpack.c.bf16 %v7035_v33, %v7030_v62  ;;  %v7194_v62 = vld [vmem:[#allocation5 + $0x158] sm:$0xff] }
0x23ba   : > { %11219 = vmatprep.subr.bf16.mxu0 %v11218_v49 }
0x23bb   : > { %11221 = vmatpush3.bf16.msra.mxu0 %v11218_v49  ;;  %v7344_v49 = vld [vmem:[#allocation5 + $0x160] sm:$0xff] }
0x23bc   : > { %10606 = vmatprep.mubr.msk.f32.mxu1 %vm569_vm1, %v7344_v49 }
0x23be   : > { %10579 = vmatmul.mubr.msk.f32.vlgmr.msra.gmra.mrb[84].mxu0 %vm569_vm1, %v7039_v51 }
0x23bf   : > { %10581 = vmatprep.mubr.msk.f32.mxu0 %vm569_vm1, %v7040_v29  ;;  %v14447_v29 = vld [vmem:[#allocation64_spill] sm:$0xff] }
0x23c2   : > { %10582 = vmatmul.mubr.msk.f32.gmra.mrb[86].mxu0 %vm569_vm1, %v7041_v36 }
0x23c3   : > { %10592 = vmatprep.mubr.msk.f32.mxu0 %vm569_vm1, %v7191_v37 }
0x2491   : > { %v10580_v10 = vpop.f32.mrb[84].mxu0 }
0x2492   : > { %v7142_v32 = vadd.f32 %v10580_v10, %v14443_v41  ;;  %v7136_v18 = vpop.f32.mrb[85].mxu0  ;;  %v14448_v10 = vld [vmem:[#allocation48_spill] sm:$0xff] }
0x2493   : > { %v7137_v7 = vadd.f32 %v7136_v18, %v14444_v11 }
0x2494   : > { %v7156_v17 = vmul.f32 %v7142_v32, %v7142_v32 }
0x2495   : > { %v7155_v50 = vmul.f32 %v7137_v7, %v7137_v7  ;;  %v10583_v8 = vpop.f32.mrb[86].mxu0 }
0x2496   : > { %v7160_v21 = vmul.f32 %v7156_v17, %v7142_v32  ;;  %v7152_v40 = vadd.f32 %v10583_v8, %v14445_v35  ;;  %v7146_v57 = vpop.f32.mrb[87].mxu0  ;;  %v14449_v17 = vld [vmem:[#allocation50_spill] sm:$0xff]  ;;  %v14450_v35 = vld [vmem:[#allocation49_spill] sm:$0xff] }
0x2497   : > { %v7159_v45 = vmul.f32 %v7155_v50, %v7137_v7  ;;  %v7147_v47 = vadd.f32 %v7146_v57, %v14446_v59 }
0x2498   : > { %v7164_v31 = vmul.f32 0.044715, %v7160_v21  ;;  %v7158_v0 = vmul.f32 %v7152_v40, %v7152_v40 }
0x2499   : > { %v7163_v46 = vmul.f32 0.044715, %v7159_v45  ;;  %v7157_v30 = vmul.f32 %v7147_v47, %v7147_v47 }
0x249a   : > { %v7168_v60 = vadd.f32 %v7164_v31, %v7142_v32  ;;  %v7162_v16 = vmul.f32 %v7158_v0, %v7152_v40 }
0x249b   : > { %v7167_v43 = vadd.f32 %v7163_v46, %v7137_v7  ;;  %v7161_v3 = vmul.f32 %v7157_v30, %v7147_v47 }
0x249c   : > { %v7172_v27 = vmul.f32 0.7978846, %v7168_v60  ;;  %v7166_v44 = vmul.f32 0.044715, %v7162_v16 }
0x249d   : > { %v7171_v5 = vmul.f32 0.7978846, %v7167_v43  ;;  %v7165_v34 = vmul.f32 0.044715, %v7161_v3 }
0x249e   : > { %11840 = vtanh.f32 %v7172_v27  ;;  %v7170_v55 = vadd.f32 %v7166_v44, %v7152_v40 }
0x249f   : > { %11842 = vtanh.f32 %v7171_v5  ;;  %v7169_v12 = vadd.f32 %v7165_v34, %v7147_v47 }
0x24a0   : > { %v7174_v25 = vmul.f32 0.7978846, %v7170_v55 }
0x24a1   : > { %v7173_v48 = vmul.f32 0.7978846, %v7169_v12 }
0x24a2   : > { %11844 = vtanh.f32 %v7174_v25 }
0x24a3   : > { %11846 = vtanh.f32 %v7173_v48 }
0x24a8   : > { %v11841_v54 = vpop.eup %11840 }
0x24a9   : > { %v11843_v63 = vpop.eup %11842  ;;  %v7180_v28 = vadd.f32 1.0, %v11841_v54 }
0x24aa   : > { %v7179_v2 = vadd.f32 1.0, %v11843_v63 }
0x24ab   : > { %v7184_v42 = vmul.f32 0.5, %v7180_v28 }
0x24ac   : > { %v11845_v20 = vpop.eup %11844  ;;  %v7183_v6 = vmul.f32 0.5, %v7179_v2 }
0x24ad   : > { %v11847_v39 = vpop.eup %11846  ;;  %v7188_v4 = vmul.f32 %v7184_v42, %v7142_v32  ;;  %v7182_v61 = vadd.f32 1.0, %v11845_v20 }
0x24ae   : > { %v7187_v52 = vmul.f32 %v7183_v6, %v7137_v7  ;;  %v7181_v23 = vadd.f32 1.0, %v11847_v39 }
0x24af   : > { %v7186_v24 = vmul.f32 0.5, %v7182_v61 }
0x24b0   : > { %v11222_v14 = vpack.c.bf16 %v7188_v4, %v7187_v52  ;;  %v7185_v19 = vmul.f32 0.5, %v7181_v23 }
0x24b1   : > { %v7190_v15 = vmul.f32 %v7186_v24, %v7152_v40 }
0x24b2   : > { %11223 = vmatprep.subr.bf16.mxu0 %v11222_v14  ;;  %v7189_v22 = vmul.f32 %v7185_v19, %v7147_v47  ;;  %v7345_v19 = vld [vmem:[#allocation5 + $0x168] sm:$0xff] }
0x24b3   : > { %11225 = vmatpush3.bf16.msra.mxu0 %v11222_v14 }
0x24b4   : > { %v11226_v33 = vpack.c.bf16 %v7190_v15, %v7189_v22  ;;  %v7346_v15 = vld [vmem:[#allocation5 + $0x170] sm:$0xff]  ;;  %v7347_v22 = vld [vmem:[#allocation5 + $0x178] sm:$0xff] }
0x24b6   : > { %11227 = vmatprep.subr.bf16.mxu0 %v11226_v33 }
0x24b7   : > { %11229 = vmatpush3.bf16.msra.mxu0 %v11226_v33  ;;  %v7497_v33 = vld [vmem:[#allocation5 + $0x180] sm:$0xff] }
0x24ba   : > { %10593 = vmatmul.mubr.msk.f32.vlgmr.msra.gmra.mrb[88].mxu0 %vm569_vm1, %v7192_v9 }
0x24bb   : > { %10595 = vmatprep.mubr.msk.f32.mxu0 %vm569_vm1, %v7193_v13  ;;  %v14451_v13 = vld [vmem:[#allocation51_spill] sm:$0xff] }
0x24be   : > { %10596 = vmatmul.mubr.msk.f32.gmra.mrb[90].mxu0 %vm569_vm1, %v7194_v62 }
0x24bf   : > { %10620 = vmatprep.mubr.msk.f32.mxu0 %vm569_vm1, %v7497_v33 }
0x258d   : > { %v10594_v51 = vpop.f32.mrb[88].mxu0 }
0x258e   : > { %v7295_v36 = vadd.f32 %v10594_v51, %v14447_v29  ;;  %v7289_v37 = vpop.f32.mrb[89].mxu0  ;;  %v14452_v51 = vld [vmem:[#allocation66_spill] sm:$0xff] }
0x258f   : > { %v7290_v41 = vadd.f32 %v7289_v37, %v14448_v10 }
0x2590   : > { %v7309_v32 = vmul.f32 %v7295_v36, %v7295_v36 }
0x2591   : > { %v7308_v18 = vmul.f32 %v7290_v41, %v7290_v41  ;;  %v10597_v11 = vpop.f32.mrb[90].mxu0 }
0x2592   : > { %v7313_v7 = vmul.f32 %v7309_v32, %v7295_v36  ;;  %v7305_v50 = vadd.f32 %v10597_v11, %v14449_v17  ;;  %v7299_v8 = vpop.f32.mrb[91].mxu0  ;;  %v14453_v32 = vld [vmem:[#allocation68_spill] sm:$0xff] }
0x2593   : > { %v7312_v21 = vmul.f32 %v7308_v18, %v7290_v41  ;;  %v7300_v40 = vadd.f32 %v7299_v8, %v14450_v35  ;;  %v14454_v17 = vld [vmem:[#allocation52_spill] sm:$0xff] }
0x2594   : > { %v7317_v57 = vmul.f32 0.044715, %v7313_v7  ;;  %v7311_v45 = vmul.f32 %v7305_v50, %v7305_v50 }
0x2595   : > { %v7316_v59 = vmul.f32 0.044715, %v7312_v21  ;;  %v7310_v47 = vmul.f32 %v7300_v40, %v7300_v40 }
0x2596   : > { %v7321_v31 = vadd.f32 %v7317_v57, %v7295_v36  ;;  %v7315_v0 = vmul.f32 %v7311_v45, %v7305_v50 }
0x2597   : > { %v7320_v46 = vadd.f32 %v7316_v59, %v7290_v41  ;;  %v7314_v30 = vmul.f32 %v7310_v47, %v7300_v40 }
0x2598   : > { %v7325_v60 = vmul.f32 0.7978846, %v7321_v31  ;;  %v7319_v16 = vmul.f32 0.044715, %v7315_v0 }
0x2599   : > { %v7324_v43 = vmul.f32 0.7978846, %v7320_v46  ;;  %v7318_v3 = vmul.f32 0.044715, %v7314_v30 }
0x259a   : > { %11848 = vtanh.f32 %v7325_v60  ;;  %v7323_v27 = vadd.f32 %v7319_v16, %v7305_v50 }
0x259b   : > { %11850 = vtanh.f32 %v7324_v43  ;;  %v7322_v44 = vadd.f32 %v7318_v3, %v7300_v40 }
0x259c   : > { %v7327_v5 = vmul.f32 0.7978846, %v7323_v27 }
0x259d   : > { %v7326_v34 = vmul.f32 0.7978846, %v7322_v44 }
0x259e   : > { %11852 = vtanh.f32 %v7327_v5 }
0x259f   : > { %11854 = vtanh.f32 %v7326_v34 }
0x25a4   : > { %v11849_v55 = vpop.eup %11848 }
0x25a5   : > { %v11851_v12 = vpop.eup %11850  ;;  %v7333_v25 = vadd.f32 1.0, %v11849_v55 }
0x25a6   : > { %v7332_v48 = vadd.f32 1.0, %v11851_v12 }
0x25a7   : > { %v7337_v54 = vmul.f32 0.5, %v7333_v25 }
0x25a8   : > { %v11853_v63 = vpop.eup %11852  ;;  %v7336_v28 = vmul.f32 0.5, %v7332_v48 }
0x25a9   : > { %v11855_v2 = vpop.eup %11854  ;;  %v7341_v42 = vmul.f32 %v7337_v54, %v7295_v36  ;;  %v7335_v20 = vadd.f32 1.0, %v11853_v63 }
0x25aa   : > { %v7340_v6 = vmul.f32 %v7336_v28, %v7290_v41  ;;  %v7334_v39 = vadd.f32 1.0, %v11855_v2 }
0x25ab   : > { %v7339_v4 = vmul.f32 0.5, %v7335_v20 }
0x25ac   : > { %v11230_v61 = vpack.c.bf16 %v7341_v42, %v7340_v6  ;;  %v7338_v52 = vmul.f32 0.5, %v7334_v39 }
0x25ad   : > { %v7343_v23 = vmul.f32 %v7339_v4, %v7305_v50 }
0x25ae   : > { %11231 = vmatprep.subr.bf16.mxu1 %v11230_v61  ;;  %v7342_v24 = vmul.f32 %v7338_v52, %v7300_v40  ;;  %v7498_v52 = vld [vmem:[#allocation5 + $0x188] sm:$0xff] }
0x25af   : > { %11233 = vmatpush3.bf16.msra.mxu1 %v11230_v61 }
0x25b0   : > { %v11234_v14 = vpack.c.bf16 %v7343_v23, %v7342_v24  ;;  %v7499_v23 = vld [vmem:[#allocation5 + $0x190] sm:$0xff]  ;;  %v7500_v24 = vld [vmem:[#allocation5 + $0x198] sm:$0xff] }
0x25b2   : > { %11235 = vmatprep.subr.bf16.mxu1 %v11234_v14 }
0x25b3   : > { %11237 = vmatpush3.bf16.msra.mxu1 %v11234_v14  ;;  %v9241_v14 = vld [vmem:[%s14279_s5 + $0x20] sm:$0xff] }
0x25b6   : > { %10607 = vmatmul.mubr.msk.f32.vlgmr.msra.gmra.mrb[108].mxu1 %vm569_vm1, %v7345_v19 }
0x25b7   : > { %10609 = vmatprep.mubr.msk.f32.mxu1 %vm569_vm1, %v7346_v15  ;;  %v14455_v15 = vld [vmem:[#allocation70_spill] sm:$0xff] }
0x25ba   : > { %10610 = vmatmul.mubr.msk.f32.gmra.mrb[110].mxu1 %vm569_vm1, %v7347_v22 }
0x25bb   : > { %10642 = vmatprep.mubr.msk.f32.mxu1 %vm415_vm0, %v9241_v14 }
0x2689   : > { %v10608_v9 = vpop.f32.mrb[108].mxu1 }
0x268a   : > { %v7448_v62 = vadd.f32 %v10608_v9, %v14451_v13  ;;  %v7442_v49 = vpop.f32.mrb[109].mxu1  ;;  %v14456_v9 = vld [vmem:[#allocation53_spill] sm:$0xff] }
0x268b   : > { %v7443_v29 = vadd.f32 %v7442_v49, %v14452_v51 }
0x268c   : > { %v7462_v36 = vmul.f32 %v7448_v62, %v7448_v62 }
0x268d   : > { %v7461_v37 = vmul.f32 %v7443_v29, %v7443_v29  ;;  %v10611_v10 = vpop.f32.mrb[110].mxu1 }
0x268e   : > { %v7466_v41 = vmul.f32 %v7462_v36, %v7448_v62  ;;  %v7458_v18 = vadd.f32 %v10611_v10, %v14453_v32  ;;  %v7452_v11 = vpop.f32.mrb[111].mxu1  ;;  %v14457_v36 = vld [vmem:[#allocation55_spill] sm:$0xff]  ;;  %v14458_v32 = vld [vmem:[#allocation54_spill] sm:$0xff] }
0x268f   : > { %v7465_v7 = vmul.f32 %v7461_v37, %v7443_v29  ;;  %v7453_v50 = vadd.f32 %v7452_v11, %v14454_v17 }
0x2690   : > { %v7470_v8 = vmul.f32 0.044715, %v7466_v41  ;;  %v7464_v21 = vmul.f32 %v7458_v18, %v7458_v18 }
0x2691   : > { %v7469_v35 = vmul.f32 0.044715, %v7465_v7  ;;  %v7463_v40 = vmul.f32 %v7453_v50, %v7453_v50 }
0x2692   : > { %v7474_v57 = vadd.f32 %v7470_v8, %v7448_v62  ;;  %v7468_v45 = vmul.f32 %v7464_v21, %v7458_v18 }
0x2693   : > { %v7473_v59 = vadd.f32 %v7469_v35, %v7443_v29  ;;  %v7467_v47 = vmul.f32 %v7463_v40, %v7453_v50 }
0x2694   : > { %v7478_v31 = vmul.f32 0.7978846, %v7474_v57  ;;  %v7472_v0 = vmul.f32 0.044715, %v7468_v45 }
0x2695   : > { %v7477_v46 = vmul.f32 0.7978846, %v7473_v59  ;;  %v7471_v30 = vmul.f32 0.044715, %v7467_v47 }
0x2696   : > { %11856 = vtanh.f32 %v7478_v31  ;;  %v7476_v60 = vadd.f32 %v7472_v0, %v7458_v18 }
0x2697   : > { %11858 = vtanh.f32 %v7477_v46  ;;  %v7475_v16 = vadd.f32 %v7471_v30, %v7453_v50 }
0x2698   : > { %v7480_v43 = vmul.f32 0.7978846, %v7476_v60 }
0x2699   : > { %v7479_v3 = vmul.f32 0.7978846, %v7475_v16 }
0x269a   : > { %11860 = vtanh.f32 %v7480_v43 }
0x269b   : > { %11862 = vtanh.f32 %v7479_v3 }
0x26a0   : > { %v11857_v27 = vpop.eup %11856 }
0x26a1   : > { %v11859_v44 = vpop.eup %11858  ;;  %v7486_v5 = vadd.f32 1.0, %v11857_v27 }
0x26a2   : > { %v7485_v34 = vadd.f32 1.0, %v11859_v44 }
0x26a3   : > { %v7490_v55 = vmul.f32 0.5, %v7486_v5 }
0x26a4   : > { %v11861_v12 = vpop.eup %11860  ;;  %v7489_v25 = vmul.f32 0.5, %v7485_v34 }
0x26a5   : > { %v11863_v48 = vpop.eup %11862  ;;  %v7494_v54 = vmul.f32 %v7490_v55, %v7448_v62  ;;  %v7488_v63 = vadd.f32 1.0, %v11861_v12  ;;  %v14459_v55 = vld [vmem:[#allocation56_spill] sm:$0xff] }
0x26a6   : > { %v7493_v28 = vmul.f32 %v7489_v25, %v7443_v29  ;;  %v7487_v2 = vadd.f32 1.0, %v11863_v48  ;;  %v6541_v12 = vadd.f32 %v14015_v26, %v14459_v55 }
0x26a7   : > { %v7492_v42 = vmul.f32 0.5, %v7488_v63 }
0x26a8   : > { %v11238_v20 = vpack.c.bf16 %v7494_v54, %v7493_v28  ;;  %v7491_v6 = vmul.f32 0.5, %v7487_v2  ;;  %v14460_v54 = vld [vmem:[#allocation72_spill] sm:$0xff] }
0x26a9   : > { %v7496_v39 = vmul.f32 %v7492_v42, %v7458_v18  ;;  %v6536_v63 = vadd.f32 %v14017_v53, %v14460_v54 }
0x26aa   : > { %11239 = vmatprep.subr.bf16.mxu0 %v11238_v20  ;;  %v7495_v4 = vmul.f32 %v7491_v6, %v7453_v50 }
0x26ab   : > { %11241 = vmatpush3.bf16.msra.mxu0 %v11238_v20 }
0x26ac   : > { %v11242_v61 = vpack.c.bf16 %v7496_v39, %v7495_v4  ;;  %v14461_v4 = vld [vmem:[#allocation74_spill] sm:$0xff] }
0x26ae   : > { %11243 = vmatprep.subr.bf16.mxu0 %v11242_v61 }
0x26af   : > { %11245 = vmatpush3.bf16.msra.mxu0 %v11242_v61  ;;  %v6551_v61 = vadd.f32 %v14019_v38, %v14461_v4  ;;  %v9242_v38 = vld [vmem:[%s14279_s5 + $0x28] sm:$0xff] }
0x26b2   : > { %10621 = vmatmul.mubr.msk.f32.vlgmr.msra.gmra.mrb[92].mxu0 %vm569_vm1, %v7498_v52 }
0x26b3   : > { %10623 = vmatprep.mubr.msk.f32.mxu0 %vm569_vm1, %v7499_v23  ;;  %v14462_v23 = vld [vmem:[#allocation57_spill] sm:$0xff] }
0x26b6   : > { %10624 = vmatmul.mubr.msk.f32.gmra.mrb[94].mxu0 %vm569_vm1, %v7500_v24  ;;  %v6546_v24 = vadd.f32 %v14021_v56, %v14462_v23  ;;  %v9243_v56 = vld [vmem:[%s14279_s5 + $0x30] sm:$0xff] }
0x2785   : > { %v10622_v19 = vpop.f32.mrb[92].mxu0 }
0x2786   : > { %v7601_v22 = vadd.f32 %v10622_v19, %v14455_v15  ;;  %v7595_v33 = vpop.f32.mrb[93].mxu0 }
0x2787   : > { %v7596_v13 = vadd.f32 %v7595_v33, %v14456_v9  ;;  %v14463_v33 = vld [vmem:[#allocation76_spill] sm:$0xff] }
0x2788   : > { %v7615_v62 = vmul.f32 %v7601_v22, %v7601_v22 }
0x2789   : > { %v7614_v49 = vmul.f32 %v7596_v13, %v7596_v13  ;;  %v10625_v51 = vpop.f32.mrb[94].mxu0 }
0x278a   : > { %v7619_v29 = vmul.f32 %v7615_v62, %v7601_v22  ;;  %v7611_v37 = vadd.f32 %v10625_v51, %v14457_v36  ;;  %v7605_v10 = vpop.f32.mrb[95].mxu0  ;;  %v14464_v62 = vld [vmem:[#allocation58_spill] sm:$0xff]  ;;  %v14465_v36 = vld [vmem:[#allocation61_spill] sm:$0xff] }
0x278b   : > { %v7618_v41 = vmul.f32 %v7614_v49, %v7596_v13  ;;  %v7606_v18 = vadd.f32 %v7605_v10, %v14458_v32 }
0x278c   : > { %v7623_v11 = vmul.f32 0.044715, %v7619_v29  ;;  %v7617_v7 = vmul.f32 %v7611_v37, %v7611_v37 }
0x278d   : > { %v7622_v17 = vmul.f32 0.044715, %v7618_v41  ;;  %v7616_v50 = vmul.f32 %v7606_v18, %v7606_v18  ;;  %v14466_v41 = vld [vmem:[#allocation59_spill] sm:$0xff] }
0x278e   : > { %v7627_v8 = vadd.f32 %v7623_v11, %v7601_v22  ;;  %v7621_v21 = vmul.f32 %v7617_v7, %v7611_v37  ;;  %v7772_v11 = vld [vmem:[#allocation5 + $0x1a8] sm:$0xff]  ;;  %v7773_v7 = vld [vmem:[#allocation5 + $0x1b0] sm:$0xff] }
0x278f   : > { %v7626_v35 = vadd.f32 %v7622_v17, %v7596_v13  ;;  %v7620_v40 = vmul.f32 %v7616_v50, %v7606_v18  ;;  %v7774_v17 = vld [vmem:[#allocation5 + $0x1b8] sm:$0xff]  ;;  %v7924_v50 = vld [vmem:[#allocation5 + $0x1c0] sm:$0xff] }
0x2790   : > { %v7631_v57 = vmul.f32 0.7978846, %v7627_v8  ;;  %v7625_v45 = vmul.f32 0.044715, %v7621_v21  ;;  %v14467_v21 = vld [vmem:[#allocation63_spill] sm:$0xff] }
0x2791   : > { %v7630_v59 = vmul.f32 0.7978846, %v7626_v35  ;;  %v7624_v47 = vmul.f32 0.044715, %v7620_v40 }
0x2792   : > { %11864 = vtanh.f32 %v7631_v57  ;;  %v7629_v31 = vadd.f32 %v7625_v45, %v7611_v37  ;;  %v14468_v57 = vld [vmem:[#allocation78_spill] sm:$0xff] }
0x2793   : > { %11866 = vtanh.f32 %v7630_v59  ;;  %v7628_v0 = vadd.f32 %v7624_v47, %v7606_v18 }
0x2794   : > { %v7633_v46 = vmul.f32 0.7978846, %v7629_v31 }
0x2795   : > { %v7632_v30 = vmul.f32 0.7978846, %v7628_v0 }
0x2796   : > { %11868 = vtanh.f32 %v7633_v46  ;;  %v14469_v46 = vld [vmem:[#allocation80_spill] sm:$0xff] }
0x2797   : > { %11870 = vtanh.f32 %v7632_v30 }
0x279c   : > { %v11865_v60 = vpop.eup %11864 }
0x279d   : > { %v11867_v16 = vpop.eup %11866  ;;  %v7639_v43 = vadd.f32 1.0, %v11865_v60 }
0x279e   : > { %v7638_v3 = vadd.f32 1.0, %v11867_v16 }
0x279f   : > { %v7643_v27 = vmul.f32 0.5, %v7639_v43  ;;  %v14470_v43 = vld [vmem:[#allocation65_spill] sm:$0xff] }
0x27a0   : > { %v11869_v44 = vpop.eup %11868  ;;  %v7642_v5 = vmul.f32 0.5, %v7638_v3 }
0x27a1   : > { %v11871_v34 = vpop.eup %11870  ;;  %v7647_v25 = vmul.f32 %v7643_v27, %v7601_v22  ;;  %v7641_v48 = vadd.f32 1.0, %v11869_v44  ;;  %v7771_v22 = vld [vmem:[#allocation5 + $0x1a0] sm:$0xff] }
0x27a2   : > { %v7646_v28 = vmul.f32 %v7642_v5, %v7596_v13  ;;  %v7640_v2 = vadd.f32 1.0, %v11871_v34  ;;  %10656 = vmatprep.mubr.msk.f32.mxu0 %vm569_vm1, %v7771_v22 }
0x27a3   : > { %v7651_v42 = vadd.f32 %v7647_v25, %v6541_v12  ;;  %v7645_v20 = vmul.f32 0.5, %v7641_v48 }
0x27a4   : > { %v7650_v6 = vadd.f32 %v7646_v28, %v6536_v63  ;;  %v7644_v39 = vmul.f32 0.5, %v7640_v2 }
0x27a5   : > { %v7649_v52 = vmul.f32 %v7645_v20, %v7611_v37 }
0x27a6   : > { %v11246_v14 = vpack.c.bf16 %v7651_v42, %v7650_v6  ;;  %v7648_v26 = vmul.f32 %v7644_v39, %v7606_v18 }
0x27a7   : > { %v7653_v19 = vadd.f32 %v7649_v52, %v6551_v61 }
0x27a8   : > { %11247 = vmatprep.subr.bf16.mxu1 %v11246_v14  ;;  %v7652_v15 = vadd.f32 %v7648_v26, %v6546_v24 }
0x27a9   : > { %11249 = vmatpush3.bf16.msra.mxu1 %v11246_v14 }
0x27aa   : > { %v11250_v53 = vpack.c.bf16 %v7653_v19, %v7652_v15 }
0x27ac   : > { %11251 = vmatprep.subr.bf16.mxu1 %v11250_v53 }
0x27ad   : > { %11253 = vmatpush3.bf16.msra.mxu1 %v11250_v53 }
0x27ae   : > { %11255 = vmatprep.subr.bf16.mxu1 %v13794_v1 }
0x27b1   : > { %11257 = vmatpush3.bf16.msra.mxu1 %v13794_v1  ;;  %v9244_v1 = vld [vmem:[%s14279_s5 + $0x38] sm:$0xff] }
0x27b2   : > { %11259 = vmatprep.subr.bf16.mxu1 %v13800_v58 }
0x27b5   : > { %11261 = vmatpush3.bf16.msra.mxu1 %v13800_v58 }
0x27b8   : > { %10643 = vmatmul.mubr.msk.f32.vlgmr.msra.gmra.mrb[112].mxu1 %vm415_vm0, %v9242_v38 }
0x27b9   : > { %10645 = vmatprep.mubr.msk.f32.mxu1 %vm415_vm0, %v9243_v56 }
0x27bc   : > { %10646 = vmatmul.mubr.msk.f32.gmra.mrb[114].mxu1 %vm415_vm0, %v9244_v1 }
0x288b   : > { %v10644_v58 = vpop.f32.mrb[112].mxu1 }
0x288c   : > { %v7758_v9 = vadd.f32 %v10644_v58, %v14463_v33  ;;  %v7752_v13 = vpop.f32.mrb[113].mxu1 }
0x288d   : > { %v7753_v49 = vadd.f32 %v7752_v13, %v14464_v62  ;;  %v7925_v62 = vld [vmem:[#allocation5 + $0x1c8] sm:$0xff] }
0x288f   : > { %v11262_v51 = vpack.c.bf16 %v7758_v9, %v7753_v49  ;;  %v10647_v29 = vpop.f32.mrb[114].mxu1  ;;  %v7926_v49 = vld [vmem:[#allocation5 + $0x1d0] sm:$0xff] }
0x2890   : > { %v7768_v37 = vadd.f32 %v10647_v29, %v14465_v36  ;;  %v7762_v10 = vpop.f32.mrb[115].mxu1  ;;  %v8077_v29 = vld [vmem:[#allocation5 + $0x1e0] sm:$0xff] }
0x2891   : > { %v7763_v32 = vadd.f32 %v7762_v10, %v14466_v41  ;;  %11263 = vmatprep.subr.bf16.mxu0 %v11262_v51  ;;  %10684 = vmatprep.mubr.msk.f32.mxu1 %vm569_vm1, %v8077_v29 }
0x2892   : > { %11265 = vmatpush3.bf16.msra.mxu0 %v11262_v51  ;;  %v7927_v51 = vld [vmem:[#allocation5 + $0x1d8] sm:$0xff] }
0x2893   : > { %v11266_v18 = vpack.c.bf16 %v7768_v37, %v7763_v32  ;;  %v14471_v37 = vld [vmem:[#allocation82_spill] sm:$0xff]  ;;  %v14472_v32 = vld [vmem:[#allocation67_spill] sm:$0xff] }
0x2895   : > { %11267 = vmatprep.subr.bf16.mxu0 %v11266_v18 }
0x2896   : > { %11269 = vmatpush3.bf16.msra.mxu0 %v11266_v18 }
0x2899   : > { %10657 = vmatmul.mubr.msk.f32.vlgmr.msra.gmra.mrb[96].mxu0 %vm569_vm1, %v7772_v11 }
0x289a   : > { %10659 = vmatprep.mubr.msk.f32.mxu0 %vm569_vm1, %v7773_v7 }
0x289d   : > { %10660 = vmatmul.mubr.msk.f32.gmra.mrb[98].mxu0 %vm569_vm1, %v7774_v17 }
0x289e   : > { %10670 = vmatprep.mubr.msk.f32.mxu0 %vm569_vm1, %v7924_v50 }
0x296c   : > { %v10658_v8 = vpop.f32.mrb[96].mxu0 }
0x296d   : > { %v7875_v35 = vadd.f32 %v10658_v8, %v14467_v21  ;;  %v7869_v40 = vpop.f32.mrb[97].mxu0  ;;  %v14473_v8 = vld [vmem:[#allocation71_spill] sm:$0xff] }
0x296e   : > { %v7870_v45 = vadd.f32 %v7869_v40, %v14468_v57  ;;  %v14474_v57 = vld [vmem:[#allocation69_spill] sm:$0xff] }
0x296f   : > { %v7889_v59 = vmul.f32 %v7875_v35, %v7875_v35 }
0x2970   : > { %v7888_v47 = vmul.f32 %v7870_v45, %v7870_v45  ;;  %v10661_v31 = vpop.f32.mrb[98].mxu0 }
0x2971   : > { %v7893_v0 = vmul.f32 %v7889_v59, %v7875_v35  ;;  %v7885_v30 = vadd.f32 %v10661_v31, %v14469_v46  ;;  %v7879_v60 = vpop.f32.mrb[99].mxu0 }
0x2972   : > { %v7892_v16 = vmul.f32 %v7888_v47, %v7870_v45  ;;  %v7880_v3 = vadd.f32 %v7879_v60, %v14470_v43 }
0x2973   : > { %v7897_v27 = vmul.f32 0.044715, %v7893_v0  ;;  %v7891_v44 = vmul.f32 %v7885_v30, %v7885_v30 }
0x2974   : > { %v7896_v5 = vmul.f32 0.044715, %v7892_v16  ;;  %v7890_v34 = vmul.f32 %v7880_v3, %v7880_v3 }
0x2975   : > { %v7901_v55 = vadd.f32 %v7897_v27, %v7875_v35  ;;  %v7895_v12 = vmul.f32 %v7891_v44, %v7885_v30 }
0x2976   : > { %v7900_v25 = vadd.f32 %v7896_v5, %v7870_v45  ;;  %v7894_v48 = vmul.f32 %v7890_v34, %v7880_v3 }
0x2977   : > { %v7905_v54 = vmul.f32 0.7978846, %v7901_v55  ;;  %v7899_v63 = vmul.f32 0.044715, %v7895_v12 }
0x2978   : > { %v7904_v28 = vmul.f32 0.7978846, %v7900_v25  ;;  %v7898_v2 = vmul.f32 0.044715, %v7894_v48 }
0x2979   : > { %11872 = vtanh.f32 %v7905_v54  ;;  %v7903_v42 = vadd.f32 %v7899_v63, %v7885_v30 }
0x297a   : > { %11874 = vtanh.f32 %v7904_v28  ;;  %v7902_v20 = vadd.f32 %v7898_v2, %v7880_v3 }
0x297b   : > { %v7907_v6 = vmul.f32 0.7978846, %v7903_v42 }
0x297c   : > { %v7906_v39 = vmul.f32 0.7978846, %v7902_v20 }
0x297d   : > { %11876 = vtanh.f32 %v7907_v6 }
0x297e   : > { %11878 = vtanh.f32 %v7906_v39 }
0x2983   : > { %v11873_v4 = vpop.eup %11872 }
0x2984   : > { %v11875_v61 = vpop.eup %11874  ;;  %v7913_v52 = vadd.f32 1.0, %v11873_v4 }
0x2985   : > { %v7912_v23 = vadd.f32 1.0, %v11875_v61 }
0x2986   : > { %v7917_v24 = vmul.f32 0.5, %v7913_v52 }
0x2987   : > { %v11877_v14 = vpop.eup %11876  ;;  %v7916_v26 = vmul.f32 0.5, %v7912_v23 }
0x2988   : > { %v11879_v19 = vpop.eup %11878  ;;  %v7921_v15 = vmul.f32 %v7917_v24, %v7875_v35  ;;  %v7915_v53 = vadd.f32 1.0, %v11877_v14 }
0x2989   : > { %v7920_v38 = vmul.f32 %v7916_v26, %v7870_v45  ;;  %v7914_v56 = vadd.f32 1.0, %v11879_v19 }
0x298a   : > { %v7919_v1 = vmul.f32 0.5, %v7915_v53  ;;  %v8079_v53 = vld [vmem:[#allocation5 + $0x1f0] sm:$0xff] }
0x298b   : > { %v11270_v22 = vpack.c.bf16 %v7921_v15, %v7920_v38  ;;  %v7918_v58 = vmul.f32 0.5, %v7914_v56  ;;  %v8078_v15 = vld [vmem:[#allocation5 + $0x1e8] sm:$0xff]  ;;  %v8080_v38 = vld [vmem:[#allocation5 + $0x1f8] sm:$0xff]  ;;  %v8230_v56 = vld [vmem:[#allocation5 + $0x200] sm:$0xff] }
0x298c   : > { %v7923_v33 = vmul.f32 %v7919_v1, %v7885_v30 }
0x298d   : > { %11271 = vmatprep.subr.bf16.mxu0 %v11270_v22  ;;  %v7922_v9 = vmul.f32 %v7918_v58, %v7880_v3 }
0x298e   : > { %11273 = vmatpush3.bf16.msra.mxu0 %v11270_v22  ;;  %v14475_v22 = vld [vmem:[#allocation73_spill] sm:$0xff] }
0x298f   : > { %v11274_v13 = vpack.c.bf16 %v7923_v33, %v7922_v9  ;;  %v14476_v9 = vld [vmem:[#allocation84_spill] sm:$0xff] }
0x2991   : > { %11275 = vmatprep.subr.bf16.mxu0 %v11274_v13 }
0x2992   : > { %11277 = vmatpush3.bf16.msra.mxu0 %v11274_v13 }
0x2995   : > { %10671 = vmatmul.mubr.msk.f32.vlgmr.msra.gmra.mrb[100].mxu0 %vm569_vm1, %v7925_v62 }
0x2996   : > { %10673 = vmatprep.mubr.msk.f32.mxu0 %vm569_vm1, %v7926_v49 }
0x2999   : > { %10674 = vmatmul.mubr.msk.f32.gmra.mrb[102].mxu0 %vm569_vm1, %v7927_v51 }
0x299a   : > { %10698 = vmatprep.mubr.msk.f32.mxu0 %vm569_vm1, %v8230_v56 }
0x2a68   : > { %v10672_v36 = vpop.f32.mrb[100].mxu0 }
0x2a69   : > { %v8028_v10 = vadd.f32 %v10672_v36, %v14471_v37  ;;  %v8022_v41 = vpop.f32.mrb[101].mxu0  ;;  %v14477_v36 = vld [vmem:[#allocation86_spill] sm:$0xff] }
0x2a6a   : > { %v8023_v18 = vadd.f32 %v8022_v41, %v14472_v32  ;;  %v14478_v32 = vld [vmem:[#allocation75_spill] sm:$0xff] }
0x2a6b   : > { %v8042_v11 = vmul.f32 %v8028_v10, %v8028_v10 }
0x2a6c   : > { %v8041_v7 = vmul.f32 %v8023_v18, %v8023_v18  ;;  %v10675_v17 = vpop.f32.mrb[102].mxu0 }
0x2a6d   : > { %v8046_v50 = vmul.f32 %v8042_v11, %v8028_v10  ;;  %v8038_v21 = vadd.f32 %v10675_v17, %v14473_v8  ;;  %v8032_v35 = vpop.f32.mrb[103].mxu0 }
0x2a6e   : > { %v8045_v40 = vmul.f32 %v8041_v7, %v8023_v18  ;;  %v8033_v45 = vadd.f32 %v8032_v35, %v14474_v57 }
0x2a6f   : > { %v8050_v59 = vmul.f32 0.044715, %v8046_v50  ;;  %v8044_v47 = vmul.f32 %v8038_v21, %v8038_v21 }
0x2a70   : > { %v8049_v31 = vmul.f32 0.044715, %v8045_v40  ;;  %v8043_v0 = vmul.f32 %v8033_v45, %v8033_v45 }
0x2a71   : > { %v8054_v46 = vadd.f32 %v8050_v59, %v8028_v10  ;;  %v8048_v30 = vmul.f32 %v8044_v47, %v8038_v21 }
0x2a72   : > { %v8053_v60 = vadd.f32 %v8049_v31, %v8023_v18  ;;  %v8047_v16 = vmul.f32 %v8043_v0, %v8033_v45 }
0x2a73   : > { %v8058_v43 = vmul.f32 0.7978846, %v8054_v46  ;;  %v8052_v3 = vmul.f32 0.044715, %v8048_v30 }
0x2a74   : > { %v8057_v27 = vmul.f32 0.7978846, %v8053_v60  ;;  %v8051_v44 = vmul.f32 0.044715, %v8047_v16 }
0x2a75   : > { %11880 = vtanh.f32 %v8058_v43  ;;  %v8056_v5 = vadd.f32 %v8052_v3, %v8038_v21 }
0x2a76   : > { %11882 = vtanh.f32 %v8057_v27  ;;  %v8055_v34 = vadd.f32 %v8051_v44, %v8033_v45 }
0x2a77   : > { %v8060_v55 = vmul.f32 0.7978846, %v8056_v5 }
0x2a78   : > { %v8059_v12 = vmul.f32 0.7978846, %v8055_v34 }
0x2a79   : > { %11884 = vtanh.f32 %v8060_v55 }
0x2a7a   : > { %11886 = vtanh.f32 %v8059_v12 }
0x2a7f   : > { %v11881_v25 = vpop.eup %11880 }
0x2a80   : > { %v11883_v48 = vpop.eup %11882  ;;  %v8066_v54 = vadd.f32 1.0, %v11881_v25 }
0x2a81   : > { %v8065_v63 = vadd.f32 1.0, %v11883_v48 }
0x2a82   : > { %v8070_v28 = vmul.f32 0.5, %v8066_v54 }
0x2a83   : > { %v11885_v2 = vpop.eup %11884  ;;  %v8069_v42 = vmul.f32 0.5, %v8065_v63 }
0x2a84   : > { %v11887_v20 = vpop.eup %11886  ;;  %v8074_v6 = vmul.f32 %v8070_v28, %v8028_v10  ;;  %v8068_v39 = vadd.f32 1.0, %v11885_v2 }
0x2a85   : > { %v8073_v4 = vmul.f32 %v8069_v42, %v8023_v18  ;;  %v8067_v61 = vadd.f32 1.0, %v11887_v20 }
0x2a86   : > { %v8072_v52 = vmul.f32 0.5, %v8068_v39  ;;  %v8232_v39 = vld [vmem:[#allocation5 + $0x210] sm:$0xff] }
0x2a87   : > { %v11278_v23 = vpack.c.bf16 %v8074_v6, %v8073_v4  ;;  %v8071_v24 = vmul.f32 0.5, %v8067_v61  ;;  %v8231_v6 = vld [vmem:[#allocation5 + $0x208] sm:$0xff]  ;;  %v8233_v4 = vld [vmem:[#allocation5 + $0x218] sm:$0xff]  ;;  %v14151_v61 = vld [vmem:[#allocation5 + $0x240] sm:$0xff] }
0x2a88   : > { %v8076_v14 = vmul.f32 %v8072_v52, %v8038_v21  ;;  %v8383_v52 = vld [vmem:[#allocation5 + $0x220] sm:$0xff] }
0x2a89   : > { %11279 = vmatprep.subr.bf16.mxu1 %v11278_v23  ;;  %v8075_v26 = vmul.f32 %v8071_v24, %v8033_v45  ;;  %v14479_v24 = vld [vmem:[#allocation88_spill] sm:$0xff] }
0x2a8a   : > { %11281 = vmatpush3.bf16.msra.mxu1 %v11278_v23 }
0x2a8b   : > { %v11282_v19 = vpack.c.bf16 %v8076_v14, %v8075_v26 }
0x2a8d   : > { %11283 = vmatprep.subr.bf16.mxu1 %v11282_v19 }
0x2a8e   : > { %11285 = vmatpush3.bf16.msra.mxu1 %v11282_v19  ;;  %v14480_v19 = vld [vmem:[#allocation77_spill] sm:$0xff] }
0x2a91   : > { %10685 = vmatmul.mubr.msk.f32.vlgmr.msra.gmra.mrb[116].mxu1 %vm569_vm1, %v8078_v15 }
0x2a92   : > { %10687 = vmatprep.mubr.msk.f32.mxu1 %vm569_vm1, %v8079_v53 }
0x2a95   : > { %10688 = vmatmul.mubr.msk.f32.gmra.mrb[118].mxu1 %vm569_vm1, %v8080_v38 }
0x2a96   : > { %10712 = vmatprep.mubr.msk.f32.mxu1 %vm569_vm1, %v8383_v52 }
0x2b64   : > { %v10686_v1 = vpop.f32.mrb[116].mxu1 }
0x2b65   : > { %v8181_v58 = vadd.f32 %v10686_v1, %v14475_v22  ;;  %v8175_v33 = vpop.f32.mrb[117].mxu1  ;;  %v14481_v22 = vld [vmem:[#allocation81_spill] sm:$0xff] }
0x2b66   : > { %v8176_v13 = vadd.f32 %v8175_v33, %v14476_v9 }
0x2b67   : > { %v8195_v62 = vmul.f32 %v8181_v58, %v8181_v58 }
0x2b68   : > { %v8194_v49 = vmul.f32 %v8176_v13, %v8176_v13  ;;  %v10689_v51 = vpop.f32.mrb[118].mxu1 }
0x2b69   : > { %v8199_v29 = vmul.f32 %v8195_v62, %v8181_v58  ;;  %v8191_v37 = vadd.f32 %v10689_v51, %v14477_v36  ;;  %v8185_v10 = vpop.f32.mrb[119].mxu1 }
0x2b6a   : > { %v8198_v41 = vmul.f32 %v8194_v49, %v8176_v13  ;;  %v8186_v18 = vadd.f32 %v8185_v10, %v14478_v32 }
0x2b6b   : > { %v8203_v11 = vmul.f32 0.044715, %v8199_v29  ;;  %v8197_v7 = vmul.f32 %v8191_v37, %v8191_v37 }
0x2b6c   : > { %v8202_v17 = vmul.f32 0.044715, %v8198_v41  ;;  %v8196_v50 = vmul.f32 %v8186_v18, %v8186_v18 }
0x2b6d   : > { %v8207_v8 = vadd.f32 %v8203_v11, %v8181_v58  ;;  %v8201_v21 = vmul.f32 %v8197_v7, %v8191_v37 }
0x2b6e   : > { %v8206_v35 = vadd.f32 %v8202_v17, %v8176_v13  ;;  %v8200_v40 = vmul.f32 %v8196_v50, %v8186_v18 }
0x2b6f   : > { %v8211_v57 = vmul.f32 0.7978846, %v8207_v8  ;;  %v8205_v45 = vmul.f32 0.044715, %v8201_v21 }
0x2b70   : > { %v8210_v59 = vmul.f32 0.7978846, %v8206_v35  ;;  %v8204_v47 = vmul.f32 0.044715, %v8200_v40 }
0x2b71   : > { %11888 = vtanh.f32 %v8211_v57  ;;  %v8209_v31 = vadd.f32 %v8205_v45, %v8191_v37 }
0x2b72   : > { %11890 = vtanh.f32 %v8210_v59  ;;  %v8208_v0 = vadd.f32 %v8204_v47, %v8186_v18 }
0x2b73   : > { %v8213_v46 = vmul.f32 0.7978846, %v8209_v31 }
0x2b74   : > { %v8212_v30 = vmul.f32 0.7978846, %v8208_v0 }
0x2b75   : > { %11892 = vtanh.f32 %v8213_v46 }
0x2b76   : > { %11894 = vtanh.f32 %v8212_v30 }
0x2b7b   : > { %v11889_v60 = vpop.eup %11888 }
0x2b7c   : > { %v11891_v16 = vpop.eup %11890  ;;  %v8219_v43 = vadd.f32 1.0, %v11889_v60 }
0x2b7d   : > { %v8218_v3 = vadd.f32 1.0, %v11891_v16 }
0x2b7e   : > { %v8223_v27 = vmul.f32 0.5, %v8219_v43 }
0x2b7f   : > { %v11893_v44 = vpop.eup %11892  ;;  %v8222_v5 = vmul.f32 0.5, %v8218_v3 }
0x2b80   : > { %v11895_v34 = vpop.eup %11894  ;;  %v8227_v55 = vmul.f32 %v8223_v27, %v8181_v58  ;;  %v8221_v12 = vadd.f32 1.0, %v11893_v44 }
0x2b81   : > { %v8226_v25 = vmul.f32 %v8222_v5, %v8176_v13  ;;  %v8220_v48 = vadd.f32 1.0, %v11895_v34  ;;  %v14482_v13 = vld [vmem:[#allocation79_spill] sm:$0xff] }
0x2b82   : > { %v8225_v54 = vmul.f32 0.5, %v8221_v12  ;;  %v8384_v12 = vld [vmem:[#allocation5 + $0x228] sm:$0xff] }
0x2b83   : > { %v11286_v63 = vpack.c.bf16 %v8227_v55, %v8226_v25  ;;  %v8224_v28 = vmul.f32 0.5, %v8220_v48  ;;  %v8385_v25 = vld [vmem:[#allocation5 + $0x230] sm:$0xff]  ;;  %v8386_v48 = vld [vmem:[#allocation5 + $0x238] sm:$0xff] }
0x2b84   : > { %v8229_v2 = vmul.f32 %v8225_v54, %v8191_v37 }
0x2b85   : > { %11287 = vmatprep.subr.bf16.mxu0 %v11286_v63  ;;  %v8228_v42 = vmul.f32 %v8224_v28, %v8186_v18 }
0x2b86   : > { %11289 = vmatpush3.bf16.msra.mxu0 %v11286_v63  ;;  %v14483_v63 = vld [vmem:[#allocation83_spill] sm:$0xff] }
0x2b87   : > { %v11290_v20 = vpack.c.bf16 %v8229_v2, %v8228_v42  ;;  %v14484_v42 = vld [vmem:[#allocation90_spill] sm:$0xff] }
0x2b89   : > { %11291 = vmatprep.subr.bf16.mxu0 %v11290_v20 }
0x2b8a   : > { %11293 = vmatpush3.bf16.msra.mxu0 %v11290_v20 }
0x2b8d   : > { %10699 = vmatmul.mubr.msk.f32.vlgmr.msra.gmra.mrb[104].mxu0 %vm569_vm1, %v8231_v6 }
0x2b8e   : > { %10701 = vmatprep.mubr.msk.f32.mxu0 %vm569_vm1, %v8232_v39 }
0x2b91   : > { %10702 = vmatmul.mubr.msk.f32.gmra.mrb[106].mxu0 %vm569_vm1, %v8233_v4  ;;  %v14485_v4 = vld [vmem:[#allocation92_spill] sm:$0xff] }
0x2b92   : > { %10726 = vmatprep.mubr.msk.f32.mxu0 %vm569_vm1, %v14151_v61 }
0x2c60   : > { %v10700_v23 = vpop.f32.mrb[104].mxu0 }
0x2c61   : > { %v8334_v14 = vadd.f32 %v10700_v23, %v14479_v24  ;;  %v8328_v26 = vpop.f32.mrb[105].mxu0  ;;  %v14486_v24 = vld [vmem:[#allocation85_spill] sm:$0xff] }
0x2c62   : > { %v8329_v15 = vadd.f32 %v8328_v26, %v14480_v19  ;;  %v11936_v19 = vld [vmem:[#allocation5 + $0x248] sm:$0xff] }
0x2c63   : > { %v8348_v53 = vmul.f32 %v8334_v14, %v8334_v14 }
0x2c64   : > { %v8347_v38 = vmul.f32 %v8329_v15, %v8329_v15  ;;  %v10703_v56 = vpop.f32.mrb[106].mxu0 }
0x2c65   : > { %v8352_v1 = vmul.f32 %v8348_v53, %v8334_v14  ;;  %v8344_v58 = vadd.f32 %v10703_v56, %v14481_v22  ;;  %v8338_v33 = vpop.f32.mrb[107].mxu0 }
0x2c66   : > { %v8351_v9 = vmul.f32 %v8347_v38, %v8329_v15  ;;  %v8339_v62 = vadd.f32 %v8338_v33, %v14482_v13 }
0x2c67   : > { %v8356_v49 = vmul.f32 0.044715, %v8352_v1  ;;  %v8350_v51 = vmul.f32 %v8344_v58, %v8344_v58 }
0x2c68   : > { %v8355_v29 = vmul.f32 0.044715, %v8351_v9  ;;  %v8349_v36 = vmul.f32 %v8339_v62, %v8339_v62 }
0x2c69   : > { %v8360_v37 = vadd.f32 %v8356_v49, %v8334_v14  ;;  %v8354_v10 = vmul.f32 %v8350_v51, %v8344_v58 }
0x2c6a   : > { %v8359_v41 = vadd.f32 %v8355_v29, %v8329_v15  ;;  %v8353_v32 = vmul.f32 %v8349_v36, %v8339_v62 }
0x2c6b   : > { %v8364_v18 = vmul.f32 0.7978846, %v8360_v37  ;;  %v8358_v11 = vmul.f32 0.044715, %v8354_v10  ;;  %v8730_v37 = vld [vmem:[%s14280_s6] sm:$0xff] }
0x2c6c   : > { %v8363_v7 = vmul.f32 0.7978846, %v8359_v41  ;;  %v8357_v17 = vmul.f32 0.044715, %v8353_v32 }
0x2c6d   : > { %11896 = vtanh.f32 %v8364_v18  ;;  %v8362_v50 = vadd.f32 %v8358_v11, %v8344_v58 }
0x2c6e   : > { %11898 = vtanh.f32 %v8363_v7  ;;  %v8361_v8 = vadd.f32 %v8357_v17, %v8339_v62 }
0x2c6f   : > { %v8366_v21 = vmul.f32 0.7978846, %v8362_v50 }
0x2c70   : > { %v8365_v35 = vmul.f32 0.7978846, %v8361_v8 }
0x2c71   : > { %11900 = vtanh.f32 %v8366_v21 }
0x2c72   : > { %11902 = vtanh.f32 %v8365_v35 }
0x2c77   : > { %v11897_v40 = vpop.eup %11896 }
0x2c78   : > { %v11899_v57 = vpop.eup %11898  ;;  %v8372_v45 = vadd.f32 1.0, %v11897_v40 }
0x2c79   : > { %v8371_v59 = vadd.f32 1.0, %v11899_v57  ;;  %v14487_v57 = vld [vmem:[#allocation94_spill] sm:$0xff] }
0x2c7a   : > { %v8376_v47 = vmul.f32 0.5, %v8372_v45 }
0x2c7b   : > { %v11901_v31 = vpop.eup %11900  ;;  %v8375_v0 = vmul.f32 0.5, %v8371_v59 }
0x2c7c   : > { %v11903_v46 = vpop.eup %11902  ;;  %v8380_v30 = vmul.f32 %v8376_v47, %v8334_v14  ;;  %v8374_v60 = vadd.f32 1.0, %v11901_v31  ;;  %v14488_v47 = vld [vmem:[#allocation87_spill] sm:$0xff] }
0x2c7d   : > { %v8379_v16 = vmul.f32 %v8375_v0, %v8329_v15  ;;  %v8373_v43 = vadd.f32 1.0, %v11903_v46  ;;  %v11938_v15 = vld [vmem:[#allocation5 + $0x258] sm:$0xff]  ;;  %v14489_v46 = vld [vmem:[#allocation91_spill] sm:$0xff] }
0x2c7e   : > { %v8378_v3 = vmul.f32 0.5, %v8374_v60 }
0x2c7f   : > { %v11294_v27 = vpack.c.bf16 %v8380_v30, %v8379_v16  ;;  %v8377_v44 = vmul.f32 0.5, %v8373_v43  ;;  %v14490_v16 = vld [vmem:[#allocation89_spill] sm:$0xff] }
0x2c80   : > { %v8382_v5 = vmul.f32 %v8378_v3, %v8344_v58 }
0x2c81   : > { %11295 = vmatprep.subr.bf16.mxu1 %v11294_v27  ;;  %v8381_v34 = vmul.f32 %v8377_v44, %v8339_v62  ;;  %v14491_v44 = vld [vmem:[#allocation93_spill] sm:$0xff] }
0x2c82   : > { %11297 = vmatpush3.bf16.msra.mxu1 %v11294_v27 }
0x2c83   : > { %v11298_v55 = vpack.c.bf16 %v8382_v5, %v8381_v34 }
0x2c85   : > { %11299 = vmatprep.subr.bf16.mxu1 %v11298_v55 }
0x2c86   : > { %11301 = vmatpush3.bf16.msra.mxu1 %v11298_v55  ;;  %v14492_v55 = vld [vmem:[#allocation96_spill] sm:$0xff] }
0x2c89   : > { %10713 = vmatmul.mubr.msk.f32.vlgmr.msra.gmra.mrb[120].mxu1 %vm569_vm1, %v8384_v12 }
0x2c8a   : > { %10715 = vmatprep.mubr.msk.f32.mxu1 %vm569_vm1, %v8385_v25  ;;  %v14493_v25 = vld [vmem:[#allocation95_spill] sm:$0xff] }
0x2c8d   : > { %10716 = vmatmul.mubr.msk.f32.gmra.mrb[122].mxu1 %vm569_vm1, %v8386_v48 }
0x2c8e   : > { %10740 = vmatprep.mubr.msk.f32.mxu1 %vm569_vm1, %v14151_v61  ;;  %v11937_v61 = vld [vmem:[#allocation5 + $0x250] sm:$0xff] }
0x2d5c   : > { %v10714_v54 = vpop.f32.mrb[120].mxu1 }
0x2d5d   : > { %v8487_v28 = vadd.f32 %v10714_v54, %v14483_v63  ;;  %v8481_v2 = vpop.f32.mrb[121].mxu1  ;;  %v14494_v63 = vld [vmem:[#allocation97_spill] sm:$0xff] }
0x2d5e   : > { %v8482_v20 = vadd.f32 %v8481_v2, %v14484_v42 }
0x2d60   : > { %v11302_v6 = vpack.c.bf16 %v8487_v28, %v8482_v20  ;;  %v10717_v39 = vpop.f32.mrb[122].mxu1 }
0x2d61   : > { %v8497_v52 = vadd.f32 %v10717_v39, %v14485_v4  ;;  %v8491_v23 = vpop.f32.mrb[123].mxu1  ;;  %v8732_v39 = vld [vmem:[%s14280_s6 + $0x10] sm:$0xff]  ;;  %v8733_v4 = vld [vmem:[%s14280_s6 + $0x18] sm:$0xff] }
0x2d62   : > { %v8492_v14 = vadd.f32 %v8491_v23, %v14486_v24  ;;  %11303 = vmatprep.subr.bf16.mxu0 %v11302_v6  ;;  %v8735_v23 = vld [vmem:[%s14280_s6 + $0x28] sm:$0xff]  ;;  %v8736_v24 = vld [vmem:[%s14280_s6 + $0x30] sm:$0xff] }
0x2d63   : > { %11305 = vmatpush3.bf16.msra.mxu0 %v11302_v6  ;;  %v8731_v6 = vld [vmem:[%s14280_s6 + $0x8] sm:$0xff] }
0x2d64   : > { %v11306_v26 = vpack.c.bf16 %v8497_v52, %v8492_v14 }
0x2d66   : > { %11307 = vmatprep.subr.bf16.mxu0 %v11306_v26 }
0x2d67   : > { %11309 = vmatpush3.bf16.msra.mxu0 %v11306_v26  ;;  %v8744_v26 = vpop.permute.xlu1 %8743 }
0x2d6a   : > { %10727 = vmatmul.mubr.msk.f32.vlgmr.msra.gmra.mrb[108].mxu0 %vm569_vm1, %v11936_v19 }
0x2d6b   : > { %10729 = vmatprep.mubr.msk.f32.mxu0 %vm569_vm1, %v11937_v61 }
0x2d6e   : > { %10730 = vmatmul.mubr.msk.f32.gmra.mrb[110].mxu0 %vm569_vm1, %v11938_v15 }
0x2d6f   : > { %10754 = vmatprep.mubr.msk.f32.mxu0 %vm569_vm1, %v8730_v37 }
0x2e3d   : > { %v10728_v53 = vpop.f32.mrb[108].mxu0 }
0x2e3e   : > { %v8586_v38 = vsub.f32 %v8487_v28, %v10728_v53  ;;  %v8566_v56 = vpop.f32.mrb[109].mxu0 }
0x2e3f   : > { %v8585_v1 = vsub.f32 %v8482_v20, %v8566_v56 }
0x2e40   : > { %v8590_v22 = vmul.f32 %v8586_v38, %v8586_v38 }
0x2e41   : > { %v8589_v58 = vmul.f32 %v8585_v1, %v8585_v1  ;;  %v10731_v33 = vpop.f32.mrb[110].mxu0 }
0x2e42   : > { %v8588_v9 = vsub.f32 %v8497_v52, %v10731_v33  ;;  %v8576_v13 = vpop.f32.mrb[111].mxu0  ;;  %v8734_v52 = vld [vmem:[%s14280_s6 + $0x20] sm:$0xff] }
0x2e43   : > { %v8587_v62 = vsub.f32 %v8492_v14, %v8576_v13  ;;  %v11310_v49 = vpack.c.bf16 %v8590_v22, %v8589_v58  ;;  %v8737_v14 = vld [vmem:[%s14280_s6 + $0x38] sm:$0xff] }
0x2e44   : > { %v8592_v51 = vmul.f32 %v8588_v9, %v8588_v9 }
0x2e45   : > { %v8591_v29 = vmul.f32 %v8587_v62, %v8587_v62  ;;  %11311 = vmatprep.subr.bf16.mxu1 %v11310_v49 }
0x2e46   : > { %11313 = vmatpush3.bf16.msra.mxu1 %v11310_v49 }
0x2e47   : > { %v11314_v36 = vpack.c.bf16 %v8592_v51, %v8591_v29 }
0x2e49   : > { %11315 = vmatprep.subr.bf16.mxu1 %v11314_v36 }
0x2e4a   : > { %11317 = vmatpush3.bf16.msra.mxu1 %v11314_v36 }
0x2e4d   : > { %10741 = vmatmul.mubr.msk.f32.vlgmr.msra.gmra.mrb[124].mxu1 %vm569_vm1, %v11936_v19  ;;  %v8740_v19 = vpop.permute.xlu0 %8739 }
0x2e4e   : > { %10743 = vmatprep.mubr.msk.f32.mxu1 %vm569_vm1, %v11937_v61  ;;  %v8752_v61 = vpop.permute.xlu1 %8751 }
0x2e51   : > { %10744 = vmatmul.mubr.msk.f32.gmra.mrb[126].mxu1 %vm569_vm1, %v11938_v15  ;;  %v8748_v53 = vpop.permute.xlu0 %8747 }
0x2f20   : > { %v10742_v10 = vpop.f32.mrb[124].mxu1 }
0x2f21   : > { %v8665_v41 = vadd.f32 1e-05, %v10742_v10  ;;  %v8659_v32 = vpop.f32.mrb[125].mxu1 }
0x2f22   : > { %v8660_v18 = vadd.f32 1e-05, %v8659_v32 }
0x2f23   : > { %11904 = vrsqrt.f32 %v8665_v41 }
0x2f24   : > { %11906 = vrsqrt.f32 %v8660_v18  ;;  %v10745_v11 = vpop.f32.mrb[126].mxu1 }
0x2f25   : > { %v8675_v7 = vadd.f32 1e-05, %v10745_v11  ;;  %v8669_v17 = vpop.f32.mrb[127].mxu1 }
0x2f26   : > { %v8670_v50 = vadd.f32 1e-05, %v8669_v17 }
0x2f27   : > { %11908 = vrsqrt.f32 %v8675_v7 }
0x2f28   : > { %11910 = vrsqrt.f32 %v8670_v50 }
0x2f2d   : > { %v11905_v8 = vpop.eup %11904 }
0x2f2e   : > { %v11907_v21 = vpop.eup %11906  ;;  %v8683_v35 = vmul.f32 %v11905_v8, %v8586_v38 }
0x2f2f   : > { %v8682_v40 = vmul.f32 %v11907_v21, %v8585_v1 }
0x2f30   : > { %v8703_v45 = vmul.f32 %v14487_v57, %v8683_v35 }
0x2f31   : > { %v11909_v59 = vpop.eup %11908  ;;  %v8702_v31 = vmul.f32 %v14488_v47, %v8682_v40 }
0x2f32   : > { %v11911_v0 = vpop.eup %11910  ;;  %v8723_v30 = vadd.f32 %v14489_v46, %v8703_v45  ;;  %v8685_v60 = vmul.f32 %v11909_v59, %v8588_v9  ;;  %v8760_v9 = vpop.permute.xlu1 %8759 }
0x2f33   : > { %v8722_v43 = vadd.f32 %v14490_v16, %v8702_v31  ;;  %v8684_v3 = vmul.f32 %v11911_v0, %v8587_v62  ;;  %v8756_v62 = vpop.permute.xlu0 %8755 }
0x2f34   : > { %v8727_v27 = vmax.f32 %v8723_v30, 0.0  ;;  %v8705_v5 = vmul.f32 %v14491_v44, %v8685_v60 }
0x2f35   : > { %v8726_v34 = vmax.f32 %v8722_v43, 0.0  ;;  %v8704_v12 = vmul.f32 %v14492_v55, %v8684_v3 }
0x2f36   : > { %v8725_v48 = vadd.f32 %v14493_v25, %v8705_v5  ;;  %v8768_v37 = vpop.permute.xlu1 %8767 }
0x2f37   : > { %v11318_v54 = vpack.c.bf16 %v8727_v27, %v8726_v34  ;;  %v8724_v28 = vadd.f32 %v14494_v63, %v8704_v12  ;;  %v8764_v41 = vpop.permute.xlu0 %8763 }
0x2f38   : > { %v8729_v2 = vmax.f32 %v8725_v48, 0.0 }
0x2f39   : > { %11319 = vmatprep.subr.bf16.mxu0 %v11318_v54  ;;  %v8728_v42 = vmax.f32 %v8724_v28, 0.0 }
0x2f3a   : > { %11321 = vmatpush3.bf16.msra.mxu0 %v11318_v54 }
0x2f3b   : > { %v11322_v20 = vpack.c.bf16 %v8729_v2, %v8728_v42 }
0x2f3d   : > { %11323 = vmatprep.subr.bf16.mxu0 %v11322_v20 }
0x2f3e   : > { %11325 = vmatpush3.bf16.msra.mxu0 %v11322_v20 }
0x2f41   : > { %10755 = vmatmul.mubr.msk.f32.vlgmr.msra.gmra.mrb[112].mxu0 %vm569_vm1, %v8731_v6 }
0x2f42   : > { %10757 = vmatprep.mubr.msk.f32.mxu0 %vm569_vm1, %v8732_v39 }
0x2f45   : > { %10758 = vmatmul.mubr.msk.f32.gmra.mrb[114].mxu0 %vm569_vm1, %v8733_v4 }
0x2f46   : > { %10760 = vmatprep.mubr.msk.f32.mxu0 %vm569_vm1, %v8734_v52 }
0x2f49   : > { %10761 = vmatmul.mubr.msk.f32.gmra.mrb[116].mxu0 %vm569_vm1, %v8735_v23 }
0x2f4a   : > { %10763 = vmatprep.mubr.msk.f32.mxu0 %vm569_vm1, %v8736_v24 }
0x2f4d   : > { %10764 = vmatmul.mubr.msk.f32.gmra.mrb[118].mxu0 %vm569_vm1, %v8737_v14 }
0x3014   : > { %v10756_v15 = vpop.f32.mrb[112].mxu0 }
0x3015   : > { %v8866_v38 = vadd.f32 %v10756_v15, %v8744_v26  ;;  %v8860_v56 = vpop.f32.mrb[113].mxu0 }
0x3016   : > { %v8861_v1 = vadd.f32 %v8860_v56, %v8740_v19 }
0x3017   : > { %9286 = vst [vmem:[%s13754_s19 + $0x18] sm:$0xff] %v8866_v38 }
0x3018   : > { %9285 = vst [vmem:[%s13754_s19 + $0x8] sm:$0xff] %v8861_v1  ;;  %v10759_v22 = vpop.f32.mrb[114].mxu0 }
0x3019   : > { %v8876_v58 = vadd.f32 %v10759_v22, %v8752_v61  ;;  %v8870_v33 = vpop.f32.mrb[115].mxu0 }
0x301a   : > { %v8871_v13 = vadd.f32 %v8870_v33, %v8748_v53 }
0x301b   : > { %9288 = vst [vmem:[%s13754_s19 + $0x38] sm:$0xff] %v8876_v58 }
0x301c   : > { %9287 = vst [vmem:[%s13754_s19 + $0x28] sm:$0xff] %v8871_v13  ;;  %v10762_v49 = vpop.f32.mrb[116].mxu0 }
0x301d   : > { %v8886_v51 = vadd.f32 %v10762_v49, %v8760_v9  ;;  %v8880_v29 = vpop.f32.mrb[117].mxu0 }
0x301e   : > { %v8881_v36 = vadd.f32 %v8880_v29, %v8756_v62 }
0x301f   : > { %9290 = vst [vmem:[%s13754_s19 + $0x58] sm:$0xff] %v8886_v51 }
0x3020   : > { %9289 = vst [vmem:[%s13754_s19 + $0x48] sm:$0xff] %v8881_v36  ;;  %v10765_v10 = vpop.f32.mrb[118].mxu0 }
0x3021   : > { %v8896_v32 = vadd.f32 %v10765_v10, %v8768_v37  ;;  %v8890_v18 = vpop.f32.mrb[119].mxu0 }
0x3022   : > { %v8891_v11 = vadd.f32 %v8890_v18, %v8764_v41 }
0x3023   : > { %9292 = vst [vmem:[%s13754_s19 + $0x78] sm:$0xff] %v8896_v32 }
0x3024   : > { %9291 = vst [vmem:[%s13754_s19 + $0x68] sm:$0xff] %v8891_v11 }
0x3025   : > { %12038 = shalt.err (!%p12035_p5)
}
0x3026   : > { %s12039_s19 = scalar_lea.hbm %s14226_s23, 2048  ;;  %s12043_s13 = scalar_lea.hbm %s14282_s8, 4096 }
0x3027   : > { %p12040_p11 = scmp.ne.s32.totalorder %s14226_s23, %s12039_s19  ;;  %p12044_p6 = scmp.lt.u32.totalorder %s14226_s23, %s14282_s8 }
0x3028   : > { %p12045_p8 = scmp.lt.u32.totalorder %s12043_s13, %s12039_s19  ;;  %p12047_p3 = scmp.lt.u32.totalorder %s12039_s19, %s14226_s23 }
0x3029   : > { %p12041_p12 = pnand %p12040_p11, %p14495_p9 }
0x302a   : > { %p12046_p13 = por %p12045_p8, %p12044_p6 }
0x302b   : > { %p12042_p4 = pneg %p12041_p12 }
0x302c   : > { %p12048_p10 = por %p12047_p3, %p12046_p13 }
0x302e   : > { %p12049_p1 = pnand %p12048_p10, %p12042_p4 }
0x3030   : > { %12052 = shalt.err (!%p12049_p1)
}
0x3031   : > { %s12136_s18 = smov 256   ;;  %s12137_s25 = smov 512  }
0x3032   : > { %s12138_s20 = smov 16  }
0x3033   : > { %11338 = dma.vmem_to_hbm [thread:$0]  (%p14495_p9), %s14228_s24, 2048, %s14226_s23, %s8909_s9, %s12136_s18, %s12137_s25, %s12138_s20  }
0x3034 PF: > { %s14496_s16 = sld [smem:[#allocation14_spill]]  ;;  %s8937_s12 = sand.u32 1, %s12083_s27  }
0x3035   : > { %p14498_p7 = scmp.ge.s32.totalorder %s12095_s30, 2  ;;  %s8938_s15 = scalar_lea.sflag [#allocation4], %s8937_s12 }
0x303a   : > { %p14497_p0 = scmp.ne.s32.totalorder %s14496_s16, 0 }
0x303c   : > { %p11352_p2 = pnand %p14498_p7, %p14497_p0 }
0x303e   : > { %12078 = dma.done.wait (!%p11352_p2), %s8938_s15, 2048  }
0x303f   : > { %12080 = vsyncadd (!%p11352_p2), %s8938_s15, 4294965248  ;;  %s14499_s30 = sld [smem:[#allocation12_spill]]  ;;  %s14500_s26 = sld [smem:[#allocation13_spill]] }
0x3040   : > { %s14501_s27 = smov %s12087_s28  ;;  %s14502_s28 = smov %s12091_s29 }
0x3045   : > { %p22_p5 = scmp.ge.s32.totalorder %s14499_s30, 4   ;;  %s14503_s29 = smov %s14500_s26 }
0x3047   :  { %24 = sbr.rel (!%p22_p5) target bundleno = 6 (0x6), region = 126 }
0x304e   :  { %8943 = vsyncpa [#allocation3], 1 }
0x304f   :  { %8945 = vsyncpa [#allocation3 + $0x1], 1 }
0x3050   :  { %8946 = vsyncpa [#allocation6], 1 }
0x3051   :  { %8947 = vsyncpa [#allocation4], 1 }
0x3052   :  { %8949 = vsyncpa [#allocation4 + $0x1], 1 }

</bundles_post_ra>
